<compile_context>
chip_gen: v7x
topology: tpu7x:2x2x1
jax: 0.10.0
libtpu: 0.0.40
codegen_flags: <defaults>
</compile_context>

<pallas_src>
import jax
import jax.numpy as jnp
from jax.experimental import pallas as pl
from jax.experimental.pallas import tpu as pltpu

CPAD = 128   # lane-padded channel width (conv1/conv2/fc2 outputs)
N1P = 512    # lane-padded fc1 output width (500 -> 512)


# ----------------------------------------------------------------------------
# helpers
# ----------------------------------------------------------------------------
def _round_up(x, m):
    return (x + m - 1) // m * m


def _pick_group(b, target):
    """Largest divisor of b that is <= target while keeping >=2 grid steps."""
    cap = target if b == 1 else min(target, max(1, b // 2))
    g = 1
    for d in range(1, min(cap, b) + 1):
        if b % d == 0:
            g = d
    return g


def _fc_tiles(m, max_tm=512):
    """(padded_M, tile_M): tile <= 512, multiple of 8, >=2 grid steps if possible."""
    mp = _round_up(m, 8)
    tm = min(max_tm, mp)
    if mp > 8:  # split across >=2 tiles so both v7x TensorCores are used
        tm = min(tm, max(8, _round_up((mp + 1) // 2, 8)))
    mp = _round_up(mp, tm)
    return mp, tm


# ----------------------------------------------------------------------------
# conv1 (1 -> 20, 5x5) + ReLU + 2x2 max-pool, fused epilogue
# ----------------------------------------------------------------------------
def _im2col_conv1(x):
    """x: [B, 28, 28] bf16 -> patches [B*576, 25].

    Patch rows are ordered (img, h, w%2, w//2): within each output row h the
    12 even-w windows come first, then the 12 odd-w windows, so the in-kernel
    W-pair pooling is a max of two contiguous row blocks.
    """
    B = x.shape[0]
    cols = [x[:, i:i + 24, j:j + 24] for i in range(5) for j in range(5)]
    p = jnp.stack(cols, axis=-1)                    # [B, 24, 24, 25]  (b, h, w, tap)
    p = p.reshape(B, 24, 12, 2, 25)                 # (b, h, w//2, w%2, tap)
    p = jnp.transpose(p, (0, 1, 3, 2, 4))           # (b, h, w%2, w//2, tap)
    return p.reshape(B * 576, 25)


def _conv1_pool_kernel(p_ref, w_ref, b_ref, o_ref):
    # p: (G*576, 25) bf16 patches (rows ordered (g, h, w%2, w//2))
    # w: (25, 128) bf16   b: (1, 128) f32   o: (G, 12, 12, 128) bf16
    G = o_ref.shape[0]
    acc = jnp.dot(p_ref[...], w_ref[...], preferred_element_type=jnp.float32)
    acc = jnp.maximum(acc + b_ref[...], 0.0)                  # (G*576, 128)
    # H pair: regroup rows as (g*12+ho, hi, 24) -- whole-tile reshape.
    a4 = acc.reshape(G * 12, 2, 24, 128)
    hm = jnp.maximum(a4[:, 0], a4[:, 1])                      # (G*12, 24, 128)
    # W pair: rows within each 24 are (w%2, w//2): halves are contiguous.
    pooled = jnp.maximum(hm[:, :12, :], hm[:, 12:, :])        # (G*12, 12, 128)
    o_ref[...] = pooled.reshape(G, 12, 12, 128).astype(o_ref.dtype)


def conv1_relu_pool(x_img, w1, b1):
    """conv1 + ReLU + 2x2 max-pool; returns [B, 12, 12, 128] bf16 (ch padded)."""
    B = x_img.shape[0]
    g = _pick_group(B, 4)
    patches = _im2col_conv1(x_img)                            # [B*576, 25] bf16
    return pl.pallas_call(
        _conv1_pool_kernel,
        out_shape=jax.ShapeDtypeStruct((B, 12, 12, CPAD), jnp.bfloat16),
        grid=(B // g,),
        in_specs=[
            pl.BlockSpec((g * 576, 25), lambda i: (i, 0)),    # patches: tiled over imgs
            pl.BlockSpec((25, CPAD), lambda i: (0, 0)),       # weight: resident
            pl.BlockSpec((1, CPAD), lambda i: (0, 0)),        # bias: resident
        ],
        out_specs=pl.BlockSpec((g, 12, 12, CPAD), lambda i: (i, 0, 0, 0)),
        compiler_params=pltpu.CompilerParams(
            dimension_semantics=("parallel",)),
    )(patches, w1, b1)


# ----------------------------------------------------------------------------
# conv2 (20 -> 50, 5x5) with fused im2col + ReLU + 2x2 max-pool
# ----------------------------------------------------------------------------
def _conv2_pool_kernel(x_ref, w_ref, b_ref, o_ref, hm_ref):
    # x: (G, 12, 12, 128) bf16   w: (25, 128, 128) bf16   b: (1, 128) f32
    # o: (G*16, 128) bf16        hm: (G*32, 128) f32 scratch (H-pooled rows)
    G = x_ref.shape[0]
    acc = jnp.zeros((G * 64, 128), jnp.float32)
    for t in range(25):                                       # 25 shifted-window dots
        ki, kj = divmod(t, 5)
        xt = x_ref[:, ki:ki + 8, kj:kj + 8, :].reshape(G * 64, 128)
        acc = acc + jnp.dot(xt, w_ref[t], preferred_element_type=jnp.float32)
    acc = jnp.maximum(acc + b_ref[...], 0.0)                  # (G*64, 128), rows (g,h,w)
    # H pair: regroup rows as (g*4+ho, hi, 8) -- whole-tile reshape.
    a4 = acc.reshape(G * 4, 2, 8, 128)
    hm_ref[...] = jnp.maximum(a4[:, 0], a4[:, 1]).reshape(G * 32, 128)
    # W pair: even/odd rows of the scratch, lane-dense 128-wide max + store.
    even = hm_ref[pl.ds(0, G * 16, 2), :]
    odd = hm_ref[pl.ds(1, G * 16, 2), :]
    o_ref[...] = jnp.maximum(even, odd).astype(o_ref.dtype)


def conv2_relu_pool(h1, w2, b2):
    """conv2 (fused im2col) + ReLU + 2x2 max-pool.

    h1: [B, 12, 12, 128] bf16 -> [B*16, 128] bf16, whose free reshape to
    [B, 2048] is the fc1 input (flatten order is folded into wfc1).
    """
    B = h1.shape[0]
    g = _pick_group(B, 8)
    return pl.pallas_call(
        _conv2_pool_kernel,
        out_shape=jax.ShapeDtypeStruct((B * 16, CPAD), jnp.bfloat16),
        grid=(B // g,),
        in_specs=[
            pl.BlockSpec((g, 12, 12, CPAD), lambda i: (i, 0, 0, 0)),
            pl.BlockSpec((25, CPAD, CPAD), lambda i: (0, 0, 0)),   # weight: resident
            pl.BlockSpec((1, CPAD), lambda i: (0, 0)),             # bias: resident
        ],
        out_specs=pl.BlockSpec((g * 16, CPAD), lambda i: (i, 0)),
        scratch_shapes=[pltpu.VMEM((g * 32, CPAD), jnp.float32)],
        compiler_params=pltpu.CompilerParams(
            dimension_semantics=("parallel",)),
    )(h1, w2, b2)


# ----------------------------------------------------------------------------
# fc1 (800 -> 500) + ReLU + fc2 (500 -> 10), fused
# ----------------------------------------------------------------------------
def _fc_fused_kernel(x_ref, w1_ref, b1_ref, w2_ref, b2_ref, o_ref):
    h = jnp.dot(x_ref[...], w1_ref[...], preferred_element_type=jnp.float32)
    h = jnp.maximum(h + b1_ref[...], 0.0)
    o = jnp.dot(h.astype(jnp.bfloat16), w2_ref[...],
                preferred_element_type=jnp.float32)
    o_ref[...] = (o + b2_ref[...]).astype(o_ref.dtype)


def fc_fused(x, w1, b1, w2, b2):
    M, K = x.shape
    K1, N1 = w1.shape
    N1b, N2 = w2.shape
    assert K == K1 and N1 == N1b and N1 % 128 == 0 and N2 % 128 == 0
    Mp, tm = _fc_tiles(M)
    if Mp != M:
        x = jnp.pad(x, ((0, Mp - M), (0, 0)))
    out = pl.pallas_call(
        _fc_fused_kernel,
        out_shape=jax.ShapeDtypeStruct((Mp, N2), jnp.float32),
        grid=(Mp // tm,),
        in_specs=[
            pl.BlockSpec((tm, K), lambda i: (i, 0)),
            pl.BlockSpec((K, N1), lambda i: (0, 0)),
            pl.BlockSpec((1, N1), lambda i: (0, 0)),
            pl.BlockSpec((N1, N2), lambda i: (0, 0)),
            pl.BlockSpec((1, N2), lambda i: (0, 0)),
        ],
        out_specs=pl.BlockSpec((tm, N2), lambda i: (i, 0)),
        compiler_params=pltpu.CompilerParams(
            dimension_semantics=("parallel",)),
    )(x, w1, b1, w2, b2)
    return out[:M] if Mp != M else out


# ----------------------------------------------------------------------------
# Full forward pass + params
# ----------------------------------------------------------------------------
def net_forward(x_nchw, params):
    B = x_nchw.shape[0]
    x = x_nchw[:, 0, :, :].astype(jnp.bfloat16)                    # [B, 28, 28]
    h = conv1_relu_pool(x, params["w1"], params["b1"])             # [B,12,12,128]
    h = conv2_relu_pool(h, params["w2"], params["b2"])             # [B*16, 128]
    flat = h.reshape(B, 4 * 4 * CPAD)                              # [B, 2048] (free)
    out = fc_fused(flat, params["wfc1"], params["bfc1"],
                   params["wfc2"], params["bfc2"])                 # [B, 128] f32
    return out[:, :10]


def init_params(key):
    ks = jax.random.split(key, 8)
    # Deterministic small-scale init; shapes mirror the PyTorch module.
    w1_t = 0.1 * jax.random.normal(ks[0], (20, 1, 5, 5), jnp.float32)
    b1 = 0.1 * jax.random.normal(ks[1], (20,), jnp.float32)
    w2_t = 0.1 * jax.random.normal(ks[2], (50, 20, 5, 5), jnp.float32)
    b2 = 0.1 * jax.random.normal(ks[3], (50,), jnp.float32)
    wfc1_t = 0.05 * jax.random.normal(ks[4], (500, 800), jnp.float32)   # [out, in]
    bfc1 = 0.05 * jax.random.normal(ks[5], (500,), jnp.float32)
    wfc2_t = 0.05 * jax.random.normal(ks[6], (10, 500), jnp.float32)    # [out, in]
    bfc2 = 0.05 * jax.random.normal(ks[7], (10,), jnp.float32)

    def pad_bias(b, n):
        return jnp.pad(b, (0, n - b.shape[0])).reshape(1, n).astype(jnp.float32)

    # conv1 weight: [20,1,5,5] -> tap-major (25, 128), lane-padded, bf16.
    w1 = jnp.transpose(w1_t, (2, 3, 1, 0)).reshape(25, 20)
    w1 = jnp.pad(w1, ((0, 0), (0, CPAD - 20))).astype(jnp.bfloat16)

    # conv2 weight: [50,20,5,5] -> (25 taps, 128 cin_pad, 128 cout_pad), bf16.
    w2 = jnp.transpose(w2_t, (2, 3, 1, 0))                               # [5,5,20,50]
    w2 = jnp.zeros((5, 5, CPAD, CPAD), jnp.float32).at[:, :, :20, :50].set(w2)
    w2 = w2.reshape(25, CPAD, CPAD).astype(jnp.bfloat16)

    # fc1: fold PyTorch's NCHW flatten order (idx = c*16 + h*4 + w) into the
    # weight, padded to the 2048-wide (h, w, 128-ch) input / 512-wide output.
    w1m = wfc1_t.T.reshape(50, 4, 4, 500)                      # [c, h, w, n]
    w1m = jnp.transpose(w1m, (1, 2, 0, 3))                     # [h, w, c, n]
    wfc1 = jnp.zeros((4, 4, CPAD, N1P), jnp.float32).at[:, :, :50, :500].set(w1m)
    wfc1 = wfc1.reshape(4 * 4 * CPAD, N1P).astype(jnp.bfloat16)

    wfc2 = jnp.zeros((N1P, CPAD), jnp.float32).at[:500, :10].set(wfc2_t.T)
    wfc2 = wfc2.astype(jnp.bfloat16)

    return {
        "w1": w1, "b1": pad_bias(b1, CPAD),
        "w2": w2, "b2": pad_bias(b2, CPAD),
        "wfc1": wfc1, "bfc1": pad_bias(bfc1, N1P),
        "wfc2": wfc2, "bfc2": pad_bias(bfc2, CPAD),
    }


if __name__ == "__main__":
    key = jax.random.PRNGKey(0)
    kx, kp = jax.random.split(key)
    # Architecture requires 28x28 single-channel input (4*4*50 after two conv/pool).
    x = jax.random.normal(kx, (2, 1, 28, 28), jnp.float32)
    params = init_params(kp)

    fwd = jax.jit(net_forward)
    out = fwd(x, params)
    jax.block_until_ready(out)
    assert out.shape == (2, 10) and out.dtype == jnp.float32
    print("KERNEL_OK")
</pallas_src>

<mosaic_0001>
module attributes {stable_mosaic.version = 11 : i64} {
  func.func @_conv1_pool_kernel(%arg0: i32, %arg1: memref<576x25xbf16, #tpu.memory_space<vmem>>, %arg2: memref<25x128xbf16, #tpu.memory_space<vmem>>, %arg3: memref<1x128xf32, #tpu.memory_space<vmem>>, %arg4: memref<1x12x12x128xbf16, #tpu.memory_space<vmem>>) attributes {dimension_semantics = [#tpu.dimension_semantics<parallel>], iteration_bounds = array<i64: 2>, scalar_prefetch = 0 : i64, scratch_operands = 0 : i64, tpu.core_type = #tpu.core_type<tc>, window_params = [{transform_indices = @transform_0, window_bounds = array<i64: 576, 25>}, {pipeline_mode = #tpu.pipeline_mode<synchronous>, transform_indices = @transform_1, window_bounds = array<i64: 25, 128>}, {pipeline_mode = #tpu.pipeline_mode<synchronous>, transform_indices = @transform_2, window_bounds = array<i64: 1, 128>}, {transform_indices = @transform_3, window_bounds = array<i64: 1, 12, 12, 128>}]} {
    %c0 = arith.constant 0 : index
    %c0_0 = arith.constant 0 : index
    %0 = vector.load %arg1[%c0, %c0_0] : memref<576x25xbf16, #tpu.memory_space<vmem>>, vector<576x25xbf16>
    %c0_1 = arith.constant 0 : index
    %c0_2 = arith.constant 0 : index
    %1 = vector.load %arg2[%c0_1, %c0_2] : memref<25x128xbf16, #tpu.memory_space<vmem>>, vector<25x128xbf16>
    %cst = arith.constant dense<0.000000e+00> : vector<576x128xf32>
    %2 = tpu.matmul %0, %1, %cst {dimension_numbers = #tpu.dot_dimension_numbers<[1], [0], [0], [1], [0, 0, 1, 1], [], []>} : vector<576x25xbf16>, vector<25x128xbf16>, vector<576x128xf32> -> vector<576x128xf32>
    %c0_3 = arith.constant 0 : index
    %c0_4 = arith.constant 0 : index
    %3 = vector.load %arg3[%c0_3, %c0_4] : memref<1x128xf32, #tpu.memory_space<vmem>>, vector<1x128xf32>
    %4 = vector.broadcast %3 : vector<1x128xf32> to vector<576x128xf32>
    %5 = arith.addf %2, %4 : vector<576x128xf32>
    %cst_5 = arith.constant 0.000000e+00 : f32
    %6 = vector.broadcast %cst_5 : f32 to vector<576x128xf32>
    %7 = arith.maximumf %5, %6 : vector<576x128xf32>
    %8 = vector.shape_cast %7 : vector<576x128xf32> to vector<12x2x24x128xf32>
    %9 = vector.extract_strided_slice %8 {offsets = [0, 0, 0, 0], sizes = [12, 1, 24, 128], strides = [1, 1, 1, 1]} : vector<12x2x24x128xf32> to vector<12x1x24x128xf32>
    %10 = vector.shape_cast %9 : vector<12x1x24x128xf32> to vector<12x24x128xf32>
    %11 = vector.extract_strided_slice %8 {offsets = [0, 1, 0, 0], sizes = [12, 1, 24, 128], strides = [1, 1, 1, 1]} : vector<12x2x24x128xf32> to vector<12x1x24x128xf32>
    %12 = vector.shape_cast %11 : vector<12x1x24x128xf32> to vector<12x24x128xf32>
    %13 = arith.maximumf %10, %12 : vector<12x24x128xf32>
    %14 = vector.extract_strided_slice %13 {offsets = [0, 0, 0], sizes = [12, 12, 128], strides = [1, 1, 1]} : vector<12x24x128xf32> to vector<12x12x128xf32>
    %15 = vector.extract_strided_slice %13 {offsets = [0, 12, 0], sizes = [12, 12, 128], strides = [1, 1, 1]} : vector<12x24x128xf32> to vector<12x12x128xf32>
    %16 = arith.maximumf %14, %15 : vector<12x12x128xf32>
    %17 = vector.shape_cast %16 : vector<12x12x128xf32> to vector<1x12x12x128xf32>
    %18 = arith.truncf %17 : vector<1x12x12x128xf32> to vector<1x12x12x128xbf16>
    %c0_6 = arith.constant 0 : index
    %c0_7 = arith.constant 0 : index
    %c0_8 = arith.constant 0 : index
    %c0_9 = arith.constant 0 : index
    %19 = vector.load %arg4[%c0_6, %c0_7, %c0_8, %c0_9] : memref<1x12x12x128xbf16, #tpu.memory_space<vmem>>, vector<1x12x12x128xbf16>
    tpu.vector_store %arg4[%c0_6, %c0_7, %c0_8, %c0_9], %18 {strides = array<i32>} : memref<1x12x12x128xbf16, #tpu.memory_space<vmem>>, vector<1x12x12x128xbf16>,
    return
  }
  func.func @transform_0(%arg0: i32) -> (i32, i32) {
    %c0_i32 = arith.constant 0 : i32
    %c0_i32_0 = arith.constant 0 : i32
    return %arg0, %c0_i32 : i32, i32
  }
  func.func @transform_1(%arg0: i32) -> (i32, i32) {
    %c0_i32 = arith.constant 0 : i32
    %c0_i32_0 = arith.constant 0 : i32
    %c0_i32_1 = arith.constant 0 : i32
    return %c0_i32, %c0_i32_0 : i32, i32
  }
  func.func @transform_2(%arg0: i32) -> (i32, i32) {
    %c0_i32 = arith.constant 0 : i32
    %c0_i32_0 = arith.constant 0 : i32
    %c0_i32_1 = arith.constant 0 : i32
    return %c0_i32, %c0_i32_0 : i32, i32
  }
  func.func @transform_3(%arg0: i32) -> (i32, i32, i32, i32) {
    %c0_i32 = arith.constant 0 : i32
    %c0_i32_0 = arith.constant 0 : i32
    %c0_i32_1 = arith.constant 0 : i32
    %c0_i32_2 = arith.constant 0 : i32
    return %arg0, %c0_i32, %c0_i32_0, %c0_i32_1 : i32, i32, i32, i32
  }
}

module attributes {stable_mosaic.version = 11 : i64} {
  func.func @_conv2_pool_kernel(%arg0: i32, %arg1: memref<1x12x12x128xbf16, #tpu.memory_space<vmem>>, %arg2: memref<25x128x128xbf16, #tpu.memory_space<vmem>>, %arg3: memref<1x128xf32, #tpu.memory_space<vmem>>, %arg4: memref<16x128xbf16, #tpu.memory_space<vmem>>, %arg5: memref<32x128xf32, #tpu.memory_space<vmem>>) attributes {dimension_semantics = [#tpu.dimension_semantics<parallel>], iteration_bounds = array<i64: 2>, scalar_prefetch = 0 : i64, scratch_operands = 1 : i64, tpu.core_type = #tpu.core_type<tc>, window_params = [{transform_indices = @transform_0, window_bounds = array<i64: 1, 12, 12, 128>}, {pipeline_mode = #tpu.pipeline_mode<synchronous>, transform_indices = @transform_1, window_bounds = array<i64: 25, 128, 128>}, {pipeline_mode = #tpu.pipeline_mode<synchronous>, transform_indices = @transform_2, window_bounds = array<i64: 1, 128>}, {transform_indices = @transform_3, window_bounds = array<i64: 16, 128>}]} {
    %cst = arith.constant 0.000000e+00 : f32
    %0 = vector.broadcast %cst : f32 to vector<64x128xf32>
    %c0 = arith.constant 0 : index
    %c0_0 = arith.constant 0 : index
    %c0_1 = arith.constant 0 : index
    %c0_2 = arith.constant 0 : index
    %1 = vector.load %arg1[%c0, %c0_0, %c0_1, %c0_2] : memref<1x12x12x128xbf16, #tpu.memory_space<vmem>>, vector<1x8x8x128xbf16>
    %2 = vector.shape_cast %1 : vector<1x8x8x128xbf16> to vector<64x128xbf16>
    %c0_3 = arith.constant 0 : index
    %c0_4 = arith.constant 0 : index
    %c0_5 = arith.constant 0 : index
    %3 = vector.load %arg2[%c0_3, %c0_4, %c0_5] : memref<25x128x128xbf16, #tpu.memory_space<vmem>>, vector<1x128x128xbf16>
    %4 = vector.shape_cast %3 : vector<1x128x128xbf16> to vector<128x128xbf16>
    %cst_6 = arith.constant dense<0.000000e+00> : vector<64x128xf32>
    %5 = tpu.matmul %2, %4, %cst_6 {dimension_numbers = #tpu.dot_dimension_numbers<[1], [0], [0], [1], [0, 0, 1, 1], [], []>} : vector<64x128xbf16>, vector<128x128xbf16>, vector<64x128xf32> -> vector<64x128xf32>
    %6 = arith.addf %0, %5 : vector<64x128xf32>
    %c0_7 = arith.constant 0 : index
    %c0_8 = arith.constant 0 : index
    %c1 = arith.constant 1 : index
    %c0_9 = arith.constant 0 : index
    %7 = vector.load %arg1[%c0_7, %c0_8, %c1, %c0_9] : memref<1x12x12x128xbf16, #tpu.memory_space<vmem>>, vector<1x8x8x128xbf16>
    %8 = vector.shape_cast %7 : vector<1x8x8x128xbf16> to vector<64x128xbf16>
    %c1_10 = arith.constant 1 : index
    %c0_11 = arith.constant 0 : index
    %c0_12 = arith.constant 0 : index
    %9 = vector.load %arg2[%c1_10, %c0_11, %c0_12] : memref<25x128x128xbf16, #tpu.memory_space<vmem>>, vector<1x128x128xbf16>
    %10 = vector.shape_cast %9 : vector<1x128x128xbf16> to vector<128x128xbf16>
    %cst_13 = arith.constant dense<0.000000e+00> : vector<64x128xf32>
    %11 = tpu.matmul %8, %10, %cst_13 {dimension_numbers = #tpu.dot_dimension_numbers<[1], [0], [0], [1], [0, 0, 1, 1], [], []>} : vector<64x128xbf16>, vector<128x128xbf16>, vector<64x128xf32> -> vector<64x128xf32>
    %12 = arith.addf %6, %11 : vector<64x128xf32>
    %c0_14 = arith.constant 0 : index
    %c0_15 = arith.constant 0 : index
    %c2 = arith.constant 2 : index
    %c0_16 = arith.constant 0 : index
    %13 = vector.load %arg1[%c0_14, %c0_15, %c2, %c0_16] : memref<1x12x12x128xbf16, #tpu.memory_space<vmem>>, vector<1x8x8x128xbf16>
    %14 = vector.shape_cast %13 : vector<1x8x8x128xbf16> to vector<64x128xbf16>
    %c2_17 = arith.constant 2 : index
    %c0_18 = arith.constant 0 : index
    %c0_19 = arith.constant 0 : index
    %15 = vector.load %arg2[%c2_17, %c0_18, %c0_19] : memref<25x128x128xbf16, #tpu.memory_space<vmem>>, vector<1x128x128xbf16>
    %16 = vector.shape_cast %15 : vector<1x128x128xbf16> to vector<128x128xbf16>
    %cst_20 = arith.constant dense<0.000000e+00> : vector<64x128xf32>
    %17 = tpu.matmul %14, %16, %cst_20 {dimension_numbers = #tpu.dot_dimension_numbers<[1], [0], [0], [1], [0, 0, 1, 1], [], []>} : vector<64x128xbf16>, vector<128x128xbf16>, vector<64x128xf32> -> vector<64x128xf32>
    %18 = arith.addf %12, %17 : vector<64x128xf32>
    %c0_21 = arith.constant 0 : index
    %c0_22 = arith.constant 0 : index
    %c3 = arith.constant 3 : index
    %c0_23 = arith.constant 0 : index
    %19 = vector.load %arg1[%c0_21, %c0_22, %c3, %c0_23] : memref<1x12x12x128xbf16, #tpu.memory_space<vmem>>, vector<1x8x8x128xbf16>
    %20 = vector.shape_cast %19 : vector<1x8x8x128xbf16> to vector<64x128xbf16>
    %c3_24 = arith.constant 3 : index
    %c0_25 = arith.constant 0 : index
    %c0_26 = arith.constant 0 : index
    %21 = vector.load %arg2[%c3_24, %c0_25, %c0_26] : memref<25x128x128xbf16, #tpu.memory_space<vmem>>, vector<1x128x128xbf16>
    %22 = vector.shape_cast %21 : vector<1x128x128xbf16> to vector<128x128xbf16>
    %cst_27 = arith.constant dense<0.000000e+00> : vector<64x128xf32>
    %23 = tpu.matmul %20, %22, %cst_27 {dimension_numbers = #tpu.dot_dimension_numbers<[1], [0], [0], [1], [0, 0, 1, 1], [], []>} : vector<64x128xbf16>, vector<128x128xbf16>, vector<64x128xf32> -> vector<64x128xf32>
    %24 = arith.addf %18, %23 : vector<64x128xf32>
    %c0_28 = arith.constant 0 : index
    %c0_29 = arith.constant 0 : index
    %c4 = arith.constant 4 : index
    %c0_30 = arith.constant 0 : index
    %25 = vector.load %arg1[%c0_28, %c0_29, %c4, %c0_30] : memref<1x12x12x128xbf16, #tpu.memory_space<vmem>>, vector<1x8x8x128xbf16>
    %26 = vector.shape_cast %25 : vector<1x8x8x128xbf16> to vector<64x128xbf16>
    %c4_31 = arith.constant 4 : index
    %c0_32 = arith.constant 0 : index
    %c0_33 = arith.constant 0 : index
    %27 = vector.load %arg2[%c4_31, %c0_32, %c0_33] : memref<25x128x128xbf16, #tpu.memory_space<vmem>>, vector<1x128x128xbf16>
    %28 = vector.shape_cast %27 : vector<1x128x128xbf16> to vector<128x128xbf16>
    %cst_34 = arith.constant dense<0.000000e+00> : vector<64x128xf32>
    %29 = tpu.matmul %26, %28, %cst_34 {dimension_numbers = #tpu.dot_dimension_numbers<[1], [0], [0], [1], [0, 0, 1, 1], [], []>} : vector<64x128xbf16>, vector<128x128xbf16>, vector<64x128xf32> -> vector<64x128xf32>
    %30 = arith.addf %24, %29 : vector<64x128xf32>
    %c0_35 = arith.constant 0 : index
    %c1_36 = arith.constant 1 : index
    %c0_37 = arith.constant 0 : index
    %c0_38 = arith.constant 0 : index
    %31 = vector.load %arg1[%c0_35, %c1_36, %c0_37, %c0_38] : memref<1x12x12x128xbf16, #tpu.memory_space<vmem>>, vector<1x8x8x128xbf16>
    %32 = vector.shape_cast %31 : vector<1x8x8x128xbf16> to vector<64x128xbf16>
    %c5 = arith.constant 5 : index
    %c0_39 = arith.constant 0 : index
    %c0_40 = arith.constant 0 : index
    %33 = vector.load %arg2[%c5, %c0_39, %c0_40] : memref<25x128x128xbf16, #tpu.memory_space<vmem>>, vector<1x128x128xbf16>
    %34 = vector.shape_cast %33 : vector<1x128x128xbf16> to vector<128x128xbf16>
    %cst_41 = arith.constant dense<0.000000e+00> : vector<64x128xf32>
    %35 = tpu.matmul %32, %34, %cst_41 {dimension_numbers = #tpu.dot_dimension_numbers<[1], [0], [0], [1], [0, 0, 1, 1], [], []>} : vector<64x128xbf16>, vector<128x128xbf16>, vector<64x128xf32> -> vector<64x128xf32>
    %36 = arith.addf %30, %35 : vector<64x128xf32>
    %c0_42 = arith.constant 0 : index
    %c1_43 = arith.constant 1 : index
    %c1_44 = arith.constant 1 : index
    %c0_45 = arith.constant 0 : index
    %37 = vector.load %arg1[%c0_42, %c1_43, %c1_44, %c0_45] : memref<1x12x12x128xbf16, #tpu.memory_space<vmem>>, vector<1x8x8x128xbf16>
    %38 = vector.shape_cast %37 : vector<1x8x8x128xbf16> to vector<64x128xbf16>
    %c6 = arith.constant 6 : index
    %c0_46 = arith.constant 0 : index
    %c0_47 = arith.constant 0 : index
    %39 = vector.load %arg2[%c6, %c0_46, %c0_47] : memref<25x128x128xbf16, #tpu.memory_space<vmem>>, vector<1x128x128xbf16>
    %40 = vector.shape_cast %39 : vector<1x128x128xbf16> to vector<128x128xbf16>
    %cst_48 = arith.constant dense<0.000000e+00> : vector<64x128xf32>
    %41 = tpu.matmul %38, %40, %cst_48 {dimension_numbers = #tpu.dot_dimension_numbers<[1], [0], [0], [1], [0, 0, 1, 1], [], []>} : vector<64x128xbf16>, vector<128x128xbf16>, vector<64x128xf32> -> vector<64x128xf32>
    %42 = arith.addf %36, %41 : vector<64x128xf32>
    %c0_49 = arith.constant 0 : index
    %c1_50 = arith.constant 1 : index
    %c2_51 = arith.constant 2 : index
    %c0_52 = arith.constant 0 : index
    %43 = vector.load %arg1[%c0_49, %c1_50, %c2_51, %c0_52] : memref<1x12x12x128xbf16, #tpu.memory_space<vmem>>, vector<1x8x8x128xbf16>
    %44 = vector.shape_cast %43 : vector<1x8x8x128xbf16> to vector<64x128xbf16>
    %c7 = arith.constant 7 : index
    %c0_53 = arith.constant 0 : index
    %c0_54 = arith.constant 0 : index
    %45 = vector.load %arg2[%c7, %c0_53, %c0_54] : memref<25x128x128xbf16, #tpu.memory_space<vmem>>, vector<1x128x128xbf16>
    %46 = vector.shape_cast %45 : vector<1x128x128xbf16> to vector<128x128xbf16>
    %cst_55 = arith.constant dense<0.000000e+00> : vector<64x128xf32>
    %47 = tpu.matmul %44, %46, %cst_55 {dimension_numbers = #tpu.dot_dimension_numbers<[1], [0], [0], [1], [0, 0, 1, 1], [], []>} : vector<64x128xbf16>, vector<128x128xbf16>, vector<64x128xf32> -> vector<64x128xf32>
    %48 = arith.addf %42, %47 : vector<64x128xf32>
    %c0_56 = arith.constant 0 : index
    %c1_57 = arith.constant 1 : index
    %c3_58 = arith.constant 3 : index
    %c0_59 = arith.constant 0 : index
    %49 = vector.load %arg1[%c0_56, %c1_57, %c3_58, %c0_59] : memref<1x12x12x128xbf16, #tpu.memory_space<vmem>>, vector<1x8x8x128xbf16>
    %50 = vector.shape_cast %49 : vector<1x8x8x128xbf16> to vector<64x128xbf16>
    %c8 = arith.constant 8 : index
    %c0_60 = arith.constant 0 : index
    %c0_61 = arith.constant 0 : index
    %51 = vector.load %arg2[%c8, %c0_60, %c0_61] : memref<25x128x128xbf16, #tpu.memory_space<vmem>>, vector<1x128x128xbf16>
    %52 = vector.shape_cast %51 : vector<1x128x128xbf16> to vector<128x128xbf16>
    %cst_62 = arith.constant dense<0.000000e+00> : vector<64x128xf32>
    %53 = tpu.matmul %50, %52, %cst_62 {dimension_numbers = #tpu.dot_dimension_numbers<[1], [0], [0], [1], [0, 0, 1, 1], [], []>} : vector<64x128xbf16>, vector<128x128xbf16>, vector<64x128xf32> -> vector<64x128xf32>
    %54 = arith.addf %48, %53 : vector<64x128xf32>
    %c0_63 = arith.constant 0 : index
    %c1_64 = arith.constant 1 : index
    %c4_65 = arith.constant 4 : index
    %c0_66 = arith.constant 0 : index
    %55 = vector.load %arg1[%c0_63, %c1_64, %c4_65, %c0_66] : memref<1x12x12x128xbf16, #tpu.memory_space<vmem>>, vector<1x8x8x128xbf16>
    %56 = vector.shape_cast %55 : vector<1x8x8x128xbf16> to vector<64x128xbf16>
    %c9 = arith.constant 9 : index
    %c0_67 = arith.constant 0 : index
    %c0_68 = arith.constant 0 : index
    %57 = vector.load %arg2[%c9, %c0_67, %c0_68] : memref<25x128x128xbf16, #tpu.memory_space<vmem>>, vector<1x128x128xbf16>
    %58 = vector.shape_cast %57 : vector<1x128x128xbf16> to vector<128x128xbf16>
    %cst_69 = arith.constant dense<0.000000e+00> : vector<64x128xf32>
    %59 = tpu.matmul %56, %58, %cst_69 {dimension_numbers = #tpu.dot_dimension_numbers<[1], [0], [0], [1], [0, 0, 1, 1], [], []>} : vector<64x128xbf16>, vector<128x128xbf16>, vector<64x128xf32> -> vector<64x128xf32>
    %60 = arith.addf %54, %59 : vector<64x128xf32>
    %c0_70 = arith.constant 0 : index
    %c2_71 = arith.constant 2 : index
    %c0_72 = arith.constant 0 : index
    %c0_73 = arith.constant 0 : index
    %61 = vector.load %arg1[%c0_70, %c2_71, %c0_72, %c0_73] : memref<1x12x12x128xbf16, #tpu.memory_space<vmem>>, vector<1x8x8x128xbf16>
    %62 = vector.shape_cast %61 : vector<1x8x8x128xbf16> to vector<64x128xbf16>
    %c10 = arith.constant 10 : index
    %c0_74 = arith.constant 0 : index
    %c0_75 = arith.constant 0 : index
    %63 = vector.load %arg2[%c10, %c0_74, %c0_75] : memref<25x128x128xbf16, #tpu.memory_space<vmem>>, vector<1x128x128xbf16>
    %64 = vector.shape_cast %63 : vector<1x128x128xbf16> to vector<128x128xbf16>
    %cst_76 = arith.constant dense<0.000000e+00> : vector<64x128xf32>
    %65 = tpu.matmul %62, %64, %cst_76 {dimension_numbers = #tpu.dot_dimension_numbers<[1], [0], [0], [1], [0, 0, 1, 1], [], []>} : vector<64x128xbf16>, vector<128x128xbf16>, vector<64x128xf32> -> vector<64x128xf32>
    %66 = arith.addf %60, %65 : vector<64x128xf32>
    %c0_77 = arith.constant 0 : index
    %c2_78 = arith.constant 2 : index
    %c1_79 = arith.constant 1 : index
    %c0_80 = arith.constant 0 : index
    %67 = vector.load %arg1[%c0_77, %c2_78, %c1_79, %c0_80] : memref<1x12x12x128xbf16, #tpu.memory_space<vmem>>, vector<1x8x8x128xbf16>
    %68 = vector.shape_cast %67 : vector<1x8x8x128xbf16> to vector<64x128xbf16>
    %c11 = arith.constant 11 : index
    %c0_81 = arith.constant 0 : index
    %c0_82 = arith.constant 0 : index
    %69 = vector.load %arg2[%c11, %c0_81, %c0_82] : memref<25x128x128xbf16, #tpu.memory_space<vmem>>, vector<1x128x128xbf16>
    %70 = vector.shape_cast %69 : vector<1x128x128xbf16> to vector<128x128xbf16>
    %cst_83 = arith.constant dense<0.000000e+00> : vector<64x128xf32>
    %71 = tpu.matmul %68, %70, %cst_83 {dimension_numbers = #tpu.dot_dimension_numbers<[1], [0], [0], [1], [0, 0, 1, 1], [], []>} : vector<64x128xbf16>, vector<128x128xbf16>, vector<64x128xf32> -> vector<64x128xf32>
    %72 = arith.addf %66, %71 : vector<64x128xf32>
    %c0_84 = arith.constant 0 : index
    %c2_85 = arith.constant 2 : index
    %c2_86 = arith.constant 2 : index
    %c0_87 = arith.constant 0 : index
    %73 = vector.load %arg1[%c0_84, %c2_85, %c2_86, %c0_87] : memref<1x12x12x128xbf16, #tpu.memory_space<vmem>>, vector<1x8x8x128xbf16>
    %74 = vector.shape_cast %73 : vector<1x8x8x128xbf16> to vector<64x128xbf16>
    %c12 = arith.constant 12 : index
    %c0_88 = arith.constant 0 : index
    %c0_89 = arith.constant 0 : index
    %75 = vector.load %arg2[%c12, %c0_88, %c0_89] : memref<25x128x128xbf16, #tpu.memory_space<vmem>>, vector<1x128x128xbf16>
    %76 = vector.shape_cast %75 : vector<1x128x128xbf16> to vector<128x128xbf16>
    %cst_90 = arith.constant dense<0.000000e+00> : vector<64x128xf32>
    %77 = tpu.matmul %74, %76, %cst_90 {dimension_numbers = #tpu.dot_dimension_numbers<[1], [0], [0], [1], [0, 0, 1, 1], [], []>} : vector<64x128xbf16>, vector<128x128xbf16>, vector<64x128xf32> -> vector<64x128xf32>
    %78 = arith.addf %72, %77 : vector<64x128xf32>
    %c0_91 = arith.constant 0 : index
    %c2_92 = arith.constant 2 : index
    %c3_93 = arith.constant 3 : index
    %c0_94 = arith.constant 0 : index
    %79 = vector.load %arg1[%c0_91, %c2_92, %c3_93, %c0_94] : memref<1x12x12x128xbf16, #tpu.memory_space<vmem>>, vector<1x8x8x128xbf16>
    %80 = vector.shape_cast %79 : vector<1x8x8x128xbf16> to vector<64x128xbf16>
    %c13 = arith.constant 13 : index
    %c0_95 = arith.constant 0 : index
    %c0_96 = arith.constant 0 : index
    %81 = vector.load %arg2[%c13, %c0_95, %c0_96] : memref<25x128x128xbf16, #tpu.memory_space<vmem>>, vector<1x128x128xbf16>
    %82 = vector.shape_cast %81 : vector<1x128x128xbf16> to vector<128x128xbf16>
    %cst_97 = arith.constant dense<0.000000e+00> : vector<64x128xf32>
    %83 = tpu.matmul %80, %82, %cst_97 {dimension_numbers = #tpu.dot_dimension_numbers<[1], [0], [0], [1], [0, 0, 1, 1], [], []>} : vector<64x128xbf16>, vector<128x128xbf16>, vector<64x128xf32> -> vector<64x128xf32>
    %84 = arith.addf %78, %83 : vector<64x128xf32>
    %c0_98 = arith.constant 0 : index
    %c2_99 = arith.constant 2 : index
    %c4_100 = arith.constant 4 : index
    %c0_101 = arith.constant 0 : index
    %85 = vector.load %arg1[%c0_98, %c2_99, %c4_100, %c0_101] : memref<1x12x12x128xbf16, #tpu.memory_space<vmem>>, vector<1x8x8x128xbf16>
    %86 = vector.shape_cast %85 : vector<1x8x8x128xbf16> to vector<64x128xbf16>
    %c14 = arith.constant 14 : index
    %c0_102 = arith.constant 0 : index
    %c0_103 = arith.constant 0 : index
    %87 = vector.load %arg2[%c14, %c0_102, %c0_103] : memref<25x128x128xbf16, #tpu.memory_space<vmem>>, vector<1x128x128xbf16>
    %88 = vector.shape_cast %87 : vector<1x128x128xbf16> to vector<128x128xbf16>
    %cst_104 = arith.constant dense<0.000000e+00> : vector<64x128xf32>
    %89 = tpu.matmul %86, %88, %cst_104 {dimension_numbers = #tpu.dot_dimension_numbers<[1], [0], [0], [1], [0, 0, 1, 1], [], []>} : vector<64x128xbf16>, vector<128x128xbf16>, vector<64x128xf32> -> vector<64x128xf32>
    %90 = arith.addf %84, %89 : vector<64x128xf32>
    %c0_105 = arith.constant 0 : index
    %c3_106 = arith.constant 3 : index
    %c0_107 = arith.constant 0 : index
    %c0_108 = arith.constant 0 : index
    %91 = vector.load %arg1[%c0_105, %c3_106, %c0_107, %c0_108] : memref<1x12x12x128xbf16, #tpu.memory_space<vmem>>, vector<1x8x8x128xbf16>
    %92 = vector.shape_cast %91 : vector<1x8x8x128xbf16> to vector<64x128xbf16>
    %c15 = arith.constant 15 : index
    %c0_109 = arith.constant 0 : index
    %c0_110 = arith.constant 0 : index
    %93 = vector.load %arg2[%c15, %c0_109, %c0_110] : memref<25x128x128xbf16, #tpu.memory_space<vmem>>, vector<1x128x128xbf16>
    %94 = vector.shape_cast %93 : vector<1x128x128xbf16> to vector<128x128xbf16>
    %cst_111 = arith.constant dense<0.000000e+00> : vector<64x128xf32>
    %95 = tpu.matmul %92, %94, %cst_111 {dimension_numbers = #tpu.dot_dimension_numbers<[1], [0], [0], [1], [0, 0, 1, 1], [], []>} : vector<64x128xbf16>, vector<128x128xbf16>, vector<64x128xf32> -> vector<64x128xf32>
    %96 = arith.addf %90, %95 : vector<64x128xf32>
    %c0_112 = arith.constant 0 : index
    %c3_113 = arith.constant 3 : index
    %c1_114 = arith.constant 1 : index
    %c0_115 = arith.constant 0 : index
    %97 = vector.load %arg1[%c0_112, %c3_113, %c1_114, %c0_115] : memref<1x12x12x128xbf16, #tpu.memory_space<vmem>>, vector<1x8x8x128xbf16>
    %98 = vector.shape_cast %97 : vector<1x8x8x128xbf16> to vector<64x128xbf16>
    %c16 = arith.constant 16 : index
    %c0_116 = arith.constant 0 : index
    %c0_117 = arith.constant 0 : index
    %99 = vector.load %arg2[%c16, %c0_116, %c0_117] : memref<25x128x128xbf16, #tpu.memory_space<vmem>>, vector<1x128x128xbf16>
    %100 = vector.shape_cast %99 : vector<1x128x128xbf16> to vector<128x128xbf16>
    %cst_118 = arith.constant dense<0.000000e+00> : vector<64x128xf32>
    %101 = tpu.matmul %98, %100, %cst_118 {dimension_numbers = #tpu.dot_dimension_numbers<[1], [0], [0], [1], [0, 0, 1, 1], [], []>} : vector<64x128xbf16>, vector<128x128xbf16>, vector<64x128xf32> -> vector<64x128xf32>
    %102 = arith.addf %96, %101 : vector<64x128xf32>
    %c0_119 = arith.constant 0 : index
    %c3_120 = arith.constant 3 : index
    %c2_121 = arith.constant 2 : index
    %c0_122 = arith.constant 0 : index
    %103 = vector.load %arg1[%c0_119, %c3_120, %c2_121, %c0_122] : memref<1x12x12x128xbf16, #tpu.memory_space<vmem>>, vector<1x8x8x128xbf16>
    %104 = vector.shape_cast %103 : vector<1x8x8x128xbf16> to vector<64x128xbf16>
    %c17 = arith.constant 17 : index
    %c0_123 = arith.constant 0 : index
    %c0_124 = arith.constant 0 : index
    %105 = vector.load %arg2[%c17, %c0_123, %c0_124] : memref<25x128x128xbf16, #tpu.memory_space<vmem>>, vector<1x128x128xbf16>
    %106 = vector.shape_cast %105 : vector<1x128x128xbf16> to vector<128x128xbf16>
    %cst_125 = arith.constant dense<0.000000e+00> : vector<64x128xf32>
    %107 = tpu.matmul %104, %106, %cst_125 {dimension_numbers = #tpu.dot_dimension_numbers<[1], [0], [0], [1], [0, 0, 1, 1], [], []>} : vector<64x128xbf16>, vector<128x128xbf16>, vector<64x128xf32> -> vector<64x128xf32>
    %108 = arith.addf %102, %107 : vector<64x128xf32>
    %c0_126 = arith.constant 0 : index
    %c3_127 = arith.constant 3 : index
    %c3_128 = arith.constant 3 : index
    %c0_129 = arith.constant 0 : index
    %109 = vector.load %arg1[%c0_126, %c3_127, %c3_128, %c0_129] : memref<1x12x12x128xbf16, #tpu.memory_space<vmem>>, vector<1x8x8x128xbf16>
    %110 = vector.shape_cast %109 : vector<1x8x8x128xbf16> to vector<64x128xbf16>
    %c18 = arith.constant 18 : index
    %c0_130 = arith.constant 0 : index
    %c0_131 = arith.constant 0 : index
    %111 = vector.load %arg2[%c18, %c0_130, %c0_131] : memref<25x128x128xbf16, #tpu.memory_space<vmem>>, vector<1x128x128xbf16>
    %112 = vector.shape_cast %111 : vector<1x128x128xbf16> to vector<128x128xbf16>
    %cst_132 = arith.constant dense<0.000000e+00> : vector<64x128xf32>
    %113 = tpu.matmul %110, %112, %cst_132 {dimension_numbers = #tpu.dot_dimension_numbers<[1], [0], [0], [1], [0, 0, 1, 1], [], []>} : vector<64x128xbf16>, vector<128x128xbf16>, vector<64x128xf32> -> vector<64x128xf32>
    %114 = arith.addf %108, %113 : vector<64x128xf32>
    %c0_133 = arith.constant 0 : index
    %c3_134 = arith.constant 3 : index
    %c4_135 = arith.constant 4 : index
    %c0_136 = arith.constant 0 : index
    %115 = vector.load %arg1[%c0_133, %c3_134, %c4_135, %c0_136] : memref<1x12x12x128xbf16, #tpu.memory_space<vmem>>, vector<1x8x8x128xbf16>
    %116 = vector.shape_cast %115 : vector<1x8x8x128xbf16> to vector<64x128xbf16>
    %c19 = arith.constant 19 : index
    %c0_137 = arith.constant 0 : index
    %c0_138 = arith.constant 0 : index
    %117 = vector.load %arg2[%c19, %c0_137, %c0_138] : memref<25x128x128xbf16, #tpu.memory_space<vmem>>, vector<1x128x128xbf16>
    %118 = vector.shape_cast %117 : vector<1x128x128xbf16> to vector<128x128xbf16>
    %cst_139 = arith.constant dense<0.000000e+00> : vector<64x128xf32>
    %119 = tpu.matmul %116, %118, %cst_139 {dimension_numbers = #tpu.dot_dimension_numbers<[1], [0], [0], [1], [0, 0, 1, 1], [], []>} : vector<64x128xbf16>, vector<128x128xbf16>, vector<64x128xf32> -> vector<64x128xf32>
    %120 = arith.addf %114, %119 : vector<64x128xf32>
    %c0_140 = arith.constant 0 : index
    %c4_141 = arith.constant 4 : index
    %c0_142 = arith.constant 0 : index
    %c0_143 = arith.constant 0 : index
    %121 = vector.load %arg1[%c0_140, %c4_141, %c0_142, %c0_143] : memref<1x12x12x128xbf16, #tpu.memory_space<vmem>>, vector<1x8x8x128xbf16>
    %122 = vector.shape_cast %121 : vector<1x8x8x128xbf16> to vector<64x128xbf16>
    %c20 = arith.constant 20 : index
    %c0_144 = arith.constant 0 : index
    %c0_145 = arith.constant 0 : index
    %123 = vector.load %arg2[%c20, %c0_144, %c0_145] : memref<25x128x128xbf16, #tpu.memory_space<vmem>>, vector<1x128x128xbf16>
    %124 = vector.shape_cast %123 : vector<1x128x128xbf16> to vector<128x128xbf16>
    %cst_146 = arith.constant dense<0.000000e+00> : vector<64x128xf32>
    %125 = tpu.matmul %122, %124, %cst_146 {dimension_numbers = #tpu.dot_dimension_numbers<[1], [0], [0], [1], [0, 0, 1, 1], [], []>} : vector<64x128xbf16>, vector<128x128xbf16>, vector<64x128xf32> -> vector<64x128xf32>
    %126 = arith.addf %120, %125 : vector<64x128xf32>
    %c0_147 = arith.constant 0 : index
    %c4_148 = arith.constant 4 : index
    %c1_149 = arith.constant 1 : index
    %c0_150 = arith.constant 0 : index
    %127 = vector.load %arg1[%c0_147, %c4_148, %c1_149, %c0_150] : memref<1x12x12x128xbf16, #tpu.memory_space<vmem>>, vector<1x8x8x128xbf16>
    %128 = vector.shape_cast %127 : vector<1x8x8x128xbf16> to vector<64x128xbf16>
    %c21 = arith.constant 21 : index
    %c0_151 = arith.constant 0 : index
    %c0_152 = arith.constant 0 : index
    %129 = vector.load %arg2[%c21, %c0_151, %c0_152] : memref<25x128x128xbf16, #tpu.memory_space<vmem>>, vector<1x128x128xbf16>
    %130 = vector.shape_cast %129 : vector<1x128x128xbf16> to vector<128x128xbf16>
    %cst_153 = arith.constant dense<0.000000e+00> : vector<64x128xf32>
    %131 = tpu.matmul %128, %130, %cst_153 {dimension_numbers = #tpu.dot_dimension_numbers<[1], [0], [0], [1], [0, 0, 1, 1], [], []>} : vector<64x128xbf16>, vector<128x128xbf16>, vector<64x128xf32> -> vector<64x128xf32>
    %132 = arith.addf %126, %131 : vector<64x128xf32>
    %c0_154 = arith.constant 0 : index
    %c4_155 = arith.constant 4 : index
    %c2_156 = arith.constant 2 : index
    %c0_157 = arith.constant 0 : index
    %133 = vector.load %arg1[%c0_154, %c4_155, %c2_156, %c0_157] : memref<1x12x12x128xbf16, #tpu.memory_space<vmem>>, vector<1x8x8x128xbf16>
    %134 = vector.shape_cast %133 : vector<1x8x8x128xbf16> to vector<64x128xbf16>
    %c22 = arith.constant 22 : index
    %c0_158 = arith.constant 0 : index
    %c0_159 = arith.constant 0 : index
    %135 = vector.load %arg2[%c22, %c0_158, %c0_159] : memref<25x128x128xbf16, #tpu.memory_space<vmem>>, vector<1x128x128xbf16>
    %136 = vector.shape_cast %135 : vector<1x128x128xbf16> to vector<128x128xbf16>
    %cst_160 = arith.constant dense<0.000000e+00> : vector<64x128xf32>
    %137 = tpu.matmul %134, %136, %cst_160 {dimension_numbers = #tpu.dot_dimension_numbers<[1], [0], [0], [1], [0, 0, 1, 1], [], []>} : vector<64x128xbf16>, vector<128x128xbf16>, vector<64x128xf32> -> vector<64x128xf32>
    %138 = arith.addf %132, %137 : vector<64x128xf32>
    %c0_161 = arith.constant 0 : index
    %c4_162 = arith.constant 4 : index
    %c3_163 = arith.constant 3 : index
    %c0_164 = arith.constant 0 : index
    %139 = vector.load %arg1[%c0_161, %c4_162, %c3_163, %c0_164] : memref<1x12x12x128xbf16, #tpu.memory_space<vmem>>, vector<1x8x8x128xbf16>
    %140 = vector.shape_cast %139 : vector<1x8x8x128xbf16> to vector<64x128xbf16>
    %c23 = arith.constant 23 : index
    %c0_165 = arith.constant 0 : index
    %c0_166 = arith.constant 0 : index
    %141 = vector.load %arg2[%c23, %c0_165, %c0_166] : memref<25x128x128xbf16, #tpu.memory_space<vmem>>, vector<1x128x128xbf16>
    %142 = vector.shape_cast %141 : vector<1x128x128xbf16> to vector<128x128xbf16>
    %cst_167 = arith.constant dense<0.000000e+00> : vector<64x128xf32>
    %143 = tpu.matmul %140, %142, %cst_167 {dimension_numbers = #tpu.dot_dimension_numbers<[1], [0], [0], [1], [0, 0, 1, 1], [], []>} : vector<64x128xbf16>, vector<128x128xbf16>, vector<64x128xf32> -> vector<64x128xf32>
    %144 = arith.addf %138, %143 : vector<64x128xf32>
    %c0_168 = arith.constant 0 : index
    %c4_169 = arith.constant 4 : index
    %c4_170 = arith.constant 4 : index
    %c0_171 = arith.constant 0 : index
    %145 = vector.load %arg1[%c0_168, %c4_169, %c4_170, %c0_171] : memref<1x12x12x128xbf16, #tpu.memory_space<vmem>>, vector<1x8x8x128xbf16>
    %146 = vector.shape_cast %145 : vector<1x8x8x128xbf16> to vector<64x128xbf16>
    %c24 = arith.constant 24 : index
    %c0_172 = arith.constant 0 : index
    %c0_173 = arith.constant 0 : index
    %147 = vector.load %arg2[%c24, %c0_172, %c0_173] : memref<25x128x128xbf16, #tpu.memory_space<vmem>>, vector<1x128x128xbf16>
    %148 = vector.shape_cast %147 : vector<1x128x128xbf16> to vector<128x128xbf16>
    %cst_174 = arith.constant dense<0.000000e+00> : vector<64x128xf32>
    %149 = tpu.matmul %146, %148, %cst_174 {dimension_numbers = #tpu.dot_dimension_numbers<[1], [0], [0], [1], [0, 0, 1, 1], [], []>} : vector<64x128xbf16>, vector<128x128xbf16>, vector<64x128xf32> -> vector<64x128xf32>
    %150 = arith.addf %144, %149 : vector<64x128xf32>
    %c0_175 = arith.constant 0 : index
    %c0_176 = arith.constant 0 : index
    %151 = vector.load %arg3[%c0_175, %c0_176] : memref<1x128xf32, #tpu.memory_space<vmem>>, vector<1x128xf32>
    %152 = vector.broadcast %151 : vector<1x128xf32> to vector<64x128xf32>
    %153 = arith.addf %150, %152 : vector<64x128xf32>
    %cst_177 = arith.constant 0.000000e+00 : f32
    %154 = vector.broadcast %cst_177 : f32 to vector<64x128xf32>
    %155 = arith.maximumf %153, %154 : vector<64x128xf32>
    %156 = vector.shape_cast %155 : vector<64x128xf32> to vector<4x2x8x128xf32>
    %157 = vector.extract_strided_slice %156 {offsets = [0, 0, 0, 0], sizes = [4, 1, 8, 128], strides = [1, 1, 1, 1]} : vector<4x2x8x128xf32> to vector<4x1x8x128xf32>
    %158 = vector.shape_cast %157 : vector<4x1x8x128xf32> to vector<4x8x128xf32>
    %159 = vector.extract_strided_slice %156 {offsets = [0, 1, 0, 0], sizes = [4, 1, 8, 128], strides = [1, 1, 1, 1]} : vector<4x2x8x128xf32> to vector<4x1x8x128xf32>
    %160 = vector.shape_cast %159 : vector<4x1x8x128xf32> to vector<4x8x128xf32>
    %161 = arith.maximumf %158, %160 : vector<4x8x128xf32>
    %162 = vector.shape_cast %161 : vector<4x8x128xf32> to vector<32x128xf32>
    %c0_178 = arith.constant 0 : index
    %c0_179 = arith.constant 0 : index
    %163 = vector.load %arg5[%c0_178, %c0_179] : memref<32x128xf32, #tpu.memory_space<vmem>>, vector<32x128xf32>
    tpu.vector_store %arg5[%c0_178, %c0_179], %162 {strides = array<i32>} : memref<32x128xf32, #tpu.memory_space<vmem>>, vector<32x128xf32>,
    %c0_180 = arith.constant 0 : index
    %c0_181 = arith.constant 0 : index
    %164 = tpu.strided_load %arg5[%c0_180, %c0_181] {strides = array<i32: 2, 1>} : memref<32x128xf32, #tpu.memory_space<vmem>>, vector<16x128xf32>
    %c1_182 = arith.constant 1 : index
    %c0_183 = arith.constant 0 : index
    %165 = tpu.strided_load %arg5[%c1_182, %c0_183] {strides = array<i32: 2, 1>} : memref<32x128xf32, #tpu.memory_space<vmem>>, vector<16x128xf32>
    %166 = arith.maximumf %164, %165 : vector<16x128xf32>
    %167 = arith.truncf %166 : vector<16x128xf32> to vector<16x128xbf16>
    %c0_184 = arith.constant 0 : index
    %c0_185 = arith.constant 0 : index
    %168 = vector.load %arg4[%c0_184, %c0_185] : memref<16x128xbf16, #tpu.memory_space<vmem>>, vector<16x128xbf16>
    tpu.vector_store %arg4[%c0_184, %c0_185], %167 {strides = array<i32>} : memref<16x128xbf16, #tpu.memory_space<vmem>>, vector<16x128xbf16>,
    return
  }
  func.func @transform_0(%arg0: i32) -> (i32, i32, i32, i32) {
    %c0_i32 = arith.constant 0 : i32
    %c0_i32_0 = arith.constant 0 : i32
    %c0_i32_1 = arith.constant 0 : i32
    %c0_i32_2 = arith.constant 0 : i32
    return %arg0, %c0_i32, %c0_i32_0, %c0_i32_1 : i32, i32, i32, i32
  }
  func.func @transform_1(%arg0: i32) -> (i32, i32, i32) {
    %c0_i32 = arith.constant 0 : i32
    %c0_i32_0 = arith.constant 0 : i32
    %c0_i32_1 = arith.constant 0 : i32
    %c0_i32_2 = arith.constant 0 : i32
    return %c0_i32, %c0_i32_0, %c0_i32_1 : i32, i32, i32
  }
  func.func @transform_2(%arg0: i32) -> (i32, i32) {
    %c0_i32 = arith.constant 0 : i32
    %c0_i32_0 = arith.constant 0 : i32
    %c0_i32_1 = arith.constant 0 : i32
    return %c0_i32, %c0_i32_0 : i32, i32
  }
  func.func @transform_3(%arg0: i32) -> (i32, i32) {
    %c0_i32 = arith.constant 0 : i32
    %c0_i32_0 = arith.constant 0 : i32
    return %arg0, %c0_i32 : i32, i32
  }
}

module attributes {stable_mosaic.version = 11 : i64} {
  func.func @_fc_fused_kernel(%arg0: i32, %arg1: memref<8x2048xbf16, #tpu.memory_space<vmem>>, %arg2: memref<2048x512xbf16, #tpu.memory_space<vmem>>, %arg3: memref<1x512xf32, #tpu.memory_space<vmem>>, %arg4: memref<512x128xbf16, #tpu.memory_space<vmem>>, %arg5: memref<1x128xf32, #tpu.memory_space<vmem>>, %arg6: memref<8x128xf32, #tpu.memory_space<vmem>>) attributes {dimension_semantics = [#tpu.dimension_semantics<parallel>], iteration_bounds = array<i64: 1>, scalar_prefetch = 0 : i64, scratch_operands = 0 : i64, tpu.core_type = #tpu.core_type<tc>, window_params = [{transform_indices = @transform_0, window_bounds = array<i64: 8, 2048>}, {pipeline_mode = #tpu.pipeline_mode<synchronous>, transform_indices = @transform_1, window_bounds = array<i64: 2048, 512>}, {pipeline_mode = #tpu.pipeline_mode<synchronous>, transform_indices = @transform_2, window_bounds = array<i64: 1, 512>}, {pipeline_mode = #tpu.pipeline_mode<synchronous>, transform_indices = @transform_3, window_bounds = array<i64: 512, 128>}, {pipeline_mode = #tpu.pipeline_mode<synchronous>, transform_indices = @transform_4, window_bounds = array<i64: 1, 128>}, {transform_indices = @transform_5, window_bounds = array<i64: 8, 128>}]} {
    %c0 = arith.constant 0 : index
    %c0_0 = arith.constant 0 : index
    %0 = vector.load %arg1[%c0, %c0_0] : memref<8x2048xbf16, #tpu.memory_space<vmem>>, vector<8x2048xbf16>
    %c0_1 = arith.constant 0 : index
    %c0_2 = arith.constant 0 : index
    %1 = vector.load %arg2[%c0_1, %c0_2] : memref<2048x512xbf16, #tpu.memory_space<vmem>>, vector<2048x512xbf16>
    %cst = arith.constant dense<0.000000e+00> : vector<8x512xf32>
    %2 = tpu.matmul %0, %1, %cst {dimension_numbers = #tpu.dot_dimension_numbers<[1], [0], [0], [1], [0, 0, 1, 1], [], []>} : vector<8x2048xbf16>, vector<2048x512xbf16>, vector<8x512xf32> -> vector<8x512xf32>
    %c0_3 = arith.constant 0 : index
    %c0_4 = arith.constant 0 : index
    %3 = vector.load %arg3[%c0_3, %c0_4] : memref<1x512xf32, #tpu.memory_space<vmem>>, vector<1x512xf32>
    %4 = vector.broadcast %3 : vector<1x512xf32> to vector<8x512xf32>
    %5 = arith.addf %2, %4 : vector<8x512xf32>
    %cst_5 = arith.constant 0.000000e+00 : f32
    %6 = vector.broadcast %cst_5 : f32 to vector<8x512xf32>
    %7 = arith.maximumf %5, %6 : vector<8x512xf32>
    %8 = arith.truncf %7 : vector<8x512xf32> to vector<8x512xbf16>
    %c0_6 = arith.constant 0 : index
    %c0_7 = arith.constant 0 : index
    %9 = vector.load %arg4[%c0_6, %c0_7] : memref<512x128xbf16, #tpu.memory_space<vmem>>, vector<512x128xbf16>
    %cst_8 = arith.constant dense<0.000000e+00> : vector<8x128xf32>
    %10 = tpu.matmul %8, %9, %cst_8 {dimension_numbers = #tpu.dot_dimension_numbers<[1], [0], [0], [1], [0, 0, 1, 1], [], []>} : vector<8x512xbf16>, vector<512x128xbf16>, vector<8x128xf32> -> vector<8x128xf32>
    %c0_9 = arith.constant 0 : index
    %c0_10 = arith.constant 0 : index
    %11 = vector.load %arg5[%c0_9, %c0_10] : memref<1x128xf32, #tpu.memory_space<vmem>>, vector<1x128xf32>
    %12 = vector.broadcast %11 : vector<1x128xf32> to vector<8x128xf32>
    %13 = arith.addf %10, %12 : vector<8x128xf32>
    %c0_11 = arith.constant 0 : index
    %c0_12 = arith.constant 0 : index
    %14 = vector.load %arg6[%c0_11, %c0_12] : memref<8x128xf32, #tpu.memory_space<vmem>>, vector<8x128xf32>
    tpu.vector_store %arg6[%c0_11, %c0_12], %13 {strides = array<i32>} : memref<8x128xf32, #tpu.memory_space<vmem>>, vector<8x128xf32>,
    return
  }
  func.func @transform_0(%arg0: i32) -> (i32, i32) {
    %c0_i32 = arith.constant 0 : i32
    %c0_i32_0 = arith.constant 0 : i32
    return %arg0, %c0_i32 : i32, i32
  }
  func.func @transform_1(%arg0: i32) -> (i32, i32) {
    %c0_i32 = arith.constant 0 : i32
    %c0_i32_0 = arith.constant 0 : i32
    %c0_i32_1 = arith.constant 0 : i32
    return %c0_i32, %c0_i32_0 : i32, i32
  }
  func.func @transform_2(%arg0: i32) -> (i32, i32) {
    %c0_i32 = arith.constant 0 : i32
    %c0_i32_0 = arith.constant 0 : i32
    %c0_i32_1 = arith.constant 0 : i32
    return %c0_i32, %c0_i32_0 : i32, i32
  }
  func.func @transform_3(%arg0: i32) -> (i32, i32) {
    %c0_i32 = arith.constant 0 : i32
    %c0_i32_0 = arith.constant 0 : i32
    %c0_i32_1 = arith.constant 0 : i32
    return %c0_i32, %c0_i32_0 : i32, i32
  }
  func.func @transform_4(%arg0: i32) -> (i32, i32) {
    %c0_i32 = arith.constant 0 : i32
    %c0_i32_0 = arith.constant 0 : i32
    %c0_i32_1 = arith.constant 0 : i32
    return %c0_i32, %c0_i32_0 : i32, i32
  }
  func.func @transform_5(%arg0: i32) -> (i32, i32) {
    %c0_i32 = arith.constant 0 : i32
    %c0_i32_0 = arith.constant 0 : i32
    return %arg0, %c0_i32 : i32, i32
  }
}

</mosaic_0001>

<bundles_post_ra>
// kernel: net_forward.3
= control target key start
LH: loop header
LB: loop body
LE: loop exit
PB: predicated region body
PF: predicated region fallthrough
CT: control target
= control target key end

     0   :  { %s1603_s12 = smov 0   ;;  %s1844_s0 = inlined_call_operand.vmem [shape: bf16[1152,25], index: 0, kind: input, shape index: {}]   ;;  %s1845_s1 = inlined_call_operand.vmem [shape: bf16[25,128], index: 1, kind: input, shape index: {}]   ;;  %s1846_s2 = inlined_call_operand.vmem [shape: f32[1,128], index: 2, kind: input, shape index: {}]   ;;  %s1847_s3 = inlined_call_operand.vmem [shape: bf16[2,12,12,128], index: 3, kind: output, shape index: {}]  }
   0x1 LB: > { %s1609_s13 = sadd.s32 4294967295, %s1580_s12   ;;  %p1280_p0 = scmp.ge.s32.totalorder %s1580_s12, 1  ;;  %s1580_s12 = sphi %s1603_s12, %s13_s12  }
   0x2   : > { %p138_p1 = scmp.lt.s32.totalorder %s1580_s12, 3 }
   0x4   : > { %p139_p2 = pnand %p1280_p0, %p138_p1 }
   0x5   : > { %v1536_v0 = vld [vmem:[%s1845_s1] sm:$0xff] (!%p139_p2)   ;;  %vm557_vm0 = vcmask (!%p139_p2), 1043456   ;;  %v1537_v1 = vld [vmem:[%s1845_s1 + $0x8] sm:$0x1f] (!%p139_p2)   ;;  %vm558_vm1 = vcmask (!%p139_p2), 1044480   ;;  %s162_s18 = smul.u32 (!%p139_p2), 72, %s1609_s13 }
   0x6   : > { %142 = sbr.rel (%p139_p2) target bundleno = 313 (0x139), region = 32  ;;  %1446 = vmatprep.subr.bf16.mxu0 (!%p139_p2), %v1536_v0  ;;  %1522 = vmatprep.subr.bf16.mxu1 (!%p139_p2), %v1536_v0  ;;  %v1582_v2 = vmov (!%p139_p2), 65535   ;;  %vm448_vm2 = vcmask (!%p139_p2), 203776   ;;  %v1701_v42 = vld [vmem:[%s1846_s2] ss:$0 sm:$0xff] (!%p139_p2)  ;;  %p168_p4 = scmp.lt.s32.totalorder (!%p139_p2), %s1609_s13, 1 }
   0x7   : > { %1447 = vmatpush3.bf16.msra.mxu0 (!%p139_p2), %v1536_v0  ;;  %1524 = vmatpush3.bf16.msra.mxu1 (!%p139_p2), %v1536_v0  ;;  %v559_v3 = vsel (!%p139_p2), %vm557_vm0, 4294967295, %v1582_v2  ;;  %p163_p3 = scmp.lt.s32.totalorder (!%p139_p2), %s162_s18, 143 }
   0x8   : > { %v560_v4 = vsel (!%p139_p2), %vm558_vm1, %v559_v3, 0 }
   0x9   : > { %v562_v5 = vand.u32 (!%p139_p2), %v1537_v1, %v560_v4 }
   0xb   : > { %1448 = vmatprep.subr.bf16.mxu0 (!%p139_p2), %v562_v5  ;;  %1523 = vmatprep.subr.bf16.mxu1 (!%p139_p2), %v562_v5 }
   0xc   : > { %1449 = vmatpush3.bf16.msra.mxu0 (!%p139_p2), %v562_v5  ;;  %1525 = vmatpush3.bf16.msra.mxu1 (!%p139_p2), %v562_v5 }
   0xd   : > { %s1849_s18 = smov (!%p163_p3, %s162_s18), 143  ;;  %s1851_s13 = smov (!%p168_p4, %s1609_s13), 1 }
   0xe   : > { %s1281_s19 = sshll.u32 %s1849_s18, 2  ;;  %s1526_s25 = smul.u32 96, %s1851_s13 }
   0xf   : > { %s1624_s22 = scalar_lea.vmem %s1844_s0, %s1281_s19 }
  0x10   : > { %v1538_v6 = vld [vmem:[%s1624_s22] sm:$0xff]   ;;  %v1539_v7 = vld [vmem:[%s1624_s22 + $0x90] sm:$0xff]   ;;  %v1540_v8 = vld [vmem:[%s1624_s22 + $0x8] sm:$0xff]   ;;  %s1738_s28 = scalar_lea.vmem %s1847_s3, %s1526_s25 }
  0x11   : > { %1450 = vmatprep.mubr.msk.bf16.mxu0 %vm448_vm2, %v1538_v6  ;;  %1486 = vmatprep.mubr.msk.bf16.mxu1 %vm448_vm2, %v1539_v7  ;;  %v1541_v9 = vld [vmem:[%s1624_s22 + $0x98] sm:$0xff]   ;;  %v1542_v10 = vld [vmem:[%s1624_s22 + $0x10] sm:$0xff]   ;;  %v1543_v11 = vld [vmem:[%s1624_s22 + $0xa0] sm:$0xff]  }
  0x12   : > { %1451 = vmatmul.mubr.msk.bf16.vlgmr.msra.gmra.mrb[0].mxu0 %vm448_vm2, %v1540_v8  ;;  %1487 = vmatmul.mubr.msk.bf16.vlgmr.msra.gmra.mrb[0].mxu1 %vm448_vm2, %v1541_v9  ;;  %v1544_v12 = vld [vmem:[%s1624_s22 + $0x18] sm:$0xff]   ;;  %v1545_v13 = vld [vmem:[%s1624_s22 + $0xa8] sm:$0xff]   ;;  %v1546_v14 = vld [vmem:[%s1624_s22 + $0x20] sm:$0xff]  }
  0x13   : > { %1454 = vmatprep.mubr.msk.bf16.mxu0 %vm448_vm2, %v1542_v10  ;;  %1490 = vmatprep.mubr.msk.bf16.mxu1 %vm448_vm2, %v1543_v11  ;;  %v1547_v15 = vld [vmem:[%s1624_s22 + $0xb0] sm:$0xff]   ;;  %v1548_v16 = vld [vmem:[%s1624_s22 + $0x28] sm:$0xff]   ;;  %v1549_v17 = vld [vmem:[%s1624_s22 + $0xb8] sm:$0xff]  }
  0x14   : > { %v1550_v18 = vld [vmem:[%s1624_s22 + $0x30] sm:$0xff]   ;;  %v1551_v19 = vld [vmem:[%s1624_s22 + $0xc0] sm:$0xff]   ;;  %v1552_v20 = vld [vmem:[%s1624_s22 + $0x38] sm:$0xff]  }
  0x15   : > { %v1553_v21 = vld [vmem:[%s1624_s22 + $0xc8] sm:$0xff]   ;;  %v1554_v22 = vld [vmem:[%s1624_s22 + $0x40] sm:$0xff]   ;;  %v1555_v23 = vld [vmem:[%s1624_s22 + $0xd0] sm:$0xff]  }
  0x16   : > { %v1556_v24 = vld [vmem:[%s1624_s22 + $0x48] sm:$0xff]   ;;  %v1557_v25 = vld [vmem:[%s1624_s22 + $0xd8] sm:$0xff]   ;;  %v1558_v26 = vld [vmem:[%s1624_s22 + $0x50] sm:$0xff]  }
  0x17   : > { %v1559_v27 = vld [vmem:[%s1624_s22 + $0xe0] sm:$0xff]   ;;  %v1560_v28 = vld [vmem:[%s1624_s22 + $0x58] sm:$0xff]   ;;  %v1561_v29 = vld [vmem:[%s1624_s22 + $0xe8] sm:$0xff]  }
  0x18   : > { %v1562_v30 = vld [vmem:[%s1624_s22 + $0x60] sm:$0xff]   ;;  %v1563_v31 = vld [vmem:[%s1624_s22 + $0xf0] sm:$0xff]   ;;  %v1564_v32 = vld [vmem:[%s1624_s22 + $0x68] sm:$0xff]  }
  0x19   : > { %v1565_v33 = vld [vmem:[%s1624_s22 + $0xf8] sm:$0xff]   ;;  %v1566_v34 = vld [vmem:[%s1624_s22 + $0x70] sm:$0xff]   ;;  %v1567_v35 = vld [vmem:[%s1624_s22 + $0x100] sm:$0xff]  }
  0x1a   : > { %1455 = vmatmul.mubr.msk.bf16.gmra.mrb[4].mxu0 %vm448_vm2, %v1544_v12  ;;  %1491 = vmatmul.mubr.msk.bf16.gmra.mrb[4].mxu1 %vm448_vm2, %v1545_v13  ;;  %v1568_v36 = vld [vmem:[%s1624_s22 + $0x78] sm:$0xff]   ;;  %v1569_v37 = vld [vmem:[%s1624_s22 + $0x108] sm:$0xff]   ;;  %v1570_v38 = vld [vmem:[%s1624_s22 + $0x80] sm:$0xff]  }
  0x1b   : > { %1458 = vmatprep.mubr.msk.bf16.mxu0 %vm448_vm2, %v1546_v14  ;;  %1494 = vmatprep.mubr.msk.bf16.mxu1 %vm448_vm2, %v1547_v15  ;;  %v1571_v39 = vld [vmem:[%s1624_s22 + $0x110] sm:$0xff]   ;;  %v1572_v40 = vld [vmem:[%s1624_s22 + $0x88] sm:$0xff]   ;;  %v1573_v41 = vld [vmem:[%s1624_s22 + $0x118] sm:$0xff]  }
  0x22   : > { %1459 = vmatmul.mubr.msk.bf16.gmra.mrb[8].mxu0 %vm448_vm2, %v1548_v16  ;;  %1495 = vmatmul.mubr.msk.bf16.gmra.mrb[8].mxu1 %vm448_vm2, %v1549_v17 }
  0x23   : > { %1462 = vmatprep.mubr.msk.bf16.mxu0 %vm448_vm2, %v1550_v18  ;;  %1498 = vmatprep.mubr.msk.bf16.mxu1 %vm448_vm2, %v1551_v19 }
  0x2a   : > { %1463 = vmatmul.mubr.msk.bf16.gmra.mrb[12].mxu0 %vm448_vm2, %v1552_v20  ;;  %1499 = vmatmul.mubr.msk.bf16.gmra.mrb[12].mxu1 %vm448_vm2, %v1553_v21 }
  0x2b   : > { %1466 = vmatprep.mubr.msk.bf16.mxu0 %vm448_vm2, %v1554_v22  ;;  %1502 = vmatprep.mubr.msk.bf16.mxu1 %vm448_vm2, %v1555_v23 }
  0x32   : > { %1467 = vmatmul.mubr.msk.bf16.gmra.mrb[16].mxu0 %vm448_vm2, %v1556_v24  ;;  %1503 = vmatmul.mubr.msk.bf16.gmra.mrb[16].mxu1 %vm448_vm2, %v1557_v25 }
  0x33   : > { %1470 = vmatprep.mubr.msk.bf16.mxu0 %vm448_vm2, %v1558_v26  ;;  %1506 = vmatprep.mubr.msk.bf16.mxu1 %vm448_vm2, %v1559_v27 }
  0x3a   : > { %1471 = vmatmul.mubr.msk.bf16.gmra.mrb[20].mxu0 %vm448_vm2, %v1560_v28  ;;  %1507 = vmatmul.mubr.msk.bf16.gmra.mrb[20].mxu1 %vm448_vm2, %v1561_v29 }
  0x3b   : > { %1474 = vmatprep.mubr.msk.bf16.mxu0 %vm448_vm2, %v1562_v30  ;;  %1510 = vmatprep.mubr.msk.bf16.mxu1 %vm448_vm2, %v1563_v31 }
  0x42   : > { %1475 = vmatmul.mubr.msk.bf16.gmra.mrb[24].mxu0 %vm448_vm2, %v1564_v32  ;;  %1511 = vmatmul.mubr.msk.bf16.gmra.mrb[24].mxu1 %vm448_vm2, %v1565_v33 }
  0x43   : > { %1478 = vmatprep.mubr.msk.bf16.mxu0 %vm448_vm2, %v1566_v34  ;;  %1514 = vmatprep.mubr.msk.bf16.mxu1 %vm448_vm2, %v1567_v35 }
  0x4a   : > { %1479 = vmatmul.mubr.msk.bf16.gmra.mrb[28].mxu0 %vm448_vm2, %v1568_v36  ;;  %1515 = vmatmul.mubr.msk.bf16.gmra.mrb[28].mxu1 %vm448_vm2, %v1569_v37 }
  0x4b   : > { %1482 = vmatprep.mubr.msk.bf16.mxu0 %vm448_vm2, %v1570_v38  ;;  %1518 = vmatprep.mubr.msk.bf16.mxu1 %vm448_vm2, %v1571_v39 }
  0x52   : > { %1483 = vmatmul.mubr.msk.bf16.gmra.mrb[32].mxu0 %vm448_vm2, %v1572_v40  ;;  %1519 = vmatmul.mubr.msk.bf16.gmra.mrb[32].mxu1 %vm448_vm2, %v1573_v41 }
  0xe5   : > { %v1452_v43 = vpop.f32.mrb[0].mxu0  ;;  %v1488_v44 = vpop.f32.mrb[0].mxu1 }
  0xe6   : > { %v598_v45 = vpop.f32.mrb[1].mxu0  ;;  %v742_v47 = vpop.f32.mrb[1].mxu1  ;;  %v607_v2 = vadd.f32 %v1452_v43, %v1701_v42  ;;  %v751_v6 = vadd.f32 %v1488_v44, %v1701_v42 }
  0xe7   : > { %v599_v46 = vadd.f32 %v1701_v42, %v598_v45  ;;  %v1453_v48 = vpop.f32.mrb[2].mxu0  ;;  %v743_v49 = vadd.f32 %v1701_v42, %v742_v47  ;;  %v1489_v51 = vpop.f32.mrb[2].mxu1 }
  0xe8   : > { %v610_v50 = vadd.f32 %v1453_v48, %v1701_v42  ;;  %v601_v52 = vpop.f32.mrb[3].mxu0  ;;  %v754_v54 = vadd.f32 %v1489_v51, %v1701_v42  ;;  %v745_v55 = vpop.f32.mrb[3].mxu1  ;;  %v887_v19 = vmax.f32 %v607_v2, 0.0  ;;  %v923_v22 = vmax.f32 %v751_v6, 0.0 }
  0xe9   : > { %v885_v53 = vmax.f32 %v599_v46, 0.0  ;;  %v921_v56 = vmax.f32 %v743_v49, 0.0  ;;  %v602_v61 = vadd.f32 %v1701_v42, %v601_v52  ;;  %v746_v63 = vadd.f32 %v1701_v42, %v745_v55 }
  0xea   : > { %v888_v57 = vmax.f32 %v610_v50, 0.0  ;;  %v924_v58 = vmax.f32 %v754_v54, 0.0 }
  0xeb   : > { %v886_v10 = vmax.f32 %v602_v61, 0.0  ;;  %v922_v15 = vmax.f32 %v746_v63, 0.0 }
  0xec   : > { %v957_v59 = vmax.f32 %v885_v53, %v888_v57  ;;  %v1707_v60 = vmax.f32 %v921_v56, %v924_v58 }
  0xed   : > { %v1456_v62 = vpop.f32.mrb[4].mxu0  ;;  %v1492_v0 = vpop.f32.mrb[4].mxu1 }
  0xee   : > { %v614_v1 = vpop.f32.mrb[5].mxu0  ;;  %v758_v4 = vpop.f32.mrb[5].mxu1  ;;  %v1726_v25 = vadd.f32 %v1456_v62, %v1701_v42  ;;  %v767_v57 = vadd.f32 %v1492_v0, %v1701_v42 }
  0xef   : > { %v615_v3 = vadd.f32 %v1701_v42, %v614_v1  ;;  %v1457_v5 = vpop.f32.mrb[6].mxu0  ;;  %v759_v7 = vadd.f32 %v1701_v42, %v758_v4  ;;  %v1493_v8 = vpop.f32.mrb[6].mxu1 }
  0xf0   : > { %v617_v9 = vpop.f32.mrb[7].mxu0  ;;  %v626_v12 = vadd.f32 %v1457_v5, %v1701_v42  ;;  %v761_v14 = vpop.f32.mrb[7].mxu1  ;;  %v770_v17 = vadd.f32 %v1493_v8, %v1701_v42 }
  0xf1   : > { %v889_v11 = vmax.f32 %v615_v3, 0.0  ;;  %v618_v13 = vadd.f32 %v1701_v42, %v617_v9  ;;  %v925_v16 = vmax.f32 %v759_v7, 0.0  ;;  %v762_v18 = vadd.f32 %v1701_v42, %v761_v14 }
  0xf2   : > { %v892_v26 = vmax.f32 %v626_v12, 0.0  ;;  %v928_v30 = vmax.f32 %v770_v17, 0.0  ;;  %v891_v7 = vmax.f32 %v1726_v25, 0.0 }
  0xf3   : > { %v958_v20 = vmax.f32 %v886_v10, %v889_v11  ;;  %v890_v21 = vmax.f32 %v618_v13, 0.0  ;;  %v976_v23 = vmax.f32 %v922_v15, %v925_v16  ;;  %v926_v24 = vmax.f32 %v762_v18, 0.0 }
  0xf4   : > { %v927_v10 = vmax.f32 %v767_v57, 0.0 }
  0xf5   : > { %v959_v27 = vmax.f32 %v887_v19, %v890_v21  ;;  %v1460_v28 = vpop.f32.mrb[8].mxu0  ;;  %v1017_v29 = vrot.slane %v958_v20, 4  ;;  %v977_v31 = vmax.f32 %v923_v22, %v926_v24  ;;  %v1496_v33 = vpop.f32.mrb[8].mxu1  ;;  %v1035_v35 = vrot.slane %v976_v23, 4 }
  0xf6   : > { %v639_v32 = vadd.f32 %v1460_v28, %v1701_v42  ;;  %v630_v34 = vpop.f32.mrb[9].mxu0  ;;  %v783_v37 = vadd.f32 %v1496_v33, %v1701_v42  ;;  %v774_v39 = vpop.f32.mrb[9].mxu1 }
  0xf7   : > { %v1018_v36 = vrot.slane %v959_v27, 4  ;;  %v631_v38 = vadd.f32 %v1701_v42, %v630_v34  ;;  %v1461_v40 = vpop.f32.mrb[10].mxu0  ;;  %v1036_v41 = vrot.slane %v977_v31, 4  ;;  %v775_v44 = vadd.f32 %v1701_v42, %v774_v39  ;;  %v1497_v46 = vpop.f32.mrb[10].mxu1 }
  0xf8   : > { %v895_v43 = vmax.f32 %v639_v32, 0.0  ;;  %v642_v45 = vadd.f32 %v1461_v40, %v1701_v42  ;;  %v633_v47 = vpop.f32.mrb[11].mxu0  ;;  %v931_v50 = vmax.f32 %v783_v37, 0.0  ;;  %v777_v52 = vpop.f32.mrb[11].mxu1 }
  0xf9   : > { %v1019_v48 = vsel %vm557_vm0, %v1017_v29, %v1018_v36  ;;  %v1078_v49 = vmax.f32 %v958_v20, %v1018_v36  ;;  %v893_v51 = vmax.f32 %v631_v38, 0.0  ;;  %v1037_v54 = vsel %vm557_vm0, %v1035_v35, %v1036_v41 }
  0xfa   : > { %v1077_v53 = vmax.f32 %v957_v59, %v1019_v48  ;;  %v1090_v55 = vmax.f32 %v976_v23, %v1036_v41  ;;  %v961_v56 = vmax.f32 %v892_v26, %v895_v43  ;;  %v1089_v61 = vmax.f32 %v1707_v60, %v1037_v54 }
  0xfb   : > { %v1385_v58 = vpack.c.bf16 %v1078_v49, %v1078_v49  ;;  %v979_v62 = vmax.f32 %v928_v30, %v931_v50  ;;  %v896_v2 = vmax.f32 %v642_v45, 0.0  ;;  %v929_v4 = vmax.f32 %v775_v44, 0.0 }
  0xfc   : > { %v1384_v63 = vpack.c.bf16 %v1077_v53, %v1077_v53  ;;  %v1397_v1 = vpack.c.bf16 %v1090_v55, %v1090_v55  ;;  %v1396_v3 = vpack.c.bf16 %v1089_v61, %v1089_v61  ;;  %v786_v59 = vadd.f32 %v1497_v46, %v1701_v42 }
  0xfd   : > { %1198 = vst [vmem:[%s1738_s28 + $0x4] sm:$0x3] %v1385_v58  ;;  %v634_v5 = vadd.f32 %v1701_v42, %v633_v47  ;;  %v1464_v6 = vpop.f32.mrb[12].mxu0  ;;  %v962_v0 = vmax.f32 %v893_v51, %v896_v2  ;;  %v778_v60 = vadd.f32 %v1701_v42, %v777_v52  ;;  %v1500_v8 = vpop.f32.mrb[12].mxu1  ;;  %v1020_v16 = vrot.slane %v961_v56, 4 }
  0xfe   : > { %1197 = vst [vmem:[%s1738_s28] sm:$0xf] %v1384_v63  ;;  %1210 = vst [vmem:[%s1738_s28 + $0x34] sm:$0x3] %v1397_v1  ;;  %v646_v9 = vpop.f32.mrb[13].mxu0  ;;  %v932_v11 = vmax.f32 %v786_v59, 0.0  ;;  %v790_v14 = vpop.f32.mrb[13].mxu1  ;;  %v655_v49 = vadd.f32 %v1464_v6, %v1701_v42  ;;  %v799_v50 = vadd.f32 %v1500_v8, %v1701_v42 }
  0xff   : > { %1209 = vst [vmem:[%s1738_s28 + $0x30] sm:$0xf] %v1396_v3  ;;  %v894_v12 = vmax.f32 %v634_v5, 0.0  ;;  %v647_v13 = vadd.f32 %v1701_v42, %v646_v9  ;;  %v1465_v15 = vpop.f32.mrb[14].mxu0  ;;  %v1021_v17 = vrot.slane %v962_v0, 4  ;;  %v930_v18 = vmax.f32 %v778_v60, 0.0 }
 0x100   : > { %v791_v19 = vadd.f32 %v1701_v42, %v790_v14  ;;  %v1501_v20 = vpop.f32.mrb[14].mxu1  ;;  %v649_v21 = vpop.f32.mrb[15].mxu0  ;;  %v1038_v22 = vrot.slane %v979_v62, 4  ;;  %v980_v23 = vmax.f32 %v929_v4, %v932_v11  ;;  %v658_v32 = vadd.f32 %v1465_v15, %v1701_v42 }
 0x101   : > { %v960_v24 = vmax.f32 %v891_v7, %v894_v12  ;;  %v793_v25 = vpop.f32.mrb[15].mxu1  ;;  %v1080_v26 = vmax.f32 %v961_v56, %v1021_v17  ;;  %v1022_v27 = vsel %vm557_vm0, %v1020_v16, %v1021_v17  ;;  %v978_v28 = vmax.f32 %v927_v10, %v930_v18 }
 0x102   : > { %v897_v29 = vmax.f32 %v647_v13, 0.0  ;;  %v1039_v30 = vrot.slane %v980_v23, 4  ;;  %v802_v33 = vadd.f32 %v1501_v20, %v1701_v42  ;;  %v933_v35 = vmax.f32 %v791_v19, 0.0 }
 0x103   : > { %v1079_v31 = vmax.f32 %v960_v24, %v1022_v27  ;;  %v1387_v34 = vpack.c.bf16 %v1080_v26, %v1080_v26  ;;  %v650_v36 = vadd.f32 %v1701_v42, %v649_v21  ;;  %v794_v37 = vadd.f32 %v1701_v42, %v793_v25 }
 0x104   : > { %v1092_v38 = vmax.f32 %v979_v62, %v1039_v30  ;;  %v1040_v40 = vsel %vm557_vm0, %v1038_v22, %v1039_v30  ;;  %v900_v41 = vmax.f32 %v658_v32, 0.0  ;;  %v936_v45 = vmax.f32 %v802_v33, 0.0 }
 0x105   : > { %v1386_v39 = vpack.c.bf16 %v1079_v31, %v1079_v31  ;;  %v1468_v43 = vpop.f32.mrb[16].mxu0  ;;  %1200 = vst [vmem:[%s1738_s28 + $0xc] sm:$0x3] %v1387_v34  ;;  %v1091_v44 = vmax.f32 %v978_v28, %v1040_v40  ;;  %v1760_v46 = vpop.f32.mrb[16].mxu1  ;;  %v898_v62 = vmax.f32 %v650_v36, 0.0  ;;  %v934_v63 = vmax.f32 %v794_v37, 0.0 }
 0x106   : > { %v662_v47 = vpop.f32.mrb[17].mxu0  ;;  %v1399_v48 = vpack.c.bf16 %v1092_v38, %v1092_v38  ;;  %v963_v51 = vmax.f32 %v897_v29, %v900_v41  ;;  %v806_v52 = vpop.f32.mrb[17].mxu1  ;;  %v981_v55 = vmax.f32 %v933_v35, %v936_v45  ;;  %v899_v7 = vmax.f32 %v655_v49, 0.0 }
 0x107   : > { %1199 = vst [vmem:[%s1738_s28 + $0x8] sm:$0xf] %v1386_v39  ;;  %v1469_v53 = vpop.f32.mrb[18].mxu0  ;;  %v1398_v54 = vpack.c.bf16 %v1091_v44, %v1091_v44  ;;  %v663_v56 = vadd.f32 %v1701_v42, %v662_v47  ;;  %v807_v57 = vadd.f32 %v1701_v42, %v806_v52  ;;  %v1505_v58 = vpop.f32.mrb[18].mxu1  ;;  %v935_v0 = vmax.f32 %v799_v50, 0.0 }
 0x108   : > { %v665_v61 = vpop.f32.mrb[19].mxu0  ;;  %1212 = vst [vmem:[%s1738_s28 + $0x3c] sm:$0x3] %v1399_v48  ;;  %v674_v1 = vadd.f32 %v1469_v53, %v1701_v42  ;;  %v818_v2 = vadd.f32 %v1505_v58, %v1701_v42  ;;  %v809_v3 = vpop.f32.mrb[19].mxu1  ;;  %v1774_v11 = vadd.f32 %v1468_v43, %v1701_v42  ;;  %v815_v52 = vadd.f32 %v1760_v46, %v1701_v42 }
 0x109   : > { %1211 = vst [vmem:[%s1738_s28 + $0x38] sm:$0xf] %v1398_v54  ;;  %v901_v4 = vmax.f32 %v663_v56, 0.0  ;;  %v937_v59 = vmax.f32 %v807_v57, 0.0  ;;  %v666_v5 = vadd.f32 %v1701_v42, %v665_v61  ;;  %v810_v6 = vadd.f32 %v1701_v42, %v809_v3 }
 0x10a   : > { %v904_v12 = vmax.f32 %v674_v1, 0.0  ;;  %v940_v15 = vmax.f32 %v818_v2, 0.0 }
 0x10b   : > { %v964_v60 = vmax.f32 %v898_v62, %v901_v4  ;;  %v982_v8 = vmax.f32 %v934_v63, %v937_v59  ;;  %v902_v9 = vmax.f32 %v666_v5, 0.0  ;;  %v938_v10 = vmax.f32 %v810_v6, 0.0 }
 0x10c   : > { %v903_v63 = vmax.f32 %v1774_v11, 0.0 }
 0x10d   : > { %v1472_v13 = vpop.f32.mrb[20].mxu0  ;;  %v1023_v14 = vrot.slane %v964_v60, 4  ;;  %v965_v16 = vmax.f32 %v899_v7, %v902_v9  ;;  %v983_v17 = vmax.f32 %v935_v0, %v938_v10  ;;  %v1508_v18 = vpop.f32.mrb[20].mxu1  ;;  %v1041_v20 = vrot.slane %v982_v8, 4 }
 0x10e   : > { %v678_v19 = vpop.f32.mrb[21].mxu0  ;;  %v687_v21 = vadd.f32 %v1472_v13, %v1701_v42  ;;  %v831_v22 = vadd.f32 %v1508_v18, %v1701_v42  ;;  %v822_v24 = vpop.f32.mrb[21].mxu1 }
 0x10f   : > { %v679_v23 = vadd.f32 %v1701_v42, %v678_v19  ;;  %v1473_v25 = vpop.f32.mrb[22].mxu0  ;;  %v1024_v26 = vrot.slane %v965_v16, 4  ;;  %v1042_v27 = vrot.slane %v983_v17, 4  ;;  %v823_v28 = vadd.f32 %v1701_v42, %v822_v24  ;;  %v1509_v30 = vpop.f32.mrb[22].mxu1 }
 0x110   : > { %v690_v29 = vadd.f32 %v1473_v25, %v1701_v42  ;;  %v681_v31 = vpop.f32.mrb[23].mxu0  ;;  %v907_v32 = vmax.f32 %v687_v21, 0.0  ;;  %v943_v33 = vmax.f32 %v831_v22, 0.0  ;;  %v834_v35 = vadd.f32 %v1509_v30, %v1701_v42  ;;  %v825_v36 = vpop.f32.mrb[23].mxu1 }
 0x111   : > { %v905_v34 = vmax.f32 %v679_v23, 0.0  ;;  %v1025_v37 = vsel %vm557_vm0, %v1023_v14, %v1024_v26  ;;  %v1082_v38 = vmax.f32 %v964_v60, %v1024_v26  ;;  %v1043_v39 = vsel %vm557_vm0, %v1041_v20, %v1042_v27 }
 0x112   : > { %v1094_v40 = vmax.f32 %v982_v8, %v1042_v27  ;;  %v1081_v41 = vmax.f32 %v963_v51, %v1025_v37  ;;  %v1093_v43 = vmax.f32 %v981_v55, %v1043_v39  ;;  %v967_v44 = vmax.f32 %v904_v12, %v907_v32 }
 0x113   : > { %v985_v45 = vmax.f32 %v940_v15, %v943_v33  ;;  %v1389_v47 = vpack.c.bf16 %v1082_v38, %v1082_v38  ;;  %v941_v49 = vmax.f32 %v823_v28, 0.0  ;;  %v908_v50 = vmax.f32 %v690_v29, 0.0 }
 0x114   : > { %v1401_v48 = vpack.c.bf16 %v1094_v40, %v1094_v40  ;;  %v1388_v53 = vpack.c.bf16 %v1081_v41, %v1081_v41  ;;  %v1400_v54 = vpack.c.bf16 %v1093_v43, %v1093_v43  ;;  %v944_v58 = vmax.f32 %v834_v35, 0.0 }
 0x115   : > { %v1476_v56 = vpop.f32.mrb[24].mxu0  ;;  %1202 = vst [vmem:[%s1738_s28 + $0x14] sm:$0x3] %v1389_v47  ;;  %v968_v57 = vmax.f32 %v905_v34, %v908_v50  ;;  %v682_v51 = vadd.f32 %v1701_v42, %v681_v31  ;;  %v826_v55 = vadd.f32 %v1701_v42, %v825_v36  ;;  %v1512_v61 = vpop.f32.mrb[24].mxu1  ;;  %v1026_v1 = vrot.slane %v967_v44, 4 }
 0x116   : > { %1214 = vst [vmem:[%s1738_s28 + $0x44] sm:$0x3] %v1401_v48  ;;  %v694_v62 = vpop.f32.mrb[25].mxu0  ;;  %1201 = vst [vmem:[%s1738_s28 + $0x10] sm:$0xf] %v1388_v53  ;;  %v838_v2 = vpop.f32.mrb[25].mxu1  ;;  %v986_v59 = vmax.f32 %v941_v49, %v944_v58  ;;  %v703_v30 = vadd.f32 %v1476_v56, %v1701_v42  ;;  %v847_v40 = vadd.f32 %v1512_v61, %v1701_v42 }
 0x117   : > { %1213 = vst [vmem:[%s1738_s28 + $0x40] sm:$0xf] %v1400_v54  ;;  %v695_v46 = vadd.f32 %v1701_v42, %v694_v62  ;;  %v1477_v3 = vpop.f32.mrb[26].mxu0  ;;  %v1027_v4 = vrot.slane %v968_v57, 4  ;;  %v906_v5 = vmax.f32 %v682_v51, 0.0  ;;  %v942_v6 = vmax.f32 %v826_v55, 0.0 }
 0x118   : > { %v1513_v7 = vpop.f32.mrb[26].mxu1  ;;  %v697_v0 = vpop.f32.mrb[27].mxu0  ;;  %v939_v60 = vmax.f32 %v815_v52, 0.0  ;;  %v1044_v8 = vrot.slane %v985_v45, 4  ;;  %v839_v10 = vadd.f32 %v1701_v42, %v838_v2  ;;  %v1045_v13 = vrot.slane %v986_v59, 4 }
 0x119   : > { %v909_v9 = vmax.f32 %v695_v46, 0.0  ;;  %v841_v12 = vpop.f32.mrb[27].mxu1  ;;  %v1084_v11 = vmax.f32 %v967_v44, %v1027_v4  ;;  %v966_v14 = vmax.f32 %v903_v63, %v906_v5  ;;  %v1028_v15 = vsel %vm557_vm0, %v1026_v1, %v1027_v4 }
 0x11a   : > { %v984_v16 = vmax.f32 %v939_v60, %v942_v6  ;;  %v945_v17 = vmax.f32 %v839_v10, 0.0  ;;  %v706_v18 = vadd.f32 %v1477_v3, %v1701_v42  ;;  %v850_v19 = vadd.f32 %v1513_v7, %v1701_v42 }
 0x11b   : > { %v1391_v20 = vpack.c.bf16 %v1084_v11, %v1084_v11  ;;  %v1096_v21 = vmax.f32 %v985_v45, %v1045_v13  ;;  %v1083_v22 = vmax.f32 %v966_v14, %v1028_v15  ;;  %v1046_v23 = vsel %vm557_vm0, %v1044_v8, %v1045_v13 }
 0x11c   : > { %v1095_v24 = vmax.f32 %v984_v16, %v1046_v23  ;;  %v912_v25 = vmax.f32 %v706_v18, 0.0  ;;  %v948_v26 = vmax.f32 %v850_v19, 0.0  ;;  %v698_v31 = vadd.f32 %v1701_v42, %v697_v0 }
 0x11d   : > { %v1799_v27 = vpop.f32.mrb[28].mxu0  ;;  %1204 = vst [vmem:[%s1738_s28 + $0x1c] sm:$0x3] %v1391_v20  ;;  %v1403_v28 = vpack.c.bf16 %v1096_v21, %v1096_v21  ;;  %v1390_v29 = vpack.c.bf16 %v1083_v22, %v1083_v22  ;;  %v1804_v32 = vpop.f32.mrb[28].mxu1  ;;  %v842_v37 = vadd.f32 %v1701_v42, %v841_v12  ;;  %v911_v56 = vmax.f32 %v703_v30, 0.0 }
 0x11e   : > { %v710_v33 = vpop.f32.mrb[29].mxu0  ;;  %v1402_v34 = vpack.c.bf16 %v1095_v24, %v1095_v24  ;;  %v969_v35 = vmax.f32 %v909_v9, %v912_v25  ;;  %v987_v36 = vmax.f32 %v945_v17, %v948_v26  ;;  %v854_v38 = vpop.f32.mrb[29].mxu1  ;;  %v910_v50 = vmax.f32 %v698_v31, 0.0 }
 0x11f   : > { %v1481_v39 = vpop.f32.mrb[30].mxu0  ;;  %1216 = vst [vmem:[%s1738_s28 + $0x4c] sm:$0x3] %v1403_v28  ;;  %1203 = vst [vmem:[%s1738_s28 + $0x18] sm:$0xf] %v1390_v29  ;;  %v711_v41 = vadd.f32 %v1701_v42, %v710_v33  ;;  %v1517_v43 = vpop.f32.mrb[30].mxu1  ;;  %v855_v45 = vadd.f32 %v1701_v42, %v854_v38  ;;  %v719_v28 = vadd.f32 %v1799_v27, %v1701_v42 }
 0x120   : > { %v713_v44 = vpop.f32.mrb[31].mxu0  ;;  %1215 = vst [vmem:[%s1738_s28 + $0x48] sm:$0xf] %v1402_v34  ;;  %v722_v47 = vadd.f32 %v1481_v39, %v1701_v42  ;;  %v857_v49 = vpop.f32.mrb[31].mxu1  ;;  %v866_v53 = vadd.f32 %v1517_v43, %v1701_v42  ;;  %v946_v57 = vmax.f32 %v842_v37, 0.0  ;;  %v947_v55 = vmax.f32 %v847_v40, 0.0 }
 0x121   : > { %v714_v48 = vadd.f32 %v1701_v42, %v713_v44  ;;  %v913_v52 = vmax.f32 %v711_v41, 0.0  ;;  %v858_v54 = vadd.f32 %v1701_v42, %v857_v49  ;;  %v949_v58 = vmax.f32 %v855_v45, 0.0 }
 0x122   : > { %v916_v1 = vmax.f32 %v722_v47, 0.0  ;;  %v952_v4 = vmax.f32 %v866_v53, 0.0  ;;  %v863_v33 = vadd.f32 %v1804_v32, %v1701_v42  ;;  %v915_v43 = vmax.f32 %v719_v28, 0.0 }
 0x123   : > { %v914_v51 = vmax.f32 %v714_v48, 0.0  ;;  %v970_v61 = vmax.f32 %v910_v50, %v913_v52  ;;  %v950_v62 = vmax.f32 %v858_v54, 0.0  ;;  %v988_v63 = vmax.f32 %v946_v57, %v949_v58 }
 0x124   : > { %v951_v32 = vmax.f32 %v863_v33, 0.0 }
 0x125   : > { %v971_v46 = vmax.f32 %v911_v56, %v914_v51  ;;  %v1484_v2 = vpop.f32.mrb[32].mxu0  ;;  %v1029_v3 = vrot.slane %v970_v61, 4  ;;  %v989_v59 = vmax.f32 %v947_v55, %v950_v62  ;;  %v1520_v6 = vpop.f32.mrb[32].mxu1  ;;  %v1047_v0 = vrot.slane %v988_v63, 4 }
 0x126   : > { %v735_v5 = vadd.f32 %v1484_v2, %v1701_v42  ;;  %v726_v7 = vpop.f32.mrb[33].mxu0  ;;  %v879_v8 = vadd.f32 %v1520_v6, %v1701_v42  ;;  %v870_v10 = vpop.f32.mrb[33].mxu1 }
 0x127   : > { %v1030_v60 = vrot.slane %v971_v46, 4  ;;  %v727_v9 = vadd.f32 %v1701_v42, %v726_v7  ;;  %v1485_v12 = vpop.f32.mrb[34].mxu0  ;;  %v1048_v11 = vrot.slane %v989_v59, 4  ;;  %v871_v14 = vadd.f32 %v1701_v42, %v870_v10  ;;  %v1521_v16 = vpop.f32.mrb[34].mxu1 }
 0x128   : > { %v919_v13 = vmax.f32 %v735_v5, 0.0  ;;  %v738_v15 = vadd.f32 %v1485_v12, %v1701_v42  ;;  %v729_v17 = vpop.f32.mrb[35].mxu0  ;;  %v955_v20 = vmax.f32 %v879_v8, 0.0  ;;  %v873_v22 = vpop.f32.mrb[35].mxu1  ;;  %v882_v40 = vadd.f32 %v1521_v16, %v1701_v42 }
 0x129   : > { %v1031_v18 = vsel %vm557_vm0, %v1029_v3, %v1030_v60  ;;  %v1086_v19 = vmax.f32 %v970_v61, %v1030_v60  ;;  %v917_v21 = vmax.f32 %v727_v9, 0.0  ;;  %v1049_v24 = vsel %vm557_vm0, %v1047_v0, %v1048_v11 }
 0x12a   : > { %v1085_v23 = vmax.f32 %v969_v35, %v1031_v18  ;;  %v1098_v25 = vmax.f32 %v988_v63, %v1048_v11  ;;  %v973_v26 = vmax.f32 %v916_v1, %v919_v13  ;;  %v1097_v30 = vmax.f32 %v987_v36, %v1049_v24 }
 0x12b   : > { %v1393_v29 = vpack.c.bf16 %v1086_v19, %v1086_v19  ;;  %v991_v31 = vmax.f32 %v952_v4, %v955_v20  ;;  %v920_v38 = vmax.f32 %v738_v15, 0.0  ;;  %v953_v39 = vmax.f32 %v871_v14, 0.0 }
 0x12c   : > { %v1392_v34 = vpack.c.bf16 %v1085_v23, %v1085_v23  ;;  %v1405_v37 = vpack.c.bf16 %v1098_v25, %v1098_v25  ;;  %v1404_v35 = vpack.c.bf16 %v1097_v30, %v1097_v30  ;;  %v730_v41 = vadd.f32 %v1701_v42, %v729_v17 }
 0x12d   : > { %1206 = vst [vmem:[%s1738_s28 + $0x24] sm:$0x3] %v1393_v29  ;;  %v974_v27 = vmax.f32 %v917_v21, %v920_v38  ;;  %v874_v36 = vadd.f32 %v1701_v42, %v873_v22  ;;  %v956_v44 = vmax.f32 %v882_v40, 0.0  ;;  %v1032_v47 = vrot.slane %v973_v26, 4 }
 0x12e   : > { %1205 = vst [vmem:[%s1738_s28 + $0x20] sm:$0xf] %v1392_v34  ;;  %1218 = vst [vmem:[%s1738_s28 + $0x54] sm:$0x3] %v1405_v37  ;;  %v918_v45 = vmax.f32 %v730_v41, 0.0  ;;  %v1050_v57 = vrot.slane %v991_v31, 4 }
 0x12f   : > { %1217 = vst [vmem:[%s1738_s28 + $0x50] sm:$0xf] %v1404_v35  ;;  %v1033_v48 = vrot.slane %v974_v27, 4  ;;  %v954_v49 = vmax.f32 %v874_v36, 0.0  ;;  %v992_v50 = vmax.f32 %v953_v39, %v956_v44 }
 0x130   : > { %v972_v52 = vmax.f32 %v915_v43, %v918_v45 }
 0x131   : > { %v1088_v53 = vmax.f32 %v973_v26, %v1033_v48  ;;  %v1034_v54 = vsel %vm557_vm0, %v1032_v47, %v1033_v48  ;;  %v990_v56 = vmax.f32 %v951_v32, %v954_v49  ;;  %v1051_v42 = vrot.slane %v992_v50, 4 }
 0x132   : > { %v1087_v58 = vmax.f32 %v972_v52, %v1034_v54 }
 0x133   : > { %v1395_v51 = vpack.c.bf16 %v1088_v53, %v1088_v53  ;;  %v1100_v55 = vmax.f32 %v991_v31, %v1051_v42  ;;  %v1052_v62 = vsel %vm557_vm0, %v1050_v57, %v1051_v42 }
 0x134   : > { %v1394_v61 = vpack.c.bf16 %v1087_v58, %v1087_v58  ;;  %v1099_v63 = vmax.f32 %v990_v56, %v1052_v62 }
 0x135   : > { %1208 = vst [vmem:[%s1738_s28 + $0x2c] sm:$0x3] %v1395_v51  ;;  %v1407_v1 = vpack.c.bf16 %v1100_v55, %v1100_v55 }
 0x136   : > { %1207 = vst [vmem:[%s1738_s28 + $0x28] sm:$0xf] %v1394_v61  ;;  %v1406_v46 = vpack.c.bf16 %v1099_v63, %v1099_v63 }
 0x137   : > { %1220 = vst [vmem:[%s1738_s28 + $0x5c] sm:$0x3] %v1407_v1 }
 0x138   : > { %1219 = vst [vmem:[%s1738_s28 + $0x58] sm:$0xf] %v1406_v46 }
 0x139 PF: > { %s13_s12 = sadd.s32 1, %s1580_s12  }
 0x13a   : > { %p10_p5 = scmp.ge.s32.totalorder %s13_s12, 4  }
 0x13c   :  { %12 = sbr.rel (!%p10_p5) target bundleno = 1 (0x1), region = 62 }

// kernel: net_forward.5
= control target key start
LH: loop header
LB: loop body
LE: loop exit
PB: predicated region body
PF: predicated region fallthrough
CT: control target
= control target key end

     0   :  { %s7409_s1 = inlined_call_operand.vmem [shape: bf16[2048,512], index: 1, kind: input, shape index: {}]   ;;  %s7410_s0 = inlined_call_operand.vmem [shape: bf16[8,2048], index: 0, kind: input, shape index: {}]   ;;  %s7411_s3 = inlined_call_operand.vmem [shape: bf16[512,128], index: 3, kind: input, shape index: {}]   ;;  %s7412_s2 = inlined_call_operand.vmem [shape: f32[1,512], index: 2, kind: input, shape index: {}]   ;;  %s7413_s4 = inlined_call_operand.vmem [shape: f32[1,128], index: 4, kind: input, shape index: {}]   ;;  %s7414_s5 = inlined_call_operand.vmem [shape: f32[8,128], index: 5, kind: output, shape index: {}]  }
   0x1   :  { %v4856_v0 = vld [vmem:[%s7409_s1 + $0x4] ss:$16 sps:$4 sm:$0xff]   ;;  %v4858_v1 = vld [vmem:[%s7409_s1 + $0xc] ss:$16 sps:$4 sm:$0xff]   ;;  %v4860_v2 = vld [vmem:[%s7409_s1] ss:$16 sps:$4 sm:$0xff]  }
   0x2   :  { %3179 = vmatprep.subr.bf16.mxu0 %v4856_v0  ;;  %v4861_v3 = vld [vmem:[%s7409_s1 + $0x8] ss:$16 sps:$4 sm:$0xff]   ;;  %3507 = vmatprep.subr.bf16.mxu1 %v4858_v1  ;;  %v4862_v4 = vld [vmem:[%s7409_s1 + $0x24] ss:$16 sps:$4 sm:$0xff]   ;;  %v4864_v5 = vld [vmem:[%s7409_s1 + $0x2c] ss:$16 sps:$4 sm:$0xff]  }
   0x3   :  { %3180 = vmatpush1.bf16.msra.mxu0 %v4860_v2  ;;  %3508 = vmatpush1.bf16.msra.mxu1 %v4861_v3  ;;  %v4866_v6 = vld [vmem:[%s7409_s1 + $0x20] ss:$16 sps:$4 sm:$0xff]   ;;  %v4867_v7 = vld [vmem:[%s7409_s1 + $0x28] ss:$16 sps:$4 sm:$0xff]   ;;  %v4868_v8 = vld [vmem:[%s7409_s1 + $0x44] ss:$16 sps:$4 sm:$0xff]  }
   0x4   :  { %3181 = vmatprep.subr.bf16.mxu0 %v4862_v4  ;;  %3509 = vmatprep.subr.bf16.mxu1 %v4864_v5  ;;  %v4870_v9 = vld [vmem:[%s7409_s1 + $0x4c] ss:$16 sps:$4 sm:$0xff]   ;;  %v4872_v10 = vld [vmem:[%s7409_s1 + $0x40] ss:$16 sps:$4 sm:$0xff]   ;;  %v4873_v11 = vld [vmem:[%s7409_s1 + $0x48] ss:$16 sps:$4 sm:$0xff]  }
   0x5   :  { %v4874_v12 = vld [vmem:[%s7409_s1 + $0x64] ss:$16 sps:$4 sm:$0xff]   ;;  %v4876_v13 = vld [vmem:[%s7409_s1 + $0x6c] ss:$16 sps:$4 sm:$0xff]   ;;  %v4878_v14 = vld [vmem:[%s7409_s1 + $0x60] ss:$16 sps:$4 sm:$0xff]  }
   0x6   :  { %v4879_v15 = vld [vmem:[%s7409_s1 + $0x68] ss:$16 sps:$4 sm:$0xff]   ;;  %v4880_v16 = vld [vmem:[%s7409_s1 + $0x84] ss:$16 sps:$4 sm:$0xff]   ;;  %v4882_v17 = vld [vmem:[%s7409_s1 + $0x8c] ss:$16 sps:$4 sm:$0xff]  }
   0x7   :  { %3182 = vmatpush1.bf16.msra.mxu0 %v4866_v6  ;;  %3510 = vmatpush1.bf16.msra.mxu1 %v4867_v7  ;;  %v4884_v18 = vld [vmem:[%s7409_s1 + $0x80] ss:$16 sps:$4 sm:$0xff]   ;;  %v4885_v19 = vld [vmem:[%s7409_s1 + $0x88] ss:$16 sps:$4 sm:$0xff]   ;;  %v4886_v20 = vld [vmem:[%s7409_s1 + $0xa4] ss:$16 sps:$4 sm:$0xff]  }
   0x8   :  { %3183 = vmatprep.subr.bf16.mxu0 %v4868_v8  ;;  %3511 = vmatprep.subr.bf16.mxu1 %v4870_v9  ;;  %v4888_v21 = vld [vmem:[%s7409_s1 + $0xac] ss:$16 sps:$4 sm:$0xff]   ;;  %v4890_v22 = vld [vmem:[%s7409_s1 + $0xa0] ss:$16 sps:$4 sm:$0xff]   ;;  %v4891_v23 = vld [vmem:[%s7409_s1 + $0xa8] ss:$16 sps:$4 sm:$0xff]  }
   0x9   :  { %v4892_v24 = vld [vmem:[%s7409_s1 + $0xc4] ss:$16 sps:$4 sm:$0xff]   ;;  %v4894_v25 = vld [vmem:[%s7409_s1 + $0xcc] ss:$16 sps:$4 sm:$0xff]   ;;  %v4896_v26 = vld [vmem:[%s7409_s1 + $0xc0] ss:$16 sps:$4 sm:$0xff]  }
   0xa   :  { %v4897_v27 = vld [vmem:[%s7409_s1 + $0xc8] ss:$16 sps:$4 sm:$0xff]   ;;  %v4898_v28 = vld [vmem:[%s7409_s1 + $0xe4] ss:$16 sps:$4 sm:$0xff]   ;;  %v4900_v29 = vld [vmem:[%s7409_s1 + $0xec] ss:$16 sps:$4 sm:$0xff]  }
   0xb   :  { %3184 = vmatpush1.bf16.msra.mxu0 %v4872_v10  ;;  %3512 = vmatpush1.bf16.msra.mxu1 %v4873_v11  ;;  %v4902_v30 = vld [vmem:[%s7409_s1 + $0xe0] ss:$16 sps:$4 sm:$0xff]   ;;  %v4903_v31 = vld [vmem:[%s7409_s1 + $0xe8] ss:$16 sps:$4 sm:$0xff]   ;;  %v4904_v32 = vld [vmem:[%s7409_s1 + $0x104] ss:$16 sps:$4 sm:$0xff]  }
   0xc   :  { %3185 = vmatprep.subr.bf16.mxu0 %v4874_v12  ;;  %3513 = vmatprep.subr.bf16.mxu1 %v4876_v13  ;;  %v4906_v33 = vld [vmem:[%s7409_s1 + $0x10c] ss:$16 sps:$4 sm:$0xff]   ;;  %v4908_v34 = vld [vmem:[%s7409_s1 + $0x100] ss:$16 sps:$4 sm:$0xff]   ;;  %v4909_v35 = vld [vmem:[%s7409_s1 + $0x108] ss:$16 sps:$4 sm:$0xff]  }
   0xd   :  { %v4910_v36 = vld [vmem:[%s7409_s1 + $0x124] ss:$16 sps:$4 sm:$0xff]   ;;  %v4912_v37 = vld [vmem:[%s7409_s1 + $0x12c] ss:$16 sps:$4 sm:$0xff]   ;;  %v4914_v38 = vld [vmem:[%s7409_s1 + $0x120] ss:$16 sps:$4 sm:$0xff]  }
   0xe   :  { %v4915_v39 = vld [vmem:[%s7409_s1 + $0x128] ss:$16 sps:$4 sm:$0xff]   ;;  %v4916_v40 = vld [vmem:[%s7409_s1 + $0x144] ss:$16 sps:$4 sm:$0xff]   ;;  %v4918_v41 = vld [vmem:[%s7409_s1 + $0x14c] ss:$16 sps:$4 sm:$0xff]  }
   0xf   :  { %3186 = vmatpush1.bf16.msra.mxu0 %v4878_v14  ;;  %3514 = vmatpush1.bf16.msra.mxu1 %v4879_v15  ;;  %v4920_v42 = vld [vmem:[%s7409_s1 + $0x140] ss:$16 sps:$4 sm:$0xff]   ;;  %v4921_v43 = vld [vmem:[%s7409_s1 + $0x148] ss:$16 sps:$4 sm:$0xff]   ;;  %v4922_v44 = vld [vmem:[%s7409_s1 + $0x164] ss:$16 sps:$4 sm:$0xff]  }
  0x10   :  { %3187 = vmatprep.subr.bf16.mxu0 %v4880_v16  ;;  %3515 = vmatprep.subr.bf16.mxu1 %v4882_v17  ;;  %v4924_v45 = vld [vmem:[%s7409_s1 + $0x16c] ss:$16 sps:$4 sm:$0xff]   ;;  %v21_v46 = vld [vmem:[%s7410_s0] sm:$0xff]  ;;  %v4927_v49 = vld [vmem:[%s7409_s1 + $0x168] ss:$16 sps:$4 sm:$0xff]  }
  0x11   :  { %v4926_v47 = vld [vmem:[%s7409_s1 + $0x160] ss:$16 sps:$4 sm:$0xff]   ;;  %v4192_v48 = vcombine.high %v21_v46, %v21_v46  ;;  %v4928_v50 = vld [vmem:[%s7409_s1 + $0x184] ss:$16 sps:$4 sm:$0xff]   ;;  %v4930_v51 = vld [vmem:[%s7409_s1 + $0x18c] ss:$16 sps:$4 sm:$0xff]   ;;  %v4191_v4 = vcombine.low %v21_v46, %v21_v46 }
  0x12   :  { %v4932_v52 = vld [vmem:[%s7409_s1 + $0x180] ss:$16 sps:$4 sm:$0xff]   ;;  %v4933_v53 = vld [vmem:[%s7409_s1 + $0x188] ss:$16 sps:$4 sm:$0xff]   ;;  %v4934_v54 = vld [vmem:[%s7409_s1 + $0x1a4] ss:$16 sps:$4 sm:$0xff]  }
  0x13   :  { %3188 = vmatpush1.bf16.msra.mxu0 %v4884_v18  ;;  %3516 = vmatpush1.bf16.msra.mxu1 %v4885_v19  ;;  %v4936_v55 = vld [vmem:[%s7409_s1 + $0x1ac] ss:$16 sps:$4 sm:$0xff]   ;;  %v4938_v56 = vld [vmem:[%s7409_s1 + $0x1a0] ss:$16 sps:$4 sm:$0xff]   ;;  %v4939_v57 = vld [vmem:[%s7409_s1 + $0x1a8] ss:$16 sps:$4 sm:$0xff]  }
  0x14   :  { %3189 = vmatprep.subr.bf16.mxu0 %v4886_v20  ;;  %3517 = vmatprep.subr.bf16.mxu1 %v4888_v21  ;;  %v4940_v58 = vld [vmem:[%s7409_s1 + $0x1c4] ss:$16 sps:$4 sm:$0xff]   ;;  %v4942_v59 = vld [vmem:[%s7409_s1 + $0x1cc] ss:$16 sps:$4 sm:$0xff]   ;;  %v4944_v60 = vld [vmem:[%s7409_s1 + $0x1c0] ss:$16 sps:$4 sm:$0xff]  }
  0x15   :  { %3211 = vmatprep.mubr.bf16.mxu0 %v4192_v48  ;;  %3539 = vmatprep.mubr.bf16.mxu1 %v4192_v48  ;;  %v4945_v61 = vld [vmem:[%s7409_s1 + $0x1c8] ss:$16 sps:$4 sm:$0xff]   ;;  %v4946_v62 = vld [vmem:[%s7409_s1 + $0x1e4] ss:$16 sps:$4 sm:$0xff]   ;;  %v4948_v63 = vld [vmem:[%s7409_s1 + $0x1ec] ss:$16 sps:$4 sm:$0xff]  }
  0x16   :  { %v4950_v0 = vld [vmem:[%s7409_s1 + $0x1e0] ss:$16 sps:$4 sm:$0xff]   ;;  %v4951_v1 = vld [vmem:[%s7409_s1 + $0x1e8] ss:$16 sps:$4 sm:$0xff]   ;;  %v4956_v2 = vld [vmem:[%s7409_s1 + $0x204] ss:$16 sps:$4 sm:$0xff]  }
  0x17   :  { %3190 = vmatpush1.bf16.msra.mxu0 %v4890_v22  ;;  %3518 = vmatpush1.bf16.msra.mxu1 %v4891_v23  ;;  %v4959_v3 = vld [vmem:[%s7409_s1 + $0x20c] ss:$16 sps:$4 sm:$0xff]   ;;  %v4954_v5 = vld [vmem:[%s7409_s1 + $0x200] ss:$16 sps:$4 sm:$0xff]   ;;  %v4957_v6 = vld [vmem:[%s7409_s1 + $0x208] ss:$16 sps:$4 sm:$0xff]  }
  0x18   :  { %3191 = vmatprep.subr.bf16.mxu0 %v4892_v24  ;;  %3519 = vmatprep.subr.bf16.mxu1 %v4894_v25  ;;  %v4962_v7 = vld [vmem:[%s7409_s1 + $0x224] ss:$16 sps:$4 sm:$0xff]   ;;  %v4965_v8 = vld [vmem:[%s7409_s1 + $0x22c] ss:$16 sps:$4 sm:$0xff]   ;;  %v4960_v9 = vld [vmem:[%s7409_s1 + $0x220] ss:$16 sps:$4 sm:$0xff]  }
  0x19   :  { %v4963_v10 = vld [vmem:[%s7409_s1 + $0x228] ss:$16 sps:$4 sm:$0xff]   ;;  %v4968_v11 = vld [vmem:[%s7409_s1 + $0x244] ss:$16 sps:$4 sm:$0xff]   ;;  %v4971_v12 = vld [vmem:[%s7409_s1 + $0x24c] ss:$16 sps:$4 sm:$0xff]  }
  0x1a   :  { %v4966_v13 = vld [vmem:[%s7409_s1 + $0x240] ss:$16 sps:$4 sm:$0xff]   ;;  %v4969_v14 = vld [vmem:[%s7409_s1 + $0x248] ss:$16 sps:$4 sm:$0xff]   ;;  %v4974_v15 = vld [vmem:[%s7409_s1 + $0x264] ss:$16 sps:$4 sm:$0xff]  }
  0x1b   :  { %3192 = vmatpush1.bf16.msra.mxu0 %v4896_v26  ;;  %3520 = vmatpush1.bf16.msra.mxu1 %v4897_v27  ;;  %v4977_v16 = vld [vmem:[%s7409_s1 + $0x26c] ss:$16 sps:$4 sm:$0xff]   ;;  %v4972_v17 = vld [vmem:[%s7409_s1 + $0x260] ss:$16 sps:$4 sm:$0xff]   ;;  %v4975_v18 = vld [vmem:[%s7409_s1 + $0x268] ss:$16 sps:$4 sm:$0xff]  }
  0x1c   :  { %3193 = vmatprep.subr.bf16.mxu0 %v4898_v28  ;;  %3521 = vmatprep.subr.bf16.mxu1 %v4900_v29  ;;  %v4980_v19 = vld [vmem:[%s7409_s1 + $0x284] ss:$16 sps:$4 sm:$0xff]   ;;  %v4983_v20 = vld [vmem:[%s7409_s1 + $0x28c] ss:$16 sps:$4 sm:$0xff]   ;;  %v4978_v21 = vld [vmem:[%s7409_s1 + $0x280] ss:$16 sps:$4 sm:$0xff]  }
  0x1d   :  { %v4981_v22 = vld [vmem:[%s7409_s1 + $0x288] ss:$16 sps:$4 sm:$0xff]   ;;  %v4986_v23 = vld [vmem:[%s7409_s1 + $0x2a4] ss:$16 sps:$4 sm:$0xff]   ;;  %v4989_v24 = vld [vmem:[%s7409_s1 + $0x2ac] ss:$16 sps:$4 sm:$0xff]  }
  0x1e   :  { %v4984_v25 = vld [vmem:[%s7409_s1 + $0x2a0] ss:$16 sps:$4 sm:$0xff]   ;;  %v4987_v26 = vld [vmem:[%s7409_s1 + $0x2a8] ss:$16 sps:$4 sm:$0xff]   ;;  %v4992_v27 = vld [vmem:[%s7409_s1 + $0x2c4] ss:$16 sps:$4 sm:$0xff]  }
  0x1f   :  { %3194 = vmatpush1.bf16.msra.mxu0 %v4902_v30  ;;  %3522 = vmatpush1.bf16.msra.mxu1 %v4903_v31  ;;  %v4995_v28 = vld [vmem:[%s7409_s1 + $0x2cc] ss:$16 sps:$4 sm:$0xff]   ;;  %v4990_v31 = vld [vmem:[%s7409_s1 + $0x2c0] ss:$16 sps:$4 sm:$0xff]   ;;  %v5017_v48 = vld [vmem:[%s7409_s1 + $0x348] ss:$16 sps:$4 sm:$0xff]  }
  0x20   :  { %3195 = vmatprep.subr.bf16.mxu0 %v4904_v32  ;;  %3523 = vmatprep.subr.bf16.mxu1 %v4906_v33  ;;  %v5978_v29 = vld [vmem:[%s7410_s0 + $0x8] sm:$0xff]  ;;  %v4998_v33 = vld [vmem:[%s7409_s1 + $0x2e4] ss:$16 sps:$4 sm:$0xff]  }
  0x21   :  { %v4194_v30 = vcombine.high %v5978_v29, %v5978_v29  ;;  %v4993_v32 = vld [vmem:[%s7409_s1 + $0x2c8] ss:$16 sps:$4 sm:$0xff]   ;;  %v5019_v46 = vld [vmem:[%s7409_s1 + $0x34c] ss:$16 sps:$4 sm:$0xff]  }
  0x23   :  { %3196 = vmatpush1.bf16.msra.mxu0 %v4908_v34  ;;  %3524 = vmatpush1.bf16.msra.mxu1 %v4909_v35  ;;  %v5001_v34 = vld [vmem:[%s7409_s1 + $0x2ec] ss:$16 sps:$4 sm:$0xff]   ;;  %v4996_v35 = vld [vmem:[%s7409_s1 + $0x2e0] ss:$16 sps:$4 sm:$0xff]  }
  0x24   :  { %3197 = vmatprep.subr.bf16.mxu0 %v4910_v36  ;;  %3525 = vmatprep.subr.bf16.mxu1 %v4912_v37  ;;  %v4999_v36 = vld [vmem:[%s7409_s1 + $0x2e8] ss:$16 sps:$4 sm:$0xff]   ;;  %v5004_v37 = vld [vmem:[%s7409_s1 + $0x304] ss:$16 sps:$4 sm:$0xff]  }
  0x27   :  { %3198 = vmatpush1.bf16.msra.mxu0 %v4914_v38  ;;  %3526 = vmatpush1.bf16.msra.mxu1 %v4915_v39  ;;  %v5007_v38 = vld [vmem:[%s7409_s1 + $0x30c] ss:$16 sps:$4 sm:$0xff]   ;;  %v5002_v39 = vld [vmem:[%s7409_s1 + $0x300] ss:$16 sps:$4 sm:$0xff]  }
  0x28   :  { %3199 = vmatprep.subr.bf16.mxu0 %v4916_v40  ;;  %3527 = vmatprep.subr.bf16.mxu1 %v4918_v41  ;;  %v5005_v40 = vld [vmem:[%s7409_s1 + $0x308] ss:$16 sps:$4 sm:$0xff]   ;;  %v5010_v41 = vld [vmem:[%s7409_s1 + $0x324] ss:$16 sps:$4 sm:$0xff]  }
  0x2b   :  { %3200 = vmatpush1.bf16.msra.mxu0 %v4920_v42  ;;  %3528 = vmatpush1.bf16.msra.mxu1 %v4921_v43  ;;  %v5013_v42 = vld [vmem:[%s7409_s1 + $0x32c] ss:$16 sps:$4 sm:$0xff]   ;;  %v5008_v43 = vld [vmem:[%s7409_s1 + $0x320] ss:$16 sps:$4 sm:$0xff]  }
  0x2c   :  { %3201 = vmatprep.subr.bf16.mxu0 %v4922_v44  ;;  %3529 = vmatprep.subr.bf16.mxu1 %v4924_v45  ;;  %v5011_v44 = vld [vmem:[%s7409_s1 + $0x328] ss:$16 sps:$4 sm:$0xff]   ;;  %v5016_v45 = vld [vmem:[%s7409_s1 + $0x344] ss:$16 sps:$4 sm:$0xff]  }
  0x2f   :  { %3202 = vmatpush1.bf16.msra.mxu0 %v4926_v47  ;;  %3530 = vmatpush1.bf16.msra.mxu1 %v4927_v49  ;;  %v5014_v47 = vld [vmem:[%s7409_s1 + $0x340] ss:$16 sps:$4 sm:$0xff]   ;;  %v5022_v49 = vld [vmem:[%s7409_s1 + $0x364] ss:$16 sps:$4 sm:$0xff]  }
  0x30   :  { %3203 = vmatprep.subr.bf16.mxu0 %v4928_v50  ;;  %3531 = vmatprep.subr.bf16.mxu1 %v4930_v51  ;;  %v5025_v50 = vld [vmem:[%s7409_s1 + $0x36c] ss:$16 sps:$4 sm:$0xff]   ;;  %v5020_v51 = vld [vmem:[%s7409_s1 + $0x360] ss:$16 sps:$4 sm:$0xff]  }
  0x33   :  { %3204 = vmatpush1.bf16.msra.mxu0 %v4932_v52  ;;  %3532 = vmatpush1.bf16.msra.mxu1 %v4933_v53  ;;  %v5023_v52 = vld [vmem:[%s7409_s1 + $0x368] ss:$16 sps:$4 sm:$0xff]   ;;  %v5028_v53 = vld [vmem:[%s7409_s1 + $0x384] ss:$16 sps:$4 sm:$0xff]  }
  0x34   :  { %3205 = vmatprep.subr.bf16.mxu0 %v4934_v54  ;;  %3533 = vmatprep.subr.bf16.mxu1 %v4936_v55  ;;  %v5031_v54 = vld [vmem:[%s7409_s1 + $0x38c] ss:$16 sps:$4 sm:$0xff]   ;;  %v5026_v55 = vld [vmem:[%s7409_s1 + $0x380] ss:$16 sps:$4 sm:$0xff]  }
  0x37   :  { %3206 = vmatpush1.bf16.msra.mxu0 %v4938_v56  ;;  %3534 = vmatpush1.bf16.msra.mxu1 %v4939_v57  ;;  %v5029_v56 = vld [vmem:[%s7409_s1 + $0x388] ss:$16 sps:$4 sm:$0xff]   ;;  %v5034_v57 = vld [vmem:[%s7409_s1 + $0x3a4] ss:$16 sps:$4 sm:$0xff]  }
  0x38   :  { %3207 = vmatprep.subr.bf16.mxu0 %v4940_v58  ;;  %3535 = vmatprep.subr.bf16.mxu1 %v4942_v59  ;;  %v5037_v58 = vld [vmem:[%s7409_s1 + $0x3ac] ss:$16 sps:$4 sm:$0xff]   ;;  %v5032_v59 = vld [vmem:[%s7409_s1 + $0x3a0] ss:$16 sps:$4 sm:$0xff]  }
  0x3b   :  { %3208 = vmatpush1.bf16.msra.mxu0 %v4944_v60  ;;  %3536 = vmatpush1.bf16.msra.mxu1 %v4945_v61  ;;  %v5035_v60 = vld [vmem:[%s7409_s1 + $0x3a8] ss:$16 sps:$4 sm:$0xff]   ;;  %v5040_v61 = vld [vmem:[%s7409_s1 + $0x3c4] ss:$16 sps:$4 sm:$0xff]  }
  0x3c   :  { %3209 = vmatprep.subr.bf16.mxu0 %v4946_v62  ;;  %3537 = vmatprep.subr.bf16.mxu1 %v4948_v63  ;;  %v5043_v62 = vld [vmem:[%s7409_s1 + $0x3cc] ss:$16 sps:$4 sm:$0xff]   ;;  %v5038_v63 = vld [vmem:[%s7409_s1 + $0x3c0] ss:$16 sps:$4 sm:$0xff]  }
  0x3f   :  { %3210 = vmatpush1.bf16.msra.mxu0 %v4950_v0  ;;  %3538 = vmatpush1.bf16.msra.mxu1 %v4951_v1  ;;  %v5041_v0 = vld [vmem:[%s7409_s1 + $0x3c8] ss:$16 sps:$4 sm:$0xff]   ;;  %v5046_v1 = vld [vmem:[%s7409_s1 + $0x3e4] ss:$16 sps:$4 sm:$0xff]  }
  0x40   :  { %3220 = vmatprep.subr.bf16.mxu0 %v4956_v2  ;;  %3548 = vmatprep.subr.bf16.mxu1 %v4959_v3  ;;  %v5049_v2 = vld [vmem:[%s7409_s1 + $0x3ec] ss:$16 sps:$4 sm:$0xff]   ;;  %v5044_v3 = vld [vmem:[%s7409_s1 + $0x3e0] ss:$16 sps:$4 sm:$0xff]  }
  0x42   :  { %3212 = vmatmul.mubr.bf16.vlgmr.msra.gmra.mrb[0].mxu0 %v4191_v4  ;;  %3540 = vmatmul.mubr.bf16.vlgmr.msra.gmra.mrb[0].mxu1 %v4191_v4  ;;  %v5047_v4 = vld [vmem:[%s7409_s1 + $0x3e8] ss:$16 sps:$4 sm:$0xff]  }
  0x43   :  { %3221 = vmatpush1.bf16.msra.mxu0 %v4954_v5  ;;  %3549 = vmatpush1.bf16.msra.mxu1 %v4957_v6  ;;  %v5054_v5 = vld [vmem:[%s7409_s1 + $0x404] ss:$16 sps:$4 sm:$0xff]   ;;  %v5057_v6 = vld [vmem:[%s7409_s1 + $0x40c] ss:$16 sps:$4 sm:$0xff]  }
  0x44   :  { %3222 = vmatprep.subr.bf16.mxu0 %v4962_v7  ;;  %3550 = vmatprep.subr.bf16.mxu1 %v4965_v8  ;;  %v4193_v7 = vcombine.low %v5978_v29, %v5978_v29  ;;  %v5052_v8 = vld [vmem:[%s7409_s1 + $0x400] ss:$16 sps:$4 sm:$0xff]   ;;  %v5087_v29 = vld [vmem:[%s7409_s1 + $0x4ac] ss:$16 sps:$4 sm:$0xff]  }
  0x45   :  { %3252 = vmatprep.mubr.bf16.mxu0 %v4194_v30  ;;  %3580 = vmatprep.mubr.bf16.mxu1 %v4194_v30  ;;  %v5082_v30 = vld [vmem:[%s7409_s1 + $0x4a0] ss:$16 sps:$4 sm:$0xff]  }
  0x47   :  { %3223 = vmatpush1.bf16.msra.mxu0 %v4960_v9  ;;  %3551 = vmatpush1.bf16.msra.mxu1 %v4963_v10  ;;  %v5055_v9 = vld [vmem:[%s7409_s1 + $0x408] ss:$16 sps:$4 sm:$0xff]   ;;  %v5060_v10 = vld [vmem:[%s7409_s1 + $0x424] ss:$16 sps:$4 sm:$0xff]  }
  0x48   :  { %3224 = vmatprep.subr.bf16.mxu0 %v4968_v11  ;;  %3552 = vmatprep.subr.bf16.mxu1 %v4971_v12  ;;  %v6116_v11 = vld [vmem:[%s7410_s0 + $0x10] sm:$0xff]  ;;  %v5063_v12 = vld [vmem:[%s7409_s1 + $0x42c] ss:$16 sps:$4 sm:$0xff]  }
  0x4b   :  { %3225 = vmatpush1.bf16.msra.mxu0 %v4966_v13  ;;  %3553 = vmatpush1.bf16.msra.mxu1 %v4969_v14  ;;  %v4196_v13 = vcombine.high %v6116_v11, %v6116_v11  ;;  %v5058_v14 = vld [vmem:[%s7409_s1 + $0x420] ss:$16 sps:$4 sm:$0xff]  }
  0x4c   :  { %3226 = vmatprep.subr.bf16.mxu0 %v4974_v15  ;;  %3554 = vmatprep.subr.bf16.mxu1 %v4977_v16  ;;  %v5061_v15 = vld [vmem:[%s7409_s1 + $0x428] ss:$16 sps:$4 sm:$0xff]   ;;  %v5066_v16 = vld [vmem:[%s7409_s1 + $0x444] ss:$16 sps:$4 sm:$0xff]  }
  0x4f   :  { %3227 = vmatpush1.bf16.msra.mxu0 %v4972_v17  ;;  %3555 = vmatpush1.bf16.msra.mxu1 %v4975_v18  ;;  %v5069_v17 = vld [vmem:[%s7409_s1 + $0x44c] ss:$16 sps:$4 sm:$0xff]   ;;  %v5064_v18 = vld [vmem:[%s7409_s1 + $0x440] ss:$16 sps:$4 sm:$0xff]  }
  0x50   :  { %3228 = vmatprep.subr.bf16.mxu0 %v4980_v19  ;;  %3556 = vmatprep.subr.bf16.mxu1 %v4983_v20  ;;  %v5067_v19 = vld [vmem:[%s7409_s1 + $0x448] ss:$16 sps:$4 sm:$0xff]   ;;  %v5072_v20 = vld [vmem:[%s7409_s1 + $0x464] ss:$16 sps:$4 sm:$0xff]  }
  0x53   :  { %3229 = vmatpush1.bf16.msra.mxu0 %v4978_v21  ;;  %3557 = vmatpush1.bf16.msra.mxu1 %v4981_v22  ;;  %v5075_v21 = vld [vmem:[%s7409_s1 + $0x46c] ss:$16 sps:$4 sm:$0xff]   ;;  %v5070_v22 = vld [vmem:[%s7409_s1 + $0x460] ss:$16 sps:$4 sm:$0xff]  }
  0x54   :  { %3230 = vmatprep.subr.bf16.mxu0 %v4986_v23  ;;  %3558 = vmatprep.subr.bf16.mxu1 %v4989_v24  ;;  %v5073_v23 = vld [vmem:[%s7409_s1 + $0x468] ss:$16 sps:$4 sm:$0xff]   ;;  %v5078_v24 = vld [vmem:[%s7409_s1 + $0x484] ss:$16 sps:$4 sm:$0xff]  }
  0x57   :  { %3231 = vmatpush1.bf16.msra.mxu0 %v4984_v25  ;;  %3559 = vmatpush1.bf16.msra.mxu1 %v4987_v26  ;;  %v5081_v25 = vld [vmem:[%s7409_s1 + $0x48c] ss:$16 sps:$4 sm:$0xff]   ;;  %v5076_v26 = vld [vmem:[%s7409_s1 + $0x480] ss:$16 sps:$4 sm:$0xff]  }
  0x58   :  { %3232 = vmatprep.subr.bf16.mxu0 %v4992_v27  ;;  %3560 = vmatprep.subr.bf16.mxu1 %v4995_v28  ;;  %v5079_v27 = vld [vmem:[%s7409_s1 + $0x488] ss:$16 sps:$4 sm:$0xff]   ;;  %v5084_v28 = vld [vmem:[%s7409_s1 + $0x4a4] ss:$16 sps:$4 sm:$0xff]  }
  0x5b   :  { %3233 = vmatpush1.bf16.msra.mxu0 %v4990_v31  ;;  %3561 = vmatpush1.bf16.msra.mxu1 %v4993_v32  ;;  %v5085_v31 = vld [vmem:[%s7409_s1 + $0x4a8] ss:$16 sps:$4 sm:$0xff]   ;;  %v5090_v32 = vld [vmem:[%s7409_s1 + $0x4c4] ss:$16 sps:$4 sm:$0xff]  }
  0x5c   :  { %3234 = vmatprep.subr.bf16.mxu0 %v4998_v33  ;;  %3562 = vmatprep.subr.bf16.mxu1 %v5001_v34  ;;  %v5093_v33 = vld [vmem:[%s7409_s1 + $0x4cc] ss:$16 sps:$4 sm:$0xff]   ;;  %v5088_v34 = vld [vmem:[%s7409_s1 + $0x4c0] ss:$16 sps:$4 sm:$0xff]  }
  0x5f   :  { %3235 = vmatpush1.bf16.msra.mxu0 %v4996_v35  ;;  %3563 = vmatpush1.bf16.msra.mxu1 %v4999_v36  ;;  %v5091_v35 = vld [vmem:[%s7409_s1 + $0x4c8] ss:$16 sps:$4 sm:$0xff]   ;;  %v5096_v36 = vld [vmem:[%s7409_s1 + $0x4e4] ss:$16 sps:$4 sm:$0xff]  }
  0x60   :  { %3236 = vmatprep.subr.bf16.mxu0 %v5004_v37  ;;  %3564 = vmatprep.subr.bf16.mxu1 %v5007_v38  ;;  %v5099_v37 = vld [vmem:[%s7409_s1 + $0x4ec] ss:$16 sps:$4 sm:$0xff]   ;;  %v5094_v38 = vld [vmem:[%s7409_s1 + $0x4e0] ss:$16 sps:$4 sm:$0xff]  }
  0x63   :  { %3237 = vmatpush1.bf16.msra.mxu0 %v5002_v39  ;;  %3565 = vmatpush1.bf16.msra.mxu1 %v5005_v40  ;;  %v5097_v39 = vld [vmem:[%s7409_s1 + $0x4e8] ss:$16 sps:$4 sm:$0xff]   ;;  %v5102_v40 = vld [vmem:[%s7409_s1 + $0x504] ss:$16 sps:$4 sm:$0xff]  }
  0x64   :  { %3238 = vmatprep.subr.bf16.mxu0 %v5010_v41  ;;  %3566 = vmatprep.subr.bf16.mxu1 %v5013_v42  ;;  %v5105_v41 = vld [vmem:[%s7409_s1 + $0x50c] ss:$16 sps:$4 sm:$0xff]   ;;  %v5100_v42 = vld [vmem:[%s7409_s1 + $0x500] ss:$16 sps:$4 sm:$0xff]  }
  0x67   :  { %3239 = vmatpush1.bf16.msra.mxu0 %v5008_v43  ;;  %3567 = vmatpush1.bf16.msra.mxu1 %v5011_v44  ;;  %v5103_v43 = vld [vmem:[%s7409_s1 + $0x508] ss:$16 sps:$4 sm:$0xff]   ;;  %v5108_v44 = vld [vmem:[%s7409_s1 + $0x524] ss:$16 sps:$4 sm:$0xff]  }
  0x68   :  { %3240 = vmatprep.subr.bf16.mxu0 %v5016_v45  ;;  %3568 = vmatprep.subr.bf16.mxu1 %v5019_v46  ;;  %v5111_v45 = vld [vmem:[%s7409_s1 + $0x52c] ss:$16 sps:$4 sm:$0xff]   ;;  %v5106_v46 = vld [vmem:[%s7409_s1 + $0x520] ss:$16 sps:$4 sm:$0xff]  }
  0x6b   :  { %3241 = vmatpush1.bf16.msra.mxu0 %v5014_v47  ;;  %3569 = vmatpush1.bf16.msra.mxu1 %v5017_v48  ;;  %v5109_v47 = vld [vmem:[%s7409_s1 + $0x528] ss:$16 sps:$4 sm:$0xff]   ;;  %v5114_v48 = vld [vmem:[%s7409_s1 + $0x544] ss:$16 sps:$4 sm:$0xff]  }
  0x6c   :  { %3242 = vmatprep.subr.bf16.mxu0 %v5022_v49  ;;  %3570 = vmatprep.subr.bf16.mxu1 %v5025_v50  ;;  %v5117_v49 = vld [vmem:[%s7409_s1 + $0x54c] ss:$16 sps:$4 sm:$0xff]   ;;  %v5112_v50 = vld [vmem:[%s7409_s1 + $0x540] ss:$16 sps:$4 sm:$0xff]  }
  0x6f   :  { %3243 = vmatpush1.bf16.msra.mxu0 %v5020_v51  ;;  %3571 = vmatpush1.bf16.msra.mxu1 %v5023_v52  ;;  %v5115_v51 = vld [vmem:[%s7409_s1 + $0x548] ss:$16 sps:$4 sm:$0xff]   ;;  %v5120_v52 = vld [vmem:[%s7409_s1 + $0x564] ss:$16 sps:$4 sm:$0xff]  }
  0x70   :  { %3244 = vmatprep.subr.bf16.mxu0 %v5028_v53  ;;  %3572 = vmatprep.subr.bf16.mxu1 %v5031_v54  ;;  %v5123_v53 = vld [vmem:[%s7409_s1 + $0x56c] ss:$16 sps:$4 sm:$0xff]   ;;  %v5118_v54 = vld [vmem:[%s7409_s1 + $0x560] ss:$16 sps:$4 sm:$0xff]  }
  0x73   :  { %3245 = vmatpush1.bf16.msra.mxu0 %v5026_v55  ;;  %3573 = vmatpush1.bf16.msra.mxu1 %v5029_v56  ;;  %v5121_v55 = vld [vmem:[%s7409_s1 + $0x568] ss:$16 sps:$4 sm:$0xff]   ;;  %v5126_v56 = vld [vmem:[%s7409_s1 + $0x584] ss:$16 sps:$4 sm:$0xff]  }
  0x74   :  { %3246 = vmatprep.subr.bf16.mxu0 %v5034_v57  ;;  %3574 = vmatprep.subr.bf16.mxu1 %v5037_v58  ;;  %v5129_v57 = vld [vmem:[%s7409_s1 + $0x58c] ss:$16 sps:$4 sm:$0xff]   ;;  %v5124_v58 = vld [vmem:[%s7409_s1 + $0x580] ss:$16 sps:$4 sm:$0xff]  }
  0x77   :  { %3247 = vmatpush1.bf16.msra.mxu0 %v5032_v59  ;;  %3575 = vmatpush1.bf16.msra.mxu1 %v5035_v60  ;;  %v5127_v59 = vld [vmem:[%s7409_s1 + $0x588] ss:$16 sps:$4 sm:$0xff]   ;;  %v5132_v60 = vld [vmem:[%s7409_s1 + $0x5a4] ss:$16 sps:$4 sm:$0xff]  }
  0x78   :  { %3248 = vmatprep.subr.bf16.mxu0 %v5040_v61  ;;  %3576 = vmatprep.subr.bf16.mxu1 %v5043_v62  ;;  %v5135_v61 = vld [vmem:[%s7409_s1 + $0x5ac] ss:$16 sps:$4 sm:$0xff]   ;;  %v5130_v62 = vld [vmem:[%s7409_s1 + $0x5a0] ss:$16 sps:$4 sm:$0xff]  }
  0x7b   :  { %3249 = vmatpush1.bf16.msra.mxu0 %v5038_v63  ;;  %3577 = vmatpush1.bf16.msra.mxu1 %v5041_v0  ;;  %v5133_v63 = vld [vmem:[%s7409_s1 + $0x5a8] ss:$16 sps:$4 sm:$0xff]   ;;  %v5138_v0 = vld [vmem:[%s7409_s1 + $0x5c4] ss:$16 sps:$4 sm:$0xff]  }
  0x7c   :  { %3250 = vmatprep.subr.bf16.mxu0 %v5046_v1  ;;  %3578 = vmatprep.subr.bf16.mxu1 %v5049_v2  ;;  %v5141_v1 = vld [vmem:[%s7409_s1 + $0x5cc] ss:$16 sps:$4 sm:$0xff]   ;;  %v5136_v2 = vld [vmem:[%s7409_s1 + $0x5c0] ss:$16 sps:$4 sm:$0xff]  }
  0x7f   :  { %3251 = vmatpush1.bf16.msra.mxu0 %v5044_v3  ;;  %3579 = vmatpush1.bf16.msra.mxu1 %v5047_v4  ;;  %v5139_v3 = vld [vmem:[%s7409_s1 + $0x5c8] ss:$16 sps:$4 sm:$0xff]   ;;  %v5144_v4 = vld [vmem:[%s7409_s1 + $0x5e4] ss:$16 sps:$4 sm:$0xff]  }
  0x80   :  { %3261 = vmatprep.subr.bf16.mxu0 %v5054_v5  ;;  %3589 = vmatprep.subr.bf16.mxu1 %v5057_v6  ;;  %v5147_v5 = vld [vmem:[%s7409_s1 + $0x5ec] ss:$16 sps:$4 sm:$0xff]   ;;  %v5142_v6 = vld [vmem:[%s7409_s1 + $0x5e0] ss:$16 sps:$4 sm:$0xff]  }
  0x82   :  { %3253 = vmatmul.mubr.bf16.vlgmr.msra.gmra.mrb[0].mxu0 %v4193_v7  ;;  %3581 = vmatmul.mubr.bf16.vlgmr.msra.gmra.mrb[0].mxu1 %v4193_v7  ;;  %v5145_v7 = vld [vmem:[%s7409_s1 + $0x5e8] ss:$16 sps:$4 sm:$0xff]  }
  0x83   :  { %3262 = vmatpush1.bf16.msra.mxu0 %v5052_v8  ;;  %3590 = vmatpush1.bf16.msra.mxu1 %v5055_v9  ;;  %v5152_v8 = vld [vmem:[%s7409_s1 + $0x604] ss:$16 sps:$4 sm:$0xff]   ;;  %v5155_v9 = vld [vmem:[%s7409_s1 + $0x60c] ss:$16 sps:$4 sm:$0xff]  }
  0x84   :  { %3263 = vmatprep.subr.bf16.mxu0 %v5060_v10  ;;  %3591 = vmatprep.subr.bf16.mxu1 %v5063_v12  ;;  %v5150_v10 = vld [vmem:[%s7409_s1 + $0x600] ss:$16 sps:$4 sm:$0xff]   ;;  %v4195_v12 = vcombine.low %v6116_v11, %v6116_v11  ;;  %v5161_v11 = vld [vmem:[%s7409_s1 + $0x62c] ss:$16 sps:$4 sm:$0xff]  }
  0x85   :  { %3293 = vmatprep.mubr.bf16.mxu0 %v4196_v13  ;;  %3621 = vmatprep.mubr.bf16.mxu1 %v4196_v13  ;;  %v5153_v13 = vld [vmem:[%s7409_s1 + $0x608] ss:$16 sps:$4 sm:$0xff]  }
  0x87   :  { %3264 = vmatpush1.bf16.msra.mxu0 %v5058_v14  ;;  %3592 = vmatpush1.bf16.msra.mxu1 %v5061_v15  ;;  %v6314_v14 = vld [vmem:[%s7410_s0 + $0x18] sm:$0xff]  ;;  %v5158_v15 = vld [vmem:[%s7409_s1 + $0x624] ss:$16 sps:$4 sm:$0xff]  }
  0x88   :  { %3265 = vmatprep.subr.bf16.mxu0 %v5066_v16  ;;  %3593 = vmatprep.subr.bf16.mxu1 %v5069_v17  ;;  %v4198_v16 = vcombine.high %v6314_v14, %v6314_v14  ;;  %v5156_v17 = vld [vmem:[%s7409_s1 + $0x620] ss:$16 sps:$4 sm:$0xff]  }
  0x8b   :  { %3266 = vmatpush1.bf16.msra.mxu0 %v5064_v18  ;;  %3594 = vmatpush1.bf16.msra.mxu1 %v5067_v19  ;;  %v5159_v18 = vld [vmem:[%s7409_s1 + $0x628] ss:$16 sps:$4 sm:$0xff]   ;;  %v5164_v19 = vld [vmem:[%s7409_s1 + $0x644] ss:$16 sps:$4 sm:$0xff]  }
  0x8c   :  { %3267 = vmatprep.subr.bf16.mxu0 %v5072_v20  ;;  %3595 = vmatprep.subr.bf16.mxu1 %v5075_v21  ;;  %v5167_v20 = vld [vmem:[%s7409_s1 + $0x64c] ss:$16 sps:$4 sm:$0xff]   ;;  %v5162_v21 = vld [vmem:[%s7409_s1 + $0x640] ss:$16 sps:$4 sm:$0xff]  }
  0x8f   :  { %3268 = vmatpush1.bf16.msra.mxu0 %v5070_v22  ;;  %3596 = vmatpush1.bf16.msra.mxu1 %v5073_v23  ;;  %v5165_v22 = vld [vmem:[%s7409_s1 + $0x648] ss:$16 sps:$4 sm:$0xff]   ;;  %v5170_v23 = vld [vmem:[%s7409_s1 + $0x664] ss:$16 sps:$4 sm:$0xff]  }
  0x90   :  { %3269 = vmatprep.subr.bf16.mxu0 %v5078_v24  ;;  %3597 = vmatprep.subr.bf16.mxu1 %v5081_v25  ;;  %v5173_v24 = vld [vmem:[%s7409_s1 + $0x66c] ss:$16 sps:$4 sm:$0xff]   ;;  %v5168_v25 = vld [vmem:[%s7409_s1 + $0x660] ss:$16 sps:$4 sm:$0xff]  }
  0x93   :  { %3270 = vmatpush1.bf16.msra.mxu0 %v5076_v26  ;;  %3598 = vmatpush1.bf16.msra.mxu1 %v5079_v27  ;;  %v5171_v26 = vld [vmem:[%s7409_s1 + $0x668] ss:$16 sps:$4 sm:$0xff]   ;;  %v5176_v27 = vld [vmem:[%s7409_s1 + $0x684] ss:$16 sps:$4 sm:$0xff]  }
  0x94   :  { %3271 = vmatprep.subr.bf16.mxu0 %v5084_v28  ;;  %3599 = vmatprep.subr.bf16.mxu1 %v5087_v29  ;;  %v5179_v28 = vld [vmem:[%s7409_s1 + $0x68c] ss:$16 sps:$4 sm:$0xff]   ;;  %v5174_v29 = vld [vmem:[%s7409_s1 + $0x680] ss:$16 sps:$4 sm:$0xff]  }
  0x97   :  { %3272 = vmatpush1.bf16.msra.mxu0 %v5082_v30  ;;  %3600 = vmatpush1.bf16.msra.mxu1 %v5085_v31  ;;  %v5177_v30 = vld [vmem:[%s7409_s1 + $0x688] ss:$16 sps:$4 sm:$0xff]   ;;  %v5182_v31 = vld [vmem:[%s7409_s1 + $0x6a4] ss:$16 sps:$4 sm:$0xff]  }
  0x98   :  { %3273 = vmatprep.subr.bf16.mxu0 %v5090_v32  ;;  %3601 = vmatprep.subr.bf16.mxu1 %v5093_v33  ;;  %v5185_v32 = vld [vmem:[%s7409_s1 + $0x6ac] ss:$16 sps:$4 sm:$0xff]   ;;  %v5180_v33 = vld [vmem:[%s7409_s1 + $0x6a0] ss:$16 sps:$4 sm:$0xff]  }
  0x9b   :  { %3274 = vmatpush1.bf16.msra.mxu0 %v5088_v34  ;;  %3602 = vmatpush1.bf16.msra.mxu1 %v5091_v35  ;;  %v5183_v34 = vld [vmem:[%s7409_s1 + $0x6a8] ss:$16 sps:$4 sm:$0xff]   ;;  %v5188_v35 = vld [vmem:[%s7409_s1 + $0x6c4] ss:$16 sps:$4 sm:$0xff]  }
  0x9c   :  { %3275 = vmatprep.subr.bf16.mxu0 %v5096_v36  ;;  %3603 = vmatprep.subr.bf16.mxu1 %v5099_v37  ;;  %v5191_v36 = vld [vmem:[%s7409_s1 + $0x6cc] ss:$16 sps:$4 sm:$0xff]   ;;  %v5186_v37 = vld [vmem:[%s7409_s1 + $0x6c0] ss:$16 sps:$4 sm:$0xff]  }
  0x9f   :  { %3276 = vmatpush1.bf16.msra.mxu0 %v5094_v38  ;;  %3604 = vmatpush1.bf16.msra.mxu1 %v5097_v39  ;;  %v5189_v38 = vld [vmem:[%s7409_s1 + $0x6c8] ss:$16 sps:$4 sm:$0xff]   ;;  %v5194_v39 = vld [vmem:[%s7409_s1 + $0x6e4] ss:$16 sps:$4 sm:$0xff]  }
  0xa0   :  { %3277 = vmatprep.subr.bf16.mxu0 %v5102_v40  ;;  %3605 = vmatprep.subr.bf16.mxu1 %v5105_v41  ;;  %v5197_v40 = vld [vmem:[%s7409_s1 + $0x6ec] ss:$16 sps:$4 sm:$0xff]   ;;  %v5192_v41 = vld [vmem:[%s7409_s1 + $0x6e0] ss:$16 sps:$4 sm:$0xff]  }
  0xa3   :  { %3278 = vmatpush1.bf16.msra.mxu0 %v5100_v42  ;;  %3606 = vmatpush1.bf16.msra.mxu1 %v5103_v43  ;;  %v5195_v42 = vld [vmem:[%s7409_s1 + $0x6e8] ss:$16 sps:$4 sm:$0xff]   ;;  %v5200_v43 = vld [vmem:[%s7409_s1 + $0x704] ss:$16 sps:$4 sm:$0xff]  }
  0xa4   :  { %3279 = vmatprep.subr.bf16.mxu0 %v5108_v44  ;;  %3607 = vmatprep.subr.bf16.mxu1 %v5111_v45  ;;  %v5203_v44 = vld [vmem:[%s7409_s1 + $0x70c] ss:$16 sps:$4 sm:$0xff]   ;;  %v5198_v45 = vld [vmem:[%s7409_s1 + $0x700] ss:$16 sps:$4 sm:$0xff]  }
  0xa7   :  { %3280 = vmatpush1.bf16.msra.mxu0 %v5106_v46  ;;  %3608 = vmatpush1.bf16.msra.mxu1 %v5109_v47  ;;  %v5201_v46 = vld [vmem:[%s7409_s1 + $0x708] ss:$16 sps:$4 sm:$0xff]   ;;  %v5206_v47 = vld [vmem:[%s7409_s1 + $0x724] ss:$16 sps:$4 sm:$0xff]  }
  0xa8   :  { %3281 = vmatprep.subr.bf16.mxu0 %v5114_v48  ;;  %3609 = vmatprep.subr.bf16.mxu1 %v5117_v49  ;;  %v5209_v48 = vld [vmem:[%s7409_s1 + $0x72c] ss:$16 sps:$4 sm:$0xff]   ;;  %v5204_v49 = vld [vmem:[%s7409_s1 + $0x720] ss:$16 sps:$4 sm:$0xff]  }
  0xab   :  { %3282 = vmatpush1.bf16.msra.mxu0 %v5112_v50  ;;  %3610 = vmatpush1.bf16.msra.mxu1 %v5115_v51  ;;  %v5207_v50 = vld [vmem:[%s7409_s1 + $0x728] ss:$16 sps:$4 sm:$0xff]   ;;  %v5212_v51 = vld [vmem:[%s7409_s1 + $0x744] ss:$16 sps:$4 sm:$0xff]  }
  0xac   :  { %3283 = vmatprep.subr.bf16.mxu0 %v5120_v52  ;;  %3611 = vmatprep.subr.bf16.mxu1 %v5123_v53  ;;  %v5215_v52 = vld [vmem:[%s7409_s1 + $0x74c] ss:$16 sps:$4 sm:$0xff]   ;;  %v5210_v53 = vld [vmem:[%s7409_s1 + $0x740] ss:$16 sps:$4 sm:$0xff]  }
  0xaf   :  { %3284 = vmatpush1.bf16.msra.mxu0 %v5118_v54  ;;  %3612 = vmatpush1.bf16.msra.mxu1 %v5121_v55  ;;  %v5213_v54 = vld [vmem:[%s7409_s1 + $0x748] ss:$16 sps:$4 sm:$0xff]   ;;  %v5218_v55 = vld [vmem:[%s7409_s1 + $0x764] ss:$16 sps:$4 sm:$0xff]  }
  0xb0   :  { %3285 = vmatprep.subr.bf16.mxu0 %v5126_v56  ;;  %3613 = vmatprep.subr.bf16.mxu1 %v5129_v57  ;;  %v5221_v56 = vld [vmem:[%s7409_s1 + $0x76c] ss:$16 sps:$4 sm:$0xff]   ;;  %v5216_v57 = vld [vmem:[%s7409_s1 + $0x760] ss:$16 sps:$4 sm:$0xff]  }
  0xb3   :  { %3286 = vmatpush1.bf16.msra.mxu0 %v5124_v58  ;;  %3614 = vmatpush1.bf16.msra.mxu1 %v5127_v59  ;;  %v5219_v58 = vld [vmem:[%s7409_s1 + $0x768] ss:$16 sps:$4 sm:$0xff]   ;;  %v5224_v59 = vld [vmem:[%s7409_s1 + $0x784] ss:$16 sps:$4 sm:$0xff]  }
  0xb4   :  { %3287 = vmatprep.subr.bf16.mxu0 %v5132_v60  ;;  %3615 = vmatprep.subr.bf16.mxu1 %v5135_v61  ;;  %v5227_v60 = vld [vmem:[%s7409_s1 + $0x78c] ss:$16 sps:$4 sm:$0xff]   ;;  %v5222_v61 = vld [vmem:[%s7409_s1 + $0x780] ss:$16 sps:$4 sm:$0xff]  }
  0xb7   :  { %3288 = vmatpush1.bf16.msra.mxu0 %v5130_v62  ;;  %3616 = vmatpush1.bf16.msra.mxu1 %v5133_v63  ;;  %v5225_v62 = vld [vmem:[%s7409_s1 + $0x788] ss:$16 sps:$4 sm:$0xff]   ;;  %v5230_v63 = vld [vmem:[%s7409_s1 + $0x7a4] ss:$16 sps:$4 sm:$0xff]  }
  0xb8   :  { %3289 = vmatprep.subr.bf16.mxu0 %v5138_v0  ;;  %3617 = vmatprep.subr.bf16.mxu1 %v5141_v1  ;;  %v5233_v0 = vld [vmem:[%s7409_s1 + $0x7ac] ss:$16 sps:$4 sm:$0xff]   ;;  %v5228_v1 = vld [vmem:[%s7409_s1 + $0x7a0] ss:$16 sps:$4 sm:$0xff]  }
  0xbb   :  { %3290 = vmatpush1.bf16.msra.mxu0 %v5136_v2  ;;  %3618 = vmatpush1.bf16.msra.mxu1 %v5139_v3  ;;  %v5231_v2 = vld [vmem:[%s7409_s1 + $0x7a8] ss:$16 sps:$4 sm:$0xff]   ;;  %v5236_v3 = vld [vmem:[%s7409_s1 + $0x7c4] ss:$16 sps:$4 sm:$0xff]  }
  0xbc   :  { %3291 = vmatprep.subr.bf16.mxu0 %v5144_v4  ;;  %3619 = vmatprep.subr.bf16.mxu1 %v5147_v5  ;;  %v5239_v4 = vld [vmem:[%s7409_s1 + $0x7cc] ss:$16 sps:$4 sm:$0xff]   ;;  %v5234_v5 = vld [vmem:[%s7409_s1 + $0x7c0] ss:$16 sps:$4 sm:$0xff]  }
  0xbf   :  { %3292 = vmatpush1.bf16.msra.mxu0 %v5142_v6  ;;  %3620 = vmatpush1.bf16.msra.mxu1 %v5145_v7  ;;  %v5237_v6 = vld [vmem:[%s7409_s1 + $0x7c8] ss:$16 sps:$4 sm:$0xff]   ;;  %v5242_v7 = vld [vmem:[%s7409_s1 + $0x7e4] ss:$16 sps:$4 sm:$0xff]  }
  0xc0   :  { %3302 = vmatprep.subr.bf16.mxu0 %v5152_v8  ;;  %3630 = vmatprep.subr.bf16.mxu1 %v5155_v9  ;;  %v5245_v8 = vld [vmem:[%s7409_s1 + $0x7ec] ss:$16 sps:$4 sm:$0xff]   ;;  %v5240_v9 = vld [vmem:[%s7409_s1 + $0x7e0] ss:$16 sps:$4 sm:$0xff]  }
  0xc2   :  { %3294 = vmatmul.mubr.bf16.vlgmr.msra.gmra.mrb[0].mxu0 %v4195_v12  ;;  %3622 = vmatmul.mubr.bf16.vlgmr.msra.gmra.mrb[0].mxu1 %v4195_v12  ;;  %v5250_v12 = vld [vmem:[%s7409_s1 + $0x804] ss:$16 sps:$4 sm:$0xff]  }
  0xc3   :  { %3303 = vmatpush1.bf16.msra.mxu0 %v5150_v10  ;;  %3631 = vmatpush1.bf16.msra.mxu1 %v5153_v13  ;;  %v5243_v10 = vld [vmem:[%s7409_s1 + $0x7e8] ss:$16 sps:$4 sm:$0xff]   ;;  %v5253_v13 = vld [vmem:[%s7409_s1 + $0x80c] ss:$16 sps:$4 sm:$0xff]  }
  0xc4   :  { %3304 = vmatprep.subr.bf16.mxu0 %v5158_v15  ;;  %3632 = vmatprep.subr.bf16.mxu1 %v5161_v11  ;;  %v5248_v15 = vld [vmem:[%s7409_s1 + $0x800] ss:$16 sps:$4 sm:$0xff]   ;;  %v4197_v11 = vcombine.low %v6314_v14, %v6314_v14  ;;  %v5259_v14 = vld [vmem:[%s7409_s1 + $0x82c] ss:$16 sps:$4 sm:$0xff]  }
  0xc5   :  { %3334 = vmatprep.mubr.bf16.mxu0 %v4198_v16  ;;  %3662 = vmatprep.mubr.bf16.mxu1 %v4198_v16  ;;  %v6512_v16 = vld [vmem:[%s7410_s0 + $0x20] sm:$0xff] }
  0xc7   :  { %3305 = vmatpush1.bf16.msra.mxu0 %v5156_v17  ;;  %3633 = vmatpush1.bf16.msra.mxu1 %v5159_v18  ;;  %v5251_v17 = vld [vmem:[%s7409_s1 + $0x808] ss:$16 sps:$4 sm:$0xff]   ;;  %v5256_v18 = vld [vmem:[%s7409_s1 + $0x824] ss:$16 sps:$4 sm:$0xff]  }
  0xc8   :  { %3306 = vmatprep.subr.bf16.mxu0 %v5164_v19  ;;  %3634 = vmatprep.subr.bf16.mxu1 %v5167_v20  ;;  %v4200_v19 = vcombine.high %v6512_v16, %v6512_v16  ;;  %v5254_v20 = vld [vmem:[%s7409_s1 + $0x820] ss:$16 sps:$4 sm:$0xff]  }
  0xcb   :  { %3307 = vmatpush1.bf16.msra.mxu0 %v5162_v21  ;;  %3635 = vmatpush1.bf16.msra.mxu1 %v5165_v22  ;;  %v5257_v21 = vld [vmem:[%s7409_s1 + $0x828] ss:$16 sps:$4 sm:$0xff]   ;;  %v5262_v22 = vld [vmem:[%s7409_s1 + $0x844] ss:$16 sps:$4 sm:$0xff]  }
  0xcc   :  { %3308 = vmatprep.subr.bf16.mxu0 %v5170_v23  ;;  %3636 = vmatprep.subr.bf16.mxu1 %v5173_v24  ;;  %v5265_v23 = vld [vmem:[%s7409_s1 + $0x84c] ss:$16 sps:$4 sm:$0xff]   ;;  %v5260_v24 = vld [vmem:[%s7409_s1 + $0x840] ss:$16 sps:$4 sm:$0xff]  }
  0xcf   :  { %3309 = vmatpush1.bf16.msra.mxu0 %v5168_v25  ;;  %3637 = vmatpush1.bf16.msra.mxu1 %v5171_v26  ;;  %v5263_v25 = vld [vmem:[%s7409_s1 + $0x848] ss:$16 sps:$4 sm:$0xff]   ;;  %v5268_v26 = vld [vmem:[%s7409_s1 + $0x864] ss:$16 sps:$4 sm:$0xff]  }
  0xd0   :  { %3310 = vmatprep.subr.bf16.mxu0 %v5176_v27  ;;  %3638 = vmatprep.subr.bf16.mxu1 %v5179_v28  ;;  %v5271_v27 = vld [vmem:[%s7409_s1 + $0x86c] ss:$16 sps:$4 sm:$0xff]   ;;  %v5266_v28 = vld [vmem:[%s7409_s1 + $0x860] ss:$16 sps:$4 sm:$0xff]  }
  0xd3   :  { %3311 = vmatpush1.bf16.msra.mxu0 %v5174_v29  ;;  %3639 = vmatpush1.bf16.msra.mxu1 %v5177_v30  ;;  %v5269_v29 = vld [vmem:[%s7409_s1 + $0x868] ss:$16 sps:$4 sm:$0xff]   ;;  %v5274_v30 = vld [vmem:[%s7409_s1 + $0x884] ss:$16 sps:$4 sm:$0xff]  }
  0xd4   :  { %3312 = vmatprep.subr.bf16.mxu0 %v5182_v31  ;;  %3640 = vmatprep.subr.bf16.mxu1 %v5185_v32  ;;  %v5277_v31 = vld [vmem:[%s7409_s1 + $0x88c] ss:$16 sps:$4 sm:$0xff]   ;;  %v5272_v32 = vld [vmem:[%s7409_s1 + $0x880] ss:$16 sps:$4 sm:$0xff]  }
  0xd7   :  { %3313 = vmatpush1.bf16.msra.mxu0 %v5180_v33  ;;  %3641 = vmatpush1.bf16.msra.mxu1 %v5183_v34  ;;  %v5275_v33 = vld [vmem:[%s7409_s1 + $0x888] ss:$16 sps:$4 sm:$0xff]   ;;  %v5280_v34 = vld [vmem:[%s7409_s1 + $0x8a4] ss:$16 sps:$4 sm:$0xff]  }
  0xd8   :  { %3314 = vmatprep.subr.bf16.mxu0 %v5188_v35  ;;  %3642 = vmatprep.subr.bf16.mxu1 %v5191_v36  ;;  %v5283_v35 = vld [vmem:[%s7409_s1 + $0x8ac] ss:$16 sps:$4 sm:$0xff]   ;;  %v5278_v36 = vld [vmem:[%s7409_s1 + $0x8a0] ss:$16 sps:$4 sm:$0xff]  }
  0xdb   :  { %3315 = vmatpush1.bf16.msra.mxu0 %v5186_v37  ;;  %3643 = vmatpush1.bf16.msra.mxu1 %v5189_v38  ;;  %v5281_v37 = vld [vmem:[%s7409_s1 + $0x8a8] ss:$16 sps:$4 sm:$0xff]   ;;  %v5286_v38 = vld [vmem:[%s7409_s1 + $0x8c4] ss:$16 sps:$4 sm:$0xff]  }
  0xdc   :  { %3316 = vmatprep.subr.bf16.mxu0 %v5194_v39  ;;  %3644 = vmatprep.subr.bf16.mxu1 %v5197_v40  ;;  %v5289_v39 = vld [vmem:[%s7409_s1 + $0x8cc] ss:$16 sps:$4 sm:$0xff]   ;;  %v5284_v40 = vld [vmem:[%s7409_s1 + $0x8c0] ss:$16 sps:$4 sm:$0xff]  }
  0xdf   :  { %3317 = vmatpush1.bf16.msra.mxu0 %v5192_v41  ;;  %3645 = vmatpush1.bf16.msra.mxu1 %v5195_v42  ;;  %v5287_v41 = vld [vmem:[%s7409_s1 + $0x8c8] ss:$16 sps:$4 sm:$0xff]   ;;  %v5292_v42 = vld [vmem:[%s7409_s1 + $0x8e4] ss:$16 sps:$4 sm:$0xff]  }
  0xe0   :  { %3318 = vmatprep.subr.bf16.mxu0 %v5200_v43  ;;  %3646 = vmatprep.subr.bf16.mxu1 %v5203_v44  ;;  %v5295_v43 = vld [vmem:[%s7409_s1 + $0x8ec] ss:$16 sps:$4 sm:$0xff]   ;;  %v5290_v44 = vld [vmem:[%s7409_s1 + $0x8e0] ss:$16 sps:$4 sm:$0xff]  }
  0xe3   :  { %3319 = vmatpush1.bf16.msra.mxu0 %v5198_v45  ;;  %3647 = vmatpush1.bf16.msra.mxu1 %v5201_v46  ;;  %v5293_v45 = vld [vmem:[%s7409_s1 + $0x8e8] ss:$16 sps:$4 sm:$0xff]   ;;  %v5298_v46 = vld [vmem:[%s7409_s1 + $0x904] ss:$16 sps:$4 sm:$0xff]  }
  0xe4   :  { %3320 = vmatprep.subr.bf16.mxu0 %v5206_v47  ;;  %3648 = vmatprep.subr.bf16.mxu1 %v5209_v48  ;;  %v5301_v47 = vld [vmem:[%s7409_s1 + $0x90c] ss:$16 sps:$4 sm:$0xff]   ;;  %v5296_v48 = vld [vmem:[%s7409_s1 + $0x900] ss:$16 sps:$4 sm:$0xff]  }
  0xe7   :  { %3321 = vmatpush1.bf16.msra.mxu0 %v5204_v49  ;;  %3649 = vmatpush1.bf16.msra.mxu1 %v5207_v50  ;;  %v5299_v49 = vld [vmem:[%s7409_s1 + $0x908] ss:$16 sps:$4 sm:$0xff]   ;;  %v5304_v50 = vld [vmem:[%s7409_s1 + $0x924] ss:$16 sps:$4 sm:$0xff]  }
  0xe8   :  { %3322 = vmatprep.subr.bf16.mxu0 %v5212_v51  ;;  %3650 = vmatprep.subr.bf16.mxu1 %v5215_v52  ;;  %v5307_v51 = vld [vmem:[%s7409_s1 + $0x92c] ss:$16 sps:$4 sm:$0xff]   ;;  %v5302_v52 = vld [vmem:[%s7409_s1 + $0x920] ss:$16 sps:$4 sm:$0xff]  }
  0xeb   :  { %3323 = vmatpush1.bf16.msra.mxu0 %v5210_v53  ;;  %3651 = vmatpush1.bf16.msra.mxu1 %v5213_v54  ;;  %v5305_v53 = vld [vmem:[%s7409_s1 + $0x928] ss:$16 sps:$4 sm:$0xff]   ;;  %v5310_v54 = vld [vmem:[%s7409_s1 + $0x944] ss:$16 sps:$4 sm:$0xff]  }
  0xec   :  { %3324 = vmatprep.subr.bf16.mxu0 %v5218_v55  ;;  %3652 = vmatprep.subr.bf16.mxu1 %v5221_v56  ;;  %v5313_v55 = vld [vmem:[%s7409_s1 + $0x94c] ss:$16 sps:$4 sm:$0xff]   ;;  %v5308_v56 = vld [vmem:[%s7409_s1 + $0x940] ss:$16 sps:$4 sm:$0xff]  }
  0xef   :  { %3325 = vmatpush1.bf16.msra.mxu0 %v5216_v57  ;;  %3653 = vmatpush1.bf16.msra.mxu1 %v5219_v58  ;;  %v5311_v57 = vld [vmem:[%s7409_s1 + $0x948] ss:$16 sps:$4 sm:$0xff]   ;;  %v5316_v58 = vld [vmem:[%s7409_s1 + $0x964] ss:$16 sps:$4 sm:$0xff]  }
  0xf0   :  { %3326 = vmatprep.subr.bf16.mxu0 %v5224_v59  ;;  %3654 = vmatprep.subr.bf16.mxu1 %v5227_v60  ;;  %v5319_v59 = vld [vmem:[%s7409_s1 + $0x96c] ss:$16 sps:$4 sm:$0xff]   ;;  %v5314_v60 = vld [vmem:[%s7409_s1 + $0x960] ss:$16 sps:$4 sm:$0xff]  }
  0xf3   :  { %3327 = vmatpush1.bf16.msra.mxu0 %v5222_v61  ;;  %3655 = vmatpush1.bf16.msra.mxu1 %v5225_v62  ;;  %v5317_v61 = vld [vmem:[%s7409_s1 + $0x968] ss:$16 sps:$4 sm:$0xff]   ;;  %v5322_v62 = vld [vmem:[%s7409_s1 + $0x984] ss:$16 sps:$4 sm:$0xff]  }
  0xf4   :  { %3328 = vmatprep.subr.bf16.mxu0 %v5230_v63  ;;  %3656 = vmatprep.subr.bf16.mxu1 %v5233_v0  ;;  %v5325_v63 = vld [vmem:[%s7409_s1 + $0x98c] ss:$16 sps:$4 sm:$0xff]   ;;  %v5320_v0 = vld [vmem:[%s7409_s1 + $0x980] ss:$16 sps:$4 sm:$0xff]  }
  0xf7   :  { %3329 = vmatpush1.bf16.msra.mxu0 %v5228_v1  ;;  %3657 = vmatpush1.bf16.msra.mxu1 %v5231_v2  ;;  %v5323_v1 = vld [vmem:[%s7409_s1 + $0x988] ss:$16 sps:$4 sm:$0xff]   ;;  %v5328_v2 = vld [vmem:[%s7409_s1 + $0x9a4] ss:$16 sps:$4 sm:$0xff]  }
  0xf8   :  { %3330 = vmatprep.subr.bf16.mxu0 %v5236_v3  ;;  %3658 = vmatprep.subr.bf16.mxu1 %v5239_v4  ;;  %v5331_v3 = vld [vmem:[%s7409_s1 + $0x9ac] ss:$16 sps:$4 sm:$0xff]   ;;  %v5326_v4 = vld [vmem:[%s7409_s1 + $0x9a0] ss:$16 sps:$4 sm:$0xff]  }
  0xfb   :  { %3331 = vmatpush1.bf16.msra.mxu0 %v5234_v5  ;;  %3659 = vmatpush1.bf16.msra.mxu1 %v5237_v6  ;;  %v5329_v5 = vld [vmem:[%s7409_s1 + $0x9a8] ss:$16 sps:$4 sm:$0xff]   ;;  %v5334_v6 = vld [vmem:[%s7409_s1 + $0x9c4] ss:$16 sps:$4 sm:$0xff]  }
  0xfc   :  { %3332 = vmatprep.subr.bf16.mxu0 %v5242_v7  ;;  %3660 = vmatprep.subr.bf16.mxu1 %v5245_v8  ;;  %v5337_v7 = vld [vmem:[%s7409_s1 + $0x9cc] ss:$16 sps:$4 sm:$0xff]   ;;  %v5332_v8 = vld [vmem:[%s7409_s1 + $0x9c0] ss:$16 sps:$4 sm:$0xff]  }
  0xff   :  { %3333 = vmatpush1.bf16.msra.mxu0 %v5240_v9  ;;  %3661 = vmatpush1.bf16.msra.mxu1 %v5243_v10  ;;  %v5335_v9 = vld [vmem:[%s7409_s1 + $0x9c8] ss:$16 sps:$4 sm:$0xff]   ;;  %v5340_v10 = vld [vmem:[%s7409_s1 + $0x9e4] ss:$16 sps:$4 sm:$0xff]  }
 0x100   :  { %3343 = vmatprep.subr.bf16.mxu0 %v5250_v12  ;;  %3671 = vmatprep.subr.bf16.mxu1 %v5253_v13  ;;  %v5343_v12 = vld [vmem:[%s7409_s1 + $0x9ec] ss:$16 sps:$4 sm:$0xff]   ;;  %v5338_v13 = vld [vmem:[%s7409_s1 + $0x9e0] ss:$16 sps:$4 sm:$0xff]  }
 0x102   :  { %3335 = vmatmul.mubr.bf16.vlgmr.msra.gmra.mrb[0].mxu0 %v4197_v11  ;;  %3663 = vmatmul.mubr.bf16.vlgmr.msra.gmra.mrb[0].mxu1 %v4197_v11  ;;  %v5348_v11 = vld [vmem:[%s7409_s1 + $0xa04] ss:$16 sps:$4 sm:$0xff]  }
 0x103   :  { %3344 = vmatpush1.bf16.msra.mxu0 %v5248_v15  ;;  %3672 = vmatpush1.bf16.msra.mxu1 %v5251_v17  ;;  %v5341_v15 = vld [vmem:[%s7409_s1 + $0x9e8] ss:$16 sps:$4 sm:$0xff]   ;;  %v5351_v17 = vld [vmem:[%s7409_s1 + $0xa0c] ss:$16 sps:$4 sm:$0xff]  }
 0x104   :  { %3345 = vmatprep.subr.bf16.mxu0 %v5256_v18  ;;  %3673 = vmatprep.subr.bf16.mxu1 %v5259_v14  ;;  %v6708_v18 = vld [vmem:[%s7410_s0 + $0x28] sm:$0xff]  ;;  %v4199_v14 = vcombine.low %v6512_v16, %v6512_v16 }
 0x105   :  { %3375 = vmatprep.mubr.bf16.mxu0 %v4200_v19  ;;  %3703 = vmatprep.mubr.bf16.mxu1 %v4200_v19  ;;  %v5346_v19 = vld [vmem:[%s7409_s1 + $0xa00] ss:$16 sps:$4 sm:$0xff]   ;;  %v5357_v16 = vld [vmem:[%s7409_s1 + $0xa2c] ss:$16 sps:$4 sm:$0xff]  }
 0x107   :  { %3346 = vmatpush1.bf16.msra.mxu0 %v5254_v20  ;;  %3674 = vmatpush1.bf16.msra.mxu1 %v5257_v21  ;;  %v5349_v20 = vld [vmem:[%s7409_s1 + $0xa08] ss:$16 sps:$4 sm:$0xff]   ;;  %v5354_v21 = vld [vmem:[%s7409_s1 + $0xa24] ss:$16 sps:$4 sm:$0xff]  }
 0x108   :  { %3347 = vmatprep.subr.bf16.mxu0 %v5262_v22  ;;  %3675 = vmatprep.subr.bf16.mxu1 %v5265_v23  ;;  %v4202_v22 = vcombine.high %v6708_v18, %v6708_v18  ;;  %v5352_v23 = vld [vmem:[%s7409_s1 + $0xa20] ss:$16 sps:$4 sm:$0xff]  }
 0x10b   :  { %3348 = vmatpush1.bf16.msra.mxu0 %v5260_v24  ;;  %3676 = vmatpush1.bf16.msra.mxu1 %v5263_v25  ;;  %v5355_v24 = vld [vmem:[%s7409_s1 + $0xa28] ss:$16 sps:$4 sm:$0xff]   ;;  %v5360_v25 = vld [vmem:[%s7409_s1 + $0xa44] ss:$16 sps:$4 sm:$0xff]  }
 0x10c   :  { %3349 = vmatprep.subr.bf16.mxu0 %v5268_v26  ;;  %3677 = vmatprep.subr.bf16.mxu1 %v5271_v27  ;;  %v5363_v26 = vld [vmem:[%s7409_s1 + $0xa4c] ss:$16 sps:$4 sm:$0xff]   ;;  %v5358_v27 = vld [vmem:[%s7409_s1 + $0xa40] ss:$16 sps:$4 sm:$0xff]  }
 0x10f   :  { %3350 = vmatpush1.bf16.msra.mxu0 %v5266_v28  ;;  %3678 = vmatpush1.bf16.msra.mxu1 %v5269_v29  ;;  %v5361_v28 = vld [vmem:[%s7409_s1 + $0xa48] ss:$16 sps:$4 sm:$0xff]   ;;  %v5366_v29 = vld [vmem:[%s7409_s1 + $0xa64] ss:$16 sps:$4 sm:$0xff]  }
 0x110   :  { %3351 = vmatprep.subr.bf16.mxu0 %v5274_v30  ;;  %3679 = vmatprep.subr.bf16.mxu1 %v5277_v31  ;;  %v5369_v30 = vld [vmem:[%s7409_s1 + $0xa6c] ss:$16 sps:$4 sm:$0xff]   ;;  %v5364_v31 = vld [vmem:[%s7409_s1 + $0xa60] ss:$16 sps:$4 sm:$0xff]  }
 0x113   :  { %3352 = vmatpush1.bf16.msra.mxu0 %v5272_v32  ;;  %3680 = vmatpush1.bf16.msra.mxu1 %v5275_v33  ;;  %v5367_v32 = vld [vmem:[%s7409_s1 + $0xa68] ss:$16 sps:$4 sm:$0xff]   ;;  %v5372_v33 = vld [vmem:[%s7409_s1 + $0xa84] ss:$16 sps:$4 sm:$0xff]  }
 0x114   :  { %3353 = vmatprep.subr.bf16.mxu0 %v5280_v34  ;;  %3681 = vmatprep.subr.bf16.mxu1 %v5283_v35  ;;  %v5375_v34 = vld [vmem:[%s7409_s1 + $0xa8c] ss:$16 sps:$4 sm:$0xff]   ;;  %v5370_v35 = vld [vmem:[%s7409_s1 + $0xa80] ss:$16 sps:$4 sm:$0xff]  }
 0x117   :  { %3354 = vmatpush1.bf16.msra.mxu0 %v5278_v36  ;;  %3682 = vmatpush1.bf16.msra.mxu1 %v5281_v37  ;;  %v5373_v36 = vld [vmem:[%s7409_s1 + $0xa88] ss:$16 sps:$4 sm:$0xff]   ;;  %v5378_v37 = vld [vmem:[%s7409_s1 + $0xaa4] ss:$16 sps:$4 sm:$0xff]  }
 0x118   :  { %3355 = vmatprep.subr.bf16.mxu0 %v5286_v38  ;;  %3683 = vmatprep.subr.bf16.mxu1 %v5289_v39  ;;  %v5381_v38 = vld [vmem:[%s7409_s1 + $0xaac] ss:$16 sps:$4 sm:$0xff]   ;;  %v5376_v39 = vld [vmem:[%s7409_s1 + $0xaa0] ss:$16 sps:$4 sm:$0xff]  }
 0x11b   :  { %3356 = vmatpush1.bf16.msra.mxu0 %v5284_v40  ;;  %3684 = vmatpush1.bf16.msra.mxu1 %v5287_v41  ;;  %v5379_v40 = vld [vmem:[%s7409_s1 + $0xaa8] ss:$16 sps:$4 sm:$0xff]   ;;  %v5384_v41 = vld [vmem:[%s7409_s1 + $0xac4] ss:$16 sps:$4 sm:$0xff]  }
 0x11c   :  { %3357 = vmatprep.subr.bf16.mxu0 %v5292_v42  ;;  %3685 = vmatprep.subr.bf16.mxu1 %v5295_v43  ;;  %v5387_v42 = vld [vmem:[%s7409_s1 + $0xacc] ss:$16 sps:$4 sm:$0xff]   ;;  %v5382_v43 = vld [vmem:[%s7409_s1 + $0xac0] ss:$16 sps:$4 sm:$0xff]  }
 0x11f   :  { %3358 = vmatpush1.bf16.msra.mxu0 %v5290_v44  ;;  %3686 = vmatpush1.bf16.msra.mxu1 %v5293_v45  ;;  %v5385_v44 = vld [vmem:[%s7409_s1 + $0xac8] ss:$16 sps:$4 sm:$0xff]   ;;  %v5390_v45 = vld [vmem:[%s7409_s1 + $0xae4] ss:$16 sps:$4 sm:$0xff]  }
 0x120   :  { %3359 = vmatprep.subr.bf16.mxu0 %v5298_v46  ;;  %3687 = vmatprep.subr.bf16.mxu1 %v5301_v47  ;;  %v5393_v46 = vld [vmem:[%s7409_s1 + $0xaec] ss:$16 sps:$4 sm:$0xff]   ;;  %v5388_v47 = vld [vmem:[%s7409_s1 + $0xae0] ss:$16 sps:$4 sm:$0xff]  }
 0x123   :  { %3360 = vmatpush1.bf16.msra.mxu0 %v5296_v48  ;;  %3688 = vmatpush1.bf16.msra.mxu1 %v5299_v49  ;;  %v5391_v48 = vld [vmem:[%s7409_s1 + $0xae8] ss:$16 sps:$4 sm:$0xff]   ;;  %v5396_v49 = vld [vmem:[%s7409_s1 + $0xb04] ss:$16 sps:$4 sm:$0xff]  }
 0x124   :  { %3361 = vmatprep.subr.bf16.mxu0 %v5304_v50  ;;  %3689 = vmatprep.subr.bf16.mxu1 %v5307_v51  ;;  %v5399_v50 = vld [vmem:[%s7409_s1 + $0xb0c] ss:$16 sps:$4 sm:$0xff]   ;;  %v5394_v51 = vld [vmem:[%s7409_s1 + $0xb00] ss:$16 sps:$4 sm:$0xff]  }
 0x127   :  { %3362 = vmatpush1.bf16.msra.mxu0 %v5302_v52  ;;  %3690 = vmatpush1.bf16.msra.mxu1 %v5305_v53  ;;  %v5397_v52 = vld [vmem:[%s7409_s1 + $0xb08] ss:$16 sps:$4 sm:$0xff]   ;;  %v5402_v53 = vld [vmem:[%s7409_s1 + $0xb24] ss:$16 sps:$4 sm:$0xff]  }
 0x128   :  { %3363 = vmatprep.subr.bf16.mxu0 %v5310_v54  ;;  %3691 = vmatprep.subr.bf16.mxu1 %v5313_v55  ;;  %v5405_v54 = vld [vmem:[%s7409_s1 + $0xb2c] ss:$16 sps:$4 sm:$0xff]   ;;  %v5400_v55 = vld [vmem:[%s7409_s1 + $0xb20] ss:$16 sps:$4 sm:$0xff]  }
 0x12b   :  { %3364 = vmatpush1.bf16.msra.mxu0 %v5308_v56  ;;  %3692 = vmatpush1.bf16.msra.mxu1 %v5311_v57  ;;  %v5403_v56 = vld [vmem:[%s7409_s1 + $0xb28] ss:$16 sps:$4 sm:$0xff]   ;;  %v5408_v57 = vld [vmem:[%s7409_s1 + $0xb44] ss:$16 sps:$4 sm:$0xff]  }
 0x12c   :  { %3365 = vmatprep.subr.bf16.mxu0 %v5316_v58  ;;  %3693 = vmatprep.subr.bf16.mxu1 %v5319_v59  ;;  %v5411_v58 = vld [vmem:[%s7409_s1 + $0xb4c] ss:$16 sps:$4 sm:$0xff]   ;;  %v5406_v59 = vld [vmem:[%s7409_s1 + $0xb40] ss:$16 sps:$4 sm:$0xff]  }
 0x12f   :  { %3366 = vmatpush1.bf16.msra.mxu0 %v5314_v60  ;;  %3694 = vmatpush1.bf16.msra.mxu1 %v5317_v61  ;;  %v5409_v60 = vld [vmem:[%s7409_s1 + $0xb48] ss:$16 sps:$4 sm:$0xff]   ;;  %v5414_v61 = vld [vmem:[%s7409_s1 + $0xb64] ss:$16 sps:$4 sm:$0xff]  }
 0x130   :  { %3367 = vmatprep.subr.bf16.mxu0 %v5322_v62  ;;  %3695 = vmatprep.subr.bf16.mxu1 %v5325_v63  ;;  %v5417_v62 = vld [vmem:[%s7409_s1 + $0xb6c] ss:$16 sps:$4 sm:$0xff]   ;;  %v5412_v63 = vld [vmem:[%s7409_s1 + $0xb60] ss:$16 sps:$4 sm:$0xff]  }
 0x133   :  { %3368 = vmatpush1.bf16.msra.mxu0 %v5320_v0  ;;  %3696 = vmatpush1.bf16.msra.mxu1 %v5323_v1  ;;  %v5415_v0 = vld [vmem:[%s7409_s1 + $0xb68] ss:$16 sps:$4 sm:$0xff]   ;;  %v5420_v1 = vld [vmem:[%s7409_s1 + $0xb84] ss:$16 sps:$4 sm:$0xff]  }
 0x134   :  { %3369 = vmatprep.subr.bf16.mxu0 %v5328_v2  ;;  %3697 = vmatprep.subr.bf16.mxu1 %v5331_v3  ;;  %v5423_v2 = vld [vmem:[%s7409_s1 + $0xb8c] ss:$16 sps:$4 sm:$0xff]   ;;  %v5418_v3 = vld [vmem:[%s7409_s1 + $0xb80] ss:$16 sps:$4 sm:$0xff]  }
 0x137   :  { %3370 = vmatpush1.bf16.msra.mxu0 %v5326_v4  ;;  %3698 = vmatpush1.bf16.msra.mxu1 %v5329_v5  ;;  %v5421_v4 = vld [vmem:[%s7409_s1 + $0xb88] ss:$16 sps:$4 sm:$0xff]   ;;  %v5426_v5 = vld [vmem:[%s7409_s1 + $0xba4] ss:$16 sps:$4 sm:$0xff]  }
 0x138   :  { %3371 = vmatprep.subr.bf16.mxu0 %v5334_v6  ;;  %3699 = vmatprep.subr.bf16.mxu1 %v5337_v7  ;;  %v5429_v6 = vld [vmem:[%s7409_s1 + $0xbac] ss:$16 sps:$4 sm:$0xff]   ;;  %v5424_v7 = vld [vmem:[%s7409_s1 + $0xba0] ss:$16 sps:$4 sm:$0xff]  }
 0x13b   :  { %3372 = vmatpush1.bf16.msra.mxu0 %v5332_v8  ;;  %3700 = vmatpush1.bf16.msra.mxu1 %v5335_v9  ;;  %v5427_v8 = vld [vmem:[%s7409_s1 + $0xba8] ss:$16 sps:$4 sm:$0xff]   ;;  %v5432_v9 = vld [vmem:[%s7409_s1 + $0xbc4] ss:$16 sps:$4 sm:$0xff]  }
 0x13c   :  { %3373 = vmatprep.subr.bf16.mxu0 %v5340_v10  ;;  %3701 = vmatprep.subr.bf16.mxu1 %v5343_v12  ;;  %v5435_v10 = vld [vmem:[%s7409_s1 + $0xbcc] ss:$16 sps:$4 sm:$0xff]   ;;  %v5430_v12 = vld [vmem:[%s7409_s1 + $0xbc0] ss:$16 sps:$4 sm:$0xff]  }
 0x13f   :  { %3374 = vmatpush1.bf16.msra.mxu0 %v5338_v13  ;;  %3702 = vmatpush1.bf16.msra.mxu1 %v5341_v15  ;;  %v5433_v13 = vld [vmem:[%s7409_s1 + $0xbc8] ss:$16 sps:$4 sm:$0xff]   ;;  %v5438_v15 = vld [vmem:[%s7409_s1 + $0xbe4] ss:$16 sps:$4 sm:$0xff]  }
 0x140   :  { %3384 = vmatprep.subr.bf16.mxu0 %v5348_v11  ;;  %3712 = vmatprep.subr.bf16.mxu1 %v5351_v17  ;;  %v5441_v11 = vld [vmem:[%s7409_s1 + $0xbec] ss:$16 sps:$4 sm:$0xff]   ;;  %v5436_v17 = vld [vmem:[%s7409_s1 + $0xbe0] ss:$16 sps:$4 sm:$0xff]  }
 0x142   :  { %3376 = vmatmul.mubr.bf16.vlgmr.msra.gmra.mrb[0].mxu0 %v4199_v14  ;;  %3704 = vmatmul.mubr.bf16.vlgmr.msra.gmra.mrb[0].mxu1 %v4199_v14  ;;  %v5439_v14 = vld [vmem:[%s7409_s1 + $0xbe8] ss:$16 sps:$4 sm:$0xff]  }
 0x143   :  { %3385 = vmatpush1.bf16.msra.mxu0 %v5346_v19  ;;  %3713 = vmatpush1.bf16.msra.mxu1 %v5349_v20  ;;  %v5446_v19 = vld [vmem:[%s7409_s1 + $0xc04] ss:$16 sps:$4 sm:$0xff]   ;;  %v5449_v20 = vld [vmem:[%s7409_s1 + $0xc0c] ss:$16 sps:$4 sm:$0xff]  }
 0x144   :  { %3386 = vmatprep.subr.bf16.mxu0 %v5354_v21  ;;  %3714 = vmatprep.subr.bf16.mxu1 %v5357_v16  ;;  %v4201_v21 = vcombine.low %v6708_v18, %v6708_v18  ;;  %v6911_v16 = vld [vmem:[%s7410_s0 + $0x30] sm:$0xff] }
 0x145   :  { %3416 = vmatprep.mubr.bf16.mxu0 %v4202_v22  ;;  %3744 = vmatprep.mubr.bf16.mxu1 %v4202_v22  ;;  %v5444_v22 = vld [vmem:[%s7409_s1 + $0xc00] ss:$16 sps:$4 sm:$0xff]   ;;  %v5452_v18 = vld [vmem:[%s7409_s1 + $0xc24] ss:$16 sps:$4 sm:$0xff]  }
 0x147   :  { %3387 = vmatpush1.bf16.msra.mxu0 %v5352_v23  ;;  %3715 = vmatpush1.bf16.msra.mxu1 %v5355_v24  ;;  %v5447_v23 = vld [vmem:[%s7409_s1 + $0xc08] ss:$16 sps:$4 sm:$0xff]   ;;  %v5455_v24 = vld [vmem:[%s7409_s1 + $0xc2c] ss:$16 sps:$4 sm:$0xff]  }
 0x148   :  { %3388 = vmatprep.subr.bf16.mxu0 %v5360_v25  ;;  %3716 = vmatprep.subr.bf16.mxu1 %v5363_v26  ;;  %v4204_v25 = vcombine.high %v6911_v16, %v6911_v16  ;;  %v5450_v26 = vld [vmem:[%s7409_s1 + $0xc20] ss:$16 sps:$4 sm:$0xff]  }
 0x14b   :  { %3389 = vmatpush1.bf16.msra.mxu0 %v5358_v27  ;;  %3717 = vmatpush1.bf16.msra.mxu1 %v5361_v28  ;;  %v5453_v27 = vld [vmem:[%s7409_s1 + $0xc28] ss:$16 sps:$4 sm:$0xff]   ;;  %v5458_v28 = vld [vmem:[%s7409_s1 + $0xc44] ss:$16 sps:$4 sm:$0xff]  }
 0x14c   :  { %3390 = vmatprep.subr.bf16.mxu0 %v5366_v29  ;;  %3718 = vmatprep.subr.bf16.mxu1 %v5369_v30  ;;  %v5461_v29 = vld [vmem:[%s7409_s1 + $0xc4c] ss:$16 sps:$4 sm:$0xff]   ;;  %v5456_v30 = vld [vmem:[%s7409_s1 + $0xc40] ss:$16 sps:$4 sm:$0xff]  }
 0x14f   :  { %3391 = vmatpush1.bf16.msra.mxu0 %v5364_v31  ;;  %3719 = vmatpush1.bf16.msra.mxu1 %v5367_v32  ;;  %v5459_v31 = vld [vmem:[%s7409_s1 + $0xc48] ss:$16 sps:$4 sm:$0xff]   ;;  %v5464_v32 = vld [vmem:[%s7409_s1 + $0xc64] ss:$16 sps:$4 sm:$0xff]  }
 0x150   :  { %3392 = vmatprep.subr.bf16.mxu0 %v5372_v33  ;;  %3720 = vmatprep.subr.bf16.mxu1 %v5375_v34  ;;  %v5467_v33 = vld [vmem:[%s7409_s1 + $0xc6c] ss:$16 sps:$4 sm:$0xff]   ;;  %v5462_v34 = vld [vmem:[%s7409_s1 + $0xc60] ss:$16 sps:$4 sm:$0xff]  }
 0x153   :  { %3393 = vmatpush1.bf16.msra.mxu0 %v5370_v35  ;;  %3721 = vmatpush1.bf16.msra.mxu1 %v5373_v36  ;;  %v5465_v35 = vld [vmem:[%s7409_s1 + $0xc68] ss:$16 sps:$4 sm:$0xff]   ;;  %v5470_v36 = vld [vmem:[%s7409_s1 + $0xc84] ss:$16 sps:$4 sm:$0xff]  }
 0x154   :  { %3394 = vmatprep.subr.bf16.mxu0 %v5378_v37  ;;  %3722 = vmatprep.subr.bf16.mxu1 %v5381_v38  ;;  %v5473_v37 = vld [vmem:[%s7409_s1 + $0xc8c] ss:$16 sps:$4 sm:$0xff]   ;;  %v5468_v38 = vld [vmem:[%s7409_s1 + $0xc80] ss:$16 sps:$4 sm:$0xff]  }
 0x157   :  { %3395 = vmatpush1.bf16.msra.mxu0 %v5376_v39  ;;  %3723 = vmatpush1.bf16.msra.mxu1 %v5379_v40  ;;  %v5471_v39 = vld [vmem:[%s7409_s1 + $0xc88] ss:$16 sps:$4 sm:$0xff]   ;;  %v5476_v40 = vld [vmem:[%s7409_s1 + $0xca4] ss:$16 sps:$4 sm:$0xff]  }
 0x158   :  { %3396 = vmatprep.subr.bf16.mxu0 %v5384_v41  ;;  %3724 = vmatprep.subr.bf16.mxu1 %v5387_v42  ;;  %v5479_v41 = vld [vmem:[%s7409_s1 + $0xcac] ss:$16 sps:$4 sm:$0xff]   ;;  %v5474_v42 = vld [vmem:[%s7409_s1 + $0xca0] ss:$16 sps:$4 sm:$0xff]  }
 0x15b   :  { %3397 = vmatpush1.bf16.msra.mxu0 %v5382_v43  ;;  %3725 = vmatpush1.bf16.msra.mxu1 %v5385_v44  ;;  %v5477_v43 = vld [vmem:[%s7409_s1 + $0xca8] ss:$16 sps:$4 sm:$0xff]   ;;  %v5482_v44 = vld [vmem:[%s7409_s1 + $0xcc4] ss:$16 sps:$4 sm:$0xff]  }
 0x15c   :  { %3398 = vmatprep.subr.bf16.mxu0 %v5390_v45  ;;  %3726 = vmatprep.subr.bf16.mxu1 %v5393_v46  ;;  %v5485_v45 = vld [vmem:[%s7409_s1 + $0xccc] ss:$16 sps:$4 sm:$0xff]   ;;  %v5480_v46 = vld [vmem:[%s7409_s1 + $0xcc0] ss:$16 sps:$4 sm:$0xff]  }
 0x15f   :  { %3399 = vmatpush1.bf16.msra.mxu0 %v5388_v47  ;;  %3727 = vmatpush1.bf16.msra.mxu1 %v5391_v48  ;;  %v5483_v47 = vld [vmem:[%s7409_s1 + $0xcc8] ss:$16 sps:$4 sm:$0xff]   ;;  %v5488_v48 = vld [vmem:[%s7409_s1 + $0xce4] ss:$16 sps:$4 sm:$0xff]  }
 0x160   :  { %3400 = vmatprep.subr.bf16.mxu0 %v5396_v49  ;;  %3728 = vmatprep.subr.bf16.mxu1 %v5399_v50  ;;  %v5491_v49 = vld [vmem:[%s7409_s1 + $0xcec] ss:$16 sps:$4 sm:$0xff]   ;;  %v5486_v50 = vld [vmem:[%s7409_s1 + $0xce0] ss:$16 sps:$4 sm:$0xff]  }
 0x163   :  { %3401 = vmatpush1.bf16.msra.mxu0 %v5394_v51  ;;  %3729 = vmatpush1.bf16.msra.mxu1 %v5397_v52  ;;  %v5489_v51 = vld [vmem:[%s7409_s1 + $0xce8] ss:$16 sps:$4 sm:$0xff]   ;;  %v5494_v52 = vld [vmem:[%s7409_s1 + $0xd04] ss:$16 sps:$4 sm:$0xff]  }
 0x164   :  { %3402 = vmatprep.subr.bf16.mxu0 %v5402_v53  ;;  %3730 = vmatprep.subr.bf16.mxu1 %v5405_v54  ;;  %v5497_v53 = vld [vmem:[%s7409_s1 + $0xd0c] ss:$16 sps:$4 sm:$0xff]   ;;  %v5492_v54 = vld [vmem:[%s7409_s1 + $0xd00] ss:$16 sps:$4 sm:$0xff]  }
 0x167   :  { %3403 = vmatpush1.bf16.msra.mxu0 %v5400_v55  ;;  %3731 = vmatpush1.bf16.msra.mxu1 %v5403_v56  ;;  %v5495_v55 = vld [vmem:[%s7409_s1 + $0xd08] ss:$16 sps:$4 sm:$0xff]   ;;  %v5500_v56 = vld [vmem:[%s7409_s1 + $0xd24] ss:$16 sps:$4 sm:$0xff]  }
 0x168   :  { %3404 = vmatprep.subr.bf16.mxu0 %v5408_v57  ;;  %3732 = vmatprep.subr.bf16.mxu1 %v5411_v58  ;;  %v5503_v57 = vld [vmem:[%s7409_s1 + $0xd2c] ss:$16 sps:$4 sm:$0xff]   ;;  %v5498_v58 = vld [vmem:[%s7409_s1 + $0xd20] ss:$16 sps:$4 sm:$0xff]  }
 0x16b   :  { %3405 = vmatpush1.bf16.msra.mxu0 %v5406_v59  ;;  %3733 = vmatpush1.bf16.msra.mxu1 %v5409_v60  ;;  %v5501_v59 = vld [vmem:[%s7409_s1 + $0xd28] ss:$16 sps:$4 sm:$0xff]   ;;  %v5506_v60 = vld [vmem:[%s7409_s1 + $0xd44] ss:$16 sps:$4 sm:$0xff]  }
 0x16c   :  { %3406 = vmatprep.subr.bf16.mxu0 %v5414_v61  ;;  %3734 = vmatprep.subr.bf16.mxu1 %v5417_v62  ;;  %v5509_v61 = vld [vmem:[%s7409_s1 + $0xd4c] ss:$16 sps:$4 sm:$0xff]   ;;  %v5504_v62 = vld [vmem:[%s7409_s1 + $0xd40] ss:$16 sps:$4 sm:$0xff]  }
 0x16f   :  { %3407 = vmatpush1.bf16.msra.mxu0 %v5412_v63  ;;  %3735 = vmatpush1.bf16.msra.mxu1 %v5415_v0  ;;  %v5507_v63 = vld [vmem:[%s7409_s1 + $0xd48] ss:$16 sps:$4 sm:$0xff]   ;;  %v5512_v0 = vld [vmem:[%s7409_s1 + $0xd64] ss:$16 sps:$4 sm:$0xff]  }
 0x170   :  { %3408 = vmatprep.subr.bf16.mxu0 %v5420_v1  ;;  %3736 = vmatprep.subr.bf16.mxu1 %v5423_v2  ;;  %v5515_v1 = vld [vmem:[%s7409_s1 + $0xd6c] ss:$16 sps:$4 sm:$0xff]   ;;  %v5510_v2 = vld [vmem:[%s7409_s1 + $0xd60] ss:$16 sps:$4 sm:$0xff]  }
 0x173   :  { %3409 = vmatpush1.bf16.msra.mxu0 %v5418_v3  ;;  %3737 = vmatpush1.bf16.msra.mxu1 %v5421_v4  ;;  %v5513_v3 = vld [vmem:[%s7409_s1 + $0xd68] ss:$16 sps:$4 sm:$0xff]   ;;  %v5518_v4 = vld [vmem:[%s7409_s1 + $0xd84] ss:$16 sps:$4 sm:$0xff]  }
 0x174   :  { %3410 = vmatprep.subr.bf16.mxu0 %v5426_v5  ;;  %3738 = vmatprep.subr.bf16.mxu1 %v5429_v6  ;;  %v5521_v5 = vld [vmem:[%s7409_s1 + $0xd8c] ss:$16 sps:$4 sm:$0xff]   ;;  %v5516_v6 = vld [vmem:[%s7409_s1 + $0xd80] ss:$16 sps:$4 sm:$0xff]  }
 0x177   :  { %3411 = vmatpush1.bf16.msra.mxu0 %v5424_v7  ;;  %3739 = vmatpush1.bf16.msra.mxu1 %v5427_v8  ;;  %v5519_v7 = vld [vmem:[%s7409_s1 + $0xd88] ss:$16 sps:$4 sm:$0xff]   ;;  %v5524_v8 = vld [vmem:[%s7409_s1 + $0xda4] ss:$16 sps:$4 sm:$0xff]  }
 0x178   :  { %3412 = vmatprep.subr.bf16.mxu0 %v5432_v9  ;;  %3740 = vmatprep.subr.bf16.mxu1 %v5435_v10  ;;  %v5527_v9 = vld [vmem:[%s7409_s1 + $0xdac] ss:$16 sps:$4 sm:$0xff]   ;;  %v5522_v10 = vld [vmem:[%s7409_s1 + $0xda0] ss:$16 sps:$4 sm:$0xff]  }
 0x17b   :  { %3413 = vmatpush1.bf16.msra.mxu0 %v5430_v12  ;;  %3741 = vmatpush1.bf16.msra.mxu1 %v5433_v13  ;;  %v5525_v12 = vld [vmem:[%s7409_s1 + $0xda8] ss:$16 sps:$4 sm:$0xff]   ;;  %v5530_v13 = vld [vmem:[%s7409_s1 + $0xdc4] ss:$16 sps:$4 sm:$0xff]  }
 0x17c   :  { %3414 = vmatprep.subr.bf16.mxu0 %v5438_v15  ;;  %3742 = vmatprep.subr.bf16.mxu1 %v5441_v11  ;;  %v5533_v15 = vld [vmem:[%s7409_s1 + $0xdcc] ss:$16 sps:$4 sm:$0xff]   ;;  %v5528_v11 = vld [vmem:[%s7409_s1 + $0xdc0] ss:$16 sps:$4 sm:$0xff]  }
 0x17f   :  { %3415 = vmatpush1.bf16.msra.mxu0 %v5436_v17  ;;  %3743 = vmatpush1.bf16.msra.mxu1 %v5439_v14  ;;  %v5531_v17 = vld [vmem:[%s7409_s1 + $0xdc8] ss:$16 sps:$4 sm:$0xff]   ;;  %v5536_v14 = vld [vmem:[%s7409_s1 + $0xde4] ss:$16 sps:$4 sm:$0xff]  }
 0x180   :  { %3425 = vmatprep.subr.bf16.mxu0 %v5446_v19  ;;  %3753 = vmatprep.subr.bf16.mxu1 %v5449_v20  ;;  %v5539_v19 = vld [vmem:[%s7409_s1 + $0xdec] ss:$16 sps:$4 sm:$0xff]   ;;  %v5534_v20 = vld [vmem:[%s7409_s1 + $0xde0] ss:$16 sps:$4 sm:$0xff]  }
 0x182   :  { %3417 = vmatmul.mubr.bf16.vlgmr.msra.gmra.mrb[0].mxu0 %v4201_v21  ;;  %3745 = vmatmul.mubr.bf16.vlgmr.msra.gmra.mrb[0].mxu1 %v4201_v21  ;;  %v5537_v21 = vld [vmem:[%s7409_s1 + $0xde8] ss:$16 sps:$4 sm:$0xff]  }
 0x183   :  { %3426 = vmatpush1.bf16.msra.mxu0 %v5444_v22  ;;  %3754 = vmatpush1.bf16.msra.mxu1 %v5447_v23  ;;  %v5544_v22 = vld [vmem:[%s7409_s1 + $0xe04] ss:$16 sps:$4 sm:$0xff]   ;;  %v5547_v23 = vld [vmem:[%s7409_s1 + $0xe0c] ss:$16 sps:$4 sm:$0xff]  }
 0x184   :  { %3427 = vmatprep.subr.bf16.mxu0 %v5452_v18  ;;  %3755 = vmatprep.subr.bf16.mxu1 %v5455_v24  ;;  %v4203_v18 = vcombine.low %v6911_v16, %v6911_v16  ;;  %v7112_v24 = vld [vmem:[%s7410_s0 + $0x38] sm:$0xff]  ;;  %v5550_v16 = vld [vmem:[%s7409_s1 + $0xe24] ss:$16 sps:$4 sm:$0xff]  }
 0x185   :  { %3457 = vmatprep.mubr.bf16.mxu0 %v4204_v25  ;;  %3785 = vmatprep.mubr.bf16.mxu1 %v4204_v25  ;;  %v5542_v25 = vld [vmem:[%s7409_s1 + $0xe00] ss:$16 sps:$4 sm:$0xff]  }
 0x187   :  { %3428 = vmatpush1.bf16.msra.mxu0 %v5450_v26  ;;  %3756 = vmatpush1.bf16.msra.mxu1 %v5453_v27  ;;  %v5545_v26 = vld [vmem:[%s7409_s1 + $0xe08] ss:$16 sps:$4 sm:$0xff]   ;;  %v5553_v27 = vld [vmem:[%s7409_s1 + $0xe2c] ss:$16 sps:$4 sm:$0xff]  }
 0x188   :  { %3429 = vmatprep.subr.bf16.mxu0 %v5458_v28  ;;  %3757 = vmatprep.subr.bf16.mxu1 %v5461_v29  ;;  %v4206_v28 = vcombine.high %v7112_v24, %v7112_v24  ;;  %v5548_v29 = vld [vmem:[%s7409_s1 + $0xe20] ss:$16 sps:$4 sm:$0xff]  }
 0x18b   :  { %3430 = vmatpush1.bf16.msra.mxu0 %v5456_v30  ;;  %3758 = vmatpush1.bf16.msra.mxu1 %v5459_v31  ;;  %v5551_v30 = vld [vmem:[%s7409_s1 + $0xe28] ss:$16 sps:$4 sm:$0xff]   ;;  %v5556_v31 = vld [vmem:[%s7409_s1 + $0xe44] ss:$16 sps:$4 sm:$0xff]  }
 0x18c   :  { %3431 = vmatprep.subr.bf16.mxu0 %v5464_v32  ;;  %3759 = vmatprep.subr.bf16.mxu1 %v5467_v33  ;;  %v5559_v32 = vld [vmem:[%s7409_s1 + $0xe4c] ss:$16 sps:$4 sm:$0xff]   ;;  %v5554_v33 = vld [vmem:[%s7409_s1 + $0xe40] ss:$16 sps:$4 sm:$0xff]  }
 0x18f   :  { %3432 = vmatpush1.bf16.msra.mxu0 %v5462_v34  ;;  %3760 = vmatpush1.bf16.msra.mxu1 %v5465_v35  ;;  %v5557_v34 = vld [vmem:[%s7409_s1 + $0xe48] ss:$16 sps:$4 sm:$0xff]   ;;  %v5562_v35 = vld [vmem:[%s7409_s1 + $0xe64] ss:$16 sps:$4 sm:$0xff]  }
 0x190   :  { %3433 = vmatprep.subr.bf16.mxu0 %v5470_v36  ;;  %3761 = vmatprep.subr.bf16.mxu1 %v5473_v37  ;;  %v5565_v36 = vld [vmem:[%s7409_s1 + $0xe6c] ss:$16 sps:$4 sm:$0xff]   ;;  %v5560_v37 = vld [vmem:[%s7409_s1 + $0xe60] ss:$16 sps:$4 sm:$0xff]  }
 0x193   :  { %3434 = vmatpush1.bf16.msra.mxu0 %v5468_v38  ;;  %3762 = vmatpush1.bf16.msra.mxu1 %v5471_v39  ;;  %v5563_v38 = vld [vmem:[%s7409_s1 + $0xe68] ss:$16 sps:$4 sm:$0xff]   ;;  %v5568_v39 = vld [vmem:[%s7409_s1 + $0xe84] ss:$16 sps:$4 sm:$0xff]  }
 0x194   :  { %3435 = vmatprep.subr.bf16.mxu0 %v5476_v40  ;;  %3763 = vmatprep.subr.bf16.mxu1 %v5479_v41  ;;  %v5571_v40 = vld [vmem:[%s7409_s1 + $0xe8c] ss:$16 sps:$4 sm:$0xff]   ;;  %v5566_v41 = vld [vmem:[%s7409_s1 + $0xe80] ss:$16 sps:$4 sm:$0xff]  }
 0x197   :  { %3436 = vmatpush1.bf16.msra.mxu0 %v5474_v42  ;;  %3764 = vmatpush1.bf16.msra.mxu1 %v5477_v43  ;;  %v5569_v42 = vld [vmem:[%s7409_s1 + $0xe88] ss:$16 sps:$4 sm:$0xff]   ;;  %v5574_v43 = vld [vmem:[%s7409_s1 + $0xea4] ss:$16 sps:$4 sm:$0xff]  }
 0x198   :  { %3437 = vmatprep.subr.bf16.mxu0 %v5482_v44  ;;  %3765 = vmatprep.subr.bf16.mxu1 %v5485_v45  ;;  %v5577_v44 = vld [vmem:[%s7409_s1 + $0xeac] ss:$16 sps:$4 sm:$0xff]   ;;  %v5572_v45 = vld [vmem:[%s7409_s1 + $0xea0] ss:$16 sps:$4 sm:$0xff]  }
 0x19b   :  { %3438 = vmatpush1.bf16.msra.mxu0 %v5480_v46  ;;  %3766 = vmatpush1.bf16.msra.mxu1 %v5483_v47  ;;  %v5575_v46 = vld [vmem:[%s7409_s1 + $0xea8] ss:$16 sps:$4 sm:$0xff]   ;;  %v5580_v47 = vld [vmem:[%s7409_s1 + $0xec4] ss:$16 sps:$4 sm:$0xff]  }
 0x19c   :  { %3439 = vmatprep.subr.bf16.mxu0 %v5488_v48  ;;  %3767 = vmatprep.subr.bf16.mxu1 %v5491_v49  ;;  %v5583_v48 = vld [vmem:[%s7409_s1 + $0xecc] ss:$16 sps:$4 sm:$0xff]   ;;  %v5578_v49 = vld [vmem:[%s7409_s1 + $0xec0] ss:$16 sps:$4 sm:$0xff]  }
 0x19f   :  { %3440 = vmatpush1.bf16.msra.mxu0 %v5486_v50  ;;  %3768 = vmatpush1.bf16.msra.mxu1 %v5489_v51  ;;  %v5581_v50 = vld [vmem:[%s7409_s1 + $0xec8] ss:$16 sps:$4 sm:$0xff]   ;;  %v5586_v51 = vld [vmem:[%s7409_s1 + $0xee4] ss:$16 sps:$4 sm:$0xff]  }
 0x1a0   :  { %3441 = vmatprep.subr.bf16.mxu0 %v5494_v52  ;;  %3769 = vmatprep.subr.bf16.mxu1 %v5497_v53  ;;  %v5589_v52 = vld [vmem:[%s7409_s1 + $0xeec] ss:$16 sps:$4 sm:$0xff]   ;;  %v5584_v53 = vld [vmem:[%s7409_s1 + $0xee0] ss:$16 sps:$4 sm:$0xff]  }
 0x1a3   :  { %3442 = vmatpush1.bf16.msra.mxu0 %v5492_v54  ;;  %3770 = vmatpush1.bf16.msra.mxu1 %v5495_v55  ;;  %v5587_v54 = vld [vmem:[%s7409_s1 + $0xee8] ss:$16 sps:$4 sm:$0xff]   ;;  %v5592_v55 = vld [vmem:[%s7409_s1 + $0xf04] ss:$16 sps:$4 sm:$0xff]  }
 0x1a4   :  { %3443 = vmatprep.subr.bf16.mxu0 %v5500_v56  ;;  %3771 = vmatprep.subr.bf16.mxu1 %v5503_v57  ;;  %v5595_v56 = vld [vmem:[%s7409_s1 + $0xf0c] ss:$16 sps:$4 sm:$0xff]   ;;  %v5590_v57 = vld [vmem:[%s7409_s1 + $0xf00] ss:$16 sps:$4 sm:$0xff]  }
 0x1a7   :  { %3444 = vmatpush1.bf16.msra.mxu0 %v5498_v58  ;;  %3772 = vmatpush1.bf16.msra.mxu1 %v5501_v59  ;;  %v5593_v58 = vld [vmem:[%s7409_s1 + $0xf08] ss:$16 sps:$4 sm:$0xff]   ;;  %v5598_v59 = vld [vmem:[%s7409_s1 + $0xf24] ss:$16 sps:$4 sm:$0xff]  }
 0x1a8   :  { %3445 = vmatprep.subr.bf16.mxu0 %v5506_v60  ;;  %3773 = vmatprep.subr.bf16.mxu1 %v5509_v61  ;;  %v5601_v60 = vld [vmem:[%s7409_s1 + $0xf2c] ss:$16 sps:$4 sm:$0xff]   ;;  %v5596_v61 = vld [vmem:[%s7409_s1 + $0xf20] ss:$16 sps:$4 sm:$0xff]  }
 0x1ab   :  { %3446 = vmatpush1.bf16.msra.mxu0 %v5504_v62  ;;  %3774 = vmatpush1.bf16.msra.mxu1 %v5507_v63  ;;  %v5599_v62 = vld [vmem:[%s7409_s1 + $0xf28] ss:$16 sps:$4 sm:$0xff]   ;;  %v5604_v63 = vld [vmem:[%s7409_s1 + $0xf44] ss:$16 sps:$4 sm:$0xff]  }
 0x1ac   :  { %3447 = vmatprep.subr.bf16.mxu0 %v5512_v0  ;;  %3775 = vmatprep.subr.bf16.mxu1 %v5515_v1  ;;  %v5607_v0 = vld [vmem:[%s7409_s1 + $0xf4c] ss:$16 sps:$4 sm:$0xff]   ;;  %v5602_v1 = vld [vmem:[%s7409_s1 + $0xf40] ss:$16 sps:$4 sm:$0xff]  }
 0x1af   :  { %3448 = vmatpush1.bf16.msra.mxu0 %v5510_v2  ;;  %3776 = vmatpush1.bf16.msra.mxu1 %v5513_v3  ;;  %v5605_v2 = vld [vmem:[%s7409_s1 + $0xf48] ss:$16 sps:$4 sm:$0xff]   ;;  %v5610_v3 = vld [vmem:[%s7409_s1 + $0xf64] ss:$16 sps:$4 sm:$0xff]  }
 0x1b0   :  { %3449 = vmatprep.subr.bf16.mxu0 %v5518_v4  ;;  %3777 = vmatprep.subr.bf16.mxu1 %v5521_v5  ;;  %v5613_v4 = vld [vmem:[%s7409_s1 + $0xf6c] ss:$16 sps:$4 sm:$0xff]   ;;  %v5608_v5 = vld [vmem:[%s7409_s1 + $0xf60] ss:$16 sps:$4 sm:$0xff]  }
 0x1b3   :  { %3450 = vmatpush1.bf16.msra.mxu0 %v5516_v6  ;;  %3778 = vmatpush1.bf16.msra.mxu1 %v5519_v7  ;;  %v5611_v6 = vld [vmem:[%s7409_s1 + $0xf68] ss:$16 sps:$4 sm:$0xff]   ;;  %v5616_v7 = vld [vmem:[%s7409_s1 + $0xf84] ss:$16 sps:$4 sm:$0xff]  }
 0x1b4   :  { %3451 = vmatprep.subr.bf16.mxu0 %v5524_v8  ;;  %3779 = vmatprep.subr.bf16.mxu1 %v5527_v9  ;;  %v5619_v8 = vld [vmem:[%s7409_s1 + $0xf8c] ss:$16 sps:$4 sm:$0xff]   ;;  %v5614_v9 = vld [vmem:[%s7409_s1 + $0xf80] ss:$16 sps:$4 sm:$0xff]  }
 0x1b7   :  { %3452 = vmatpush1.bf16.msra.mxu0 %v5522_v10  ;;  %3780 = vmatpush1.bf16.msra.mxu1 %v5525_v12  ;;  %v5617_v10 = vld [vmem:[%s7409_s1 + $0xf88] ss:$16 sps:$4 sm:$0xff]   ;;  %v5622_v12 = vld [vmem:[%s7409_s1 + $0xfa4] ss:$16 sps:$4 sm:$0xff]  }
 0x1b8   :  { %3453 = vmatprep.subr.bf16.mxu0 %v5530_v13  ;;  %3781 = vmatprep.subr.bf16.mxu1 %v5533_v15  ;;  %v5625_v13 = vld [vmem:[%s7409_s1 + $0xfac] ss:$16 sps:$4 sm:$0xff]   ;;  %v5620_v15 = vld [vmem:[%s7409_s1 + $0xfa0] ss:$16 sps:$4 sm:$0xff]  }
 0x1bb   :  { %3454 = vmatpush1.bf16.msra.mxu0 %v5528_v11  ;;  %3782 = vmatpush1.bf16.msra.mxu1 %v5531_v17  ;;  %v5623_v11 = vld [vmem:[%s7409_s1 + $0xfa8] ss:$16 sps:$4 sm:$0xff]   ;;  %v5628_v17 = vld [vmem:[%s7409_s1 + $0xfc4] ss:$16 sps:$4 sm:$0xff]  }
 0x1bc   :  { %3455 = vmatprep.subr.bf16.mxu0 %v5536_v14  ;;  %3783 = vmatprep.subr.bf16.mxu1 %v5539_v19  ;;  %v5631_v14 = vld [vmem:[%s7409_s1 + $0xfcc] ss:$16 sps:$4 sm:$0xff]   ;;  %v5626_v19 = vld [vmem:[%s7409_s1 + $0xfc0] ss:$16 sps:$4 sm:$0xff]  }
 0x1bf   :  { %3456 = vmatpush1.bf16.msra.mxu0 %v5534_v20  ;;  %3784 = vmatpush1.bf16.msra.mxu1 %v5537_v21  ;;  %v5629_v20 = vld [vmem:[%s7409_s1 + $0xfc8] ss:$16 sps:$4 sm:$0xff]   ;;  %v5634_v21 = vld [vmem:[%s7409_s1 + $0xfe4] ss:$16 sps:$4 sm:$0xff]  }
 0x1c0   :  { %3466 = vmatprep.subr.bf16.mxu0 %v5544_v22  ;;  %3794 = vmatprep.subr.bf16.mxu1 %v5547_v23  ;;  %v5637_v22 = vld [vmem:[%s7409_s1 + $0xfec] ss:$16 sps:$4 sm:$0xff]   ;;  %v5632_v23 = vld [vmem:[%s7409_s1 + $0xfe0] ss:$16 sps:$4 sm:$0xff]  }
 0x1c2   :  { %3458 = vmatmul.mubr.bf16.vlgmr.msra.gmra.mrb[0].mxu0 %v4203_v18  ;;  %3786 = vmatmul.mubr.bf16.vlgmr.msra.gmra.mrb[0].mxu1 %v4203_v18  ;;  %v5635_v18 = vld [vmem:[%s7409_s1 + $0xfe8] ss:$16 sps:$4 sm:$0xff]  }
 0x1c3   :  { %3467 = vmatpush1.bf16.msra.mxu0 %v5542_v25  ;;  %3795 = vmatpush1.bf16.msra.mxu1 %v5545_v26  ;;  %v5640_v25 = vld [vmem:[%s7411_s3 + $0x40] sm:$0xff]  }
 0x1c4   :  { %3468 = vmatprep.subr.bf16.mxu0 %v5550_v16  ;;  %3796 = vmatprep.subr.bf16.mxu1 %v5553_v27  ;;  %v5641_v26 = vld [vmem:[%s7411_s3 + $0xc0] sm:$0xff]   ;;  %v4205_v16 = vcombine.low %v7112_v24, %v7112_v24  ;;  %v5645_v24 = vld [vmem:[%s7411_s3 + $0xc8] sm:$0xff]  }
 0x1c5   :  { %3498 = vmatprep.mubr.bf16.mxu0 %v4206_v28  ;;  %3826 = vmatprep.mubr.bf16.mxu1 %v4206_v28  ;;  %v5642_v27 = vld [vmem:[%s7411_s3] sm:$0xff]  }
 0x1c6   :  { %v5643_v28 = vld [vmem:[%s7411_s3 + $0x80] sm:$0xff]  }
 0x1c7   :  { %3469 = vmatpush1.bf16.msra.mxu0 %v5548_v29  ;;  %3797 = vmatpush1.bf16.msra.mxu1 %v5551_v30  ;;  %v5644_v29 = vld [vmem:[%s7411_s3 + $0x48] sm:$0xff]  }
 0x1c8   :  { %3470 = vmatprep.subr.bf16.mxu0 %v5556_v31  ;;  %3798 = vmatprep.subr.bf16.mxu1 %v5559_v32  ;;  %v5646_v30 = vld [vmem:[%s7411_s3 + $0x8] sm:$0xff]   ;;  %v5648_v32 = vld [vmem:[%s7411_s3 + $0x50] sm:$0xff]  }
 0x1c9   :  { %v5647_v31 = vld [vmem:[%s7411_s3 + $0x88] sm:$0xff]  }
 0x1cb   :  { %3471 = vmatpush1.bf16.msra.mxu0 %v5554_v33  ;;  %3799 = vmatpush1.bf16.msra.mxu1 %v5557_v34  ;;  %v5649_v33 = vld [vmem:[%s7411_s3 + $0xd0] sm:$0xff]  }
 0x1cc   :  { %3472 = vmatprep.subr.bf16.mxu0 %v5562_v35  ;;  %3800 = vmatprep.subr.bf16.mxu1 %v5565_v36  ;;  %v5650_v34 = vld [vmem:[%s7411_s3 + $0x10] sm:$0xff]   ;;  %v5652_v36 = vld [vmem:[%s7411_s3 + $0x58] sm:$0xff]  }
 0x1cd   :  { %v5651_v35 = vld [vmem:[%s7411_s3 + $0x90] sm:$0xff]  }
 0x1cf   :  { %3473 = vmatpush1.bf16.msra.mxu0 %v5560_v37  ;;  %3801 = vmatpush1.bf16.msra.mxu1 %v5563_v38  ;;  %v5653_v37 = vld [vmem:[%s7411_s3 + $0xd8] sm:$0xff]  }
 0x1d0   :  { %3474 = vmatprep.subr.bf16.mxu0 %v5568_v39  ;;  %3802 = vmatprep.subr.bf16.mxu1 %v5571_v40  ;;  %v5654_v38 = vld [vmem:[%s7411_s3 + $0x18] sm:$0xff]   ;;  %v5656_v40 = vld [vmem:[%s7411_s3 + $0x60] sm:$0xff]  }
 0x1d1   :  { %v5655_v39 = vld [vmem:[%s7411_s3 + $0x98] sm:$0xff]  }
 0x1d3   :  { %3475 = vmatpush1.bf16.msra.mxu0 %v5566_v41  ;;  %3803 = vmatpush1.bf16.msra.mxu1 %v5569_v42  ;;  %v5657_v41 = vld [vmem:[%s7411_s3 + $0xe0] sm:$0xff]  }
 0x1d4   :  { %3476 = vmatprep.subr.bf16.mxu0 %v5574_v43  ;;  %3804 = vmatprep.subr.bf16.mxu1 %v5577_v44  ;;  %v5658_v42 = vld [vmem:[%s7411_s3 + $0x20] sm:$0xff]   ;;  %v5660_v44 = vld [vmem:[%s7411_s3 + $0x68] sm:$0xff]  }
 0x1d5   :  { %v5659_v43 = vld [vmem:[%s7411_s3 + $0xa0] sm:$0xff]  }
 0x1d7   :  { %3477 = vmatpush1.bf16.msra.mxu0 %v5572_v45  ;;  %3805 = vmatpush1.bf16.msra.mxu1 %v5575_v46  ;;  %v5661_v45 = vld [vmem:[%s7411_s3 + $0xe8] sm:$0xff]  }
 0x1d8   :  { %3478 = vmatprep.subr.bf16.mxu0 %v5580_v47  ;;  %3806 = vmatprep.subr.bf16.mxu1 %v5583_v48  ;;  %v5662_v46 = vld [vmem:[%s7411_s3 + $0x28] sm:$0xff]   ;;  %v5664_v48 = vld [vmem:[%s7411_s3 + $0x70] sm:$0xff]  }
 0x1d9   :  { %v5663_v47 = vld [vmem:[%s7411_s3 + $0xa8] sm:$0xff]  }
 0x1db   :  { %3479 = vmatpush1.bf16.msra.mxu0 %v5578_v49  ;;  %3807 = vmatpush1.bf16.msra.mxu1 %v5581_v50  ;;  %v5665_v49 = vld [vmem:[%s7411_s3 + $0xf0] sm:$0xff]  }
 0x1dc   :  { %3480 = vmatprep.subr.bf16.mxu0 %v5586_v51  ;;  %3808 = vmatprep.subr.bf16.mxu1 %v5589_v52  ;;  %v5666_v50 = vld [vmem:[%s7411_s3 + $0x30] sm:$0xff]   ;;  %v5668_v52 = vld [vmem:[%s7411_s3 + $0x78] sm:$0xff]  }
 0x1dd   :  { %v5667_v51 = vld [vmem:[%s7411_s3 + $0xb0] sm:$0xff]  }
 0x1df   :  { %3481 = vmatpush1.bf16.msra.mxu0 %v5584_v53  ;;  %3809 = vmatpush1.bf16.msra.mxu1 %v5587_v54  ;;  %v5669_v53 = vld [vmem:[%s7411_s3 + $0xf8] sm:$0xff]  }
 0x1e0   :  { %3482 = vmatprep.subr.bf16.mxu0 %v5592_v55  ;;  %3810 = vmatprep.subr.bf16.mxu1 %v5595_v56  ;;  %v5670_v54 = vld [vmem:[%s7411_s3 + $0x38] sm:$0xff]   ;;  %v543_v56 = vlaneseq }
 0x1e1   :  { %v5671_v55 = vld [vmem:[%s7411_s3 + $0xb8] sm:$0xff]  }
 0x1e3   :  { %3483 = vmatpush1.bf16.msra.mxu0 %v5590_v57  ;;  %3811 = vmatpush1.bf16.msra.mxu1 %v5593_v58  ;;  %v544_v57 = vshrl.u32 %v543_v56, 7 }
 0x1e4   :  { %3484 = vmatprep.subr.bf16.mxu0 %v5598_v59  ;;  %3812 = vmatprep.subr.bf16.mxu1 %v5601_v60  ;;  %v541_v60 = vld [vmem:[%s7412_s2] sm:$0xf] }
 0x1e5   :  { %v545_v58 = vsub.s32 0, %v544_v57  ;;  %v553_v59 = vsub.s32 2, %v544_v57 }
 0x1e7   :  { %3485 = vmatpush1.bf16.msra.mxu0 %v5596_v61  ;;  %3813 = vmatpush1.bf16.msra.mxu1 %v5599_v62  ;;  %v549_v61 = vsub.s32 1, %v544_v57  ;;  %v557_v62 = vsub.s32 3, %v544_v57 }
 0x1e8   :  { %3486 = vmatprep.subr.bf16.mxu0 %v5604_v63  ;;  %3814 = vmatprep.subr.bf16.mxu1 %v5607_v0  ;;  %v546_v63 = vrot.slane %v541_v60, %v545_v58  ;;  %v554_v0 = vrot.slane %v541_v60, %v553_v59 }
 0x1eb   :  { %3487 = vmatpush1.bf16.msra.mxu0 %v5602_v1  ;;  %3815 = vmatpush1.bf16.msra.mxu1 %v5605_v2  ;;  %v550_v1 = vrot.slane %v541_v60, %v549_v61  ;;  %v558_v2 = vrot.slane %v541_v60, %v557_v62 }
 0x1ec   :  { %3488 = vmatprep.subr.bf16.mxu0 %v5610_v3  ;;  %3816 = vmatprep.subr.bf16.mxu1 %v5613_v4 }
 0x1ef   :  { %3489 = vmatpush1.bf16.msra.mxu0 %v5608_v5  ;;  %3817 = vmatpush1.bf16.msra.mxu1 %v5611_v6 }
 0x1f0   :  { %3490 = vmatprep.subr.bf16.mxu0 %v5616_v7  ;;  %3818 = vmatprep.subr.bf16.mxu1 %v5619_v8 }
 0x1f3   :  { %3491 = vmatpush1.bf16.msra.mxu0 %v5614_v9  ;;  %3819 = vmatpush1.bf16.msra.mxu1 %v5617_v10 }
 0x1f4   :  { %3492 = vmatprep.subr.bf16.mxu0 %v5622_v12  ;;  %3820 = vmatprep.subr.bf16.mxu1 %v5625_v13 }
 0x1f7   :  { %3493 = vmatpush1.bf16.msra.mxu0 %v5620_v15  ;;  %3821 = vmatpush1.bf16.msra.mxu1 %v5623_v11 }
 0x1f8   :  { %3494 = vmatprep.subr.bf16.mxu0 %v5628_v17  ;;  %3822 = vmatprep.subr.bf16.mxu1 %v5631_v14 }
 0x1fb   :  { %3495 = vmatpush1.bf16.msra.mxu0 %v5626_v19  ;;  %3823 = vmatpush1.bf16.msra.mxu1 %v5629_v20 }
 0x1fc   :  { %3496 = vmatprep.subr.bf16.mxu0 %v5634_v21  ;;  %3824 = vmatprep.subr.bf16.mxu1 %v5637_v22 }
 0x1ff   :  { %3497 = vmatpush1.bf16.msra.mxu0 %v5632_v23  ;;  %3825 = vmatpush1.bf16.msra.mxu1 %v5635_v18 }
 0x200   :  { %4752 = vmatprep.subr.bf16.mxu0 %v5640_v25  ;;  %4774 = vmatprep.subr.bf16.mxu1 %v5641_v26 }
 0x202   :  { %3499 = vmatmul.mubr.bf16.vlgmr.msra.gmra.mrb[0].mxu0 %v4205_v16  ;;  %3827 = vmatmul.mubr.bf16.vlgmr.msra.gmra.mrb[0].mxu1 %v4205_v16  ;;  %v4719_v16 = vld [vmem:[%s7413_s4] ss:$0 sm:$0xff] }
 0x203   :  { %4753 = vmatpush3.bf16.msra.mxu0 %v5642_v27  ;;  %4775 = vmatpush3.bf16.msra.mxu1 %v5643_v28 }
 0x204   :  { %4754 = vmatprep.subr.bf16.mxu0 %v5644_v29  ;;  %4776 = vmatprep.subr.bf16.mxu1 %v5645_v24 }
 0x207   :  { %4755 = vmatpush3.bf16.msra.mxu0 %v5646_v30  ;;  %4777 = vmatpush3.bf16.msra.mxu1 %v5647_v31 }
 0x208   :  { %4756 = vmatprep.subr.bf16.mxu0 %v5648_v32  ;;  %4778 = vmatprep.subr.bf16.mxu1 %v5649_v33 }
 0x20b   :  { %4757 = vmatpush3.bf16.msra.mxu0 %v5650_v34  ;;  %4779 = vmatpush3.bf16.msra.mxu1 %v5651_v35 }
 0x20c   :  { %4758 = vmatprep.subr.bf16.mxu0 %v5652_v36  ;;  %4780 = vmatprep.subr.bf16.mxu1 %v5653_v37 }
 0x20f   :  { %4759 = vmatpush3.bf16.msra.mxu0 %v5654_v38  ;;  %4781 = vmatpush3.bf16.msra.mxu1 %v5655_v39 }
 0x210   :  { %4760 = vmatprep.subr.bf16.mxu0 %v5656_v40  ;;  %4782 = vmatprep.subr.bf16.mxu1 %v5657_v41 }
 0x213   :  { %4761 = vmatpush3.bf16.msra.mxu0 %v5658_v42  ;;  %4783 = vmatpush3.bf16.msra.mxu1 %v5659_v43 }
 0x214   :  { %4762 = vmatprep.subr.bf16.mxu0 %v5660_v44  ;;  %4784 = vmatprep.subr.bf16.mxu1 %v5661_v45 }
 0x217   :  { %4763 = vmatpush3.bf16.msra.mxu0 %v5662_v46  ;;  %4785 = vmatpush3.bf16.msra.mxu1 %v5663_v47 }
 0x218   :  { %4764 = vmatprep.subr.bf16.mxu0 %v5664_v48  ;;  %4786 = vmatprep.subr.bf16.mxu1 %v5665_v49 }
 0x21b   :  { %4765 = vmatpush3.bf16.msra.mxu0 %v5666_v50  ;;  %4787 = vmatpush3.bf16.msra.mxu1 %v5667_v51 }
 0x21c   :  { %4766 = vmatprep.subr.bf16.mxu0 %v5668_v52  ;;  %4788 = vmatprep.subr.bf16.mxu1 %v5669_v53 }
 0x21f   :  { %4767 = vmatpush3.bf16.msra.mxu0 %v5670_v54  ;;  %4789 = vmatpush3.bf16.msra.mxu1 %v5671_v55 }
 0x2d5   :  { %v3500_v3 = vpop.f32.mrb[0].mxu0  ;;  %v3828_v4 = vpop.f32.mrb[0].mxu1 }
 0x2d6   :  { %v4796_v5 = vadd.f32 %v3500_v3, %v546_v63  ;;  %v4798_v6 = vadd.f32 %v3828_v4, %v554_v0  ;;  %v3502_v7 = vpop.f32.mrb[1].mxu0  ;;  %v3830_v8 = vpop.f32.mrb[1].mxu1 }
 0x2d7   :  { %v4797_v9 = vadd.f32 %v3502_v7, %v550_v1  ;;  %v4799_v10 = vadd.f32 %v3830_v8, %v558_v2  ;;  %v3504_v12 = vpop.f32.mrb[2].mxu0  ;;  %v3832_v13 = vpop.f32.mrb[2].mxu1 }
 0x2d8   :  { %v3835_v15 = vmax.f32 %v4796_v5, 0.0  ;;  %v3837_v11 = vmax.f32 %v4798_v6, 0.0  ;;  %v3505_v17 = vpop.f32.mrb[3].mxu0  ;;  %v3833_v14 = vpop.f32.mrb[3].mxu1 }
 0x2d9   :  { %v3836_v19 = vmax.f32 %v4797_v9, 0.0  ;;  %v3838_v20 = vmax.f32 %v4799_v10, 0.0 }
 0x2da   :  { %v3839_v23 = vpack.c.bf16 %v3835_v15, %v3835_v15  ;;  %v3841_v18 = vpack.c.bf16 %v3837_v11, %v3837_v11 }
 0x2db   :  { %v3840_v21 = vpack.c.bf16 %v3836_v19, %v3836_v19  ;;  %v3842_v22 = vpack.c.bf16 %v3838_v20, %v3838_v20 }
 0x2dd   :  { %4138 = vmatprep.mubr.bf16.mxu0 %v3840_v21  ;;  %4178 = vmatprep.mubr.bf16.mxu1 %v3842_v22 }
 0x2de   :  { %4139 = vmatmul.mubr.bf16.vlgmr.msra.gmra.mrb[4].mxu0 %v3839_v23  ;;  %4179 = vmatmul.mubr.bf16.vlgmr.msra.gmra.mrb[4].mxu1 %v3841_v18 }
 0x3b1   :  { %v4768_v25 = vpop.f32.mrb[4].mxu0  ;;  %v4790_v26 = vpop.f32.mrb[4].mxu1 }
 0x3b2   :  { %v4769_v27 = vpop.f32.mrb[5].mxu0  ;;  %v4791_v28 = vpop.f32.mrb[5].mxu1 }
 0x3b3   :  { %v4770_v29 = vadd.f32 %v4769_v27, %v4768_v25  ;;  %v4792_v24 = vadd.f32 %v4791_v28, %v4790_v26  ;;  %v4771_v30 = vpop.f32.mrb[6].mxu0  ;;  %v4793_v31 = vpop.f32.mrb[6].mxu1 }
 0x3b4   :  { %v4772_v32 = vpop.f32.mrb[7].mxu0  ;;  %v4794_v33 = vpop.f32.mrb[7].mxu1 }
 0x3b5   :  { %v4141_v34 = vadd.f32 %v4770_v29, %v4719_v16 }
 0x3b7   :  { %v4181_v35 = vadd.f32 %v4792_v24, %v4141_v34 }
 0x3b9   :  { %4186 = vst [vmem:[%s7414_s5] sm:$0xff] %v4181_v35 }

// kernel: net_forward.4
= control target key start
LH: loop header
LB: loop body
LE: loop exit
PB: predicated region body
PF: predicated region fallthrough
CT: control target
= control target key end

     0   :  { %s8509_s12 = smov 0   ;;  %s10425_s0 = inlined_call_operand.vmem [shape: bf16[2,12,12,128], index: 0, kind: input, shape index: {}]   ;;  %s10426_s1 = inlined_call_operand.vmem [shape: bf16[25,128,128], index: 1, kind: input, shape index: {}]   ;;  %s10427_s2 = inlined_call_operand.vmem [shape: f32[1,128], index: 2, kind: input, shape index: {}]   ;;  %s10428_s3 = inlined_call_operand.vmem [shape: bf16[32,128], index: 3, kind: output, shape index: {}]  }
   0x1 LB: > { %s8515_s13 = sadd.s32 4294967295, %s8487_s12   ;;  %p6164_p0 = scmp.ge.s32.totalorder %s8487_s12, 1  ;;  %s8487_s12 = sphi %s8509_s12, %s13_s12  }
   0x2   : > { %p137_p1 = scmp.lt.s32.totalorder %s8487_s12, 3 }
   0x4   : > { %p138_p2 = pnand %p6164_p0, %p137_p1 }
   0x5   : > { %v8253_v0 = vld [vmem:[%s10426_s1 + $0x40] sm:$0xff] (!%p138_p2)   ;;  %p161_p3 = scmp.lt.s32.totalorder (!%p138_p2), %s8515_s13, 1  ;;  %v8255_v2 = vld [vmem:[%s10426_s1 + $0x48] sm:$0xff] (!%p138_p2)   ;;  %v8257_v4 = vld [vmem:[%s10426_s1 + $0x50] sm:$0xff] (!%p138_p2)   ;;  %vm627_vm0 = vcmask (!%p138_p2), 1042432   ;;  %vm628_vm1 = vcmask (!%p138_p2), 1046532  }
   0x6   : > { %141 = sbr.rel (%p138_p2) target bundleno = 659 (0x293), region = 32  ;;  %v8254_v1 = vld [vmem:[%s10426_s1 + $0x300] sm:$0xff] (!%p138_p2)   ;;  %7436 = vmatprep.subr.bf16.mxu1 (!%p138_p2), %v8253_v0  ;;  %v8256_v3 = vld [vmem:[%s10426_s1 + $0x308] sm:$0xff] (!%p138_p2)   ;;  %v8258_v5 = vld [vmem:[%s10426_s1 + $0x310] sm:$0xff] (!%p138_p2)   ;;  %vm205_vm2 = vsmask.f32 (!%p138_p2), 3328 }
   0x7   : > { %7724 = vmatprep.subr.bf16.mxu0 (!%p138_p2), %v8254_v1  ;;  %7437 = vmatpush3.bf16.msra.mxu1 (!%p138_p2), %v8253_v0  ;;  %v8259_v6 = vld [vmem:[%s10426_s1 + $0x58] sm:$0xff] (!%p138_p2)   ;;  %v8261_v8 = vld [vmem:[%s10426_s1 + $0x60] sm:$0xff] (!%p138_p2)   ;;  %v8263_v10 = vld [vmem:[%s10426_s1 + $0x68] sm:$0xff] (!%p138_p2)   ;;  %vm206_vm3 = vsmask.f32 (!%p138_p2), 7440  ;;  %vm1149_vm9 = vcmask (!%p138_p2), 1041408  }
   0x8   : > { %7725 = vmatpush3.bf16.msra.mxu0 (!%p138_p2), %v8254_v1  ;;  %7438 = vmatprep.subr.bf16.mxu1 (!%p138_p2), %v8255_v2  ;;  %v8260_v7 = vld [vmem:[%s10426_s1 + $0x318] sm:$0xff] (!%p138_p2)   ;;  %v8262_v9 = vld [vmem:[%s10426_s1 + $0x320] sm:$0xff] (!%p138_p2)   ;;  %v8264_v14 = vld [vmem:[%s10426_s1 + $0x328] sm:$0xff] (!%p138_p2)   ;;  %vm824_vm6 = vsmask.f32 (!%p138_p2), 2304  ;;  %vm1150_vm10 = vcmask (!%p138_p2), 1045508  }
   0x9   : > { %7726 = vmatprep.subr.bf16.mxu0 (!%p138_p2), %v8256_v3  ;;  %v8265_v22 = vld [vmem:[%s10426_s1 + $0x70] sm:$0xff] (!%p138_p2)   ;;  %vm8590_vm4 = vmor (!%p138_p2), %vm627_vm0, %vm628_vm1  ;;  %v8267_v41 = vld [vmem:[%s10426_s1 + $0x78] sm:$0xff] (!%p138_p2)   ;;  %vm825_vm7 = vsmask.f32 (!%p138_p2), 6416  ;;  %s6166_s8 = sshll.u32 (!%p138_p2), %s8515_s13, 1 }
   0xa   : > { %v8266_v26 = vld [vmem:[%s10426_s1 + $0x330] sm:$0xff] (!%p138_p2)   ;;  %vm8602_vm5 = vmor (!%p138_p2), %vm205_vm2, %vm206_vm3  ;;  %v8268_v44 = vld [vmem:[%s10426_s1 + $0x338] sm:$0xff] (!%p138_p2)   ;;  %p167_p4 = scmp.lt.s32.totalorder (!%p138_p2), %s6166_s8, 3 }
   0xb   : > { %7439 = vmatpush3.bf16.msra.mxu1 (!%p138_p2), %v8255_v2  ;;  %v8634_v53 = vld [vmem:[%s10426_s1] sm:$0xff] (!%p138_p2)   ;;  %vm8814_vm8 = vmor (!%p138_p2), %vm824_vm6, %vm825_vm7  ;;  %v8449_v33 = vld [vmem:[%s10426_s1 + $0x2c8] sm:$0xff] (!%p138_p2)  }
   0xc   : > { %7727 = vmatpush3.bf16.msra.mxu0 (!%p138_p2), %v8256_v3  ;;  %7440 = vmatprep.subr.bf16.mxu1 (!%p138_p2), %v8257_v4  ;;  %v8270_v59 = vld [vmem:[%s10426_s1 + $0x340] sm:$0xff] (!%p138_p2)   ;;  %vm8918_vm11 = vmor (!%p138_p2), %vm1149_vm9, %vm1150_vm10 }
   0xd   : > { %s162_s26 = scalar_select %p161_p3, %s8515_s13, 1  ;;  %7728 = vmatprep.subr.bf16.mxu0 %v8258_v5 }
   0xe   : > { %s10438_s8 = smov (!%p167_p4, %s6166_s8), 3 }
   0xf   : > { %s8244_s4 = smul.u32 96, %s162_s26  ;;  %7441 = vmatpush3.bf16.msra.mxu1 %v8257_v4  ;;  %s6167_s9 = sshll.u32 %s10438_s8, 2 }
  0x10   : > { %7729 = vmatpush3.bf16.msra.mxu0 %v8258_v5  ;;  %7442 = vmatprep.subr.bf16.mxu1 %v8259_v6  ;;  %s170_s14 = scalar_lea.vmem %s10428_s3, %s6167_s9 }
  0x11   : > { %7730 = vmatprep.subr.bf16.mxu0 %v8260_v7  ;;  %s8554_s11 = scalar_lea.vmem %s10425_s0, %s8244_s4 }
  0x12   : > { %v8560_v11 = vld [vmem:[%s8554_s11] sm:$0xf]  ;;  %v8563_v12 = vld [vmem:[%s8554_s11 + $0x8] sm:$0xf]  ;;  %v8566_v13 = vld [vmem:[%s8554_s11 + $0x4] sm:$0x1] }
  0x13   : > { %7443 = vmatpush3.bf16.msra.mxu1 %v8259_v6  ;;  %v8572_v15 = vld [vmem:[%s8554_s11 + $0xc] sm:$0x1]  ;;  %v209_v16 = vshrl.u32 %v8560_v11, 16  ;;  %v212_v17 = vshll.u32 %v8560_v11, 16  ;;  %v218_v18 = vshll.u32 %v8566_v13, 16  ;;  %v223_v19 = vshrl.u32 %v8563_v12, 16 }
  0x14   : > { %7731 = vmatpush3.bf16.msra.mxu0 %v8260_v7  ;;  %7444 = vmatprep.subr.bf16.mxu1 %v8261_v8  ;;  %v226_v20 = vshll.u32 %v8563_v12, 16  ;;  %v232_v21 = vshll.u32 %v8572_v15, 16  ;;  %v6549_v28 = vld [vmem:[%s8554_s11 + $0x14] sm:$0x1]  ;;  %v6551_v29 = vld [vmem:[%s8554_s11 + $0x1c] sm:$0x1] }
  0x15   : > { %7732 = vmatprep.subr.bf16.mxu0 %v8262_v9  ;;  %v211_v23 = vrot.slane %v209_v16, 4  ;;  %v214_v24 = vrot.slane %v212_v17, 5  ;;  %v225_v25 = vrot.slane %v223_v19, 4  ;;  %v220_v31 = vrot.slane %v218_v18, 5  ;;  %v8595_v34 = vld [vmem:[%s8554_s11 + $0x10] sm:$0xe] }
  0x16   : > { %v228_v27 = vrot.slane %v226_v20, 5  ;;  %v234_v32 = vrot.slane %v232_v21, 5  ;;  %v8598_v35 = vld [vmem:[%s8554_s11 + $0x18] sm:$0xe]  ;;  %v6600_v38 = vrot.slane %v8595_v34, 9  ;;  %v2996_v39 = vrot.slane %v6549_v28, 5 }
  0x17   : > { %7445 = vmatpush3.bf16.msra.mxu1 %v8261_v8  ;;  %v215_v30 = vor.u32 %v214_v24, %v211_v23  ;;  %v6601_v40 = vrot.slane %v8598_v35, 9  ;;  %v3000_v43 = vrot.slane %v6551_v29, 5  ;;  %v8617_v47 = vld [vmem:[%s8554_s11 + $0x10] sm:$0xf]  ;;  %v8624_v50 = vld [vmem:[%s8554_s11 + $0x18] sm:$0xf] }
  0x18   : > { %7733 = vmatpush3.bf16.msra.mxu0 %v8262_v9  ;;  %7446 = vmatprep.subr.bf16.mxu1 %v8263_v10  ;;  %v229_v37 = vor.u32 %v228_v27, %v225_v25  ;;  %v2997_v46 = vsel %vm8590_vm4, %v6600_v38, %v2996_v39  ;;  %v8627_v51 = vld [vmem:[%s8554_s11 + $0x14] sm:$0x1]  ;;  %v8637_v55 = vld [vmem:[%s8554_s11 + $0x1c] sm:$0x1]  ;;  %v3189_v57 = vshrl.u32 %v8595_v34, 16  ;;  %v3192_v58 = vshll.u32 %v8595_v34, 16 }
  0x19   : > { %7734 = vmatprep.subr.bf16.mxu0 %v8264_v14  ;;  %v216_v42 = vrot.slane %v215_v30, 4  ;;  %v3001_v49 = vsel %vm8590_vm4, %v6601_v40, %v3000_v43  ;;  %v237_v60 = vshrl.u32 %v8617_v47, 16  ;;  %v6553_v61 = vld [vmem:[%s8554_s11 + $0x24] sm:$0x1]  ;;  %v240_v62 = vshll.u32 %v8617_v47, 16 }
  0x1a   : > { %v230_v45 = vrot.slane %v229_v37, 4  ;;  %v6624_v54 = vcombine.low %v2997_v46, %v3001_v49  ;;  %v246_v63 = vshll.u32 %v8627_v51, 16  ;;  %v251_v0 = vshrl.u32 %v8624_v50, 16  ;;  %v6594_v2 = vld [vmem:[%s8554_s11 + $0x20] sm:$0xe]  ;;  %v8271_v37 = vld [vmem:[%s10426_s1 + $0x8] sm:$0xff]  }
  0x1b   : > { %7447 = vmatpush3.bf16.msra.mxu1 %v8263_v10  ;;  %v221_v48 = vsel %vm8602_vm5, %v216_v42, %v220_v31  ;;  %v254_v1 = vshll.u32 %v8624_v50, 16  ;;  %v239_v3 = vrot.slane %v237_v60, 4  ;;  %v260_v4 = vshll.u32 %v8637_v55, 16  ;;  %v6555_v5 = vld [vmem:[%s8554_s11 + $0x2c] sm:$0x1]  ;;  %v8276_v60 = vld [vmem:[%s10426_s1 + $0x358] sm:$0xff]  }
  0x1c   : > { %7735 = vmatpush3.bf16.msra.mxu0 %v8264_v14  ;;  %7448 = vmatprep.subr.bf16.mxu1 %v8265_v22  ;;  %v235_v52 = vsel %vm8602_vm5, %v230_v45, %v234_v32  ;;  %v6595_v6 = vld [vmem:[%s8554_s11 + $0x28] sm:$0xe]  ;;  %v3207_v7 = vshrl.u32 %v8598_v35, 16  ;;  %v242_v8 = vrot.slane %v240_v62, 5  ;;  %v253_v9 = vrot.slane %v251_v0, 4 }
  0x1d   : > { %7736 = vmatprep.subr.bf16.mxu0 %v8266_v26  ;;  %v6184_v56 = vcombine.low %v221_v48, %v235_v52  ;;  %7740 = vmatprep.mubr.bf16.mxu0 %v6624_v54  ;;  %v256_v10 = vrot.slane %v254_v1, 5  ;;  %v3210_v14 = vshll.u32 %v8598_v35, 16  ;;  %v248_v16 = vrot.slane %v246_v63, 5  ;;  %v8272_v42 = vld [vmem:[%s10426_s1 + $0x348] sm:$0xff]   ;;  %v8274_v54 = vld [vmem:[%s10426_s1 + $0x350] sm:$0xff]   ;;  %v8275_v63 = vld [vmem:[%s10426_s1 + $0x18] sm:$0xff]  }
  0x1e   : > { %v262_v17 = vrot.slane %v260_v4, 5  ;;  %v6602_v18 = vrot.slane %v6594_v2, 9  ;;  %v243_v19 = vor.u32 %v242_v8, %v239_v3  ;;  %v3004_v21 = vrot.slane %v6553_v61, 5  ;;  %v8688_v61 = vld [vmem:[%s8554_s11 + $0x20] sm:$0xf] }
  0x1f   : > { %7449 = vmatpush3.bf16.msra.mxu1 %v8265_v22  ;;  %7452 = vmatprep.mubr.bf16.mxu1 %v6184_v56  ;;  %v257_v20 = vor.u32 %v256_v10, %v253_v9  ;;  %v6603_v22 = vrot.slane %v6595_v6, 9  ;;  %v3191_v23 = vrot.slane %v3189_v57, 5  ;;  %v3194_v24 = vrot.slane %v3192_v58, 6  ;;  %v8699_v0 = vld [vmem:[%s8554_s11 + $0x24] sm:$0x1] }
  0x20   : > { %7737 = vmatpush3.bf16.msra.mxu0 %v8266_v26  ;;  %7450 = vmatprep.subr.bf16.mxu1 %v8267_v41  ;;  %v3008_v25 = vrot.slane %v6555_v5, 5  ;;  %v3225_v26 = vshrl.u32 %v6594_v2, 16  ;;  %v244_v27 = vrot.slane %v243_v19, 4  ;;  %v3005_v29 = vsel %vm8590_vm4, %v6602_v18, %v3004_v21  ;;  %v8702_v1 = vld [vmem:[%s8554_s11 + $0x2c] sm:$0x1]  ;;  %v8277_v21 = vld [vmem:[%s10426_s1 + $0x20] sm:$0xff]  }
  0x21   : > { %7738 = vmatprep.subr.bf16.mxu0 %v8268_v44  ;;  %v258_v28 = vrot.slane %v257_v20, 4  ;;  %v3228_v30 = vshll.u32 %v6594_v2, 16  ;;  %v3243_v34 = vshrl.u32 %v6595_v6, 16  ;;  %v3246_v35 = vshll.u32 %v6595_v6, 16  ;;  %v6557_v20 = vld [vmem:[%s8554_s11 + $0x34] sm:$0x1] }
  0x22   : > { %v3009_v31 = vsel %vm8590_vm4, %v6603_v22, %v3008_v25  ;;  %v3227_v32 = vrot.slane %v3225_v26, 5  ;;  %v249_v38 = vsel %vm8602_vm5, %v244_v27, %v248_v16  ;;  %v3195_v46 = vor.u32 %v3194_v24, %v3191_v23  ;;  %v6559_v23 = vld [vmem:[%s8554_s11 + $0x3c] sm:$0x1]  ;;  %v8720_v24 = vld [vmem:[%s8554_s11 + $0x30] sm:$0xe]  ;;  %v8278_v26 = vld [vmem:[%s10426_s1 + $0x360] sm:$0xff]  }
  0x23   : > { %7451 = vmatpush3.bf16.msra.mxu1 %v8267_v41  ;;  %v263_v39 = vsel %vm8602_vm5, %v258_v28, %v262_v17  ;;  %v6625_v40 = vcombine.low %v3005_v29, %v3009_v31  ;;  %v3230_v41 = vrot.slane %v3228_v30, 6  ;;  %v3248_v45 = vrot.slane %v3246_v35, 6  ;;  %v8723_v25 = vld [vmem:[%s8554_s11 + $0x38] sm:$0xe]  ;;  %v8280_v35 = vld [vmem:[%s10426_s1 + $0x368] sm:$0xff]  }
  0x24   : > { %7739 = vmatpush3.bf16.msra.mxu0 %v8268_v44  ;;  %7460 = vmatprep.subr.bf16.mxu1 %v8634_v53  ;;  %v6185_v43 = vcombine.low %v249_v38, %v263_v39  ;;  %v3245_v44 = vrot.slane %v3243_v34, 5  ;;  %v632_v48 = vrot.slane %v8566_v13, 5  ;;  %v636_v49 = vrot.slane %v8572_v15, 5  ;;  %v8731_v34 = vld [vmem:[%s8554_s11 + $0x30] sm:$0xf]  ;;  %v8297_v13 = vld [vmem:[%s10426_s1 + $0xa8] sm:$0xff]  }
  0x25   : > { %7748 = vmatprep.subr.bf16.mxu0 %v8270_v59  ;;  %v8673_v52 = vrot.slane %v3207_v7, 5  ;;  %v8679_v56 = vrot.slane %v3210_v14, 6  ;;  %v3231_v57 = vor.u32 %v3230_v41, %v3227_v32  ;;  %v8693_v62 = vrot.slane %v3195_v46, 4  ;;  %v8739_v39 = vld [vmem:[%s8554_s11 + $0x38] sm:$0xf]  ;;  %v8300_v15 = vld [vmem:[%s10426_s1 + $0xb0] sm:$0xff]  }
  0x26   : > { %7453 = vmatmul.mubr.bf16.vlgmr.msra.gmra.mrb[0].mxu1 %v6185_v43  ;;  %v3249_v58 = vor.u32 %v3248_v45, %v3245_v44  ;;  %v265_v2 = vshrl.u32 %v8688_v61, 16  ;;  %v268_v3 = vshll.u32 %v8688_v61, 16  ;;  %v274_v4 = vshll.u32 %v8699_v0, 16  ;;  %v8752_v45 = vld [vmem:[%s8554_s11 + $0x3c] sm:$0x1] }
  0x27   : > { %7741 = vmatmul.mubr.bf16.vlgmr.msra.gmra.mrb[0].mxu0 %v6625_v40  ;;  %7461 = vmatpush3.bf16.msra.mxu1 %v8634_v53  ;;  %v8691_v53 = vld [vmem:[%s8554_s11 + $0x28] sm:$0xf]  ;;  %v288_v7 = vshll.u32 %v8702_v1, 16  ;;  %v8710_v8 = vrot.slane %v3231_v57, 4  ;;  %v6604_v28 = vrot.slane %v8720_v24, 9  ;;  %v3012_v29 = vrot.slane %v6557_v20, 5 }
  0x28   : > { %7749 = vmatpush3.bf16.msra.mxu0 %v8270_v59  ;;  %7462 = vmatprep.subr.bf16.mxu1 %v8271_v37  ;;  %v8273_v59 = vld [vmem:[%s10426_s1 + $0x10] sm:$0xff]   ;;  %v279_v5 = vshrl.u32 %v8691_v53, 16  ;;  %v282_v6 = vshll.u32 %v8691_v53, 16  ;;  %v8712_v9 = vrot.slane %v3249_v58, 4  ;;  %v267_v10 = vrot.slane %v265_v2, 4 }
  0x29   : > { %7750 = vmatprep.subr.bf16.mxu0 %v8272_v42  ;;  %v270_v14 = vrot.slane %v268_v3, 5  ;;  %v276_v16 = vrot.slane %v274_v4, 5  ;;  %v290_v19 = vrot.slane %v288_v7, 5  ;;  %v6605_v30 = vrot.slane %v8723_v25, 9  ;;  %v8742_v40 = vld [vmem:[%s8554_s11 + $0x34] sm:$0x1] }
  0x2a   : > { %v281_v17 = vrot.slane %v279_v5, 4  ;;  %v284_v18 = vrot.slane %v282_v6, 5  ;;  %v3016_v32 = vrot.slane %v6559_v23, 5  ;;  %v3013_v38 = vsel %vm8590_vm4, %v6604_v28, %v3012_v29  ;;  %v6561_v57 = vld [vmem:[%s8554_s11 + $0x44] sm:$0x1]  ;;  %v8279_v3 = vld [vmem:[%s10426_s1 + $0x28] sm:$0xff]  }
  0x2b   : > { %7463 = vmatpush3.bf16.msra.mxu1 %v8271_v37  ;;  %v271_v22 = vor.u32 %v270_v14, %v267_v10  ;;  %v293_v41 = vshrl.u32 %v8731_v34, 16  ;;  %v296_v46 = vshll.u32 %v8731_v34, 16  ;;  %v8762_v2 = vld [vmem:[%s8554_s11 + $0x40] sm:$0xe]  ;;  %v8769_v7 = vld [vmem:[%s8554_s11 + $0x48] sm:$0xe] }
  0x2c   : > { %7751 = vmatpush3.bf16.msra.mxu0 %v8272_v42  ;;  %7464 = vmatprep.subr.bf16.mxu1 %v8273_v59  ;;  %v285_v27 = vor.u32 %v284_v18, %v281_v17  ;;  %v3213_v42 = vor.u32 %v8679_v56, %v8673_v52  ;;  %v3017_v44 = vsel %vm8590_vm4, %v6605_v30, %v3016_v32  ;;  %v316_v14 = vshll.u32 %v8752_v45, 16  ;;  %v8281_v18 = vld [vmem:[%s10426_s1 + $0x30] sm:$0xff]  }
  0x2d   : > { %7752 = vmatprep.subr.bf16.mxu0 %v8274_v54  ;;  %v272_v31 = vrot.slane %v271_v22, 4  ;;  %v6626_v56 = vcombine.low %v3013_v38, %v3017_v44  ;;  %v295_v58 = vrot.slane %v293_v41, 4  ;;  %v298_v5 = vrot.slane %v296_v46, 5 }
  0x2e   : > { %v286_v37 = vrot.slane %v285_v27, 4  ;;  %v3020_v17 = vrot.slane %v6561_v57, 5  ;;  %v6607_v22 = vrot.slane %v8769_v7, 9  ;;  %v8282_v27 = vld [vmem:[%s10426_s1 + $0x370] sm:$0xff]   ;;  %v3214_v28 = vrot.slane %v3213_v42, 4  ;;  %v8284_v42 = vld [vmem:[%s10426_s1 + $0x378] sm:$0xff]  }
  0x2f   : > { %7465 = vmatpush3.bf16.msra.mxu1 %v8273_v59  ;;  %v277_v43 = vsel %vm8602_vm5, %v272_v31, %v276_v16  ;;  %v307_v59 = vshrl.u32 %v8739_v39, 16  ;;  %7744 = vmatprep.mubr.bf16.mxu0 %v6626_v56  ;;  %v6606_v16 = vrot.slane %v8762_v2, 9  ;;  %v318_v31 = vrot.slane %v316_v14, 5 }
  0x30   : > { %7753 = vmatpush3.bf16.msra.mxu0 %v8274_v54  ;;  %7466 = vmatprep.subr.bf16.mxu1 %v8275_v63  ;;  %v302_v54 = vshll.u32 %v8742_v40, 16  ;;  %v291_v52 = vsel %vm8602_vm5, %v286_v37, %v290_v19  ;;  %v299_v19 = vor.u32 %v298_v5, %v295_v58 }
  0x31   : > { %7754 = vmatprep.subr.bf16.mxu0 %v8276_v60  ;;  %v6186_v4 = vcombine.low %v277_v43, %v291_v52  ;;  %v309_v10 = vrot.slane %v307_v59, 4  ;;  %v8793_v43 = vld [vmem:[%s8554_s11 + $0x1c] sm:$0x3]  ;;  %v6196_v52 = vcombine.low %v8560_v11, %v8563_v12  ;;  %v8804_v59 = vld [vmem:[%s8554_s11 + $0x24] sm:$0x3] }
  0x32   : > { %v304_v6 = vrot.slane %v302_v54, 5  ;;  %v300_v29 = vrot.slane %v299_v19, 4  ;;  %v3219_v54 = vshll.u32 %v8793_v43, 16  ;;  %v3234_v11 = vshrl.u32 %v8804_v59, 16  ;;  %v8287_v19 = vld [vmem:[%s10426_s1 + $0x380] sm:$0xff]  }
  0x33   : > { %7467 = vmatpush3.bf16.msra.mxu1 %v8275_v63  ;;  %v310_v63 = vshll.u32 %v8739_v39, 16  ;;  %7456 = vmatprep.mubr.bf16.mxu1 %v6186_v4  ;;  %v8283_v4 = vld [vmem:[%s10426_s1 + $0x38] sm:$0xff]  }
  0x34   : > { %7755 = vmatpush3.bf16.msra.mxu0 %v8276_v60  ;;  %v6563_v60 = vld [vmem:[%s8554_s11 + $0x4c] sm:$0x1]  ;;  %7468 = vmatprep.subr.bf16.mxu1 %v8277_v21  ;;  %v305_v38 = vsel %vm8602_vm5, %v300_v29, %v304_v6 }
  0x35   : > { %7756 = vmatprep.subr.bf16.mxu0 %v8278_v26  ;;  %v312_v20 = vrot.slane %v310_v63, 5  ;;  %v3024_v23 = vrot.slane %v6563_v60, 5  ;;  %v8807_v60 = vld [vmem:[%s8554_s11 + $0x2c] sm:$0x3]  ;;  %v3221_v63 = vrot.slane %v3219_v54, 6  ;;  %v8291_v54 = vld [vmem:[%s10426_s1 + $0x90] sm:$0xff]  }
  0x36   : > { %v3252_v14 = vshrl.u32 %v8807_v60, 16 }
  0x37   : > { %7469 = vmatpush3.bf16.msra.mxu1 %v8277_v21  ;;  %v313_v30 = vor.u32 %v312_v20, %v309_v10  ;;  %v3025_v32 = vsel %vm8590_vm4, %v6607_v22, %v3024_v23  ;;  %v8785_v21 = vld [vmem:[%s8554_s11 + $0x14] sm:$0x3]  ;;  %v3237_v10 = vshll.u32 %v8804_v59, 16  ;;  %v3236_v20 = vrot.slane %v3234_v11, 5  ;;  %v8286_v22 = vld [vmem:[%s10426_s1 + $0x80] sm:$0xff]   ;;  %v8293_v11 = vld [vmem:[%s10426_s1 + $0x98] sm:$0xff]  }
  0x38   : > { %7757 = vmatpush3.bf16.msra.mxu0 %v8278_v26  ;;  %v3021_v26 = vsel %vm8590_vm4, %v6606_v16, %v3020_v17  ;;  %7470 = vmatprep.subr.bf16.mxu1 %v8279_v3  ;;  %v3198_v44 = vshrl.u32 %v8785_v21, 16  ;;  %v3201_v46 = vshll.u32 %v8785_v21, 16  ;;  %v3255_v16 = vshll.u32 %v8807_v60, 16 }
  0x39   : > { %7758 = vmatprep.subr.bf16.mxu0 %v8280_v35  ;;  %v6627_v37 = vcombine.low %v3021_v26, %v3025_v32  ;;  %v314_v41 = vrot.slane %v313_v30, 4  ;;  %v3254_v26 = vrot.slane %v3252_v14, 5 }
  0x3a   : > { %v3200_v56 = vrot.slane %v3198_v44, 5  ;;  %v3203_v58 = vrot.slane %v3201_v46, 6  ;;  %v3257_v29 = vrot.slane %v3255_v16, 6  ;;  %v644_v46 = vrot.slane %v8637_v55, 5 }
  0x3b   : > { %7471 = vmatpush3.bf16.msra.mxu1 %v8279_v3  ;;  %v319_v57 = vsel %vm8602_vm5, %v314_v41, %v318_v31  ;;  %7745 = vmatmul.mubr.bf16.gmra.mrb[4].mxu0 %v6627_v37  ;;  %v6197_v37 = vcombine.low %v8617_v47, %v8624_v50  ;;  %v3261_v41 = vshrl.u32 %v8720_v24, 16  ;;  %v8290_v50 = vld [vmem:[%s10426_s1 + $0x388] sm:$0xff]  }
  0x3c   : > { %7759 = vmatpush3.bf16.msra.mxu0 %v8280_v35  ;;  %v3216_v35 = vshrl.u32 %v8793_v43, 16  ;;  %7472 = vmatprep.subr.bf16.mxu1 %v8281_v18  ;;  %v6187_v3 = vcombine.low %v305_v38, %v319_v57  ;;  %v3204_v12 = vor.u32 %v3203_v58, %v3200_v56  ;;  %v8857_v57 = vld [vmem:[%s8554_s11 + $0x34] sm:$0x3] }
  0x3d   : > { %7760 = vmatprep.subr.bf16.mxu0 %v8282_v27  ;;  %v3263_v44 = vrot.slane %v3261_v41, 5  ;;  %v3270_v58 = vshrl.u32 %v8857_v57, 16 }
  0x3e   : > { %v3218_v6 = vrot.slane %v3216_v35, 5  ;;  %7457 = vmatmul.mubr.bf16.gmra.mrb[4].mxu1 %v6187_v3  ;;  %v3205_v23 = vsel %vm8814_vm8, %v8693_v62, %v3204_v12  ;;  %v3273_v3 = vshll.u32 %v8857_v57, 16  ;;  %v8294_v12 = vld [vmem:[%s10426_s1 + $0x398] sm:$0xff]  }
  0x3f   : > { %7473 = vmatpush3.bf16.msra.mxu1 %v8281_v18  ;;  %7476 = vmatprep.mubr.bf16.mxu1 %v6196_v52  ;;  %v3258_v18 = vor.u32 %v3257_v29, %v3254_v26  ;;  %v3279_v52 = vshrl.u32 %v8723_v25, 16  ;;  %v3272_v14 = vrot.slane %v3270_v58, 5 }
  0x40   : > { %7761 = vmatpush3.bf16.msra.mxu0 %v8282_v27  ;;  %v3222_v17 = vor.u32 %v3221_v63, %v3218_v6  ;;  %v3239_v27 = vrot.slane %v3237_v10, 6  ;;  %7474 = vmatprep.subr.bf16.mxu1 %v8283_v4  ;;  %v3297_v63 = vshrl.u32 %v8762_v2, 16 }
  0x41   : > { %7762 = vmatprep.subr.bf16.mxu0 %v8284_v42  ;;  %v3259_v38 = vsel %vm8814_vm8, %v8712_v9, %v3258_v18  ;;  %v6198_v9 = vcombine.low %v8688_v61, %v8691_v53  ;;  %v6199_v61 = vcombine.low %v8731_v34, %v8739_v39  ;;  %v8292_v53 = vld [vmem:[%s10426_s1 + $0x390] sm:$0xff]   ;;  %v3281_v6 = vrot.slane %v3279_v52, 5 }
  0x42   : > { %v3223_v30 = vsel %vm8814_vm8, %v3214_v28, %v3222_v17  ;;  %v3240_v32 = vor.u32 %v3239_v27, %v3236_v20  ;;  %v8289_v28 = vld [vmem:[%s10426_s1 + $0x88] sm:$0xff]   ;;  %v8881_v17 = vld [vmem:[%s8554_s11 + $0x44] sm:$0x3]  ;;  %v3300_v27 = vshll.u32 %v8762_v2, 16 }
  0x43   : > { %v6660_v31 = vcombine.low %v3205_v23, %v3223_v30  ;;  %7475 = vmatpush3.bf16.msra.mxu1 %v8283_v4  ;;  %v3282_v4 = vshll.u32 %v8723_v25, 16  ;;  %v3275_v25 = vrot.slane %v3273_v3, 6  ;;  %v3299_v23 = vrot.slane %v3297_v63, 5 }
  0x44   : > { %7763 = vmatpush3.bf16.msra.mxu0 %v8284_v42  ;;  %v3241_v62 = vsel %vm8814_vm8, %v8710_v8, %v3240_v32  ;;  %7484 = vmatprep.subr.bf16.mxu1 %v8286_v22  ;;  %v3264_v8 = vshll.u32 %v8720_v24, 16  ;;  %v640_v42 = vrot.slane %v8627_v51, 5  ;;  %v8860_v24 = vld [vmem:[%s8554_s11 + $0x3c] sm:$0x3]  ;;  %v3306_v30 = vshrl.u32 %v8881_v17, 16 }
  0x45   : > { %7772 = vmatprep.subr.bf16.mxu0 %v8287_v19  ;;  %7764 = vmatprep.mubr.bf16.mxu0 %v6660_v31  ;;  %v6661_v47 = vcombine.low %v3241_v62, %v3259_v38  ;;  %v3288_v34 = vshrl.u32 %v8860_v24, 16  ;;  %v3291_v39 = vshll.u32 %v8860_v24, 16  ;;  %v3284_v16 = vrot.slane %v3282_v4, 6  ;;  %v8295_v38 = vld [vmem:[%s10426_s1 + $0xa0] sm:$0xff]  }
  0x46   : > { %7477 = vmatmul.mubr.bf16.vlgmr.msra.gmra.mrb[0].mxu1 %v6197_v37  ;;  %v3266_v35 = vrot.slane %v3264_v8, 6  ;;  %v3276_v26 = vor.u32 %v3275_v25, %v3272_v14  ;;  %v3309_v31 = vshll.u32 %v8881_v17, 16  ;;  %v3302_v18 = vrot.slane %v3300_v27, 6  ;;  %v6673_v25 = vld [vmem:[%s8554_s11 + $0x18] sm:$0xc] }
  0x47   : > { %7765 = vmatmul.mubr.bf16.vlgmr.msra.gmra.mrb[0].mxu0 %v6661_v47  ;;  %7485 = vmatpush3.bf16.msra.mxu1 %v8286_v22  ;;  %v3293_v20 = vrot.slane %v3291_v39, 6  ;;  %v8884_v22 = vld [vmem:[%s8554_s11 + $0x4c] sm:$0x3]  ;;  %v3285_v29 = vor.u32 %v3284_v16, %v3281_v6  ;;  %v3315_v37 = vshrl.u32 %v8769_v7, 16  ;;  %v3318_v62 = vshll.u32 %v8769_v7, 16 }
  0x48   : > { %7773 = vmatpush3.bf16.msra.mxu0 %v8287_v19  ;;  %7486 = vmatprep.subr.bf16.mxu1 %v8289_v28  ;;  %v3267_v56 = vor.u32 %v3266_v35, %v3263_v44  ;;  %v3290_v19 = vrot.slane %v3288_v34, 5  ;;  %v3308_v41 = vrot.slane %v3306_v30, 5  ;;  %v3311_v47 = vrot.slane %v3309_v31, 6  ;;  %v8901_v35 = vld [vmem:[%s8554_s11] sm:$0xe] }
  0x49   : > { %7774 = vmatprep.subr.bf16.mxu0 %v8290_v50  ;;  %7480 = vmatprep.mubr.bf16.mxu1 %v6198_v9  ;;  %v3303_v8 = vor.u32 %v3302_v18, %v3299_v23  ;;  %v3317_v7 = vrot.slane %v3315_v37, 5  ;;  %v3320_v9 = vrot.slane %v3318_v62, 6  ;;  %v3324_v44 = vshrl.u32 %v8884_v22, 16  ;;  %v6672_v34 = vld [vmem:[%s8554_s11 + $0x10] sm:$0xc]  ;;  %v8298_v23 = vld [vmem:[%s10426_s1 + $0x3a8] sm:$0xff]  }
  0x4a   : > { %v3268_v10 = vrot.slane %v3267_v56, 4  ;;  %v3294_v32 = vor.u32 %v3293_v20, %v3290_v19  ;;  %v6208_v56 = vrot.slane %v8901_v35, 9  ;;  %v6680_v16 = vrot.slane %v6672_v34, 10  ;;  %v8943_v31 = vld [vmem:[%s8554_s11 + $0x18] sm:$0xe] }
  0x4b   : > { %7487 = vmatpush3.bf16.msra.mxu1 %v8289_v28  ;;  %v3286_v28 = vrot.slane %v3285_v29, 4  ;;  %v3304_v3 = vrot.slane %v3303_v8, 4  ;;  %v3321_v4 = vor.u32 %v3320_v9, %v3317_v7  ;;  %v3326_v6 = vrot.slane %v3324_v44, 5  ;;  %v6674_v62 = vld [vmem:[%s8554_s11 + $0x20] sm:$0xc] }
  0x4c   : > { %7775 = vmatpush3.bf16.msra.mxu0 %v8290_v50  ;;  %7488 = vmatprep.subr.bf16.mxu1 %v8291_v54  ;;  %v3277_v2 = vsel %vm8814_vm8, %v3268_v10, %v3276_v26  ;;  %v8296_v50 = vld [vmem:[%s10426_s1 + $0x3a0] sm:$0xff]   ;;  %v633_v63 = vsel %vm8590_vm4, %v6208_v56, %v632_v48  ;;  %v3512_v48 = vrot.slane %v8785_v21, 6  ;;  %v6681_v20 = vrot.slane %v6673_v25, 10  ;;  %v8938_v21 = vld [vmem:[%s8554_s11 + $0x10] sm:$0xe] }
  0x4d   : > { %7776 = vmatprep.subr.bf16.mxu0 %v8292_v53  ;;  %v3295_v52 = vsel %vm8814_vm8, %v3286_v28, %v3294_v32  ;;  %v3322_v19 = vrot.slane %v3321_v4, 4  ;;  %v3516_v26 = vrot.slane %v8793_v43, 6  ;;  %v6210_v32 = vrot.slane %v8938_v21, 9  ;;  %v8305_v9 = vld [vmem:[%s10426_s1 + $0xc0] sm:$0xff]  }
  0x4e   : > { %7481 = vmatmul.mubr.bf16.gmra.mrb[4].mxu1 %v6199_v61  ;;  %v3327_v61 = vshll.u32 %v8884_v22, 16  ;;  %v6662_v58 = vcombine.low %v3277_v2, %v3295_v52  ;;  %v3513_v30 = vsel %vm8918_vm11, %v6680_v16, %v3512_v48  ;;  %v6211_v37 = vrot.slane %v8943_v31, 9  ;;  %v8989_v56 = vld [vmem:[%s8554_s11 + $0x20] sm:$0xe]  ;;  %v9013_v48 = vld [vmem:[%s8554_s11 + $0x30] sm:$0xe] }
  0x4f   : > { %7489 = vmatpush3.bf16.msra.mxu1 %v8291_v54  ;;  %v3312_v54 = vor.u32 %v3311_v47, %v3308_v41  ;;  %v3517_v18 = vsel %vm8918_vm11, %v6681_v20, %v3516_v26  ;;  %v641_v41 = vsel %vm8590_vm4, %v6210_v32, %v640_v42  ;;  %v6675_v47 = vld [vmem:[%s8554_s11 + $0x28] sm:$0xc]  ;;  %v3520_v51 = vrot.slane %v8804_v59, 6  ;;  %v8306_v59 = vld [vmem:[%s10426_s1 + $0x3c0] sm:$0xff]  }
  0x50   : > { %7777 = vmatpush3.bf16.msra.mxu0 %v8292_v53  ;;  %7490 = vmatprep.subr.bf16.mxu1 %v8293_v11  ;;  %v8907_v53 = vld [vmem:[%s8554_s11 + $0x8] sm:$0xe]  ;;  %v3329_v39 = vrot.slane %v3327_v61, 6  ;;  %v6704_v28 = vcombine.low %v3513_v30, %v3517_v18  ;;  %v645_v8 = vsel %vm8590_vm4, %v6211_v37, %v644_v46  ;;  %v3524_v42 = vrot.slane %v8807_v60, 6  ;;  %v8304_v46 = vld [vmem:[%s10426_s1 + $0x3b8] sm:$0xff]  }
  0x51   : > { %7778 = vmatprep.subr.bf16.mxu0 %v8294_v12  ;;  %v6209_v10 = vrot.slane %v8907_v53, 9  ;;  %7768 = vmatprep.mubr.bf16.mxu0 %v6662_v58  ;;  %v6233_v7 = vcombine.low %v641_v41, %v645_v8  ;;  %v6683_v55 = vrot.slane %v6675_v47, 10  ;;  %v648_v60 = vrot.slane %v8699_v0, 5  ;;  %v8992_v58 = vld [vmem:[%s8554_s11 + $0x28] sm:$0xe] }
  0x52   : > { %v3528_v61 = vrot.slane %v8857_v57, 6  ;;  %v3532_v0 = vrot.slane %v8860_v24, 6  ;;  %v6212_v4 = vrot.slane %v8989_v56, 9  ;;  %v8308_v57 = vld [vmem:[%s10426_s1 + $0x3c8] sm:$0xff]   ;;  %v660_v24 = vrot.slane %v8752_v45, 5 }
  0x53   : > { %7491 = vmatpush3.bf16.msra.mxu1 %v8293_v11  ;;  %v3313_v11 = vsel %vm8814_vm8, %v3304_v3, %v3312_v54  ;;  %v637_v27 = vsel %vm8590_vm4, %v6209_v10, %v636_v49  ;;  %v8301_v49 = vld [vmem:[%s10426_s1 + $0x3b0] sm:$0xff]   ;;  %v3525_v52 = vsel %vm8918_vm11, %v6683_v55, %v3524_v42  ;;  %v652_v54 = vrot.slane %v8702_v1, 5  ;;  %v8307_v1 = vld [vmem:[%s10426_s1 + $0xc8] sm:$0xff]   ;;  %v9016_v45 = vld [vmem:[%s8554_s11 + $0x38] sm:$0xe] }
  0x54   : > { %7779 = vmatpush3.bf16.msra.mxu0 %v8294_v12  ;;  %7492 = vmatprep.subr.bf16.mxu1 %v8295_v38  ;;  %v3330_v12 = vor.u32 %v3329_v39, %v3326_v6  ;;  %v6232_v29 = vcombine.low %v633_v63, %v637_v27  ;;  %v656_v3 = vrot.slane %v8742_v40, 5  ;;  %v6213_v6 = vrot.slane %v8992_v58, 9  ;;  %v6676_v39 = vld [vmem:[%s8554_s11 + $0x30] sm:$0xc]  ;;  %v6677_v63 = vld [vmem:[%s8554_s11 + $0x38] sm:$0xc] }
  0x55   : > { %7780 = vmatprep.subr.bf16.mxu0 %v8296_v50  ;;  %v828_v40 = vshrl.u32 %v8901_v35, 16  ;;  %v649_v10 = vsel %vm8590_vm4, %v6212_v4, %v648_v60  ;;  %v6684_v16 = vrot.slane %v6676_v39, 10  ;;  %v3536_v20 = vrot.slane %v8881_v17, 6  ;;  %v6679_v30 = vld [vmem:[%s8554_s11 + $0x48] sm:$0xc]  ;;  %v8309_v17 = vld [vmem:[%s10426_s1 + $0xd0] sm:$0xff]  }
  0x56   : > { %v3331_v43 = vsel %vm8814_vm8, %v3322_v19, %v3330_v12  ;;  %7500 = vmatprep.mubr.bf16.mxu1 %v6232_v29  ;;  %v653_v25 = vsel %vm8590_vm4, %v6213_v6, %v652_v54  ;;  %v6214_v27 = vrot.slane %v9013_v48, 9  ;;  %v6215_v26 = vrot.slane %v9016_v45, 9  ;;  %v6678_v29 = vld [vmem:[%s8554_s11 + $0x40] sm:$0xc]  ;;  %v9044_v47 = vld [vmem:[%s8554_s11 + $0x4] sm:$0x3] }
  0x57   : > { %7493 = vmatpush3.bf16.msra.mxu1 %v8295_v38  ;;  %v6663_v2 = vcombine.low %v3313_v11, %v3331_v43  ;;  %v8303_v38 = vld [vmem:[%s10426_s1 + $0xb8] sm:$0xff]   ;;  %v6234_v19 = vcombine.low %v649_v10, %v653_v25  ;;  %v3529_v11 = vsel %vm8918_vm11, %v6684_v16, %v3528_v61  ;;  %v6686_v32 = vrot.slane %v6678_v29, 10  ;;  %v9047_v8 = vld [vmem:[%s8554_s11 + $0xc] sm:$0x3]  ;;  %v9064_v39 = vld [vmem:[%s8554_s11 + $0x14] sm:$0x3] }
  0x58   : > { %7781 = vmatpush3.bf16.msra.mxu0 %v8296_v50  ;;  %7494 = vmatprep.subr.bf16.mxu1 %v8297_v13  ;;  %v6682_v50 = vrot.slane %v6674_v62, 10  ;;  %v661_v43 = vsel %vm8590_vm4, %v6215_v26, %v660_v24  ;;  %v830_v18 = vrot.slane %v828_v40, 5  ;;  %v831_v37 = vshll.u32 %v8901_v35, 16  ;;  %v8310_v62 = vld [vmem:[%s10426_s1 + $0x3d0] sm:$0xff]   ;;  %v8312_v54 = vld [vmem:[%s10426_s1 + $0x3d8] sm:$0xff]   ;;  %v8313_v10 = vld [vmem:[%s10426_s1 + $0xe0] sm:$0xff]  }
  0x59   : > { %7782 = vmatprep.subr.bf16.mxu0 %v8298_v23  ;;  %7769 = vmatmul.mubr.bf16.gmra.mrb[4].mxu0 %v6663_v2  ;;  %v840_v42 = vshll.u32 %v9044_v47, 16  ;;  %v867_v24 = vshll.u32 %v8938_v21, 16  ;;  %v882_v40 = vshrl.u32 %v8943_v31, 16  ;;  %v8314_v25 = vld [vmem:[%s10426_s1 + $0x3e0] sm:$0xff]  }
  0x5a   : > { %7788 = vmatprep.mubr.bf16.mxu0 %v6704_v28  ;;  %v3521_v44 = vsel %vm8918_vm11, %v6682_v50, %v3520_v51  ;;  %v3537_v28 = vsel %vm8918_vm11, %v6686_v32, %v3536_v20  ;;  %v837_v51 = vshrl.u32 %v9044_v47, 16  ;;  %v8311_v50 = vld [vmem:[%s10426_s1 + $0xd8] sm:$0xff]   ;;  %v885_v20 = vshll.u32 %v8943_v31, 16 }
  0x5b   : > { %7495 = vmatpush3.bf16.msra.mxu1 %v8297_v13  ;;  %v6705_v34 = vcombine.low %v3521_v44, %v3525_v52  ;;  %v6685_v13 = vrot.slane %v6677_v63, 10  ;;  %v842_v52 = vrot.slane %v840_v42, 6  ;;  %v9067_v63 = vld [vmem:[%s8554_s11 + $0x1c] sm:$0x3] }
  0x5c   : > { %7783 = vmatpush3.bf16.msra.mxu0 %v8298_v23  ;;  %7496 = vmatprep.subr.bf16.mxu1 %v8300_v15  ;;  %v3540_v23 = vrot.slane %v8884_v22, 6  ;;  %v839_v44 = vrot.slane %v837_v51, 5  ;;  %v887_v29 = vrot.slane %v885_v20, 6  ;;  %v8319_v51 = vld [vmem:[%s10426_s1 + $0xf8] sm:$0xff]   ;;  %v9130_v20 = vld [vmem:[%s8554_s11 + $0x34] sm:$0x3] }
  0x5d   : > { %7784 = vmatprep.subr.bf16.mxu0 %v8301_v49  ;;  %v3533_v12 = vsel %vm8918_vm11, %v6685_v13, %v3532_v0 }
  0x5e   : > { %v6706_v22 = vcombine.low %v3529_v11, %v3533_v12  ;;  %v843_v6 = vor.u32 %v842_v52, %v839_v44  ;;  %v876_v11 = vshll.u32 %v9064_v39, 16  ;;  %v884_v12 = vrot.slane %v882_v40, 5 }
  0x5f   : > { %7497 = vmatpush3.bf16.msra.mxu1 %v8300_v15  ;;  %v6687_v15 = vrot.slane %v6679_v30, 10  ;;  %v894_v30 = vshll.u32 %v9067_v63, 16  ;;  %v921_v52 = vshll.u32 %v8992_v58, 16 }
  0x60   : > { %7785 = vmatpush3.bf16.msra.mxu0 %v8301_v49  ;;  %7498 = vmatprep.subr.bf16.mxu1 %v8303_v38  ;;  %v657_v49 = vsel %vm8590_vm4, %v6214_v27, %v656_v3  ;;  %v8322_v3 = vld [vmem:[%s8554_s11 + $0x18] ss:$8 sps:$4 sm:$0xff]   ;;  %v891_v27 = vshrl.u32 %v9067_v63, 16 }
  0x61   : > { %7786 = vmatprep.subr.bf16.mxu0 %v8304_v46  ;;  %v6235_v2 = vcombine.low %v657_v49, %v661_v43  ;;  %v3541_v41 = vsel %vm8918_vm11, %v6687_v15, %v3540_v23  ;;  %v869_v23 = vrot.slane %v867_v24, 6  ;;  %v878_v49 = vrot.slane %v876_v11, 6 }
  0x62   : > { %v6707_v35 = vcombine.low %v3537_v28, %v3541_v41  ;;  %v900_v43 = vshrl.u32 %v8989_v56, 16  ;;  %v8318_v28 = vld [vmem:[%s10426_s1 + $0x3f0] sm:$0xff]   ;;  %v936_v11 = vshrl.u32 %v9013_v48, 16 }
  0x63   : > { %7499 = vmatpush3.bf16.msra.mxu1 %v8303_v38  ;;  %v833_v38 = vrot.slane %v831_v37, 6  ;;  %v888_v37 = vor.u32 %v887_v29, %v884_v12  ;;  %v948_v29 = vshll.u32 %v9130_v20, 16 }
  0x64   : > { %7787 = vmatpush3.bf16.msra.mxu0 %v8304_v46  ;;  %7508 = vmatprep.subr.bf16.mxu1 %v8305_v9  ;;  %v849_v46 = vshll.u32 %v8907_v53, 16  ;;  %v902_v41 = vrot.slane %v900_v43, 5 }
  0x65   : > { %7796 = vmatprep.subr.bf16.mxu0 %v8306_v59  ;;  %v834_v60 = vor.u32 %v833_v38, %v830_v18  ;;  %v8317_v18 = vld [vmem:[%s10426_s1 + $0xf0] sm:$0xff]   ;;  %v918_v38 = vshrl.u32 %v8992_v58, 16 }
  0x66   : > { %7501 = vmatmul.mubr.bf16.vlgmr.msra.gmra.mrb[0].mxu1 %v6233_v7  ;;  %v846_v7 = vshrl.u32 %v8907_v53, 16  ;;  %v851_v61 = vrot.slane %v849_v46, 6 }
  0x67   : > { %7789 = vmatmul.mubr.bf16.vlgmr.msra.gmra.mrb[0].mxu0 %v6705_v34  ;;  %7509 = vmatpush3.bf16.msra.mxu1 %v8305_v9  ;;  %v855_v9 = vshrl.u32 %v9047_v8, 16  ;;  %v835_v4 = vrot.slane %v834_v60, 4  ;;  %v864_v34 = vshrl.u32 %v8938_v21, 16  ;;  %v873_v21 = vshrl.u32 %v9064_v39, 16 }
  0x68   : > { %7797 = vmatpush3.bf16.msra.mxu0 %v8306_v59  ;;  %7510 = vmatprep.subr.bf16.mxu1 %v8307_v1  ;;  %v848_v55 = vrot.slane %v846_v7, 5  ;;  %v858_v59 = vshll.u32 %v9047_v8, 16  ;;  %v903_v7 = vshll.u32 %v8989_v56, 16  ;;  %v9108_v56 = vld [vmem:[%s8554_s11 + $0x24] sm:$0x3]  ;;  %v920_v44 = vrot.slane %v918_v38, 5 }
  0x69   : > { %7798 = vmatprep.subr.bf16.mxu0 %v8308_v57  ;;  %7504 = vmatprep.mubr.bf16.mxu1 %v6234_v19  ;;  %v857_v0 = vrot.slane %v855_v9, 5  ;;  %v844_v16 = vsel %vm8814_vm8, %v835_v4, %v843_v6  ;;  %v866_v19 = vrot.slane %v864_v34, 5  ;;  %v875_v32 = vrot.slane %v873_v21, 5  ;;  %v8320_v9 = vld [vmem:[%s10426_s1 + $0x3f8] sm:$0xff]   ;;  %v8323_v4 = vld [vmem:[%s10426_s1 + $0x400] sm:$0xff]  }
  0x6a   : > { %7792 = vmatprep.mubr.bf16.mxu0 %v6706_v22  ;;  %v860_v53 = vrot.slane %v858_v59, 6  ;;  %v8316_v22 = vld [vmem:[%s10426_s1 + $0x3e8] sm:$0xff]   ;;  %v905_v46 = vrot.slane %v903_v7, 6 }
  0x6b   : > { %7511 = vmatpush3.bf16.msra.mxu1 %v8307_v1  ;;  %v852_v1 = vor.u32 %v851_v61, %v848_v55  ;;  %v870_v15 = vor.u32 %v869_v23, %v866_v19  ;;  %v879_v42 = vor.u32 %v878_v49, %v875_v32  ;;  %v9111_v59 = vld [vmem:[%s8554_s11 + $0x2c] sm:$0x3]  ;;  %v912_v61 = vshll.u32 %v9108_v56, 16  ;;  %v9133_v23 = vld [vmem:[%s8554_s11 + $0x3c] sm:$0x3] }
  0x6c   : > { %7799 = vmatpush3.bf16.msra.mxu0 %v8308_v57  ;;  %7512 = vmatprep.subr.bf16.mxu1 %v8309_v17  ;;  %v861_v57 = vor.u32 %v860_v53, %v857_v0  ;;  %v906_v60 = vor.u32 %v905_v46, %v902_v41  ;;  %v927_v0 = vshrl.u32 %v9111_v59, 16  ;;  %v930_v53 = vshll.u32 %v9111_v59, 16  ;;  %v8336_v49 = vld [vmem:[%s8554_s11 + $0x38] ss:$8 sps:$4 sm:$0xff]  }
  0x6d   : > { %7800 = vmatprep.subr.bf16.mxu0 %v8310_v62  ;;  %v853_v13 = vrot.slane %v852_v1, 4  ;;  %v923_v1 = vrot.slane %v921_v52, 6  ;;  %v914_v24 = vrot.slane %v912_v61, 6  ;;  %v957_v32 = vshll.u32 %v9016_v45, 16  ;;  %v8338_v52 = vld [vmem:[%s8554_s11 + $0x48] ss:$8 sps:$4 sm:$0xff]  }
  0x6e   : > { %7505 = vmatmul.mubr.bf16.gmra.mrb[4].mxu1 %v6235_v2  ;;  %v896_v2 = vrot.slane %v894_v30, 6  ;;  %v907_v34 = vrot.slane %v906_v60, 4  ;;  %v929_v40 = vrot.slane %v927_v0, 5  ;;  %v8325_v30 = vld [vmem:[%s10426_s1 + $0x108] sm:$0xff]   ;;  %v963_v41 = vshrl.u32 %v9133_v23, 16 }
  0x6f   : > { %7793 = vmatmul.mubr.bf16.gmra.mrb[4].mxu0 %v6707_v35  ;;  %7513 = vmatpush3.bf16.msra.mxu1 %v8309_v17  ;;  %v862_v26 = vsel %vm8814_vm8, %v853_v13, %v861_v57  ;;  %v8315_v17 = vld [vmem:[%s10426_s1 + $0xe8] sm:$0xff]   ;;  %v871_v35 = vrot.slane %v870_v15, 4  ;;  %v966_v38 = vshll.u32 %v9133_v23, 16  ;;  %v1158_v46 = vrot.slane %v9047_v8, 6  ;;  %v8329_v8 = vld [vmem:[%s10426_s1 + $0x118] sm:$0xff]  }
  0x70   : > { %7801 = vmatpush3.bf16.msra.mxu0 %v8310_v62  ;;  %7514 = vmatprep.subr.bf16.mxu1 %v8311_v50  ;;  %v6260_v31 = vcombine.low %v844_v16, %v862_v26  ;;  %v893_v62 = vrot.slane %v891_v27, 5  ;;  %v924_v16 = vor.u32 %v923_v1, %v920_v44  ;;  %v939_v27 = vshll.u32 %v9013_v48, 16  ;;  %v8326_v48 = vld [vmem:[%s10426_s1 + $0x408] sm:$0xff]   ;;  %v8330_v1 = vld [vmem:[%s10426_s1 + $0x418] sm:$0xff]  }
  0x71   : > { %7802 = vmatprep.subr.bf16.mxu0 %v8312_v54  ;;  %7812 = vmatprep.mubr.bf16.mxu0 %v8322_v3  ;;  %v8321_v3 = vld [vmem:[%s10426_s1 + $0x100] sm:$0xff]   ;;  %v880_v58 = vsel %vm8814_vm8, %v871_v35, %v879_v42  ;;  %v945_v26 = vshrl.u32 %v9130_v20, 16  ;;  %v968_v44 = vrot.slane %v966_v38, 6 }
  0x72   : > { %7524 = vmatprep.mubr.bf16.mxu1 %v6260_v31  ;;  %v897_v55 = vor.u32 %v896_v2, %v893_v62  ;;  %v925_v12 = vrot.slane %v924_v16, 4  ;;  %v938_v31 = vrot.slane %v936_v11, 5  ;;  %v941_v43 = vrot.slane %v939_v27, 6  ;;  %v9189_v27 = vld [vmem:[%s8554_s11 + $0x10] sm:$0xc] }
  0x73   : > { %7515 = vmatpush3.bf16.msra.mxu1 %v8311_v50  ;;  %v889_v50 = vrot.slane %v888_v37, 4  ;;  %v950_v37 = vrot.slane %v948_v29, 6  ;;  %v8332_v29 = vld [vmem:[%s10426_s1 + $0x420] sm:$0xff]  }
  0x74   : > { %7803 = vmatpush3.bf16.msra.mxu0 %v8312_v54  ;;  %7516 = vmatprep.subr.bf16.mxu1 %v8313_v10  ;;  %v909_v54 = vshrl.u32 %v9108_v56, 16  ;;  %v942_v7 = vor.u32 %v941_v43, %v938_v31  ;;  %v6756_v43 = vld [vmem:[%s8554_s11 + $0x28] sm:$0xf] }
  0x75   : > { %7804 = vmatprep.subr.bf16.mxu0 %v8314_v25  ;;  %v898_v6 = vsel %vm8814_vm8, %v889_v50, %v897_v55  ;;  %v965_v50 = vrot.slane %v963_v41, 5  ;;  %v1125_v55 = vld [vmem:[%s8554_s11] sm:$0xc] }
  0x76   : > { %v911_v57 = vrot.slane %v909_v54, 5  ;;  %v6261_v13 = vcombine.low %v880_v58, %v898_v6  ;;  %v943_v60 = vrot.slane %v942_v7, 4  ;;  %v6272_v54 = vrot.slane %v1125_v55, 10  ;;  %v6752_v58 = vld [vmem:[%s8554_s11 + $0x18] sm:$0xf]  ;;  %v8334_v55 = vld [vmem:[%s10426_s1 + $0x428] sm:$0xff]  }
  0x77   : > { %7517 = vmatpush3.bf16.msra.mxu1 %v8313_v10  ;;  %v932_v10 = vrot.slane %v930_v53, 6  ;;  %v9174_v6 = vld [vmem:[%s8554_s11 + $0x1c] sm:$0x1]  ;;  %v9206_v7 = vld [vmem:[%s8554_s11 + $0x34] sm:$0x1] }
  0x78   : > { %7805 = vmatpush3.bf16.msra.mxu0 %v8314_v25  ;;  %7518 = vmatprep.subr.bf16.mxu1 %v8315_v17  ;;  %v8324_v25 = vld [vmem:[%s8554_s11 + $0x28] ss:$8 sps:$4 sm:$0xff]   ;;  %v915_v19 = vor.u32 %v914_v24, %v911_v57  ;;  %v9183_v24 = vld [vmem:[%s8554_s11 + $0x24] sm:$0x1] }
  0x79   : > { %7806 = vmatprep.subr.bf16.mxu0 %v8316_v22  ;;  %v933_v21 = vor.u32 %v932_v10, %v929_v40  ;;  %v3884_v40 = vshrl.u32 %v6752_v58, 16  ;;  %v3887_v10 = vshll.u32 %v6752_v58, 16 }
  0x7b   : > { %7519 = vmatpush3.bf16.msra.mxu1 %v8315_v17  ;;  %v916_v17 = vsel %vm8814_vm8, %v907_v34, %v915_v19  ;;  %v934_v15 = vsel %vm8814_vm8, %v925_v12, %v933_v21  ;;  %v6754_v34 = vld [vmem:[%s8554_s11 + $0x20] sm:$0xf]  ;;  %v3886_v11 = vrot.slane %v3884_v40, 4  ;;  %v3889_v12 = vrot.slane %v3887_v10, 5  ;;  %v8339_v10 = vld [vmem:[%s10426_s1 + $0x138] sm:$0xff]  }
  0x7c   : > { %7807 = vmatpush3.bf16.msra.mxu0 %v8316_v22  ;;  %7520 = vmatprep.subr.bf16.mxu1 %v8317_v18  ;;  %v954_v22 = vshrl.u32 %v9016_v45, 16  ;;  %v6262_v62 = vcombine.low %v916_v17, %v934_v15  ;;  %v8327_v45 = vld [vmem:[%s10426_s1 + $0x110] sm:$0xff]   ;;  %v3901_v19 = vshll.u32 %v6754_v34, 16  ;;  %v1128_v15 = vld [vmem:[%s8554_s11 + $0x18] sm:$0xc] }
  0x7d   : > { %7808 = vmatprep.subr.bf16.mxu0 %v8318_v28 }
  0x7e   : > { %v956_v2 = vrot.slane %v954_v22, 5  ;;  %v3903_v31 = vrot.slane %v3901_v19, 5  ;;  %v3907_v22 = vshll.u32 %v9183_v24, 16  ;;  %v1174_v19 = vrot.slane %v9111_v59, 6  ;;  %v9251_v59 = vld [vmem:[%s8554_s11 + $0x3c] sm:$0x1] }
  0x7f   : > { %7521 = vmatpush3.bf16.msra.mxu1 %v8317_v18  ;;  %v947_v18 = vrot.slane %v945_v26, 5  ;;  %v8331_v26 = vld [vmem:[%s10426_s1 + $0x120] sm:$0xff]  }
  0x80   : > { %7809 = vmatpush3.bf16.msra.mxu0 %v8318_v28  ;;  %7522 = vmatprep.subr.bf16.mxu1 %v8319_v51  ;;  %v959_v28 = vrot.slane %v957_v32, 6  ;;  %v3890_v32 = vor.u32 %v3889_v12, %v3886_v11  ;;  %v1129_v12 = vld [vmem:[%s8554_s11 + $0x20] sm:$0xc] }
  0x81   : > { %7810 = vmatprep.subr.bf16.mxu0 %v8320_v9  ;;  %v951_v35 = vor.u32 %v950_v37, %v947_v18  ;;  %v3909_v37 = vrot.slane %v3907_v22, 5 }
  0x82   : > { %v960_v42 = vor.u32 %v959_v28, %v956_v2  ;;  %v6758_v2 = vld [vmem:[%s8554_s11 + $0x30] sm:$0xf]  ;;  %v3912_v28 = vshrl.u32 %v6756_v43, 16  ;;  %v3891_v41 = vrot.slane %v3890_v32, 4 }
  0x83   : > { %7523 = vmatpush3.bf16.msra.mxu1 %v8319_v51  ;;  %v1154_v51 = vrot.slane %v9044_v47, 6  ;;  %v1126_v47 = vld [vmem:[%s8554_s11 + $0x8] sm:$0xc]  ;;  %v952_v53 = vsel %vm8814_vm8, %v943_v60, %v951_v35  ;;  %v3926_v60 = vshrl.u32 %v6758_v2, 16 }
  0x84   : > { %7811 = vmatpush3.bf16.msra.mxu0 %v8320_v9  ;;  %7532 = vmatprep.subr.bf16.mxu1 %v8321_v3  ;;  %v8328_v9 = vld [vmem:[%s10426_s1 + $0x410] sm:$0xff]   ;;  %v961_v61 = vrot.slane %v960_v42, 4  ;;  %v6273_v0 = vrot.slane %v1126_v47, 10  ;;  %v8333_v35 = vld [vmem:[%s10426_s1 + $0x128] sm:$0xff]   ;;  %v3914_v42 = vrot.slane %v3912_v28, 4  ;;  %v3935_v47 = vshll.u32 %v9206_v7, 16 }
  0x85   : > { %7820 = vmatprep.subr.bf16.mxu0 %v8323_v4 }
  0x86   : > { %7525 = vmatmul.mubr.bf16.vlgmr.msra.gmra.mrb[0].mxu1 %v6261_v13  ;;  %v1159_v57 = vsel %vm8918_vm11, %v6273_v0, %v1158_v46  ;;  %v3898_v13 = vshrl.u32 %v6754_v34, 16  ;;  %v3928_v0 = vrot.slane %v3926_v60, 4 }
  0x87   : > { %7813 = vmatmul.mubr.bf16.vlgmr.msra.gmra.mrb[0].mxu0 %v8324_v25  ;;  %7533 = vmatpush3.bf16.msra.mxu1 %v8321_v3  ;;  %v969_v3 = vor.u32 %v968_v44, %v965_v50  ;;  %v3893_v25 = vshll.u32 %v9174_v6, 16  ;;  %v3929_v44 = vshll.u32 %v6758_v2, 16 }
  0x88   : > { %7821 = vmatpush3.bf16.msra.mxu0 %v8323_v4  ;;  %7534 = vmatprep.subr.bf16.mxu1 %v8325_v30  ;;  %v1155_v4 = vsel %vm8918_vm11, %v6272_v54, %v1154_v51  ;;  %v3900_v17 = vrot.slane %v3898_v13, 4  ;;  %v1162_v51 = vrot.slane %v9064_v39, 6  ;;  %v1170_v13 = vrot.slane %v9108_v56, 6 }
  0x89   : > { %7822 = vmatprep.subr.bf16.mxu0 %v8326_v48  ;;  %7528 = vmatprep.mubr.bf16.mxu1 %v6262_v62  ;;  %v970_v16 = vsel %vm8814_vm8, %v961_v61, %v969_v3  ;;  %v9202_v62 = vld [vmem:[%s8554_s11 + $0x2c] sm:$0x1]  ;;  %v8337_v3 = vld [vmem:[%s10426_s1 + $0x430] sm:$0xff]  }
  0x8a   : > { %7816 = vmatprep.mubr.bf16.mxu0 %v8336_v49  ;;  %v6263_v21 = vcombine.low %v952_v53, %v970_v16  ;;  %v6274_v49 = vrot.slane %v9189_v27, 10  ;;  %v3904_v18 = vor.u32 %v3903_v31, %v3900_v17  ;;  %v3921_v50 = vshll.u32 %v9202_v62, 16  ;;  %v8335_v53 = vld [vmem:[%s10426_s1 + $0x130] sm:$0xff]   ;;  %v1130_v27 = vld [vmem:[%s8554_s11 + $0x28] sm:$0xc] }
  0x8b   : > { %7535 = vmatpush3.bf16.msra.mxu1 %v8325_v30  ;;  %v6296_v30 = vcombine.low %v1155_v4, %v1159_v57  ;;  %v1166_v4 = vrot.slane %v9067_v63, 6  ;;  %v3937_v57 = vrot.slane %v3935_v47, 5  ;;  %v8340_v63 = vld [vmem:[%s10426_s1 + $0x438] sm:$0xff]   ;;  %v6762_v31 = vld [vmem:[%s8554_s11 + $0x40] sm:$0xf]  ;;  %v1182_v47 = vrot.slane %v9133_v23, 6 }
  0x8c   : > { %7823 = vmatpush3.bf16.msra.mxu0 %v8326_v48  ;;  %7536 = vmatprep.subr.bf16.mxu1 %v8327_v45  ;;  %v3895_v48 = vrot.slane %v3893_v25, 5  ;;  %v3905_v38 = vrot.slane %v3904_v18, 4  ;;  %v3923_v58 = vrot.slane %v3921_v50, 5  ;;  %v1163_v25 = vsel %vm8918_vm11, %v6274_v49, %v1162_v51  ;;  %v6760_v17 = vld [vmem:[%s8554_s11 + $0x38] sm:$0xf] }
  0x8d   : > { %7824 = vmatprep.subr.bf16.mxu0 %v8328_v9  ;;  %v3943_v49 = vshll.u32 %v6760_v17, 16  ;;  %v3954_v2 = vshrl.u32 %v6762_v31, 16  ;;  %v3957_v28 = vshll.u32 %v6762_v31, 16  ;;  %v1178_v51 = vrot.slane %v9130_v20, 6 }
  0x8e   : > { %7529 = vmatmul.mubr.bf16.gmra.mrb[4].mxu1 %v6263_v21  ;;  %v3896_v46 = vsel %vm8602_vm5, %v3891_v41, %v3895_v48  ;;  %v3910_v39 = vsel %vm8602_vm5, %v3905_v38, %v3909_v37  ;;  %v9257_v48 = vld [vmem:[%s8554_s11 + $0x44] sm:$0x1]  ;;  %v3949_v37 = vshll.u32 %v9251_v59, 16  ;;  %v1131_v38 = vld [vmem:[%s8554_s11 + $0x30] sm:$0xc] }
  0x8f   : > { %7817 = vmatmul.mubr.bf16.gmra.mrb[4].mxu0 %v8338_v52  ;;  %7537 = vmatpush3.bf16.msra.mxu1 %v8327_v45  ;;  %v3915_v45 = vshll.u32 %v6756_v43, 16  ;;  %v6275_v52 = vrot.slane %v1128_v15, 10  ;;  %v6784_v54 = vcombine.low %v3896_v46, %v3910_v39  ;;  %v3940_v15 = vshrl.u32 %v6760_v17, 16  ;;  %v8342_v43 = vld [vmem:[%s10426_s1 + $0x440] sm:$0xff]   ;;  %v8347_v17 = vld [vmem:[%s10426_s1 + $0x158] sm:$0xff]  }
  0x90   : > { %7825 = vmatpush3.bf16.msra.mxu0 %v8328_v9  ;;  %7538 = vmatprep.subr.bf16.mxu1 %v8329_v8  ;;  %v3951_v50 = vrot.slane %v3949_v37, 5  ;;  %v3959_v46 = vrot.slane %v3957_v28, 5  ;;  %v6278_v60 = vrot.slane %v1131_v38, 10  ;;  %v4179_v37 = vrot.slane %v9183_v24, 5  ;;  %v9313_v28 = vld [vmem:[%s8554_s11 + $0x20] sm:$0xe] }
  0x91   : > { %7826 = vmatprep.subr.bf16.mxu0 %v8330_v1  ;;  %7548 = vmatprep.mubr.bf16.mxu1 %v6296_v30  ;;  %v3917_v9 = vrot.slane %v3915_v45, 5  ;;  %v1167_v16 = vsel %vm8918_vm11, %v6275_v52, %v1166_v4  ;;  %v8341_v30 = vld [vmem:[%s10426_s1 + $0x140] sm:$0xff]   ;;  %v3942_v41 = vrot.slane %v3940_v15, 4  ;;  %v3945_v45 = vrot.slane %v3943_v49, 5 }
  0x92   : > { %7836 = vmatprep.mubr.bf16.mxu0 %v6784_v54  ;;  %v6297_v56 = vcombine.low %v1163_v25, %v1167_v16  ;;  %v6764_v54 = vld [vmem:[%s8554_s11 + $0x48] sm:$0xf]  ;;  %v8349_v38 = vld [vmem:[%s10426_s1 + $0x160] sm:$0xff]  }
  0x93   : > { %7539 = vmatpush3.bf16.msra.mxu1 %v8329_v8  ;;  %v3918_v61 = vor.u32 %v3917_v9, %v3914_v42  ;;  %v3931_v8 = vrot.slane %v3929_v44, 5  ;;  %v8343_v42 = vld [vmem:[%s10426_s1 + $0x148] sm:$0xff]   ;;  %v1132_v9 = vld [vmem:[%s8554_s11 + $0x38] sm:$0xc]  ;;  %v3946_v39 = vor.u32 %v3945_v45, %v3942_v41 }
  0x94   : > { %7827 = vmatpush3.bf16.msra.mxu0 %v8330_v1  ;;  %7540 = vmatprep.subr.bf16.mxu1 %v8331_v26  ;;  %v8344_v44 = vld [vmem:[%s10426_s1 + $0x448] sm:$0xff]   ;;  %v6279_v52 = vrot.slane %v1132_v9, 10 }
  0x95   : > { %7828 = vmatprep.subr.bf16.mxu0 %v8332_v29  ;;  %v3919_v34 = vrot.slane %v3918_v61, 4  ;;  %v3932_v1 = vor.u32 %v3931_v8, %v3928_v0  ;;  %v9278_v8 = vld [vmem:[%s8554_s11 + $0x4c] sm:$0x1]  ;;  %v3947_v4 = vrot.slane %v3946_v39, 4  ;;  %v8353_v39 = vld [vmem:[%s10426_s1 + $0x170] sm:$0xff]  }
  0x96   : > { %v1183_v23 = vsel %vm8918_vm11, %v6279_v52, %v1182_v47  ;;  %v8351_v9 = vld [vmem:[%s10426_s1 + $0x168] sm:$0xff]   ;;  %v8354_v52 = vld [vmem:[%s10426_s1 + $0x470] sm:$0xff]   ;;  %v4183_v47 = vrot.slane %v9202_v62, 5  ;;  %v9362_v62 = vld [vmem:[%s8554_s11 + $0x40] sm:$0xe] }
  0x97   : > { %7541 = vmatpush3.bf16.msra.mxu1 %v8331_v26  ;;  %v3933_v40 = vrot.slane %v3932_v1, 4  ;;  %v3924_v21 = vsel %vm8602_vm5, %v3919_v34, %v3923_v58  ;;  %v6276_v26 = vrot.slane %v1129_v12, 10  ;;  %v1179_v58 = vsel %vm8918_vm11, %v6278_v60, %v1178_v51  ;;  %v8352_v60 = vld [vmem:[%s10426_s1 + $0x468] sm:$0xff]  }
  0x98   : > { %7829 = vmatpush3.bf16.msra.mxu0 %v8332_v29  ;;  %7542 = vmatprep.subr.bf16.mxu1 %v8333_v35  ;;  %v6277_v29 = vrot.slane %v1130_v27, 10  ;;  %v3968_v34 = vshrl.u32 %v6764_v54, 16  ;;  %v3971_v1 = vshll.u32 %v6764_v54, 16  ;;  %v6299_v31 = vcombine.low %v1179_v58, %v1183_v23 }
  0x99   : > { %7830 = vmatprep.subr.bf16.mxu0 %v8334_v55  ;;  %v3938_v11 = vsel %vm8602_vm5, %v3933_v40, %v3937_v57  ;;  %v1171_v32 = vsel %vm8918_vm11, %v6276_v26, %v1170_v13  ;;  %v3977_v40 = vshll.u32 %v9278_v8, 16  ;;  %v4187_v54 = vrot.slane %v9206_v7, 5 }
  0x9a   : > { %v6785_v22 = vcombine.low %v3924_v21, %v3938_v11  ;;  %v1175_v18 = vsel %vm8918_vm11, %v6277_v29, %v1174_v19  ;;  %v3970_v25 = vrot.slane %v3968_v34, 4  ;;  %v3973_v16 = vrot.slane %v3971_v1, 5  ;;  %v8345_v19 = vld [vmem:[%s10426_s1 + $0x150] sm:$0xff]  }
  0x9b   : > { %7543 = vmatpush3.bf16.msra.mxu1 %v8333_v35  ;;  %v3963_v35 = vshll.u32 %v9257_v48, 16  ;;  %v6298_v61 = vcombine.low %v1171_v32, %v1175_v18  ;;  %v8346_v21 = vld [vmem:[%s10426_s1 + $0x450] sm:$0xff]   ;;  %v4175_v32 = vrot.slane %v9174_v6, 5  ;;  %v9306_v18 = vld [vmem:[%s8554_s11 + $0x18] sm:$0xe]  ;;  %v4191_v58 = vrot.slane %v9251_v59, 5 }
  0x9c   : > { %7831 = vmatpush3.bf16.msra.mxu0 %v8334_v55  ;;  %7544 = vmatprep.subr.bf16.mxu1 %v8335_v53  ;;  %v3956_v55 = vrot.slane %v3954_v2, 4  ;;  %v3974_v29 = vor.u32 %v3973_v16, %v3970_v25  ;;  %v8348_v2 = vld [vmem:[%s10426_s1 + $0x458] sm:$0xff]   ;;  %v6804_v41 = vrot.slane %v9306_v18, 9  ;;  %v4195_v34 = vrot.slane %v9257_v48, 5  ;;  %v8358_v25 = vld [vmem:[%s10426_s1 + $0x180] sm:$0xff]  }
  0x9d   : > { %7832 = vmatprep.subr.bf16.mxu0 %v8337_v3  ;;  %v3965_v20 = vrot.slane %v3963_v35, 5  ;;  %v6805_v35 = vrot.slane %v9313_v28, 9  ;;  %v4368_v1 = vshrl.u32 %v9306_v18, 16  ;;  %v6809_v23 = vrot.slane %v9362_v62, 9  ;;  %v8359_v16 = vld [vmem:[%s10426_s1 + $0x480] sm:$0xff]  }
  0x9e   : > { %v3960_v0 = vor.u32 %v3959_v46, %v3956_v55  ;;  %v3975_v15 = vrot.slane %v3974_v29, 4  ;;  %v4176_v24 = vsel %vm8590_vm4, %v6804_v41, %v4175_v32  ;;  %v6344_v29 = vld [vmem:[%s8554_s11 + $0x8] sm:$0xf] }
  0x9f   : > { %7545 = vmatpush3.bf16.msra.mxu1 %v8335_v53  ;;  %v6766_v53 = vld [vmem:[%s8554_s11 + $0x50] sm:$0xf]  ;;  %v1526_v32 = vshrl.u32 %v6344_v29, 16 }
  0xa0   : > { %7833 = vmatpush3.bf16.msra.mxu0 %v8337_v3  ;;  %7546 = vmatprep.subr.bf16.mxu1 %v8339_v10  ;;  %v9282_v3 = vld [vmem:[%s8554_s11 + $0x54] sm:$0x1]  ;;  %v3961_v57 = vrot.slane %v3960_v0, 4  ;;  %v3985_v13 = vshll.u32 %v6766_v53, 16 }
  0xa1   : > { %7834 = vmatprep.subr.bf16.mxu0 %v8340_v63  ;;  %v3991_v27 = vshll.u32 %v9282_v3, 16 }
  0xa2   : > { %v3966_v11 = vsel %vm8602_vm5, %v3961_v57, %v3965_v20  ;;  %v9344_v20 = vld [vmem:[%s8554_s11 + $0x30] sm:$0xe]  ;;  %v8356_v57 = vld [vmem:[%s10426_s1 + $0x478] sm:$0xff]  }
  0xa3   : > { %7547 = vmatpush3.bf16.msra.mxu1 %v8339_v10  ;;  %v3982_v10 = vshrl.u32 %v6766_v53, 16  ;;  %v6807_v0 = vrot.slane %v9344_v20, 9  ;;  %v8355_v53 = vld [vmem:[%s10426_s1 + $0x178] sm:$0xff]  }
  0xa4   : > { %7835 = vmatpush3.bf16.msra.mxu0 %v8340_v63  ;;  %7556 = vmatprep.subr.bf16.mxu1 %v8341_v30  ;;  %v3952_v63 = vsel %vm8602_vm5, %v3947_v4, %v3951_v50  ;;  %v8350_v50 = vld [vmem:[%s10426_s1 + $0x460] sm:$0xff]   ;;  %v9357_v4 = vld [vmem:[%s8554_s11 + $0x38] sm:$0xe] }
  0xa5   : > { %7844 = vmatprep.subr.bf16.mxu0 %v8342_v43  ;;  %v3984_v12 = vrot.slane %v3982_v10, 4  ;;  %v6786_v26 = vcombine.low %v3952_v63, %v3966_v11  ;;  %v6808_v7 = vrot.slane %v9357_v4, 9  ;;  %v4188_v48 = vsel %vm8590_vm4, %v6807_v0, %v4187_v54  ;;  %v8363_v54 = vld [vmem:[%s10426_s1 + $0x190] sm:$0xff]  }
  0xa6   : > { %7549 = vmatmul.mubr.bf16.vlgmr.msra.gmra.mrb[0].mxu1 %v6297_v56  ;;  %v3987_v56 = vrot.slane %v3985_v13, 5  ;;  %v4199_v10 = vrot.slane %v9278_v8, 5  ;;  %v4203_v63 = vrot.slane %v9282_v3, 5  ;;  %v9394_v8 = vld [vmem:[%s8554_s11 + $0x50] sm:$0xe] }
  0xa7   : > { %7837 = vmatmul.mubr.bf16.vlgmr.msra.gmra.mrb[0].mxu0 %v6785_v22  ;;  %7557 = vmatpush3.bf16.msra.mxu1 %v8341_v30  ;;  %v3979_v30 = vrot.slane %v3977_v40, 5  ;;  %v3993_v22 = vrot.slane %v3991_v27, 5  ;;  %v9375_v40 = vld [vmem:[%s8554_s11 + $0x48] sm:$0xe]  ;;  %v9387_v13 = vsel %vm8590_vm4, %v6808_v7, %v4191_v58  ;;  %v6811_v11 = vrot.slane %v9394_v8, 9 }
  0xa8   : > { %7845 = vmatpush3.bf16.msra.mxu0 %v8342_v43  ;;  %7558 = vmatprep.subr.bf16.mxu1 %v8343_v42  ;;  %v3988_v49 = vor.u32 %v3987_v56, %v3984_v12  ;;  %v8357_v43 = vld [vmem:[%s8554_s11 + $0x8] ss:$8 sps:$4 sm:$0xff]   ;;  %v6810_v3 = vrot.slane %v9375_v40, 9  ;;  %v4370_v12 = vrot.slane %v4368_v1, 5  ;;  %v8360_v27 = vld [vmem:[%s8554_s11 + $0x18] ss:$8 sps:$4 sm:$0xff]  }
  0xa9   : > { %7846 = vmatprep.subr.bf16.mxu0 %v8344_v44  ;;  %7552 = vmatprep.mubr.bf16.mxu1 %v6298_v61  ;;  %v3980_v6 = vsel %vm8602_vm5, %v3975_v15, %v3979_v30  ;;  %v9402_v30 = vld [vmem:[%s8554_s11 + $0xc] sm:$0x1]  ;;  %v1529_v15 = vshll.u32 %v6344_v29, 16 }
  0xaa   : > { %7840 = vmatprep.mubr.bf16.mxu0 %v6786_v26  ;;  %v3989_v45 = vrot.slane %v3988_v49, 4  ;;  %v8361_v49 = vld [vmem:[%s10426_s1 + $0x188] sm:$0xff]  }
  0xab   : > { %7559 = vmatpush3.bf16.msra.mxu1 %v8343_v42  ;;  %v4180_v42 = vsel %vm8590_vm4, %v6805_v35, %v4179_v37  ;;  %v1535_v37 = vshll.u32 %v9402_v30, 16  ;;  %v1531_v35 = vrot.slane %v1529_v15, 5 }
  0xac   : > { %7847 = vmatpush3.bf16.msra.mxu0 %v8344_v44  ;;  %7560 = vmatprep.subr.bf16.mxu1 %v8345_v19  ;;  %v3994_v51 = vsel %vm8602_vm5, %v3989_v45, %v3993_v22  ;;  %v6828_v46 = vcombine.low %v4176_v24, %v4180_v42  ;;  %v9338_v44 = vld [vmem:[%s8554_s11 + $0x28] sm:$0xe]  ;;  %v9412_v22 = vld [vmem:[%s8554_s11 + $0x14] sm:$0x1]  ;;  %v1528_v45 = vrot.slane %v1526_v32, 4 }
  0xad   : > { %7848 = vmatprep.subr.bf16.mxu0 %v8346_v21  ;;  %v6787_v55 = vcombine.low %v3980_v6, %v3994_v51  ;;  %v6806_v61 = vrot.slane %v9338_v44, 9  ;;  %v8371_v6 = vld [vmem:[%s8554_s11 + $0x28] ss:$8 sps:$4 sm:$0xff]   ;;  %v1549_v24 = vshll.u32 %v9412_v22, 16  ;;  %v1537_v51 = vrot.slane %v1535_v37, 5 }
  0xae   : > { %7553 = vmatmul.mubr.bf16.gmra.mrb[4].mxu1 %v6299_v31  ;;  %v6346_v31 = vld [vmem:[%s8554_s11 + $0x10] sm:$0xf] }
  0xaf   : > { %7561 = vmatpush3.bf16.msra.mxu1 %v8345_v19  ;;  %7572 = vmatprep.mubr.bf16.mxu1 %v8357_v43  ;;  %v4184_v59 = vsel %vm8590_vm4, %v6806_v61, %v4183_v47  ;;  %v9391_v19 = vsel %vm8590_vm4, %v6809_v23, %v4195_v34  ;;  %v8362_v43 = vld [vmem:[%s10426_s1 + $0x488] sm:$0xff]   ;;  %v1543_v41 = vshll.u32 %v6346_v31, 16  ;;  %v8364_v61 = vld [vmem:[%s10426_s1 + $0x490] sm:$0xff]   ;;  %v4389_v34 = vshll.u32 %v9313_v28, 16 }
  0xb0   : > { %7849 = vmatpush3.bf16.msra.mxu0 %v8346_v21  ;;  %7562 = vmatprep.subr.bf16.mxu1 %v8347_v17  ;;  %v4371_v21 = vshll.u32 %v9306_v18, 16  ;;  %v6829_v26 = vcombine.low %v4184_v59, %v4188_v48  ;;  %v6830_v56 = vcombine.low %v9387_v13, %v9391_v19  ;;  %v9422_v18 = vsel %vm8590_vm4, %v6811_v11, %v4203_v63  ;;  %v6348_v59 = vld [vmem:[%s8554_s11 + $0x18] sm:$0xf]  ;;  %v9447_v19 = vld [vmem:[%s8554_s11 + $0x1c] sm:$0x1] }
  0xb1   : > { %7850 = vmatprep.subr.bf16.mxu0 %v8348_v2  ;;  %7841 = vmatmul.mubr.bf16.gmra.mrb[4].mxu0 %v6787_v55  ;;  %v9428_v55 = vld [vmem:[%s8554_s11 + $0x1c] sm:$0x3]  ;;  %v4391_v63 = vrot.slane %v4389_v34, 6  ;;  %v1563_v37 = vshll.u32 %v9447_v19, 16 }
  0xb2   : > { %7860 = vmatprep.mubr.bf16.mxu0 %v6828_v46  ;;  %v4386_v46 = vshrl.u32 %v9313_v28, 16  ;;  %v4377_v47 = vshrl.u32 %v9428_v55, 16  ;;  %v8365_v11 = vld [vmem:[%s10426_s1 + $0x198] sm:$0xff]  }
  0xb3   : > { %7563 = vmatpush3.bf16.msra.mxu1 %v8347_v17  ;;  %v9408_v17 = vsel %vm8590_vm4, %v6810_v3, %v4199_v10  ;;  %v6350_v3 = vld [vmem:[%s8554_s11 + $0x20] sm:$0xf] }
  0xb4   : > { %7851 = vmatpush3.bf16.msra.mxu0 %v8348_v2  ;;  %7564 = vmatprep.subr.bf16.mxu1 %v8349_v38  ;;  %v1540_v2 = vshrl.u32 %v6346_v31, 16  ;;  %v4388_v58 = vrot.slane %v4386_v46, 5  ;;  %v6831_v28 = vcombine.low %v9408_v17, %v9422_v18  ;;  %v9461_v31 = vld [vmem:[%s8554_s11 + $0x24] sm:$0x1]  ;;  %v8366_v17 = vld [vmem:[%s10426_s1 + $0x498] sm:$0xff]   ;;  %v1557_v18 = vshll.u32 %v6348_v59, 16 }
  0xb5   : > { %7852 = vmatprep.subr.bf16.mxu0 %v8350_v50 }
  0xb6   : > { %v1542_v42 = vrot.slane %v1540_v2, 4  ;;  %v4392_v29 = vor.u32 %v4391_v63, %v4388_v58  ;;  %v9468_v2 = vld [vmem:[%s8554_s11 + $0x2c] sm:$0x3] }
  0xb7   : > { %7565 = vmatpush3.bf16.msra.mxu1 %v8349_v38  ;;  %v4373_v38 = vrot.slane %v4371_v21, 6  ;;  %v1554_v21 = vshrl.u32 %v6348_v59, 16 }
  0xb8   : > { %7853 = vmatpush3.bf16.msra.mxu0 %v8350_v50  ;;  %7566 = vmatprep.subr.bf16.mxu1 %v8351_v9  ;;  %v1545_v50 = vrot.slane %v1543_v41, 5 }
  0xb9   : > { %7854 = vmatprep.subr.bf16.mxu0 %v8352_v60  ;;  %v1556_v15 = vrot.slane %v1554_v21, 4 }
  0xba   : > { %v1546_v0 = vor.u32 %v1545_v50, %v1542_v42  ;;  %v8367_v42 = vld [vmem:[%s10426_s1 + $0x1a0] sm:$0xff]  }
  0xbb   : > { %7567 = vmatpush3.bf16.msra.mxu1 %v8351_v9  ;;  %v1532_v9 = vor.u32 %v1531_v35, %v1528_v45  ;;  %v1559_v45 = vrot.slane %v1557_v18, 5  ;;  %v9472_v35 = vrot.slane %v1563_v37, 5  ;;  %v8368_v50 = vld [vmem:[%s10426_s1 + $0x4a0] sm:$0xff]  }
  0xbc   : > { %7855 = vmatpush3.bf16.msra.mxu0 %v8352_v60  ;;  %7568 = vmatprep.subr.bf16.mxu1 %v8353_v39  ;;  %v1551_v60 = vrot.slane %v1549_v24, 5  ;;  %v1547_v48 = vrot.slane %v1546_v0, 4  ;;  %v1571_v24 = vshll.u32 %v6350_v3, 16 }
  0xbd   : > { %7856 = vmatprep.subr.bf16.mxu0 %v8354_v52  ;;  %v1533_v7 = vrot.slane %v1532_v9, 4  ;;  %v1560_v0 = vor.u32 %v1559_v45, %v1556_v15  ;;  %v9523_v45 = vld [vmem:[%s8554_s11 + $0x34] sm:$0x1] }
  0xbf   : > { %7569 = vmatpush3.bf16.msra.mxu1 %v8353_v39  ;;  %v9432_v39 = vld [vmem:[%s8554_s11 + $0x24] sm:$0x3] }
  0xc0   : > { %7857 = vmatpush3.bf16.msra.mxu0 %v8354_v52  ;;  %7570 = vmatprep.subr.bf16.mxu1 %v8355_v53  ;;  %v4374_v52 = vor.u32 %v4373_v38, %v4370_v12  ;;  %v4395_v23 = vshrl.u32 %v9432_v39, 16  ;;  %v4398_v13 = vshll.u32 %v9432_v39, 16  ;;  %v8374_v12 = vld [vmem:[%s8554_s11 + $0x38] ss:$8 sps:$4 sm:$0xff]   ;;  %v1577_v38 = vshll.u32 %v9461_v31, 16 }
  0xc1   : > { %7858 = vmatprep.subr.bf16.mxu0 %v8356_v57 }
  0xc2   : > { %v4375_v1 = vrot.slane %v4374_v52, 4  ;;  %v4407_v52 = vshll.u32 %v9338_v44, 16  ;;  %v1579_v58 = vrot.slane %v1577_v38, 5  ;;  %v8375_v38 = vld [vmem:[%s10426_s1 + $0x1b8] sm:$0xff]  }
  0xc3   : > { %7571 = vmatpush3.bf16.msra.mxu1 %v8355_v53  ;;  %v4380_v53 = vshll.u32 %v9428_v55, 16 }
  0xc4   : > { %7859 = vmatpush3.bf16.msra.mxu0 %v8356_v57  ;;  %7580 = vmatprep.subr.bf16.mxu1 %v8358_v25  ;;  %v4379_v57 = vrot.slane %v4377_v47, 5 }
  0xc5   : > { %7868 = vmatprep.subr.bf16.mxu0 %v8359_v16  ;;  %v4382_v10 = vrot.slane %v4380_v53, 6  ;;  %v1573_v53 = vrot.slane %v1571_v24, 5 }
  0xc6   : > { %7573 = vmatmul.mubr.bf16.vlgmr.msra.gmra.mrb[0].mxu1 %v8360_v27  ;;  %v1552_v27 = vsel %vm8602_vm5, %v1547_v48, %v1551_v60  ;;  %v4404_v60 = vshrl.u32 %v9338_v44, 16  ;;  %v4422_v44 = vshrl.u32 %v9344_v20, 16 }
  0xc7   : > { %7861 = vmatmul.mubr.bf16.vlgmr.msra.gmra.mrb[0].mxu0 %v6829_v26  ;;  %7581 = vmatpush3.bf16.msra.mxu1 %v8358_v25  ;;  %v1538_v25 = vsel %vm8602_vm5, %v1533_v7, %v1537_v51  ;;  %v4383_v26 = vor.u32 %v4382_v10, %v4379_v57  ;;  %v9476_v51 = vld [vmem:[%s8554_s11 + $0x34] sm:$0x3]  ;;  %v4409_v7 = vrot.slane %v4407_v52, 6  ;;  %v4416_v57 = vshll.u32 %v9468_v2, 16 }
  0xc8   : > { %7869 = vmatpush3.bf16.msra.mxu0 %v8359_v16  ;;  %7582 = vmatprep.subr.bf16.mxu1 %v8361_v49  ;;  %v4397_v16 = vrot.slane %v4395_v23, 5  ;;  %v6376_v32 = vcombine.low %v1538_v25, %v1552_v27  ;;  %v4406_v34 = vrot.slane %v4404_v60, 5  ;;  %v1561_v23 = vrot.slane %v1560_v0, 4  ;;  %v8376_v60 = vld [vmem:[%s10426_s1 + $0x4b8] sm:$0xff]  }
  0xc9   : > { %7870 = vmatprep.subr.bf16.mxu0 %v8362_v43  ;;  %7576 = vmatprep.mubr.bf16.mxu1 %v8371_v6  ;;  %v4384_v41 = vsel %vm8814_vm8, %v4375_v1, %v4383_v26  ;;  %v4393_v6 = vrot.slane %v4392_v29, 4  ;;  %v4413_v1 = vshrl.u32 %v9468_v2, 16  ;;  %v4418_v10 = vrot.slane %v4416_v57, 6  ;;  %v8372_v26 = vld [vmem:[%s10426_s1 + $0x1b0] sm:$0xff]  }
  0xca   : > { %7864 = vmatprep.mubr.bf16.mxu0 %v6830_v56  ;;  %v4400_v56 = vrot.slane %v4398_v13, 6  ;;  %v4431_v63 = vshrl.u32 %v9476_v51, 16  ;;  %v8369_v13 = vld [vmem:[%s10426_s1 + $0x1a8] sm:$0xff]   ;;  %v4424_v25 = vrot.slane %v4422_v44, 5  ;;  %v1566_v29 = vsel %vm8602_vm5, %v1561_v23, %v9472_v35  ;;  %v9544_v44 = vld [vmem:[%s8554_s11 + $0x44] sm:$0x3] }
  0xcb   : > { %7583 = vmatpush3.bf16.msra.mxu1 %v8361_v49  ;;  %v4415_v48 = vrot.slane %v4413_v1, 5  ;;  %v9540_v1 = vld [vmem:[%s8554_s11 + $0x3c] sm:$0x3]  ;;  %v4440_v57 = vshrl.u32 %v9357_v4, 16 }
  0xcc   : > { %7871 = vmatpush3.bf16.msra.mxu0 %v8362_v43  ;;  %7584 = vmatprep.subr.bf16.mxu1 %v8363_v54  ;;  %v4401_v49 = vor.u32 %v4400_v56, %v4397_v16  ;;  %v1568_v43 = vshrl.u32 %v6350_v3, 16 }
  0xcd   : > { %7872 = vmatprep.subr.bf16.mxu0 %v8364_v61  ;;  %v4419_v21 = vor.u32 %v4418_v10, %v4415_v48  ;;  %v8377_v48 = vld [vmem:[%s10426_s1 + $0x1c0] sm:$0xff]  }
  0xce   : > { %7577 = vmatmul.mubr.bf16.gmra.mrb[4].mxu1 %v8374_v12  ;;  %v4402_v46 = vsel %vm8814_vm8, %v4393_v6, %v4401_v49  ;;  %v1570_v9 = vrot.slane %v1568_v43, 4  ;;  %v4433_v12 = vrot.slane %v4431_v63, 5  ;;  %v9517_v6 = vld [vmem:[%s8554_s11 + $0x2c] sm:$0x1]  ;;  %v6354_v43 = vld [vmem:[%s8554_s11 + $0x30] sm:$0xf] }
  0xcf   : > { %7865 = vmatmul.mubr.bf16.gmra.mrb[4].mxu0 %v6831_v28  ;;  %7585 = vmatpush3.bf16.msra.mxu1 %v8363_v54  ;;  %v6864_v47 = vcombine.low %v4384_v41, %v4402_v46  ;;  %v4425_v54 = vshll.u32 %v9344_v20, 16  ;;  %v8370_v20 = vld [vmem:[%s10426_s1 + $0x4a8] sm:$0xff]   ;;  %v1596_v46 = vshrl.u32 %v6354_v43, 16  ;;  %v8378_v10 = vld [vmem:[%s10426_s1 + $0x4c0] sm:$0xff]  }
  0xd0   : > { %7873 = vmatpush3.bf16.msra.mxu0 %v8364_v61  ;;  %7586 = vmatprep.subr.bf16.mxu1 %v8365_v11  ;;  %v1574_v59 = vor.u32 %v1573_v53, %v1570_v9  ;;  %v4410_v61 = vor.u32 %v4409_v7, %v4406_v34  ;;  %v6352_v41 = vld [vmem:[%s8554_s11 + $0x28] sm:$0xf]  ;;  %v1599_v9 = vshll.u32 %v6354_v43, 16  ;;  %v1605_v53 = vshll.u32 %v9523_v45, 16 }
  0xd1   : > { %7874 = vmatprep.subr.bf16.mxu0 %v8366_v17  ;;  %7596 = vmatprep.mubr.bf16.mxu1 %v6376_v32  ;;  %v4427_v16 = vrot.slane %v4425_v54, 6  ;;  %v8373_v32 = vld [vmem:[%s10426_s1 + $0x4b0] sm:$0xff]   ;;  %v1582_v35 = vshrl.u32 %v6352_v41, 16  ;;  %v1585_v24 = vshll.u32 %v6352_v41, 16  ;;  %v1598_v34 = vrot.slane %v1596_v46, 4  ;;  %v8380_v41 = vld [vmem:[%s10426_s1 + $0x4c8] sm:$0xff]  }
  0xd2   : > { %7884 = vmatprep.mubr.bf16.mxu0 %v6864_v47  ;;  %v1575_v28 = vrot.slane %v1574_v59, 4  ;;  %v4411_v3 = vrot.slane %v4410_v61, 4  ;;  %v1601_v7 = vrot.slane %v1599_v9, 5  ;;  %v1607_v59 = vrot.slane %v1605_v53, 5 }
  0xd3   : > { %7587 = vmatpush3.bf16.msra.mxu1 %v8365_v11  ;;  %v4434_v11 = vshll.u32 %v9476_v51, 16  ;;  %v4428_v27 = vor.u32 %v4427_v16, %v4424_v25  ;;  %v1584_v47 = vrot.slane %v1582_v35, 4  ;;  %v1587_v0 = vrot.slane %v1585_v24, 5 }
  0xd4   : > { %7875 = vmatpush3.bf16.msra.mxu0 %v8366_v17  ;;  %7588 = vmatprep.subr.bf16.mxu1 %v8367_v42  ;;  %v1580_v56 = vsel %vm8602_vm5, %v1575_v28, %v1579_v58  ;;  %v9513_v18 = vsel %vm8814_vm8, %v4411_v3, %v4419_v21  ;;  %v4443_v54 = vshll.u32 %v9357_v4, 16  ;;  %v4449_v61 = vshrl.u32 %v9540_v1, 16 }
  0xd5   : > { %7876 = vmatprep.subr.bf16.mxu0 %v8368_v50  ;;  %v4436_v17 = vrot.slane %v4434_v11, 6  ;;  %v4429_v15 = vrot.slane %v4428_v27, 4  ;;  %v9519_v49 = vcombine.low %v1566_v29, %v1580_v56  ;;  %v1588_v23 = vor.u32 %v1587_v0, %v1584_v47  ;;  %v6356_v29 = vld [vmem:[%s8554_s11 + $0x38] sm:$0xf] }
  0xd6   : > { %v1602_v63 = vor.u32 %v1601_v7, %v1598_v34  ;;  %v4452_v28 = vshll.u32 %v9540_v1, 16  ;;  %v4458_v25 = vshrl.u32 %v9362_v62, 16  ;;  %v4445_v16 = vrot.slane %v4443_v54, 6 }
  0xd7   : > { %7589 = vmatpush3.bf16.msra.mxu1 %v8367_v42  ;;  %v4437_v37 = vor.u32 %v4436_v17, %v4433_v12  ;;  %v1589_v4 = vrot.slane %v1588_v23, 4  ;;  %v4461_v3 = vshll.u32 %v9362_v62, 16  ;;  %v4467_v27 = vshrl.u32 %v9544_v44, 16  ;;  %v6358_v62 = vld [vmem:[%s8554_s11 + $0x40] sm:$0xf] }
  0xd8   : > { %7877 = vmatpush3.bf16.msra.mxu0 %v8368_v50  ;;  %7590 = vmatprep.subr.bf16.mxu1 %v8369_v13  ;;  %v1591_v50 = vshll.u32 %v9517_v6, 16  ;;  %v1603_v21 = vrot.slane %v1602_v63, 4  ;;  %v4454_v12 = vrot.slane %v4452_v28, 6  ;;  %v4460_v11 = vrot.slane %v4458_v25, 5 }
  0xd9   : > { %7878 = vmatprep.subr.bf16.mxu0 %v8370_v20  ;;  %v9530_v42 = vsel %vm8814_vm8, %v4429_v15, %v4437_v37  ;;  %v4463_v17 = vrot.slane %v4461_v3, 6  ;;  %v9563_v15 = vld [vmem:[%s8554_s11 + $0x3c] sm:$0x1]  ;;  %v8379_v37 = vld [vmem:[%s10426_s1 + $0x1c8] sm:$0xff]   ;;  %v4469_v24 = vrot.slane %v4467_v27, 5  ;;  %v1610_v46 = vshrl.u32 %v6356_v29, 16 }
  0xda   : > { %v6865_v52 = vcombine.low %v9513_v18, %v9530_v42  ;;  %v1593_v58 = vrot.slane %v1591_v50, 5  ;;  %v1608_v43 = vsel %vm8602_vm5, %v1603_v21, %v1607_v59  ;;  %v9575_v50 = vld [vmem:[%s8554_s11 + $0x44] sm:$0x1]  ;;  %v1613_v7 = vshll.u32 %v6356_v29, 16  ;;  %v9597_v42 = vld [vmem:[%s8554_s11 + $0x54] sm:$0x3] }
  0xdb   : > { %7591 = vmatpush3.bf16.msra.mxu1 %v8369_v13  ;;  %v4442_v13 = vrot.slane %v4440_v57, 5  ;;  %v4464_v0 = vor.u32 %v4463_v17, %v4460_v11  ;;  %v1612_v34 = vrot.slane %v1610_v46, 4  ;;  %v1619_v57 = vshll.u32 %v9563_v15, 16  ;;  %v9604_v29 = vld [vmem:[%s8554_s11 + $0x8] sm:$0xe] }
  0xdc   : > { %7879 = vmatpush3.bf16.msra.mxu0 %v8370_v20  ;;  %7592 = vmatprep.subr.bf16.mxu1 %v8372_v26  ;;  %v4451_v20 = vrot.slane %v4449_v61, 5  ;;  %v1624_v23 = vshrl.u32 %v6358_v62, 16  ;;  %v8381_v61 = vld [vmem:[%s10426_s1 + $0x1d0] sm:$0xff]   ;;  %v1615_v63 = vrot.slane %v1613_v7, 5  ;;  %v1633_v25 = vshll.u32 %v9575_v50, 16 }
  0xdd   : > { %7880 = vmatprep.subr.bf16.mxu0 %v8373_v32  ;;  %v4446_v56 = vor.u32 %v4445_v16, %v4442_v13  ;;  %v4465_v54 = vrot.slane %v4464_v0, 4  ;;  %v1621_v13 = vrot.slane %v1619_v57, 5  ;;  %v4479_v16 = vshll.u32 %v9375_v40, 16  ;;  %v6876_v57 = vld [vmem:[%s8554_s11 + $0x18] sm:$0xc] }
  0xde   : > { %v4455_v35 = vor.u32 %v4454_v12, %v4451_v20  ;;  %v1626_v28 = vrot.slane %v1624_v23, 4  ;;  %v1635_v20 = vrot.slane %v1633_v25, 5  ;;  %v4497_v17 = vshll.u32 %v9394_v8, 16 }
  0xdf   : > { %7593 = vmatpush3.bf16.msra.mxu1 %v8372_v26  ;;  %v1594_v26 = vsel %vm8602_vm5, %v1589_v4, %v1593_v58  ;;  %v4447_v47 = vrot.slane %v4446_v56, 4  ;;  %v9578_v58 = vld [vmem:[%s8554_s11 + $0x4c] sm:$0x3]  ;;  %v8382_v4 = vld [vmem:[%s10426_s1 + $0x4d0] sm:$0xff]   ;;  %v4481_v11 = vrot.slane %v4479_v16, 6  ;;  %v4503_v46 = vshrl.u32 %v9597_v42, 16 }
  0xe0   : > { %7881 = vmatpush3.bf16.msra.mxu0 %v8373_v32  ;;  %7594 = vmatprep.subr.bf16.mxu1 %v8375_v38  ;;  %v4470_v32 = vshll.u32 %v9544_v44, 16  ;;  %v6378_v9 = vcombine.low %v1594_v26, %v1608_v43  ;;  %v4485_v3 = vshrl.u32 %v9578_v58, 16  ;;  %v4488_v27 = vshll.u32 %v9578_v58, 16 }
  0xe1   : > { %7882 = vmatprep.subr.bf16.mxu0 %v8376_v60  ;;  %v4456_v59 = vsel %vm8814_vm8, %v4447_v47, %v4455_v35  ;;  %v4506_v47 = vshll.u32 %v9597_v42, 16  ;;  %v4505_v7 = vrot.slane %v4503_v46, 5  ;;  %v6884_v16 = vrot.slane %v6876_v57, 10  ;;  %v8389_v46 = vld [vmem:[%s10426_s1 + $0x1f0] sm:$0xff]   ;;  %v6880_v57 = vld [vmem:[%s8554_s11 + $0x38] sm:$0xc] }
  0xe2   : > { %v4472_v53 = vrot.slane %v4470_v32, 6  ;;  %v4487_v56 = vrot.slane %v4485_v3, 5  ;;  %v9609_v32 = vld [vmem:[%s8554_s11 + $0x10] sm:$0xe]  ;;  %v8387_v3 = vld [vmem:[%s10426_s1 + $0x1e8] sm:$0xff]  }
  0xe3   : > { %7595 = vmatpush3.bf16.msra.mxu1 %v8375_v38  ;;  %v6397_v25 = vrot.slane %v9609_v32, 9 }
  0xe4   : > { %7883 = vmatpush3.bf16.msra.mxu0 %v8376_v60  ;;  %7604 = vmatprep.subr.bf16.mxu1 %v8377_v48  ;;  %v4473_v38 = vor.u32 %v4472_v53, %v4469_v24  ;;  %v1627_v60 = vshll.u32 %v6358_v62, 16  ;;  %v8383_v62 = vld [vmem:[%s10426_s1 + $0x1d8] sm:$0xff]   ;;  %v4490_v24 = vrot.slane %v4488_v27, 6  ;;  %v9657_v27 = vld [vmem:[%s8554_s11 + $0x20] sm:$0xe] }
  0xe5   : > { %7892 = vmatprep.subr.bf16.mxu0 %v8378_v10 }
  0xe6   : > { %7597 = vmatmul.mubr.bf16.vlgmr.msra.gmra.mrb[0].mxu1 %v9519_v49  ;;  %v4474_v49 = vsel %vm8814_vm8, %v4465_v54, %v4473_v38  ;;  %v1629_v18 = vrot.slane %v1627_v60, 5  ;;  %v4508_v54 = vrot.slane %v4506_v47, 6  ;;  %v6396_v38 = vrot.slane %v9604_v29, 9  ;;  %v6877_v60 = vld [vmem:[%s8554_s11 + $0x20] sm:$0xc] }
  0xe7   : > { %7885 = vmatmul.mubr.bf16.vlgmr.msra.gmra.mrb[0].mxu0 %v6865_v52  ;;  %7605 = vmatpush3.bf16.msra.mxu1 %v8377_v48  ;;  %v4476_v52 = vshrl.u32 %v9375_v40, 16  ;;  %v6866_v48 = vcombine.low %v4456_v59, %v4474_v49  ;;  %v4494_v40 = vshrl.u32 %v9394_v8, 16  ;;  %v8384_v8 = vld [vmem:[%s10426_s1 + $0x4d8] sm:$0xff]   ;;  %v1821_v49 = vrot.slane %v9412_v22, 5 }
  0xe8   : > { %7893 = vmatpush3.bf16.msra.mxu0 %v8378_v10  ;;  %7606 = vmatprep.subr.bf16.mxu1 %v8379_v37  ;;  %v1616_v10 = vor.u32 %v1615_v63, %v1612_v34  ;;  %v1630_v21 = vor.u32 %v1629_v18, %v1626_v28  ;;  %v4491_v34 = vor.u32 %v4490_v24, %v4487_v56  ;;  %v8385_v63 = vld [vmem:[%s10426_s1 + $0x1e0] sm:$0xff]   ;;  %v1817_v28 = vrot.slane %v9402_v30, 5  ;;  %v9635_v18 = vld [vmem:[%s8554_s11 + $0x18] sm:$0xe]  ;;  %v6878_v56 = vld [vmem:[%s8554_s11 + $0x28] sm:$0xc] }
  0xe9   : > { %7894 = vmatprep.subr.bf16.mxu0 %v8380_v41  ;;  %7600 = vmatprep.mubr.bf16.mxu1 %v6378_v9  ;;  %v4478_v12 = vrot.slane %v4476_v52, 5  ;;  %v4499_v9 = vrot.slane %v4497_v17, 6  ;;  %v4509_v52 = vor.u32 %v4508_v54, %v4505_v7  ;;  %v1822_v22 = vsel %vm8590_vm4, %v6397_v25, %v1821_v49  ;;  %v8393_v49 = vld [vmem:[%s10426_s1 + $0x200] sm:$0xff]  }
  0xea   : > { %7888 = vmatprep.mubr.bf16.mxu0 %v6866_v48  ;;  %v1617_v26 = vrot.slane %v1616_v10, 4  ;;  %v1631_v43 = vrot.slane %v1630_v21, 4  ;;  %v4691_v48 = vrot.slane %v9428_v55, 6  ;;  %v1818_v30 = vsel %vm8590_vm4, %v6396_v38, %v1817_v28  ;;  %v8388_v55 = vld [vmem:[%s10426_s1 + $0x4e8] sm:$0xff]   ;;  %v9711_v28 = vld [vmem:[%s8554_s11 + $0x40] sm:$0xe] }
  0xeb   : > { %7607 = vmatpush3.bf16.msra.mxu1 %v8379_v37  ;;  %v4482_v35 = vor.u32 %v4481_v11, %v4478_v12  ;;  %v6885_v10 = vrot.slane %v6877_v60, 10  ;;  %v6420_v12 = vcombine.low %v1818_v30, %v1822_v22  ;;  %v6398_v17 = vrot.slane %v9635_v18, 9  ;;  %v8394_v30 = vld [vmem:[%s10426_s1 + $0x500] sm:$0xff]  }
  0xec   : > { %7895 = vmatpush3.bf16.msra.mxu0 %v8380_v41  ;;  %7608 = vmatprep.subr.bf16.mxu1 %v8381_v61  ;;  %v1622_v37 = vsel %vm8602_vm5, %v1617_v26, %v1621_v13  ;;  %v4496_v41 = vrot.slane %v4494_v40, 5  ;;  %v1636_v0 = vsel %vm8602_vm5, %v1631_v43, %v1635_v20  ;;  %v4695_v20 = vrot.slane %v9432_v39, 6 }
  0xed   : > { %7896 = vmatprep.subr.bf16.mxu0 %v8382_v4  ;;  %v4483_v53 = vrot.slane %v4482_v35, 4  ;;  %v6379_v23 = vcombine.low %v1622_v37, %v1636_v0  ;;  %v4692_v11 = vsel %vm8918_vm11, %v6884_v16, %v4691_v48  ;;  %v1825_v43 = vrot.slane %v9447_v19, 5  ;;  %v6879_v35 = vld [vmem:[%s8554_s11 + $0x30] sm:$0xc]  ;;  %v8391_v0 = vld [vmem:[%s10426_s1 + $0x1f8] sm:$0xff]  }
  0xee   : > { %v4500_v59 = vor.u32 %v4499_v9, %v4496_v41  ;;  %v4696_v26 = vsel %vm8918_vm11, %v6885_v10, %v4695_v20  ;;  %v6399_v24 = vrot.slane %v9657_v27, 9  ;;  %v6886_v19 = vrot.slane %v6878_v56, 10  ;;  %v6882_v48 = vld [vmem:[%s8554_s11 + $0x48] sm:$0xc] }
  0xef   : > { %7609 = vmatpush3.bf16.msra.mxu1 %v8381_v61  ;;  %v4492_v13 = vsel %vm8814_vm8, %v4483_v53, %v4491_v34  ;;  %v8386_v61 = vld [vmem:[%s10426_s1 + $0x4e0] sm:$0xff]   ;;  %v6908_v40 = vcombine.low %v4692_v11, %v4696_v26  ;;  %v4699_v37 = vrot.slane %v9468_v2, 6  ;;  %v6887_v41 = vrot.slane %v6879_v35, 10  ;;  %v9681_v53 = vld [vmem:[%s8554_s11 + $0x28] sm:$0xe] }
  0xf0   : > { %7897 = vmatpush3.bf16.msra.mxu0 %v8382_v4  ;;  %7610 = vmatprep.subr.bf16.mxu1 %v8383_v62  ;;  %v4501_v4 = vrot.slane %v4500_v59, 4  ;;  %v1833_v9 = vrot.slane %v9517_v6, 5  ;;  %v1837_v47 = vrot.slane %v9523_v45, 5  ;;  %v9684_v34 = vld [vmem:[%s8554_s11 + $0x30] sm:$0xe]  ;;  %v4707_v2 = vrot.slane %v9540_v1, 6 }
  0xf1   : > { %7898 = vmatprep.subr.bf16.mxu0 %v8384_v8  ;;  %7601 = vmatmul.mubr.bf16.gmra.mrb[4].mxu1 %v6379_v23  ;;  %v4711_v7 = vrot.slane %v9544_v44, 6  ;;  %v6401_v6 = vrot.slane %v9684_v34, 9  ;;  %v8392_v45 = vld [vmem:[%s10426_s1 + $0x4f8] sm:$0xff]   ;;  %v6881_v23 = vld [vmem:[%s8554_s11 + $0x40] sm:$0xc]  ;;  %v1826_v1 = vsel %vm8590_vm4, %v6398_v17, %v1825_v43  ;;  %v6888_v59 = vrot.slane %v6880_v57, 10 }
  0xf2   : > { %v4510_v21 = vsel %vm8814_vm8, %v4501_v4, %v4509_v52  ;;  %7620 = vmatprep.mubr.bf16.mxu1 %v6420_v12  ;;  %v6889_v54 = vrot.slane %v6881_v23, 10  ;;  %v4700_v38 = vsel %vm8918_vm11, %v6886_v19, %v4699_v37  ;;  %v1841_v25 = vrot.slane %v9563_v15, 5  ;;  %v6883_v15 = vld [vmem:[%s8554_s11 + $0x50] sm:$0xc]  ;;  %v8395_v11 = vld [vmem:[%s10426_s1 + $0x208] sm:$0xff]  }
  0xf3   : > { %7611 = vmatpush3.bf16.msra.mxu1 %v8383_v62  ;;  %v6867_v39 = vcombine.low %v4492_v13, %v4510_v21  ;;  %v1829_v62 = vrot.slane %v9461_v31, 5  ;;  %v4703_v31 = vrot.slane %v9476_v51, 6  ;;  %v6400_v51 = vrot.slane %v9681_v53, 9  ;;  %v9708_v13 = vld [vmem:[%s8554_s11 + $0x38] sm:$0xe] }
  0xf4   : > { %7899 = vmatpush3.bf16.msra.mxu0 %v8384_v8  ;;  %7612 = vmatprep.subr.bf16.mxu1 %v8385_v63  ;;  %v8390_v8 = vld [vmem:[%s10426_s1 + $0x4f0] sm:$0xff]   ;;  %v4708_v4 = vsel %vm8918_vm11, %v6888_v59, %v4707_v2  ;;  %v4712_v52 = vsel %vm8918_vm11, %v6889_v54, %v4711_v7  ;;  %v6402_v16 = vrot.slane %v9708_v13, 9  ;;  %v6403_v22 = vrot.slane %v9711_v28, 9 }
  0xf5   : > { %7900 = vmatprep.subr.bf16.mxu0 %v8386_v61  ;;  %7889 = vmatmul.mubr.bf16.gmra.mrb[4].mxu0 %v6867_v39  ;;  %v1830_v44 = vsel %vm8590_vm4, %v6399_v24, %v1829_v62  ;;  %v4704_v60 = vsel %vm8918_vm11, %v6887_v41, %v4703_v31  ;;  %v1845_v10 = vrot.slane %v9575_v50, 5  ;;  %v6890_v20 = vrot.slane %v6882_v48, 10  ;;  %v9744_v50 = vld [vmem:[%s8554_s11 + $0x14] sm:$0x3]  ;;  %v8396_v24 = vld [vmem:[%s10426_s1 + $0x508] sm:$0xff]  }
  0xf6   : > { %7908 = vmatprep.mubr.bf16.mxu0 %v6908_v40  ;;  %v6891_v21 = vrot.slane %v6883_v15, 10  ;;  %v6909_v12 = vcombine.low %v4700_v38, %v4704_v60  ;;  %v6910_v26 = vcombine.low %v4708_v4, %v4712_v52  ;;  %v9738_v56 = vsel %vm8590_vm4, %v6402_v16, %v1841_v25  ;;  %v9741_v40 = vld [vmem:[%s8554_s11 + $0xc] sm:$0x3]  ;;  %v9773_v38 = vld [vmem:[%s8554_s11 + $0x1c] sm:$0x3] }
  0xf7   : > { %7613 = vmatpush3.bf16.msra.mxu1 %v8385_v63  ;;  %v9705_v63 = vsel %vm8590_vm4, %v6400_v51, %v1833_v9  ;;  %v2010_v17 = vshrl.u32 %v9604_v29, 16  ;;  %v2013_v43 = vshll.u32 %v9604_v29, 16  ;;  %v2019_v35 = vshrl.u32 %v9741_v40, 16  ;;  %v8399_v4 = vld [vmem:[%s10426_s1 + $0x218] sm:$0xff]   ;;  %v8410_v16 = vld [vmem:[%s8554_s11 + $0x20] ss:$8 sps:$4 sm:$0xff]  }
  0xf8   : > { %7901 = vmatpush3.bf16.msra.mxu0 %v8386_v61  ;;  %7614 = vmatprep.subr.bf16.mxu1 %v8387_v3  ;;  %v1838_v61 = vsel %vm8590_vm4, %v6401_v6, %v1837_v47  ;;  %v1846_v62 = vsel %vm8590_vm4, %v6403_v22, %v1845_v10  ;;  %v2037_v41 = vshrl.u32 %v9744_v50, 16  ;;  %v8397_v6 = vld [vmem:[%s10426_s1 + $0x210] sm:$0xff]   ;;  %v2049_v60 = vshll.u32 %v9635_v18, 16  ;;  %v9784_v48 = vld [vmem:[%s8554_s11 + $0x24] sm:$0x3] }
  0xf9   : > { %7902 = vmatprep.subr.bf16.mxu0 %v8388_v55  ;;  %v6422_v39 = vcombine.low %v9705_v63, %v1838_v61  ;;  %v2012_v19 = vrot.slane %v2010_v17, 5  ;;  %v2015_v37 = vrot.slane %v2013_v43, 6  ;;  %v2021_v29 = vrot.slane %v2019_v35, 5  ;;  %v8403_v43 = vld [vmem:[%s10426_s1 + $0x228] sm:$0xff]  }
  0xfa   : > { %v2039_v51 = vrot.slane %v2037_v41, 5  ;;  %v6423_v59 = vcombine.low %v9738_v56, %v1846_v62  ;;  %v2064_v61 = vshrl.u32 %v9657_v27, 16  ;;  %v2067_v15 = vshll.u32 %v9657_v27, 16  ;;  %v8401_v27 = vld [vmem:[%s10426_s1 + $0x220] sm:$0xff]   ;;  %v8404_v35 = vld [vmem:[%s10426_s1 + $0x528] sm:$0xff]  }
  0xfb   : > { %7615 = vmatpush3.bf16.msra.mxu1 %v8387_v3  ;;  %v6421_v3 = vcombine.low %v1826_v1, %v1830_v44  ;;  %v2016_v7 = vor.u32 %v2015_v37, %v2012_v19  ;;  %v2046_v44 = vshrl.u32 %v9635_v18, 16  ;;  %v8400_v18 = vld [vmem:[%s10426_s1 + $0x518] sm:$0xff]   ;;  %v2055_v10 = vshrl.u32 %v9773_v38, 16 }
  0xfc   : > { %7903 = vmatpush3.bf16.msra.mxu0 %v8388_v55  ;;  %7616 = vmatprep.subr.bf16.mxu1 %v8389_v46  ;;  %v4715_v55 = vrot.slane %v9578_v58, 6  ;;  %v4719_v58 = vrot.slane %v9597_v42, 6  ;;  %v2031_v42 = vshll.u32 %v9609_v32, 16  ;;  %v2082_v56 = vshrl.u32 %v9681_v53, 16 }
  0xfd   : > { %7904 = vmatprep.subr.bf16.mxu0 %v8390_v8  ;;  %v2017_v54 = vrot.slane %v2016_v7, 4  ;;  %v2048_v22 = vrot.slane %v2046_v44, 5  ;;  %v2057_v17 = vrot.slane %v2055_v10, 5  ;;  %v2100_v37 = vshrl.u32 %v9684_v34, 16 }
  0xfe   : > { %v2033_v47 = vrot.slane %v2031_v42, 6  ;;  %v4716_v2 = vsel %vm8918_vm11, %v6890_v20, %v4715_v55  ;;  %v2058_v20 = vshll.u32 %v9773_v38, 16  ;;  %v2051_v55 = vrot.slane %v2049_v60, 6  ;;  %v8407_v60 = vld [vmem:[%s10426_s1 + $0x238] sm:$0xff]  }
  0xff   : > { %7617 = vmatpush3.bf16.msra.mxu1 %v8389_v46  ;;  %v2022_v46 = vshll.u32 %v9741_v40, 16  ;;  %v2085_v42 = vshll.u32 %v9681_v53, 16  ;;  %v8406_v53 = vld [vmem:[%s10426_s1 + $0x530] sm:$0xff]   ;;  %v2136_v10 = vshrl.u32 %v9711_v28, 16 }
 0x100   : > { %7905 = vmatpush3.bf16.msra.mxu0 %v8390_v8  ;;  %7618 = vmatprep.subr.bf16.mxu1 %v8391_v0  ;;  %v2028_v8 = vshrl.u32 %v9609_v32, 16  ;;  %v4720_v32 = vsel %vm8918_vm11, %v6891_v21, %v4719_v58  ;;  %v2066_v21 = vrot.slane %v2064_v61, 5  ;;  %v2052_v58 = vor.u32 %v2051_v55, %v2048_v22 }
 0x101   : > { %7906 = vmatprep.subr.bf16.mxu0 %v8392_v45  ;;  %v2024_v31 = vrot.slane %v2022_v46, 6  ;;  %v6911_v63 = vcombine.low %v4716_v2, %v4720_v32  ;;  %v2087_v41 = vrot.slane %v2085_v42, 6  ;;  %v2102_v2 = vrot.slane %v2100_v37, 5  ;;  %v9821_v32 = vld [vmem:[%s8554_s11 + $0x34] sm:$0x3] }
 0x102   : > { %v2030_v9 = vrot.slane %v2028_v8, 5  ;;  %v2084_v8 = vrot.slane %v2082_v56, 5  ;;  %v2121_v22 = vshll.u32 %v9708_v13, 16 }
 0x103   : > { %7619 = vmatpush3.bf16.msra.mxu1 %v8391_v0  ;;  %v2040_v0 = vshll.u32 %v9744_v50, 16  ;;  %v2025_v57 = vor.u32 %v2024_v31, %v2021_v29  ;;  %v2053_v29 = vrot.slane %v2052_v58, 4  ;;  %v8405_v31 = vld [vmem:[%s10426_s1 + $0x230] sm:$0xff]  }
 0x104   : > { %7907 = vmatpush3.bf16.msra.mxu0 %v8392_v45  ;;  %7628 = vmatprep.subr.bf16.mxu1 %v8393_v49  ;;  %v8398_v45 = vld [vmem:[%s10426_s1 + $0x510] sm:$0xff]   ;;  %v2034_v23 = vor.u32 %v2033_v47, %v2030_v9  ;;  %v2088_v7 = vor.u32 %v2087_v41, %v2084_v8 }
 0x105   : > { %7916 = vmatprep.subr.bf16.mxu0 %v8394_v30  ;;  %v2042_v1 = vrot.slane %v2040_v0, 6  ;;  %v2026_v52 = vsel %vm8814_vm8, %v2017_v54, %v2025_v57  ;;  %v9815_v0 = vld [vmem:[%s8554_s11 + $0x2c] sm:$0x3] }
 0x106   : > { %7621 = vmatmul.mubr.bf16.vlgmr.msra.gmra.mrb[0].mxu1 %v6421_v3  ;;  %v2035_v25 = vrot.slane %v2034_v23, 4  ;;  %v2109_v23 = vshrl.u32 %v9821_v32, 16  ;;  %v2089_v61 = vrot.slane %v2088_v7, 4 }
 0x107   : > { %7909 = vmatmul.mubr.bf16.vlgmr.msra.gmra.mrb[0].mxu0 %v6909_v12  ;;  %7629 = vmatpush3.bf16.msra.mxu1 %v8393_v49  ;;  %v2043_v49 = vor.u32 %v2042_v1, %v2039_v51  ;;  %v2069_v12 = vrot.slane %v2067_v15, 6  ;;  %v2091_v51 = vshrl.u32 %v9815_v0, 16  ;;  %v2112_v1 = vshll.u32 %v9821_v32, 16 }
 0x108   : > { %7917 = vmatpush3.bf16.msra.mxu0 %v8394_v30  ;;  %7630 = vmatprep.subr.bf16.mxu1 %v8395_v11 }
 0x109   : > { %7918 = vmatprep.subr.bf16.mxu0 %v8396_v24  ;;  %7624 = vmatprep.mubr.bf16.mxu1 %v6422_v39  ;;  %v2044_v30 = vsel %vm8814_vm8, %v2035_v25, %v2043_v49  ;;  %v8402_v39 = vld [vmem:[%s10426_s1 + $0x520] sm:$0xff]   ;;  %v2070_v62 = vor.u32 %v2069_v12, %v2066_v21  ;;  %v2093_v44 = vrot.slane %v2091_v51, 5  ;;  %v2114_v25 = vrot.slane %v2112_v1, 6 }
 0x10a   : > { %7912 = vmatprep.mubr.bf16.mxu0 %v6910_v26  ;;  %v6456_v3 = vcombine.low %v2026_v52, %v2044_v30  ;;  %v2076_v26 = vshll.u32 %v9784_v48, 16  ;;  %v2118_v52 = vshrl.u32 %v9708_v13, 16  ;;  %v9843_v30 = vld [vmem:[%s8554_s11 + $0x44] sm:$0x3]  ;;  %v6956_v1 = vld [vmem:[%s8554_s11 + $0x20] sm:$0xf] }
 0x10b   : > { %7631 = vmatpush3.bf16.msra.mxu1 %v8395_v11  ;;  %v2073_v11 = vshrl.u32 %v9784_v48, 16  ;;  %v2071_v47 = vrot.slane %v2070_v62, 4  ;;  %v8409_v13 = vld [vmem:[%s10426_s1 + $0x240] sm:$0xff]   ;;  %v2145_v58 = vshrl.u32 %v9843_v30, 16 }
 0x10c   : > { %7919 = vmatpush3.bf16.msra.mxu0 %v8396_v24  ;;  %7632 = vmatprep.subr.bf16.mxu1 %v8397_v6  ;;  %v2060_v24 = vrot.slane %v2058_v20, 6  ;;  %v2078_v19 = vrot.slane %v2076_v26, 6  ;;  %v2120_v55 = vrot.slane %v2118_v52, 5  ;;  %v8411_v26 = vld [vmem:[%s10426_s1 + $0x540] sm:$0xff]   ;;  %v8416_v52 = vld [vmem:[%s10426_s1 + $0x550] sm:$0xff]  }
 0x10d   : > { %7920 = vmatprep.subr.bf16.mxu0 %v8398_v45  ;;  %v2075_v46 = vrot.slane %v2073_v11, 5  ;;  %v2138_v11 = vrot.slane %v2136_v10, 5  ;;  %v2147_v8 = vrot.slane %v2145_v58, 5  ;;  %v8426_v10 = vld [vmem:[%s8554_s11 + $0x50] ss:$8 sps:$4 sm:$0xff]  }
 0x10e   : > { %7625 = vmatmul.mubr.bf16.gmra.mrb[4].mxu1 %v6423_v59  ;;  %v2061_v9 = vor.u32 %v2060_v24, %v2057_v17  ;;  %v2148_v17 = vshll.u32 %v9843_v30, 16  ;;  %v8418_v58 = vld [vmem:[%s10426_s1 + $0x558] sm:$0xff]  }
 0x10f   : > { %7913 = vmatmul.mubr.bf16.gmra.mrb[4].mxu0 %v6911_v63  ;;  %7633 = vmatpush3.bf16.msra.mxu1 %v8397_v6  ;;  %v2094_v6 = vshll.u32 %v9815_v0, 16  ;;  %v2079_v57 = vor.u32 %v2078_v19, %v2075_v46  ;;  %v2111_v63 = vrot.slane %v2109_v23, 5  ;;  %v8413_v19 = vld [vmem:[%s10426_s1 + $0x248] sm:$0xff]   ;;  %v2337_v23 = vrot.slane %v9744_v50, 6 }
 0x110   : > { %7921 = vmatpush3.bf16.msra.mxu0 %v8398_v45  ;;  %7634 = vmatprep.subr.bf16.mxu1 %v8399_v4  ;;  %v2103_v45 = vshll.u32 %v9684_v34, 16  ;;  %v8408_v34 = vld [vmem:[%s10426_s1 + $0x538] sm:$0xff]   ;;  %v2062_v49 = vsel %vm8814_vm8, %v2053_v29, %v2061_v9  ;;  %v2150_v42 = vrot.slane %v2148_v17, 6  ;;  %v6468_v9 = vld [vmem:[%s8554_s11 + $0x8] sm:$0xc] }
 0x111   : > { %7922 = vmatprep.subr.bf16.mxu0 %v8400_v18  ;;  %7644 = vmatprep.mubr.bf16.mxu1 %v6456_v3  ;;  %v2096_v59 = vrot.slane %v2094_v6, 6  ;;  %v2115_v3 = vor.u32 %v2114_v25, %v2111_v63  ;;  %v6476_v51 = vrot.slane %v6468_v9, 10  ;;  %v2333_v6 = vrot.slane %v9741_v40, 6  ;;  %v8420_v9 = vld [vmem:[%s10426_s1 + $0x560] sm:$0xff]  }
 0x112   : > { %7932 = vmatprep.mubr.bf16.mxu0 %v8410_v16  ;;  %v2105_v54 = vrot.slane %v2103_v45, 6  ;;  %v2080_v16 = vsel %vm8814_vm8, %v2071_v47, %v2079_v57  ;;  %v6469_v47 = vld [vmem:[%s8554_s11 + $0x10] sm:$0xc]  ;;  %v2151_v7 = vor.u32 %v2150_v42, %v2147_v8  ;;  %v5063_v63 = vshrl.u32 %v6956_v1, 16  ;;  %v9914_v8 = vld [vmem:[%s8554_s11 + $0x34] sm:$0x1] }
 0x113   : > { %7635 = vmatpush3.bf16.msra.mxu1 %v8399_v4  ;;  %v2097_v15 = vor.u32 %v2096_v59, %v2093_v44  ;;  %v6457_v62 = vcombine.low %v2062_v49, %v2080_v16  ;;  %v6477_v45 = vrot.slane %v6469_v47, 10  ;;  %v9876_v59 = vld [vmem:[%s8554_s11 + $0x24] sm:$0x1]  ;;  %v5066_v40 = vshll.u32 %v6956_v1, 16 }
 0x114   : > { %7923 = vmatpush3.bf16.msra.mxu0 %v8400_v18  ;;  %7636 = vmatprep.subr.bf16.mxu1 %v8401_v27  ;;  %v2106_v4 = vor.u32 %v2105_v54, %v2102_v2  ;;  %v9840_v18 = vld [vmem:[%s8554_s11 + $0x3c] sm:$0x3]  ;;  %v8414_v2 = vld [vmem:[%s10426_s1 + $0x548] sm:$0xff]   ;;  %v5072_v25 = vshll.u32 %v9876_v59, 16  ;;  %v5065_v16 = vrot.slane %v5063_v63, 4  ;;  %v5100_v1 = vshll.u32 %v9914_v8, 16 }
 0x115   : > { %7924 = vmatprep.subr.bf16.mxu0 %v8402_v39  ;;  %v2127_v21 = vshrl.u32 %v9840_v18, 16  ;;  %v2130_v12 = vshll.u32 %v9840_v18, 16  ;;  %v2098_v46 = vsel %vm8814_vm8, %v2089_v61, %v2097_v15  ;;  %v6958_v54 = vld [vmem:[%s8554_s11 + $0x28] sm:$0xf]  ;;  %v5068_v15 = vrot.slane %v5066_v40, 5 }
 0x116   : > { %v2107_v20 = vrot.slane %v2106_v4, 4  ;;  %v5077_v49 = vshrl.u32 %v6958_v54, 16  ;;  %v5080_v61 = vshll.u32 %v6958_v54, 16  ;;  %v8415_v4 = vld [vmem:[%s10426_s1 + $0x250] sm:$0xff]   ;;  %v2345_v54 = vrot.slane %v9784_v48, 6  ;;  %v8421_v63 = vld [vmem:[%s10426_s1 + $0x268] sm:$0xff]  }
 0x117   : > { %7637 = vmatpush3.bf16.msra.mxu1 %v8401_v27  ;;  %v2123_v27 = vrot.slane %v2121_v22, 6  ;;  %v2129_v56 = vrot.slane %v2127_v21, 5 }
 0x118   : > { %7925 = vmatpush3.bf16.msra.mxu0 %v8402_v39  ;;  %7638 = vmatprep.subr.bf16.mxu1 %v8403_v43  ;;  %v2139_v39 = vshll.u32 %v9711_v28, 16  ;;  %v8412_v28 = vld [vmem:[%s8554_s11 + $0x30] ss:$8 sps:$4 sm:$0xff]   ;;  %v2116_v37 = vsel %vm8814_vm8, %v2107_v20, %v2115_v3  ;;  %v2334_v20 = vsel %vm8918_vm11, %v6476_v51, %v2333_v6  ;;  %v2338_v3 = vsel %vm8918_vm11, %v6477_v45, %v2337_v23 }
 0x119   : > { %7926 = vmatprep.subr.bf16.mxu0 %v8404_v35  ;;  %v6458_v44 = vcombine.low %v2098_v46, %v2116_v37  ;;  %v5082_v21 = vrot.slane %v5080_v61, 5  ;;  %v2341_v6 = vrot.slane %v9773_v38, 6  ;;  %v8422_v38 = vld [vmem:[%s10426_s1 + $0x568] sm:$0xff]   ;;  %v8423_v61 = vld [vmem:[%s10426_s1 + $0x270] sm:$0xff]  }
 0x11a   : > { %v2141_v24 = vrot.slane %v2139_v39, 6  ;;  %v5069_v39 = vor.u32 %v5068_v15, %v5065_v16  ;;  %v2349_v16 = vrot.slane %v9815_v0, 6  ;;  %v2353_v15 = vrot.slane %v9821_v32, 6  ;;  %v9965_v32 = vld [vmem:[%s8554_s11 + $0x44] sm:$0x1] }
 0x11b   : > { %7639 = vmatpush3.bf16.msra.mxu1 %v8403_v43  ;;  %v2124_v43 = vor.u32 %v2123_v27, %v2120_v55  ;;  %v5079_v55 = vrot.slane %v5077_v49, 4  ;;  %v6960_v27 = vld [vmem:[%s8554_s11 + $0x30] sm:$0xf] }
 0x11c   : > { %7927 = vmatpush3.bf16.msra.mxu0 %v8404_v35  ;;  %7640 = vmatprep.subr.bf16.mxu1 %v8405_v31  ;;  %v2132_v35 = vrot.slane %v2130_v12, 6  ;;  %v8417_v12 = vld [vmem:[%s10426_s1 + $0x258] sm:$0xff]   ;;  %v5070_v46 = vrot.slane %v5069_v39, 4 }
 0x11d   : > { %7928 = vmatprep.subr.bf16.mxu0 %v8406_v53  ;;  %v2125_v29 = vrot.slane %v2124_v43, 4  ;;  %v5083_v17 = vor.u32 %v5082_v21, %v5079_v55  ;;  %v6962_v43 = vld [vmem:[%s8554_s11 + $0x38] sm:$0xf]  ;;  %v6966_v21 = vld [vmem:[%s8554_s11 + $0x48] sm:$0xf] }
 0x11e   : > { %v2133_v41 = vor.u32 %v2132_v35, %v2129_v56  ;;  %v9907_v56 = vld [vmem:[%s8554_s11 + $0x20] sm:$0xc]  ;;  %v5091_v35 = vshrl.u32 %v6960_v27, 16  ;;  %v5105_v42 = vshrl.u32 %v6962_v43, 16 }
 0x11f   : > { %7641 = vmatpush3.bf16.msra.mxu1 %v8405_v31  ;;  %v2142_v31 = vor.u32 %v2141_v24, %v2138_v11  ;;  %v5094_v24 = vshll.u32 %v6960_v27, 16  ;;  %v5084_v37 = vrot.slane %v5083_v17, 4  ;;  %v6479_v45 = vrot.slane %v9907_v56, 10  ;;  %v9969_v27 = vld [vmem:[%s8554_s11 + $0x4c] sm:$0x1] }
 0x120   : > { %7929 = vmatpush3.bf16.msra.mxu0 %v8406_v53  ;;  %7642 = vmatprep.subr.bf16.mxu1 %v8407_v60  ;;  %v8424_v53 = vld [vmem:[%s8554_s11 + $0x40] ss:$8 sps:$4 sm:$0xff]   ;;  %v5133_v56 = vshrl.u32 %v6966_v21, 16  ;;  %v5142_v17 = vshll.u32 %v9969_v27, 16 }
 0x121   : > { %7930 = vmatprep.subr.bf16.mxu0 %v8408_v34  ;;  %v2143_v57 = vrot.slane %v2142_v31, 4  ;;  %v8419_v31 = vld [vmem:[%s10426_s1 + $0x260] sm:$0xff]  }
 0x123   : > { %7643 = vmatpush3.bf16.msra.mxu1 %v8407_v60  ;;  %v9880_v60 = vld [vmem:[%s8554_s11 + $0x2c] sm:$0x1]  ;;  %v2152_v50 = vsel %vm8814_vm8, %v2143_v57, %v2151_v7  ;;  %v5108_v7 = vshll.u32 %v6962_v43, 16 }
 0x124   : > { %7931 = vmatpush3.bf16.msra.mxu0 %v8408_v34  ;;  %7652 = vmatprep.subr.bf16.mxu1 %v8409_v13  ;;  %v2134_v34 = vsel %vm8814_vm8, %v2125_v29, %v2133_v41  ;;  %v5086_v22 = vshll.u32 %v9880_v60, 16  ;;  %v5093_v29 = vrot.slane %v5091_v35, 4  ;;  %v5096_v41 = vrot.slane %v5094_v24, 5  ;;  %v9978_v35 = vld [vmem:[%s8554_s11 + $0x1c] sm:$0x1] }
 0x125   : > { %7940 = vmatprep.subr.bf16.mxu0 %v8411_v26  ;;  %v6459_v11 = vcombine.low %v2134_v34, %v2152_v50  ;;  %v5102_v50 = vrot.slane %v5100_v1, 5  ;;  %v2728_v24 = vshll.u32 %v9978_v35, 16  ;;  %v10003_v1 = vld [vmem:[%s8554_s11 + $0x54] sm:$0x1] }
 0x126   : > { %7645 = vmatmul.mubr.bf16.vlgmr.msra.gmra.mrb[0].mxu1 %v6457_v62  ;;  %v6500_v62 = vcombine.low %v2334_v20, %v2338_v3  ;;  %v5097_v23 = vor.u32 %v5096_v41, %v5093_v29  ;;  %v9958_v3 = vsel %vm8918_vm11, %v6479_v45, %v2345_v54  ;;  %v5135_v29 = vrot.slane %v5133_v56, 4 }
 0x127   : > { %7933 = vmatmul.mubr.bf16.vlgmr.msra.gmra.mrb[0].mxu0 %v8412_v28  ;;  %7653 = vmatpush3.bf16.msra.mxu1 %v8409_v13  ;;  %v5074_v13 = vrot.slane %v5072_v25, 5  ;;  %v5088_v28 = vrot.slane %v5086_v22, 5  ;;  %v6473_v22 = vld [vmem:[%s8554_s11 + $0x30] sm:$0xc] }
 0x128   : > { %7941 = vmatpush3.bf16.msra.mxu0 %v8411_v26  ;;  %7654 = vmatprep.subr.bf16.mxu1 %v8413_v19  ;;  %v9904_v26 = vld [vmem:[%s8554_s11 + $0x18] sm:$0xc]  ;;  %v5098_v48 = vrot.slane %v5097_v23, 4  ;;  %v6968_v23 = vld [vmem:[%s8554_s11 + $0x50] sm:$0xf] }
 0x129   : > { %7942 = vmatprep.subr.bf16.mxu0 %v8414_v2  ;;  %7648 = vmatprep.mubr.bf16.mxu1 %v6458_v44  ;;  %v5075_v47 = vsel %vm8602_vm5, %v5070_v46, %v5074_v13  ;;  %v5089_v51 = vsel %vm8602_vm5, %v5084_v37, %v5088_v28  ;;  %v5110_v44 = vrot.slane %v5108_v7, 5  ;;  %v5128_v13 = vshll.u32 %v9965_v32, 16  ;;  %v9974_v28 = vld [vmem:[%s8554_s11 + $0x14] sm:$0x1]  ;;  %v8428_v46 = vld [vmem:[%s10426_s1 + $0x578] sm:$0xff]  }
 0x12a   : > { %7936 = vmatprep.mubr.bf16.mxu0 %v8424_v53  ;;  %v5107_v53 = vrot.slane %v5105_v42, 4  ;;  %v6988_v57 = vcombine.low %v5075_v47, %v5089_v51  ;;  %v5103_v55 = vsel %vm8602_vm5, %v5098_v48, %v5102_v50  ;;  %v2714_v43 = vshll.u32 %v9974_v28, 16  ;;  %v8429_v47 = vld [vmem:[%s10426_s1 + $0x280] sm:$0xff]  }
 0x12b   : > { %7655 = vmatpush3.bf16.msra.mxu1 %v8413_v19  ;;  %v6478_v19 = vrot.slane %v9904_v26, 10  ;;  %v6481_v26 = vrot.slane %v6473_v22, 10  ;;  %v2357_v50 = vrot.slane %v9840_v18, 6  ;;  %v8432_v22 = vld [vmem:[%s10426_s1 + $0x588] sm:$0xff]  }
 0x12c   : > { %7943 = vmatpush3.bf16.msra.mxu0 %v8414_v2  ;;  %7656 = vmatprep.subr.bf16.mxu1 %v8415_v4  ;;  %v9926_v2 = vld [vmem:[%s8554_s11 + $0x3c] sm:$0x1]  ;;  %v5111_v40 = vor.u32 %v5110_v44, %v5107_v53  ;;  %v8430_v53 = vld [vmem:[%s10426_s1 + $0x580] sm:$0xff]  }
 0x12d   : > { %7944 = vmatprep.subr.bf16.mxu0 %v8416_v52  ;;  %v5114_v34 = vshll.u32 %v9926_v2, 16  ;;  %v9954_v20 = vsel %vm8918_vm11, %v6478_v19, %v2341_v6  ;;  %v5130_v19 = vrot.slane %v5128_v13, 5  ;;  %v2354_v44 = vsel %vm8918_vm11, %v6481_v26, %v2353_v15  ;;  %v8431_v15 = vld [vmem:[%s10426_s1 + $0x288] sm:$0xff]  }
 0x12e   : > { %7649 = vmatmul.mubr.bf16.gmra.mrb[4].mxu1 %v6459_v11  ;;  %v5112_v25 = vrot.slane %v5111_v40, 4  ;;  %v6501_v7 = vcombine.low %v9954_v20, %v9958_v3  ;;  %v5150_v40 = vshll.u32 %v6968_v23, 16  ;;  %v5354_v13 = vrot.slane %v9876_v59, 5 }
 0x12f   : > { %7937 = vmatmul.mubr.bf16.gmra.mrb[4].mxu0 %v8426_v10  ;;  %7657 = vmatpush3.bf16.msra.mxu1 %v8415_v4  ;;  %v5116_v49 = vrot.slane %v5114_v34, 5  ;;  %v8425_v4 = vld [vmem:[%s10426_s1 + $0x570] sm:$0xff]   ;;  %v6964_v10 = vld [vmem:[%s8554_s11 + $0x40] sm:$0xf]  ;;  %v6970_v34 = vld [vmem:[%s8554_s11 + $0x58] sm:$0xf] }
 0x130   : > { %7945 = vmatpush3.bf16.msra.mxu0 %v8416_v52  ;;  %7658 = vmatprep.subr.bf16.mxu1 %v8417_v12  ;;  %v6472_v52 = vld [vmem:[%s8554_s11 + $0x28] sm:$0xc]  ;;  %v5119_v11 = vshrl.u32 %v6964_v10, 16  ;;  %v5122_v39 = vshll.u32 %v6964_v10, 16  ;;  %v5164_v3 = vshll.u32 %v6970_v34, 16  ;;  %v5358_v26 = vrot.slane %v9880_v60, 5 }
 0x131   : > { %7946 = vmatprep.subr.bf16.mxu0 %v8418_v58  ;;  %7668 = vmatprep.mubr.bf16.mxu1 %v6500_v62  ;;  %v5117_v0 = vsel %vm8602_vm5, %v5112_v25, %v5116_v49  ;;  %v8427_v62 = vld [vmem:[%s10426_s1 + $0x278] sm:$0xff]   ;;  %v5156_v25 = vshll.u32 %v10003_v1, 16  ;;  %v5161_v49 = vshrl.u32 %v6970_v34, 16 }
 0x132   : > { %7956 = vmatprep.mubr.bf16.mxu0 %v6988_v57  ;;  %v5121_v42 = vrot.slane %v5119_v11, 4  ;;  %v5124_v37 = vrot.slane %v5122_v39, 5  ;;  %v6989_v51 = vcombine.low %v5103_v55, %v5117_v0  ;;  %v6475_v57 = vld [vmem:[%s8554_s11 + $0x40] sm:$0xc]  ;;  %v2361_v0 = vrot.slane %v9843_v30, 6 }
 0x133   : > { %7659 = vmatpush3.bf16.msra.mxu1 %v8417_v12  ;;  %v6480_v12 = vrot.slane %v6472_v52, 10  ;;  %v6483_v20 = vrot.slane %v6475_v57, 10  ;;  %v5163_v18 = vrot.slane %v5161_v49, 4  ;;  %v5158_v11 = vrot.slane %v5156_v25, 5  ;;  %v8435_v57 = vld [vmem:[%s10426_s1 + $0x298] sm:$0xff]   ;;  %v8438_v25 = vld [vmem:[%s10426_s1 + $0x5a0] sm:$0xff]  }
 0x134   : > { %7947 = vmatpush3.bf16.msra.mxu0 %v8418_v58  ;;  %7660 = vmatprep.subr.bf16.mxu1 %v8419_v31  ;;  %v5136_v58 = vshll.u32 %v6966_v21, 16  ;;  %v5125_v45 = vor.u32 %v5124_v37, %v5121_v42  ;;  %v5166_v39 = vrot.slane %v5164_v3, 5  ;;  %v10032_v42 = vld [vmem:[%s8554_s11 + $0x28] sm:$0xe]  ;;  %v8445_v34 = vld [vmem:[%s8554_s11 + $0x10] ss:$8 sps:$4 sm:$0xff]  }
 0x135   : > { %7948 = vmatprep.subr.bf16.mxu0 %v8420_v9  ;;  %v9998_v6 = vsel %vm8918_vm11, %v6480_v12, %v2349_v16  ;;  %v5152_v16 = vrot.slane %v5150_v40, 5  ;;  %v2362_v60 = vsel %vm8918_vm11, %v6483_v20, %v2361_v0  ;;  %v8437_v40 = vld [vmem:[%s10426_s1 + $0x2a0] sm:$0xff]  }
 0x136   : > { %v5138_v41 = vrot.slane %v5136_v58, 5  ;;  %v5126_v48 = vrot.slane %v5125_v45, 4  ;;  %v6502_v56 = vcombine.low %v9998_v6, %v2354_v44  ;;  %v5167_v30 = vor.u32 %v5166_v39, %v5163_v18  ;;  %v8476_v6 = vld [vmem:[%s8554_s11 + $0x2c] sm:$0x1]  ;;  %v10099_v20 = vld [vmem:[%s8554_s11 + $0x40] sm:$0xe] }
 0x137   : > { %7661 = vmatpush3.bf16.msra.mxu1 %v8419_v31  ;;  %v5144_v31 = vrot.slane %v5142_v17, 5  ;;  %v2756_v45 = vshll.u32 %v8476_v6, 16  ;;  %v5374_v18 = vrot.slane %v9969_v27, 5  ;;  %v7012_v0 = vrot.slane %v10099_v20, 9 }
 0x138   : > { %7949 = vmatpush3.bf16.msra.mxu0 %v8420_v9  ;;  %7662 = vmatprep.subr.bf16.mxu1 %v8421_v63  ;;  %v6474_v9 = vld [vmem:[%s8554_s11 + $0x38] sm:$0xc]  ;;  %v5139_v54 = vor.u32 %v5138_v41, %v5135_v29  ;;  %v5131_v10 = vsel %vm8602_vm5, %v5126_v48, %v5130_v19  ;;  %v7009_v19 = vrot.slane %v10032_v42, 9  ;;  %v8475_v29 = vld [vmem:[%s8554_s11 + $0x24] sm:$0x1] }
 0x139   : > { %7950 = vmatprep.subr.bf16.mxu0 %v8422_v38  ;;  %v2742_v41 = vshll.u32 %v8475_v29, 16  ;;  %v10077_v48 = vld [vmem:[%s8554_s11 + $0x30] sm:$0xe]  ;;  %v6550_v29 = vld [vmem:[%s8554_s11 + $0x18] sm:$0xf] }
 0x13a   : > { %v5140_v52 = vrot.slane %v5139_v54, 4  ;;  %v5359_v35 = vsel %vm8590_vm4, %v7009_v19, %v5358_v26  ;;  %v8436_v54 = vld [vmem:[%s10426_s1 + $0x598] sm:$0xff]   ;;  %v6548_v19 = vld [vmem:[%s8554_s11 + $0x10] sm:$0xf]  ;;  %v2722_v6 = vshll.u32 %v6550_v29, 16 }
 0x13b   : > { %7663 = vmatpush3.bf16.msra.mxu1 %v8421_v63  ;;  %v10009_v63 = vld [vmem:[%s8554_s11 + $0x5c] sm:$0x1]  ;;  %v10067_v44 = vrot.slane %v2742_v41, 5  ;;  %v10148_v41 = vld [vmem:[%s8554_s11 + $0x24] sm:$0x3] }
 0x13c   : > { %7951 = vmatpush3.bf16.msra.mxu0 %v8422_v38  ;;  %7664 = vmatprep.subr.bf16.mxu1 %v8423_v61  ;;  %v5147_v38 = vshrl.u32 %v6968_v23, 16  ;;  %v5145_v55 = vsel %vm8602_vm5, %v5140_v52, %v5144_v31  ;;  %v5170_v12 = vshll.u32 %v10009_v63, 16  ;;  %v8433_v31 = vld [vmem:[%s10426_s1 + $0x290] sm:$0xff]   ;;  %v5362_v52 = vrot.slane %v9914_v8, 5 }
 0x13d   : > { %7952 = vmatprep.subr.bf16.mxu0 %v8425_v4  ;;  %v6990_v58 = vcombine.low %v5131_v10, %v5145_v55  ;;  %v5370_v8 = vrot.slane %v9965_v32, 5  ;;  %v10103_v55 = vld [vmem:[%s8554_s11 + $0x48] sm:$0xe]  ;;  %v8441_v32 = vld [vmem:[%s10426_s1 + $0x2b0] sm:$0xff]  }
 0x13f   : > { %7665 = vmatpush3.bf16.msra.mxu1 %v8423_v61  ;;  %v6482_v61 = vrot.slane %v6474_v9, 10  ;;  %v8434_v9 = vld [vmem:[%s10426_s1 + $0x590] sm:$0xff]   ;;  %v10128_v26 = vsel %vm8590_vm4, %v7012_v0, %v5370_v8  ;;  %v6554_v8 = vld [vmem:[%s8554_s11 + $0x28] sm:$0xf] }
 0x140   : > { %7953 = vmatpush3.bf16.msra.mxu0 %v8425_v4  ;;  %7666 = vmatprep.subr.bf16.mxu1 %v8427_v62  ;;  %v5149_v4 = vrot.slane %v5147_v38, 4 }
 0x141   : > { %7954 = vmatprep.subr.bf16.mxu0 %v8428_v46  ;;  %v2358_v59 = vsel %vm8918_vm11, %v6482_v61, %v2357_v50  ;;  %v10080_v50 = vld [vmem:[%s8554_s11 + $0x38] sm:$0xe] }
 0x142   : > { %v5153_v21 = vor.u32 %v5152_v16, %v5149_v4  ;;  %v6503_v23 = vcombine.low %v2358_v59, %v2362_v60  ;;  %v8439_v4 = vld [vmem:[%s10426_s1 + $0x2a8] sm:$0xff]   ;;  %v7011_v10 = vrot.slane %v10080_v50, 9 }
 0x143   : > { %7667 = vmatpush3.bf16.msra.mxu1 %v8427_v62  ;;  %v5172_v62 = vrot.slane %v5170_v12, 5  ;;  %v8440_v16 = vld [vmem:[%s10426_s1 + $0x5a8] sm:$0xff]   ;;  %v8442_v12 = vld [vmem:[%s10426_s1 + $0x5b0] sm:$0xff]  }
 0x144   : > { %7955 = vmatpush3.bf16.msra.mxu0 %v8428_v46  ;;  %7676 = vmatprep.subr.bf16.mxu1 %v8429_v47  ;;  %v5154_v17 = vrot.slane %v5153_v21, 4  ;;  %v10029_v46 = vld [vmem:[%s8554_s11 + $0x20] sm:$0xe]  ;;  %v10106_v21 = vrot.slane %v2756_v45, 5  ;;  %v10161_v45 = vld [vmem:[%s8554_s11 + $0x2c] sm:$0x3] }
 0x145   : > { %7964 = vmatprep.subr.bf16.mxu0 %v8430_v53  ;;  %v7008_v37 = vrot.slane %v10029_v46, 9  ;;  %v5547_v49 = vshrl.u32 %v10029_v46, 16  ;;  %v5550_v61 = vshll.u32 %v10029_v46, 16  ;;  %v5382_v46 = vrot.slane %v10009_v63, 5  ;;  %v8444_v63 = vld [vmem:[%s10426_s1 + $0x5b8] sm:$0xff]  }
 0x146   : > { %7669 = vmatmul.mubr.bf16.vlgmr.msra.gmra.mrb[0].mxu1 %v6501_v7  ;;  %v10051_v7 = vrot.slane %v2714_v43, 5 }
 0x147   : > { %7957 = vmatmul.mubr.bf16.vlgmr.msra.gmra.mrb[0].mxu0 %v6989_v51  ;;  %7677 = vmatpush3.bf16.msra.mxu1 %v8429_v47  ;;  %v5159_v47 = vsel %vm8602_vm5, %v5154_v17, %v5158_v11  ;;  %v10055_v51 = vrot.slane %v2728_v24, 5  ;;  %v5355_v43 = vsel %vm8590_vm4, %v7008_v37, %v5354_v13  ;;  %v5549_v3 = vrot.slane %v5547_v49, 5  ;;  %v10124_v13 = vld [vmem:[%s8554_s11 + $0x50] sm:$0xe] }
 0x148   : > { %7965 = vmatpush3.bf16.msra.mxu0 %v8430_v53  ;;  %7678 = vmatprep.subr.bf16.mxu1 %v8431_v15  ;;  %v5168_v53 = vrot.slane %v5167_v30, 4  ;;  %v7032_v38 = vcombine.low %v5355_v43, %v5359_v35  ;;  %v7013_v11 = vrot.slane %v10103_v55, 9  ;;  %v7014_v17 = vrot.slane %v10124_v13, 9 }
 0x149   : > { %7966 = vmatprep.subr.bf16.mxu0 %v8432_v22  ;;  %7672 = vmatprep.mubr.bf16.mxu1 %v6502_v56 }
 0x14a   : > { %7960 = vmatprep.mubr.bf16.mxu0 %v6990_v58  ;;  %v5173_v28 = vsel %vm8602_vm5, %v5168_v53, %v5172_v62  ;;  %v10132_v56 = vsel %vm8590_vm4, %v7013_v11, %v5374_v18  ;;  %v10135_v58 = vld [vmem:[%s8554_s11 + $0x58] sm:$0xe]  ;;  %v5378_v62 = vrot.slane %v10003_v1, 5  ;;  %v2719_v53 = vshrl.u32 %v6550_v29, 16 }
 0x14b   : > { %7679 = vmatpush3.bf16.msra.mxu1 %v8431_v15  ;;  %v6991_v24 = vcombine.low %v5159_v47, %v5173_v28  ;;  %v7010_v15 = vrot.slane %v10077_v48, 9  ;;  %v7015_v30 = vrot.slane %v10135_v58, 9  ;;  %v7034_v37 = vcombine.low %v10128_v26, %v10132_v56  ;;  %v8443_v1 = vld [vmem:[%s10426_s1 + $0x2b8] sm:$0xff]  }
 0x14c   : > { %7967 = vmatpush3.bf16.msra.mxu0 %v8432_v22  ;;  %7680 = vmatprep.subr.bf16.mxu1 %v8433_v31  ;;  %v5366_v22 = vrot.slane %v9926_v2, 5  ;;  %v5552_v2 = vrot.slane %v5550_v61, 6  ;;  %v2708_v47 = vshll.u32 %v6548_v19, 16  ;;  %v5559_v28 = vshll.u32 %v10148_v41, 16  ;;  %v8447_v61 = vld [vmem:[%s10426_s1 + $0x5c0] sm:$0xff]  }
 0x14d   : > { %7968 = vmatprep.subr.bf16.mxu0 %v8434_v9  ;;  %v10117_v27 = vsel %vm8590_vm4, %v7010_v15, %v5362_v52  ;;  %v5568_v52 = vshll.u32 %v10032_v42, 16  ;;  %v10182_v18 = vsel %vm8590_vm4, %v7015_v30, %v5382_v46  ;;  %v8450_v30 = vld [vmem:[%s10426_s1 + $0x5c8] sm:$0xff]   ;;  %v8459_v46 = vld [vmem:[%s8554_s11 + $0x30] ss:$8 sps:$4 sm:$0xff]  }
 0x14e   : > { %7673 = vmatmul.mubr.bf16.gmra.mrb[4].mxu1 %v6503_v23  ;;  %v10121_v39 = vsel %vm8590_vm4, %v7011_v10, %v5366_v22  ;;  %v5553_v59 = vor.u32 %v5552_v2, %v5549_v3  ;;  %v5556_v23 = vshrl.u32 %v10148_v41, 16  ;;  %v2710_v35 = vrot.slane %v2708_v47, 5 }
 0x14f   : > { %7961 = vmatmul.mubr.bf16.gmra.mrb[4].mxu0 %v6991_v24  ;;  %7681 = vmatpush3.bf16.msra.mxu1 %v8433_v31  ;;  %v7033_v60 = vcombine.low %v10117_v27, %v10121_v39  ;;  %v10158_v31 = vsel %vm8590_vm4, %v7014_v17, %v5378_v62  ;;  %v2721_v24 = vrot.slane %v2719_v53, 4  ;;  %v5561_v49 = vrot.slane %v5559_v28, 6 }
 0x150   : > { %7969 = vmatpush3.bf16.msra.mxu0 %v8434_v9  ;;  %7682 = vmatprep.subr.bf16.mxu1 %v8435_v57  ;;  %v2705_v9 = vshrl.u32 %v6548_v19, 16  ;;  %v5574_v22 = vshrl.u32 %v10161_v45, 16  ;;  %v5577_v10 = vshll.u32 %v10161_v45, 16  ;;  %v5583_v28 = vshrl.u32 %v10077_v48, 16 }
 0x151   : > { %7970 = vmatprep.subr.bf16.mxu0 %v8436_v54  ;;  %7692 = vmatprep.mubr.bf16.mxu1 %v8445_v34  ;;  %v6552_v34 = vld [vmem:[%s8554_s11 + $0x20] sm:$0xf] }
 0x152   : > { %7980 = vmatprep.mubr.bf16.mxu0 %v7032_v38  ;;  %v2707_v43 = vrot.slane %v2705_v9, 4  ;;  %v8446_v38 = vld [vmem:[%s10426_s1 + $0x2c0] sm:$0xff]   ;;  %v2733_v0 = vshrl.u32 %v6552_v34, 16  ;;  %v2736_v11 = vshll.u32 %v6552_v34, 16  ;;  %v2747_v9 = vshrl.u32 %v6554_v8, 16 }
 0x153   : > { %7683 = vmatpush3.bf16.msra.mxu1 %v8435_v57  ;;  %v10163_v57 = vrot.slane %v5553_v59, 4  ;;  %v5585_v34 = vrot.slane %v5583_v28, 5  ;;  %v5619_v28 = vshrl.u32 %v10099_v20, 16 }
 0x154   : > { %7971 = vmatpush3.bf16.msra.mxu0 %v8436_v54  ;;  %7684 = vmatprep.subr.bf16.mxu1 %v8437_v40  ;;  %v5565_v54 = vshrl.u32 %v10032_v42, 16  ;;  %v5570_v42 = vrot.slane %v5568_v52, 6  ;;  %v2735_v19 = vrot.slane %v2733_v0, 4 }
 0x155   : > { %7972 = vmatprep.subr.bf16.mxu0 %v8438_v25 }
 0x156   : > { %v5567_v15 = vrot.slane %v5565_v54, 5  ;;  %v8452_v54 = vld [vmem:[%s10426_s1 + $0x5d0] sm:$0xff]  }
 0x157   : > { %7685 = vmatpush3.bf16.msra.mxu1 %v8437_v40  ;;  %v2724_v40 = vrot.slane %v2722_v6, 5  ;;  %v2750_v6 = vshll.u32 %v6554_v8, 16  ;;  %v6558_v8 = vld [vmem:[%s8554_s11 + $0x38] sm:$0xf] }
 0x158   : > { %7973 = vmatpush3.bf16.msra.mxu0 %v8438_v25  ;;  %7686 = vmatprep.subr.bf16.mxu1 %v8439_v4  ;;  %v5558_v25 = vrot.slane %v5556_v23, 5  ;;  %v5571_v59 = vor.u32 %v5570_v42, %v5567_v15  ;;  %v10198_v23 = vld [vmem:[%s8554_s11 + $0x34] sm:$0x3]  ;;  %v6556_v15 = vld [vmem:[%s8554_s11 + $0x30] sm:$0xf] }
 0x159   : > { %7974 = vmatprep.subr.bf16.mxu0 %v8440_v16  ;;  %v2725_v3 = vor.u32 %v2724_v40, %v2721_v24  ;;  %v5586_v24 = vshll.u32 %v10077_v48, 16  ;;  %v10221_v48 = vld [vmem:[%s8554_s11 + $0x3c] sm:$0x3]  ;;  %v5595_v52 = vshll.u32 %v10198_v23, 16 }
 0x15a   : > { %v5562_v62 = vor.u32 %v5561_v49, %v5558_v25  ;;  %v5572_v53 = vrot.slane %v5571_v59, 4  ;;  %v5592_v49 = vshrl.u32 %v10198_v23, 16  ;;  %v5613_v42 = vshll.u32 %v10221_v48, 16 }
 0x15b   : > { %7687 = vmatpush3.bf16.msra.mxu1 %v8439_v4  ;;  %v8448_v4 = vld [vmem:[%s8554_s11 + $0x20] ss:$8 sps:$4 sm:$0xff]   ;;  %v2726_v17 = vrot.slane %v2725_v3, 4  ;;  %v5588_v25 = vrot.slane %v5586_v24, 6 }
 0x15c   : > { %7975 = vmatpush3.bf16.msra.mxu0 %v8440_v16  ;;  %7688 = vmatprep.subr.bf16.mxu1 %v8441_v32  ;;  %v2711_v16 = vor.u32 %v2710_v35, %v2707_v43  ;;  %v2749_v35 = vrot.slane %v2747_v9, 4  ;;  %v10216_v27 = vsel %vm8814_vm8, %v10163_v57, %v5562_v62  ;;  %v7035_v57 = vcombine.low %v10158_v31, %v10182_v18  ;;  %v8456_v9 = vld [vmem:[%s10426_s1 + $0x5e0] sm:$0xff]  }
 0x15d   : > { %7976 = vmatprep.subr.bf16.mxu0 %v8442_v12  ;;  %v2731_v47 = vsel %vm8602_vm5, %v2726_v17, %v10055_v51  ;;  %v8451_v51 = vld [vmem:[%s10426_s1 + $0x2d0] sm:$0xff]   ;;  %v5610_v31 = vshrl.u32 %v10221_v48, 16  ;;  %v5594_v0 = vrot.slane %v5592_v49, 5  ;;  %v5615_v17 = vrot.slane %v5613_v42, 6  ;;  %v6562_v42 = vld [vmem:[%s8554_s11 + $0x48] sm:$0xf] }
 0x15e   : > { %v2712_v2 = vrot.slane %v2711_v16, 4  ;;  %v5604_v16 = vshll.u32 %v10080_v50, 16  ;;  %v2764_v62 = vshll.u32 %v6556_v15, 16 }
 0x15f   : > { %7689 = vmatpush3.bf16.msra.mxu1 %v8441_v32  ;;  %v5576_v32 = vrot.slane %v5574_v22, 5  ;;  %v8453_v22 = vld [vmem:[%s10426_s1 + $0x2d8] sm:$0xff]  }
 0x160   : > { %7977 = vmatpush3.bf16.msra.mxu0 %v8442_v12  ;;  %7690 = vmatprep.subr.bf16.mxu1 %v8443_v1  ;;  %v5579_v12 = vrot.slane %v5577_v10, 6  ;;  %v2717_v29 = vsel %vm8602_vm5, %v2712_v2, %v10051_v7  ;;  %v8454_v10 = vld [vmem:[%s10426_s1 + $0x5d8] sm:$0xff]   ;;  %v5606_v3 = vrot.slane %v5604_v16, 6  ;;  %v5597_v2 = vrot.slane %v5595_v52, 6  ;;  %v8458_v52 = vld [vmem:[%s10426_s1 + $0x5e8] sm:$0xff]  }
 0x161   : > { %7978 = vmatprep.subr.bf16.mxu0 %v8444_v63  ;;  %v10204_v7 = vcombine.low %v2717_v29, %v2731_v47  ;;  %v8455_v29 = vld [vmem:[%s10426_s1 + $0x2e0] sm:$0xff]  }
 0x162   : > { %v5598_v47 = vor.u32 %v5597_v2, %v5594_v0  ;;  %v8461_v2 = vld [vmem:[%s10426_s1 + $0x2f0] sm:$0xff]  }
 0x163   : > { %7691 = vmatpush3.bf16.msra.mxu1 %v8443_v1  ;;  %v5580_v1 = vor.u32 %v5579_v12, %v5576_v32  ;;  %v10247_v32 = vrot.slane %v5610_v31, 5 }
 0x164   : > { %7979 = vmatpush3.bf16.msra.mxu0 %v8444_v63  ;;  %7700 = vmatprep.subr.bf16.mxu1 %v8446_v38  ;;  %v2738_v63 = vrot.slane %v2736_v11, 5 }
 0x165   : > { %7988 = vmatprep.subr.bf16.mxu0 %v8447_v61  ;;  %v5581_v39 = vsel %vm8814_vm8, %v5572_v53, %v5580_v1  ;;  %v2766_v1 = vrot.slane %v2764_v62, 5 }
 0x166   : > { %7693 = vmatmul.mubr.bf16.vlgmr.msra.gmra.mrb[0].mxu1 %v8448_v4  ;;  %v2739_v43 = vor.u32 %v2738_v63, %v2735_v19  ;;  %v5601_v4 = vshrl.u32 %v10080_v50, 16  ;;  %v7068_v26 = vcombine.low %v10216_v27, %v5581_v39  ;;  %v2775_v63 = vshrl.u32 %v6558_v8, 16 }
 0x167   : > { %7981 = vmatmul.mubr.bf16.vlgmr.msra.gmra.mrb[0].mxu0 %v7033_v60  ;;  %7701 = vmatpush3.bf16.msra.mxu1 %v8446_v38  ;;  %v2752_v60 = vrot.slane %v2750_v6, 5  ;;  %v8460_v38 = vld [vmem:[%s8554_s11 + $0x40] ss:$8 sps:$4 sm:$0xff]   ;;  %v2778_v6 = vshll.u32 %v6558_v8, 16 }
 0x168   : > { %7989 = vmatpush3.bf16.msra.mxu0 %v8447_v61  ;;  %7702 = vmatprep.subr.bf16.mxu1 %v8449_v33  ;;  %v2740_v40 = vrot.slane %v2739_v43, 4  ;;  %v5603_v18 = vrot.slane %v5601_v4, 5  ;;  %v5616_v43 = vor.u32 %v5615_v17, %v10247_v32  ;;  %v2777_v24 = vrot.slane %v2775_v63, 4  ;;  %v8462_v32 = vld [vmem:[%s10426_s1 + $0x5f0] sm:$0xff]  }
 0x169   : > { %7990 = vmatprep.subr.bf16.mxu0 %v8450_v30  ;;  %7696 = vmatprep.mubr.bf16.mxu1 %v8459_v46  ;;  %v2753_v61 = vor.u32 %v2752_v60, %v2749_v35  ;;  %v10256_v46 = vld [vmem:[%s8554_s11 + $0x44] sm:$0x3]  ;;  %v2780_v39 = vrot.slane %v2778_v6, 5  ;;  %v8478_v60 = vld [vmem:[%s8554_s11 + $0x3c] sm:$0x1]  ;;  %v5640_v4 = vshll.u32 %v10103_v55, 16 }
 0x16a   : > { %7984 = vmatprep.mubr.bf16.mxu0 %v7034_v37  ;;  %v2745_v56 = vsel %vm8602_vm5, %v2740_v40, %v10067_v44  ;;  %v5589_v37 = vor.u32 %v5588_v25, %v5585_v34  ;;  %v2761_v44 = vshrl.u32 %v6556_v15, 16  ;;  %v5607_v11 = vor.u32 %v5606_v3, %v5603_v18  ;;  %v6560_v15 = vld [vmem:[%s8554_s11 + $0x40] sm:$0xf] }
 0x16b   : > { %7703 = vmatpush3.bf16.msra.mxu1 %v8449_v33  ;;  %v2754_v50 = vrot.slane %v2753_v61, 4  ;;  %v8477_v33 = vld [vmem:[%s8554_s11 + $0x34] sm:$0x1]  ;;  %v2784_v34 = vshll.u32 %v8478_v60, 16  ;;  %v5628_v49 = vshrl.u32 %v10256_v46, 16  ;;  %v5637_v61 = vshrl.u32 %v10103_v55, 16 }
 0x16c   : > { %7991 = vmatpush3.bf16.msra.mxu0 %v8450_v30  ;;  %7704 = vmatprep.subr.bf16.mxu1 %v8451_v51  ;;  %v2763_v19 = vrot.slane %v2761_v44, 4  ;;  %v2770_v30 = vshll.u32 %v8477_v33, 16  ;;  %v5608_v53 = vrot.slane %v5607_v11, 4  ;;  %v2789_v0 = vshrl.u32 %v6560_v15, 16 }
 0x16d   : > { %7992 = vmatprep.subr.bf16.mxu0 %v8452_v54  ;;  %v2759_v12 = vsel %vm8602_vm5, %v2754_v50, %v10106_v21  ;;  %v5590_v21 = vrot.slane %v5589_v37, 4  ;;  %v10294_v31 = vrot.slane %v2784_v34, 5  ;;  %v5639_v8 = vrot.slane %v5637_v61, 5 }
 0x16e   : > { %7697 = vmatmul.mubr.bf16.gmra.mrb[4].mxu1 %v8460_v38  ;;  %v10252_v59 = vcombine.low %v2745_v56, %v2759_v12  ;;  %v2767_v35 = vor.u32 %v2766_v1, %v2763_v19  ;;  %v10271_v27 = vrot.slane %v2770_v30, 5  ;;  %v5621_v38 = vrot.slane %v5619_v28, 5  ;;  %v8479_v30 = vld [vmem:[%s8554_s11 + $0x44] sm:$0x1]  ;;  %v8480_v28 = vld [vmem:[%s8554_s11 + $0x4c] sm:$0x1] }
 0x16f   : > { %7985 = vmatmul.mubr.bf16.gmra.mrb[4].mxu0 %v7035_v57  ;;  %7705 = vmatpush3.bf16.msra.mxu1 %v8451_v51  ;;  %v10268_v51 = vld [vmem:[%s8554_s11 + $0x4c] sm:$0x3]  ;;  %v2781_v57 = vor.u32 %v2780_v39, %v2777_v24  ;;  %v5642_v50 = vrot.slane %v5640_v4, 6  ;;  %v10298_v55 = vsel %vm8814_vm8, %v5608_v53, %v5616_v43  ;;  %v2792_v17 = vshll.u32 %v6560_v15, 16  ;;  %v8463_v24 = vld [vmem:[%s10426_s1 + $0x2f8] sm:$0xff]  }
 0x170   : > { %7993 = vmatpush3.bf16.msra.mxu0 %v8452_v54  ;;  %7706 = vmatprep.subr.bf16.mxu1 %v8453_v22  ;;  %v5622_v54 = vshll.u32 %v10099_v20, 16  ;;  %v10277_v40 = vrot.slane %v2767_v35, 4  ;;  %v5631_v20 = vshll.u32 %v10256_v46, 16  ;;  %v5646_v16 = vshrl.u32 %v10268_v51, 16 }
 0x171   : > { %7994 = vmatprep.subr.bf16.mxu0 %v8454_v10  ;;  %7716 = vmatprep.mubr.bf16.mxu1 %v10204_v7  ;;  %v8457_v7 = vld [vmem:[%s10426_s1 + $0x2e8] sm:$0xff]   ;;  %v10292_v37 = vrot.slane %v2781_v57, 4  ;;  %v5649_v3 = vshll.u32 %v10268_v51, 16  ;;  %v5643_v11 = vor.u32 %v5642_v50, %v5639_v8  ;;  %v2791_v33 = vrot.slane %v2789_v0, 4 }
 0x172   : > { %8004 = vmatprep.mubr.bf16.mxu0 %v7068_v26  ;;  %v5624_v25 = vrot.slane %v5622_v54, 6  ;;  %v5630_v26 = vrot.slane %v5628_v49, 5  ;;  %v5633_v56 = vrot.slane %v5631_v20, 6  ;;  %v5648_v18 = vrot.slane %v5646_v16, 5  ;;  %v8464_v54 = vld [vmem:[%s10426_s1 + $0x5f8] sm:$0xff]  }
 0x173   : > { %7707 = vmatpush3.bf16.msra.mxu1 %v8453_v22  ;;  %v10290_v22 = vsel %vm8814_vm8, %v5590_v21, %v5598_v47  ;;  %v2773_v44 = vsel %vm8602_vm5, %v10277_v40, %v10271_v27  ;;  %v5651_v19 = vrot.slane %v5649_v3, 6  ;;  %v10314_v21 = vld [vmem:[%s8554_s11 + $0x54] sm:$0x3]  ;;  %v2787_v1 = vsel %vm8602_vm5, %v10292_v37, %v10294_v31 }
 0x174   : > { %7995 = vmatpush3.bf16.msra.mxu0 %v8454_v10  ;;  %7708 = vmatprep.subr.bf16.mxu1 %v8455_v29  ;;  %v5625_v10 = vor.u32 %v5624_v25, %v5621_v38  ;;  %v5634_v62 = vor.u32 %v5633_v56, %v5630_v26  ;;  %v5644_v63 = vrot.slane %v5643_v11, 4  ;;  %v2803_v47 = vshrl.u32 %v6562_v42, 16  ;;  %v10337_v25 = vld [vmem:[%s8554_s11 + $0x5c] sm:$0x3] }
 0x175   : > { %7996 = vmatprep.subr.bf16.mxu0 %v8456_v9  ;;  %v5652_v53 = vor.u32 %v5651_v19, %v5648_v18  ;;  %v2806_v6 = vshll.u32 %v6562_v42, 16  ;;  %v2812_v43 = vshll.u32 %v8480_v28, 16  ;;  %v5655_v35 = vshrl.u32 %v10124_v13, 16 }
 0x176   : > { %v5626_v12 = vrot.slane %v5625_v10, 4  ;;  %v2805_v39 = vrot.slane %v2803_v47, 4  ;;  %v5658_v60 = vshll.u32 %v10124_v13, 16  ;;  %v5664_v34 = vshrl.u32 %v10314_v21, 16  ;;  %v8465_v10 = vld [vmem:[%s10426_s1 + $0x600] sm:$0xff]  }
 0x177   : > { %7709 = vmatpush3.bf16.msra.mxu1 %v8455_v29  ;;  %v2798_v29 = vshll.u32 %v8479_v30, 16  ;;  %v2808_v40 = vrot.slane %v2806_v6, 5  ;;  %v5657_v49 = vrot.slane %v5655_v35, 5  ;;  %v5653_v20 = vsel %vm8814_vm8, %v5644_v63, %v5652_v53  ;;  %v7085_v30 = vld [vmem:[%s8554_s11 + $0x48] sm:$0xc] }
 0x178   : > { %7997 = vmatpush3.bf16.msra.mxu0 %v8456_v9  ;;  %7710 = vmatprep.subr.bf16.mxu1 %v8457_v7  ;;  %v2794_v9 = vrot.slane %v2792_v17, 5  ;;  %v10332_v38 = vsel %vm8814_vm8, %v5626_v12, %v5634_v62  ;;  %v5660_v57 = vrot.slane %v5658_v60, 6  ;;  %v5666_v61 = vrot.slane %v5664_v34, 5  ;;  %v7081_v12 = vld [vmem:[%s8554_s11 + $0x28] sm:$0xc]  ;;  %v8469_v34 = vld [vmem:[%s10426_s1 + $0x620] sm:$0xff]  }
 0x179   : > { %7998 = vmatprep.subr.bf16.mxu0 %v8458_v52  ;;  %v2809_v13 = vor.u32 %v2808_v40, %v2805_v39  ;;  %v5667_v4 = vshll.u32 %v10314_v21, 16  ;;  %v5673_v16 = vshrl.u32 %v10135_v58, 16  ;;  %v5676_v15 = vshll.u32 %v10135_v58, 16  ;;  %v7082_v40 = vld [vmem:[%s8554_s11 + $0x30] sm:$0xc] }
 0x17a   : > { %v2795_v27 = vor.u32 %v2794_v9, %v2791_v33  ;;  %v5661_v56 = vor.u32 %v5660_v57, %v5657_v49  ;;  %v5682_v37 = vshrl.u32 %v10337_v25, 16  ;;  %v5685_v31 = vshll.u32 %v10337_v25, 16  ;;  %v7084_v33 = vld [vmem:[%s8554_s11 + $0x40] sm:$0xc]  ;;  %v7083_v49 = vld [vmem:[%s8554_s11 + $0x38] sm:$0xc] }
 0x17b   : > { %7711 = vmatpush3.bf16.msra.mxu1 %v8457_v7  ;;  %v10334_v7 = vrot.slane %v2798_v29, 5  ;;  %v2810_v8 = vrot.slane %v2809_v13, 4  ;;  %v5669_v50 = vrot.slane %v5667_v4, 6  ;;  %v5675_v18 = vrot.slane %v5673_v16, 5 }
 0x17c   : > { %7999 = vmatpush3.bf16.msra.mxu0 %v8458_v52  ;;  %7712 = vmatprep.subr.bf16.mxu1 %v8461_v2  ;;  %v2814_v52 = vrot.slane %v2812_v43, 5  ;;  %v2796_v26 = vrot.slane %v2795_v27, 4  ;;  %v5678_v58 = vrot.slane %v5676_v15, 6  ;;  %v7069_v3 = vcombine.low %v10290_v22, %v10298_v55  ;;  %v8466_v22 = vld [vmem:[%s10426_s1 + $0x608] sm:$0xff]   ;;  %v8468_v27 = vld [vmem:[%s10426_s1 + $0x618] sm:$0xff]  }
 0x17d   : > { %8000 = vmatprep.subr.bf16.mxu0 %v8462_v32  ;;  %v6582_v42 = vcombine.low %v2773_v44, %v2787_v1  ;;  %v5684_v0 = vrot.slane %v5682_v37, 5  ;;  %v7070_v11 = vcombine.low %v10332_v38, %v5653_v20  ;;  %v5662_v17 = vrot.slane %v5661_v56, 4  ;;  %v8470_v38 = vld [vmem:[%s10426_s1 + $0x628] sm:$0xff]   ;;  %v7086_v20 = vld [vmem:[%s8554_s11 + $0x50] sm:$0xc]  ;;  %v8472_v56 = vld [vmem:[%s10426_s1 + $0x638] sm:$0xff]  }
 0x17e   : > { %v5670_v62 = vor.u32 %v5669_v50, %v5666_v61  ;;  %v5679_v19 = vor.u32 %v5678_v58, %v5675_v18  ;;  %v2801_v55 = vsel %vm8602_vm5, %v2796_v26, %v10334_v7  ;;  %v2815_v44 = vsel %vm8602_vm5, %v2810_v8, %v2814_v52  ;;  %v8471_v7 = vld [vmem:[%s10426_s1 + $0x630] sm:$0xff]   ;;  %v7087_v52 = vld [vmem:[%s8554_s11 + $0x58] sm:$0xc] }
 0x17f   : > { %7713 = vmatpush3.bf16.msra.mxu1 %v8461_v2  ;;  %v5687_v2 = vrot.slane %v5685_v31, 6  ;;  %v5870_v9 = vrot.slane %v10148_v41, 6  ;;  %v7089_v47 = vrot.slane %v7081_v12, 10  ;;  %v5874_v53 = vrot.slane %v10161_v45, 6  ;;  %v8467_v45 = vld [vmem:[%s10426_s1 + $0x610] sm:$0xff]  }
 0x180   : > { %8001 = vmatpush3.bf16.msra.mxu0 %v8462_v32  ;;  %7714 = vmatprep.subr.bf16.mxu1 %v8463_v24  ;;  %v7080_v32 = vld [vmem:[%s8554_s11 + $0x20] sm:$0xc]  ;;  %v5680_v1 = vrot.slane %v5679_v19, 4  ;;  %v7092_v6 = vrot.slane %v7084_v33, 10  ;;  %v5886_v28 = vrot.slane %v10256_v46, 6  ;;  %v7093_v43 = vrot.slane %v7085_v30, 10 }
 0x181   : > { %8002 = vmatprep.subr.bf16.mxu0 %v8464_v54  ;;  %v5688_v29 = vor.u32 %v5687_v2, %v5684_v0  ;;  %v7088_v63 = vrot.slane %v7080_v32, 10  ;;  %v5671_v36 = vsel %vm8814_vm8, %v5662_v17, %v5670_v62  ;;  %v5890_v41 = vrot.slane %v10268_v51, 6 }
 0x182   : > { %v5887_v5 = vsel %vm8918_vm11, %v7092_v6, %v5886_v28  ;;  %v5894_v57 = vrot.slane %v10314_v21, 6  ;;  %v5898_v61 = vrot.slane %v10337_v25, 6  ;;  %v7090_v13 = vrot.slane %v7082_v40, 10 }
 0x183   : > { %7715 = vmatpush3.bf16.msra.mxu1 %v8463_v24  ;;  %v5689_v35 = vsel %vm8814_vm8, %v5680_v1, %v5688_v29  ;;  %v5871_v46 = vsel %vm8918_vm11, %v7088_v63, %v5870_v9  ;;  %v5891_v51 = vsel %vm8918_vm11, %v7093_v43, %v5890_v41  ;;  %v5878_v4 = vrot.slane %v10198_v23, 6 }
 0x184   : > { %8003 = vmatpush3.bf16.msra.mxu0 %v8464_v54  ;;  %8036 = vmatprep.subr.bf16.mxu1 %v8465_v10  ;;  %v7071_v24 = vcombine.low %v5671_v36, %v5689_v35  ;;  %v5875_v54 = vsel %vm8918_vm11, %v7089_v47, %v5874_v53  ;;  %v7114_v60 = vcombine.low %v5887_v5, %v5891_v51  ;;  %v7091_v16 = vrot.slane %v7083_v49, 10 }
 0x185   : > { %8012 = vmatprep.subr.bf16.mxu0 %v8465_v10  ;;  %v7112_v39 = vcombine.low %v5871_v46, %v5875_v54  ;;  %v5882_v15 = vrot.slane %v10221_v48, 6  ;;  %v7095_v26 = vrot.slane %v7087_v52, 10  ;;  %v5879_v21 = vsel %vm8918_vm11, %v7090_v13, %v5878_v4 }
 0x186   : > { %7717 = vmatmul.mubr.bf16.vlgmr.msra.gmra.mrb[0].mxu1 %v10252_v59  ;;  %v6583_v59 = vcombine.low %v2801_v55, %v2815_v44 }
 0x187   : > { %8005 = vmatmul.mubr.bf16.vlgmr.msra.gmra.mrb[0].mxu0 %v7069_v3  ;;  %8044 = vmatpush3.bf16.msra.mxu1 %v8465_v10  ;;  %v5883_v23 = vsel %vm8918_vm11, %v7091_v16, %v5882_v15  ;;  %v5899_v48 = vsel %vm8918_vm11, %v7095_v26, %v5898_v61 }
 0x188   : > { %8013 = vmatpush3.bf16.msra.mxu0 %v8465_v10  ;;  %8037 = vmatprep.subr.bf16.mxu1 %v8466_v22  ;;  %v7094_v10 = vrot.slane %v7086_v20, 10  ;;  %v7113_v37 = vcombine.low %v5879_v21, %v5883_v23 }
 0x189   : > { %8014 = vmatprep.subr.bf16.mxu0 %v8466_v22  ;;  %7720 = vmatprep.mubr.bf16.mxu1 %v6582_v42 }
 0x18a   : > { %8008 = vmatprep.mubr.bf16.mxu0 %v7070_v11  ;;  %v5895_v25 = vsel %vm8918_vm11, %v7094_v10, %v5894_v57 }
 0x18b   : > { %8045 = vmatpush3.bf16.msra.mxu1 %v8466_v22  ;;  %v7115_v31 = vcombine.low %v5895_v25, %v5899_v48 }
 0x18c   : > { %8015 = vmatpush3.bf16.msra.mxu0 %v8466_v22  ;;  %8038 = vmatprep.subr.bf16.mxu1 %v8467_v45  ;;  %v7124_v22 = vld [vmem:[%s10427_s2] ss:$0 sm:$0xff] }
 0x18d   : > { %8016 = vmatprep.subr.bf16.mxu0 %v8467_v45 }
 0x18e   : > { %7721 = vmatmul.mubr.bf16.gmra.mrb[4].mxu1 %v6583_v59 }
 0x18f   : > { %8009 = vmatmul.mubr.bf16.gmra.mrb[4].mxu0 %v7071_v24  ;;  %8046 = vmatpush3.bf16.msra.mxu1 %v8467_v45 }
 0x190   : > { %8017 = vmatpush3.bf16.msra.mxu0 %v8467_v45  ;;  %8039 = vmatprep.subr.bf16.mxu1 %v8468_v27 }
 0x191   : > { %8018 = vmatprep.subr.bf16.mxu0 %v8468_v27  ;;  %8028 = vmatprep.mubr.bf16.mxu0 %v7112_v39 }
 0x192   : > { %8032 = vmatprep.mubr.bf16.mxu1 %v7114_v60 }
 0x193   : > { %8047 = vmatpush3.bf16.msra.mxu1 %v8468_v27 }
 0x194   : > { %8019 = vmatpush3.bf16.msra.mxu0 %v8468_v27  ;;  %8040 = vmatprep.subr.bf16.mxu1 %v8469_v34 }
 0x195   : > { %8020 = vmatprep.subr.bf16.mxu0 %v8469_v34 }
 0x197   : > { %8048 = vmatpush3.bf16.msra.mxu1 %v8469_v34 }
 0x198   : > { %8021 = vmatpush3.bf16.msra.mxu0 %v8469_v34  ;;  %8041 = vmatprep.subr.bf16.mxu1 %v8470_v38 }
 0x199   : > { %8022 = vmatprep.subr.bf16.mxu0 %v8470_v38 }
 0x19b   : > { %8049 = vmatpush3.bf16.msra.mxu1 %v8470_v38 }
 0x19c   : > { %8023 = vmatpush3.bf16.msra.mxu0 %v8470_v38  ;;  %8042 = vmatprep.subr.bf16.mxu1 %v8471_v7 }
 0x19d   : > { %8024 = vmatprep.subr.bf16.mxu0 %v8471_v7 }
 0x19f   : > { %8050 = vmatpush3.bf16.msra.mxu1 %v8471_v7 }
 0x1a0   : > { %8025 = vmatpush3.bf16.msra.mxu0 %v8471_v7  ;;  %8043 = vmatprep.subr.bf16.mxu1 %v8472_v56 }
 0x1a1   : > { %8026 = vmatprep.subr.bf16.mxu0 %v8472_v56 }
 0x1a3   : > { %8051 = vmatpush3.bf16.msra.mxu1 %v8472_v56 }
 0x1a4   : > { %8027 = vmatpush3.bf16.msra.mxu0 %v8472_v56 }
 0x1a6   : > { %8033 = vmatmul.mubr.bf16.vlgmr.msra.gmra.mrb[8].mxu1 %v7115_v31 }
 0x1a7   : > { %8029 = vmatmul.mubr.bf16.vlgmr.msra.gmra.mrb[0].mxu0 %v7113_v37 }
 0x259   : > { %v7718_v8 = vpop.f32.mrb[0].mxu1 }
 0x25a   : > { %v2931_v50 = vpop.f32.mrb[1].mxu1 }
 0x25b   : > { %v7719_v18 = vpop.f32.mrb[2].mxu1 }
 0x25c   : > { %v2934_v58 = vpop.f32.mrb[3].mxu1 }
 0x261   : > { %v7722_v3 = vpop.f32.mrb[4].mxu1 }
 0x262   : > { %v8010_v42 = vpop.f32.mrb[4].mxu0  ;;  %v2947_v2 = vpop.f32.mrb[5].mxu1 }
 0x263   : > { %v8056_v0 = vadd.f32 %v8010_v42, %v7722_v3  ;;  %v5821_v32 = vpop.f32.mrb[5].mxu0  ;;  %v7723_v14 = vpop.f32.mrb[6].mxu1 }
 0x264   : > { %v8058_v12 = vadd.f32 %v5821_v32, %v2947_v2  ;;  %v8011_v11 = vpop.f32.mrb[6].mxu0  ;;  %v2950_v62 = vpop.f32.mrb[7].mxu1 }
 0x265   : > { %v8060_v17 = vadd.f32 %v8011_v11, %v7723_v14  ;;  %v5824_v19 = vpop.f32.mrb[7].mxu0 }
 0x266   : > { %v8062_v33 = vadd.f32 %v5824_v19, %v2950_v62 }
 0x279   : > { %v8034_v55 = vpop.f32.mrb[8].mxu1 }
 0x27a   : > { %v8030_v30 = vpop.f32.mrb[0].mxu0  ;;  %v8057_v29 = vadd.f32 %v8056_v0, %v8034_v55  ;;  %v6031_v63 = vpop.f32.mrb[9].mxu1 }
 0x27b   : > { %v8052_v44 = vadd.f32 %v8030_v30, %v7718_v8  ;;  %v6015_v1 = vpop.f32.mrb[1].mxu0  ;;  %v8059_v47 = vadd.f32 %v8058_v12, %v6031_v63  ;;  %v8035_v6 = vpop.f32.mrb[10].mxu1 }
 0x27c   : > { %v8053_v9 = vadd.f32 %v6015_v1, %v2931_v50  ;;  %v8031_v53 = vpop.f32.mrb[2].mxu0  ;;  %v6067_v43 = vadd.f32 %v8057_v29, %v7124_v22  ;;  %v8061_v35 = vadd.f32 %v8060_v17, %v8035_v6  ;;  %v6034_v45 = vpop.f32.mrb[11].mxu1 }
 0x27d   : > { %v6063_v28 = vadd.f32 %v8052_v44, %v7124_v22  ;;  %v8054_v36 = vadd.f32 %v8031_v53, %v7719_v18  ;;  %v6018_v41 = vpop.f32.mrb[3].mxu0  ;;  %v6065_v46 = vadd.f32 %v8059_v47, %v7124_v22  ;;  %v8063_v54 = vadd.f32 %v8062_v33, %v6034_v45 }
 0x27e   : > { %v6061_v59 = vadd.f32 %v8053_v9, %v7124_v22  ;;  %v8055_v24 = vadd.f32 %v6018_v41, %v2934_v58  ;;  %v6068_v51 = vadd.f32 %v8061_v35, %v7124_v22  ;;  %v6075_v34 = vmax.f32 %v6067_v43, 0.0 }
 0x27f   : > { %v6064_v5 = vadd.f32 %v8054_v36, %v7124_v22  ;;  %v6066_v39 = vadd.f32 %v8063_v54, %v7124_v22  ;;  %v6071_v60 = vmax.f32 %v6063_v28, 0.0  ;;  %v6073_v49 = vmax.f32 %v6065_v46, 0.0 }
 0x280   : > { %v6062_v27 = vadd.f32 %v8055_v24, %v7124_v22  ;;  %v6076_v7 = vmax.f32 %v6068_v51, 0.0  ;;  %v6069_v40 = vmax.f32 %v6061_v59, 0.0 }
 0x281   : > { %v6072_v38 = vmax.f32 %v6064_v5, 0.0  ;;  %v6074_v52 = vmax.f32 %v6066_v39, 0.0 }
 0x282   : > { %v6070_v20 = vmax.f32 %v6062_v27, 0.0  ;;  %v6080_v61 = vmax.f32 %v6075_v34, %v6076_v7 }
 0x283   : > { %v6078_v57 = vmax.f32 %v6071_v60, %v6072_v38  ;;  %v6079_v4 = vmax.f32 %v6073_v49, %v6074_v52 }
 0x284   : > { %v6077_v13 = vmax.f32 %v6069_v40, %v6070_v20  ;;  %6084 = vst [vmem:[#allocation2 + $0x18] sm:$0xff] %v6080_v61 }
 0x285   : > { %6082 = vst [vmem:[#allocation2 + $0x8] sm:$0xff] %v6078_v57  ;;  %6083 = vst [vmem:[#allocation2 + $0x10] sm:$0xff] %v6079_v4 }
 0x286   : > { %6081 = vst [vmem:[#allocation2] sm:$0xff] %v6077_v13 }
 0x28c   : > { %v6087_v10 = vld [vmem:[#allocation2 + $0x10] ss:$2 sm:$0xff]  ;;  %v6091_v56 = vld [vmem:[#allocation2 + $0x11] ss:$2 sm:$0xff] }
 0x28d   : > { %v6085_v16 = vld [vmem:[#allocation2] ss:$2 sm:$0xff]  ;;  %v6089_v15 = vld [vmem:[#allocation2 + $0x1] ss:$2 sm:$0xff]  ;;  %v6093_v21 = vmax.f32 %v6087_v10, %v6091_v56 }
 0x28e   : > { %v6092_v26 = vmax.f32 %v6085_v16, %v6089_v15 }
 0x290   : > { %v7134_v23 = vpack.c.bf16 %v6093_v21, %v6092_v26 }
 0x292   : > { %7135 = vst [vmem:[%s170_s14] sm:$0xff] %v7134_v23  }
 0x293 PF: > { %s13_s12 = sadd.s32 1, %s8487_s12  }
 0x294   : > { %p10_p5 = scmp.ge.s32.totalorder %s13_s12, 4  }
 0x296   :  { %12 = sbr.rel (!%p10_p5) target bundleno = 1 (0x1), region = 93 }

</bundles_post_ra>
